<compile_context>
chip_gen: v7x
topology: tpu7x:2x2x1
jax: 0.10.0
libtpu: 0.0.40
codegen_flags: <defaults>
</compile_context>

<pallas_src>
import math
import functools
import numpy as np

import jax
import jax.numpy as jnp
from jax.experimental import pallas as pl
from jax.experimental.pallas import tpu as pltpu


_PARALLEL_1D = pltpu.CompilerParams(
    dimension_semantics=("parallel",),
    vmem_limit_bytes=32 * 1024 * 1024,
)


def _round_up(x, m):
    return ((x + m - 1) // m) * m


def _const_spec(arr):
    """Full-array block that is identical for every grid step (weights / biases)."""
    nd = arr.ndim
    return pl.BlockSpec(arr.shape, lambda b, _nd=nd: (0,) * _nd)


# ---------------------------------------------------------------------------
# Generic row-tiled matmul + bias (+ ReLU) kernel (used for the fused FPN)
# ---------------------------------------------------------------------------
def _matmul_bias_kernel(a_ref, b_ref, bias_ref, o_ref, *, act):
    acc = jnp.dot(a_ref[...], b_ref[...], preferred_element_type=jnp.float32)
    acc = acc + bias_ref[...]
    if act == "relu":
        acc = jnp.maximum(acc, 0.0)
    o_ref[...] = acc.astype(o_ref.dtype)


def matmul_bias(a, b, bias=None, act="none", block_rows=512):
    """(M, K) @ (K, N) + bias, optional ReLU; rows tiled on a 1-D 'parallel' grid.

    Ragged last row-block is handled by Pallas' masked writeback (no host pad/slice);
    for M > 256 the grid always has >= 2 steps so both v7x TensorCores get work.
    """
    M, K = a.shape
    K2, N = b.shape
    assert K == K2
    if bias is None:
        bias = jnp.zeros((N,), jnp.float32)
    bias2 = bias.reshape(1, N).astype(jnp.float32)
    if M <= 256:
        tm = M                                          # single full-row block
    else:
        tm = min(block_rows, _round_up(-(-M // 2), 8))  # >= 2 even-ish steps
    grid = pl.cdiv(M, tm)
    return pl.pallas_call(
        functools.partial(_matmul_bias_kernel, act=act),
        out_shape=jax.ShapeDtypeStruct((M, N), jnp.float32),
        grid=(grid,),
        in_specs=[pl.BlockSpec((tm, K), lambda i: (i, 0)),
                  pl.BlockSpec((K, N), lambda i: (0, 0)),
                  pl.BlockSpec((1, N), lambda i: (0, 0))],
        out_specs=pl.BlockSpec((tm, N), lambda i: (i, 0)),
        compiler_params=_PARALLEL_1D,
    )(a, b, bias2)


# ---------------------------------------------------------------------------
# Fused encoder stack: PE add + 2 encoder layers + crop head + anchors, one kernel
# ---------------------------------------------------------------------------
_PER_LAYER = 12


def _layernorm(x, g, b, eps):
    mu = jnp.mean(x, axis=-1, keepdims=True)
    var = jnp.mean(jnp.square(x - mu), axis=-1, keepdims=True)
    return (x - mu) * jax.lax.rsqrt(var + eps) * g + b


def _enc_core(x, p, *, nh, eps):
    """One post-norm nn.TransformerEncoderLayer (nhead=8, ReLU FFN), eval mode."""
    (winT, bin_, wout, bout, g1, b1, wf1T, bf1, wf2T, bf2, g2, b2) = p
    S, E = x.shape
    dh = E // nh
    scale = 1.0 / math.sqrt(dh)
    qkv = jnp.dot(x, winT, preferred_element_type=jnp.float32) + bin_      # (S, 3E)
    q = qkv[:, :E]
    k = qkv[:, E:2 * E]
    v = qkv[:, 2 * E:]
    # Per-head attention; the out-projection is accumulated per head (head @ Wout[:, h]^T),
    # which removes the 8-way lane concat of the context vector.
    acc = jnp.zeros((S, E), jnp.float32)
    for h in range(nh):                                                    # static unroll
        qh = q[:, h * dh:(h + 1) * dh]
        kh = k[:, h * dh:(h + 1) * dh]
        vh = v[:, h * dh:(h + 1) * dh]
        s = jax.lax.dot_general(qh, kh, (((1,), (1,)), ((), ())),
                                preferred_element_type=jnp.float32) * scale
        m = jnp.max(s, axis=-1, keepdims=True)
        e = jnp.exp(s - m)
        p_att = e / jnp.sum(e, axis=-1, keepdims=True)                     # exact softmax
        head = jnp.dot(p_att, vh, preferred_element_type=jnp.float32)      # (S, dh)
        wo_h = wout[:, h * dh:(h + 1) * dh]                                # (E, dh) lane slice
        acc = acc + jax.lax.dot_general(head, wo_h, (((1,), (1,)), ((), ())),
                                        preferred_element_type=jnp.float32)
    x1 = _layernorm(x + acc + bout, g1, b1, eps)
    # FFN (32 -> 2048 -> 32): the only big encoder matmuls; bf16 operands, f32 accumulate.
    hid = jnp.maximum(jnp.dot(x1.astype(jnp.bfloat16), wf1T,
                              preferred_element_type=jnp.float32) + bf1, 0.0)
    ff = jnp.dot(hid.astype(jnp.bfloat16), wf2T,
                 preferred_element_type=jnp.float32) + bf2
    return _layernorm(x1 + ff, g2, b2, eps)


def _encoder_stack_kernel(*refs, nh, eps, n_layers):
    x_ref, pe_ref = refs[0], refs[1]
    out_ref = refs[-1]
    h = x_ref[0] + pe_ref[...]                       # PositionalEncoding (dropout = identity)
    idx = 2
    for _ in range(n_layers):
        p = tuple(r[...] for r in refs[idx:idx + _PER_LAYER])
        idx += _PER_LAYER
        h = _enc_core(h, p, nh=nh, eps=eps)
    cropT, cropb, anch = refs[idx][...], refs[idx + 1][...], refs[idx + 2][...]
    # Crop head (Linear E->4) + anchor add fused so the lane-sparse (.,4) result is made once.
    out_ref[0] = jnp.dot(h, cropT, preferred_element_type=jnp.float32) + cropb + anch


def encoder_stack(f_seq, layers, crop_w, crop_b, pe, anchors, nh=8, eps=1e-5):
    B, S, E = f_seq.shape
    args = [f_seq.astype(jnp.float32), pe.astype(jnp.float32)]
    for lp in layers:
        F = lp["ff1_w"].shape[0]
        args += [
            lp["in_w"].T.astype(jnp.float32), lp["in_b"].reshape(1, 3 * E).astype(jnp.float32),
            lp["out_w"].astype(jnp.float32), lp["out_b"].reshape(1, E).astype(jnp.float32),
            lp["ln1_g"].reshape(1, E).astype(jnp.float32),
            lp["ln1_b"].reshape(1, E).astype(jnp.float32),
            lp["ff1_w"].T.astype(jnp.bfloat16), lp["ff1_b"].reshape(1, F).astype(jnp.float32),
            lp["ff2_w"].T.astype(jnp.bfloat16), lp["ff2_b"].reshape(1, E).astype(jnp.float32),
            lp["ln2_g"].reshape(1, E).astype(jnp.float32),
            lp["ln2_b"].reshape(1, E).astype(jnp.float32),
        ]
    args += [crop_w.T.astype(jnp.float32), crop_b.reshape(1, -1).astype(jnp.float32),
             anchors.astype(jnp.float32)]
    specs = [pl.BlockSpec((1, S, E), lambda b: (b, 0, 0))] + [_const_spec(a) for a in args[1:]]
    return pl.pallas_call(
        functools.partial(_encoder_stack_kernel, nh=nh, eps=eps, n_layers=len(layers)),
        out_shape=jax.ShapeDtypeStruct((B, S, 4), jnp.float32),
        grid=(B,),
        in_specs=specs,
        out_specs=pl.BlockSpec((1, S, 4), lambda b: (b, 0, 0)),
        compiler_params=_PARALLEL_1D,
    )(*args)


# ---------------------------------------------------------------------------
# Fused score + masked-softmax + crop selection kernel
# ---------------------------------------------------------------------------
def _score_select_kernel(f_ref, ws_ref, wc_ref, bconv_ref, wfc1_ref, bfc1_ref,
                         wfc2_ref, bfc2_ref, xreg_ref, mask_ref, r_ref, w_ref,
                         *, M, nslice):
    f = f_ref[0]                                                       # (S, C) bf16
    # Bilinear RoI/RoD sampling for all M crops in one matmul (rows ordered (r, m)).
    G = jnp.dot(ws_ref[0], f, preferred_element_type=jnp.float32)     # (nslice*M, C)
    # Re-pack as (M, nslice*C): the whole 5x5x2C score conv collapses into a single
    # K = nslice*C (= 1600) MXU matmul instead of 50 K=C dots.
    feat = jnp.concatenate([G[r * M:(r + 1) * M, :] for r in range(nslice)], axis=-1)
    conv = jnp.dot(feat.astype(jnp.bfloat16), wc_ref[...],
                   preferred_element_type=jnp.float32) + bconv_ref[...]
    h = jnp.maximum(conv, 0.0)
    h = jnp.maximum(jnp.dot(h, wfc1_ref[...], preferred_element_type=jnp.float32)
                    + bfc1_ref[...], 0.0)
    sc = jnp.dot(h, wfc2_ref[...], preferred_element_type=jnp.float32) + bfc2_ref[...]  # (M, 1)
    logits = sc * mask_ref[0]                   # scores * normalized subject mask (as in torch)
    mx = jnp.max(logits, axis=0, keepdims=True)
    e = jnp.exp(logits - mx)
    wgt = e / jnp.sum(e, axis=0, keepdims=True)                        # exact softmax (parity)
    w_ref[0] = wgt
    r_ref[0] = jnp.sum(xreg_ref[0] * wgt, axis=0, keepdims=True)       # (1, 4)


def _bilinear_weight(Y, X, FH, FW):
    """Bilinear-interpolation one-hot weights over the FH*FW feature positions (no gathers)."""
    valid = (Y > -1.0) & (Y < FH) & (X > -1.0) & (X < FW)
    y = jnp.clip(Y, 0.0, FH - 1.0)
    x = jnp.clip(X, 0.0, FW - 1.0)
    y0 = jnp.floor(y)
    x0 = jnp.floor(x)
    y1 = jnp.minimum(y0 + 1.0, FH - 1.0)
    x1 = jnp.minimum(x0 + 1.0, FW - 1.0)
    ly = y - y0
    lx = x - x0
    hy = 1.0 - ly
    hx = 1.0 - lx
    ry = jnp.arange(FH, dtype=jnp.float32)
    rx = jnp.arange(FW, dtype=jnp.float32)
    wy = ((ry == y0[..., None]).astype(jnp.float32) * hy[..., None]
          + (ry == y1[..., None]).astype(jnp.float32) * ly[..., None])      # (..., FH)
    wx = ((rx == x0[..., None]).astype(jnp.float32) * hx[..., None]
          + (rx == x1[..., None]).astype(jnp.float32) * lx[..., None])      # (..., FW)
    w = wy[..., :, None] * wx[..., None, :]                                  # (..., FH, FW)
    w = w * valid[..., None, None].astype(jnp.float32)
    return w.reshape(*Y.shape, FH * FW)


def build_roi_weights(boxes, FH, FW, out_size, spatial_scale, sr):
    # TODO(synk): torchvision's default sampling_ratio=-1 adapts per-RoI; a fixed sr=2 is used.
    x1 = boxes[..., 0] * spatial_scale
    y1 = boxes[..., 1] * spatial_scale
    x2 = boxes[..., 2] * spatial_scale
    y2 = boxes[..., 3] * spatial_scale
    roi_w = jnp.maximum(x2 - x1, 1.0)
    roi_h = jnp.maximum(y2 - y1, 1.0)
    bin_w = roi_w / out_size
    bin_h = roi_h / out_size
    ph = jnp.arange(out_size, dtype=jnp.float32)
    ii = jnp.arange(sr, dtype=jnp.float32)
    ys = (y1[..., None, None] + ph[:, None] * bin_h[..., None, None]
          + (ii[None, :] + 0.5) * bin_h[..., None, None] / sr)               # (B, M, out, sr)
    xs = (x1[..., None, None] + ph[:, None] * bin_w[..., None, None]
          + (ii[None, :] + 0.5) * bin_w[..., None, None] / sr)
    B, M = boxes.shape[:2]
    Y = jnp.broadcast_to(ys[:, :, :, None, :, None], (B, M, out_size, out_size, sr, sr))
    X = jnp.broadcast_to(xs[:, :, None, :, None, :], (B, M, out_size, out_size, sr, sr))
    w = _bilinear_weight(Y, X, FH, FW)                                       # (B,M,5,5,sr,sr,HW)
    w = w.mean(axis=(4, 5))                                                  # (B,M,5,5,HW)
    return w.reshape(B, M, out_size * out_size, FH * FW)


def build_rod_weights(boxes, FH, FW, out_size, spatial_scale):
    # TODO(synk): RoDAlignAvg is a custom CUDA op (GAIC); approximated as full-image bilinear
    # sampling on the output grid with samples that fall inside the RoI zeroed out.
    ph = jnp.arange(out_size, dtype=jnp.float32)
    Yg, Xg = jnp.meshgrid(ph * (FH / out_size), ph * (FW / out_size), indexing="ij")
    base = _bilinear_weight(Yg, Xg, FH, FW)                                  # (5,5,HW)
    x1 = boxes[..., 0] * spatial_scale
    y1 = boxes[..., 1] * spatial_scale
    x2 = boxes[..., 2] * spatial_scale
    y2 = boxes[..., 3] * spatial_scale
    inside = ((Xg[None, None] >= x1[..., None, None]) & (Xg[None, None] <= x2[..., None, None]) &
              (Yg[None, None] >= y1[..., None, None]) & (Yg[None, None] <= y2[..., None, None]))
    w = base[None, None] * (1.0 - inside[..., None].astype(jnp.float32))     # (B,M,5,5,HW)
    B, M = boxes.shape[:2]
    return w.reshape(B, M, out_size * out_size, FH * FW)


def build_sampling_weights(boxes, FH, FW, img_dim, out_size, sr):
    wroi = build_roi_weights(boxes, FH, FW, out_size, FW / float(img_dim), sr)
    wrod = build_rod_weights(boxes, FH, FW, out_size, 1.0 / 16.0)
    B, M = boxes.shape[:2]
    wcat = jnp.concatenate([wroi, wrod], axis=2)          # (B, M, 50, HW)
    wcat = jnp.transpose(wcat, (0, 2, 1, 3))              # (B, 50, M, HW)  -> rows ordered (r, m)
    return wcat.reshape(B, 2 * out_size * out_size * M, FH * FW)


def reorg_conv_weight(conv_w, C):
    """(128, 2C, 5, 5) -> (50*C, 128) flat matrix matching the (r, c) feature packing."""
    O = conv_w.shape[0]
    w = conv_w.reshape(O, 2 * C, 25)
    wroi = jnp.transpose(w[:, :C, :], (2, 1, 0)).reshape(25 * C, O)   # row index r*C + c
    wrod = jnp.transpose(w[:, C:, :], (2, 1, 0)).reshape(25 * C, O)
    return jnp.concatenate([wroi, wrod], axis=0)                      # (50*C, O)


def score_select(params, f_seq, x_reg, mask_norm, FH, FW, img_dim, out_size=5, sr=2):
    B, S, C = f_seq.shape
    M = x_reg.shape[1]
    nslice = 2 * out_size * out_size
    boxes = jnp.clip(x_reg, 0.0, 1.0) * float(img_dim)    # .detach().clamp(0,1) * img_size
    wsamp = build_sampling_weights(boxes, FH, FW, img_dim, out_size, sr)     # (B, 50*M, S)
    wc = reorg_conv_weight(params["score_conv_w"], C)                        # (50*C, 128)
    args = [f_seq.astype(jnp.bfloat16),
            wsamp.astype(jnp.bfloat16),                   # bf16 halves the VMEM/DMA footprint
            wc.astype(jnp.bfloat16),
            params["score_conv_b"].reshape(1, -1).astype(jnp.float32),
            params["score_fc1_w"].T.astype(jnp.float32),
            params["score_fc1_b"].reshape(1, -1).astype(jnp.float32),
            params["score_fc2_w"].T.astype(jnp.float32),
            params["score_fc2_b"].reshape(1, -1).astype(jnp.float32),
            x_reg.astype(jnp.float32),
            mask_norm.reshape(B, M, 1).astype(jnp.float32)]
    in_specs = [pl.BlockSpec((1, S, C), lambda b: (b, 0, 0)),
                pl.BlockSpec((1, nslice * M, S), lambda b: (b, 0, 0)),
                _const_spec(args[2]), _const_spec(args[3]), _const_spec(args[4]),
                _const_spec(args[5]), _const_spec(args[6]), _const_spec(args[7]),
                pl.BlockSpec((1, M, 4), lambda b: (b, 0, 0)),
                pl.BlockSpec((1, M, 1), lambda b: (b, 0, 0))]
    r, w = pl.pallas_call(
        functools.partial(_score_select_kernel, M=M, nslice=nslice),
        out_shape=(jax.ShapeDtypeStruct((B, 1, 4), jnp.float32),
                   jax.ShapeDtypeStruct((B, M, 1), jnp.float32)),
        grid=(B,),
        in_specs=in_specs,
        out_specs=(pl.BlockSpec((1, 1, 4), lambda b: (b, 0, 0)),
                   pl.BlockSpec((1, M, 1), lambda b: (b, 0, 0))),
        compiler_params=_PARALLEL_1D,
    )(*args)
    return r[:, 0, :], w[:, :, 0]


# ---------------------------------------------------------------------------
# Host-side constants (hoisted out of the traced forward) and small XLA glue
# ---------------------------------------------------------------------------
@functools.lru_cache(maxsize=None)
def _interp_matrix(n_out, n_in):
    # bilinear, align_corners=True
    W = np.zeros((n_out, n_in), np.float32)
    if n_out == 1:
        src = np.zeros((1,), np.float64)
    else:
        src = np.arange(n_out, dtype=np.float64) * (n_in - 1) / (n_out - 1)
    lo = np.clip(np.floor(src).astype(np.int64), 0, n_in - 1)
    hi = np.clip(lo + 1, 0, n_in - 1)
    frac = src - lo
    W[np.arange(n_out), lo] += (1.0 - frac)
    W[np.arange(n_out), hi] += frac
    return W


@functools.lru_cache(maxsize=None)
def _sinusoidal_pe_np(S, d):
    pos = np.arange(S, dtype=np.float64)[:, None]
    div = np.exp(np.arange(0, d, 2, dtype=np.float64) * (-math.log(10000.0) / d))
    pe = np.zeros((S, d), np.float32)
    pe[:, 0::2] = np.sin(pos * div)
    pe[:, 1::2] = np.cos(pos * div)
    return pe


@functools.lru_cache(maxsize=None)
def _anchor_table_np(FH, FW, img_dim):
    # anchor_stride == 16 -> num_anchors == 1, pixel_shuffle(upscale=1) is the identity.
    ii = np.arange(FH, dtype=np.float64)[:, None] * np.ones((1, FW))
    jj = np.ones((FH, 1)) * np.arange(FW, dtype=np.float64)[None, :]
    ax = (8.0 + 16.0 * ii) / img_dim
    ay = (8.0 + 16.0 * jj) / img_dim
    return np.stack([ax, ay, ax, ay], axis=-1).reshape(FH * FW, 4).astype(np.float32)


def interp_nhwc(x, out_hw):
    """F.interpolate(mode='bilinear', align_corners=True) on NHWC via two tiny contractions."""
    B, H, W, C = x.shape
    Ho, Wo = out_hw
    if (H, W) == (Ho, Wo):
        return x
    Wh = jnp.asarray(_interp_matrix(Ho, H))
    Ww = jnp.asarray(_interp_matrix(Wo, W))
    y = jnp.einsum("ph,bhwc->bpwc", Wh, x)
    y = jnp.einsum("qw,bpwc->bpqc", Ww, y)
    return y


def subject_mask(subject_xyxy, B, FH, FW):
    s = subject_xyxy.astype(jnp.int32)                       # matches torch .int() truncation
    sx1, sy1, sx2, sy2 = s[:, 0], s[:, 1], s[:, 2], s[:, 3]
    r0 = jnp.floor_divide(sy1, 16)
    r1 = -jnp.floor_divide(-sy2, 16)                         # ceil(sy2 / 16)
    c0 = jnp.floor_divide(sx1, 16)
    c1 = -jnp.floor_divide(-sx2, 16)
    rows = jnp.arange(FH)
    cols = jnp.arange(FW)
    rmask = (rows[None, :] >= r0[:, None]) & (rows[None, :] < r1[:, None])
    cmask = (cols[None, :] >= c0[:, None]) & (cols[None, :] < c1[:, None])
    m = (rmask[:, :, None] & cmask[:, None, :]).astype(jnp.float32).reshape(B, FH * FW)
    return m / (jnp.sum(m, axis=1, keepdims=True) + 0.0001)


# ---------------------------------------------------------------------------
# Full forward pass (debug=False branch)
# ---------------------------------------------------------------------------
def cropping_model_forward(params, x, subject_xyxy, img_dim):
    B = x.shape[0]
    x_nhwc = jnp.transpose(x, (0, 2, 3, 1)).astype(jnp.float32)

    # TODO(synk): the pretrained timm backbone (resnet18 features_only) cannot be loaded here;
    # it is replaced by a deterministic surrogate (avg-pool downsample + 1x1 conv + ReLU)
    # producing feature maps with resnet18's stage-2/3/4 shapes (128@/8, 256@/16, 512@/32).
    # These K=4 1x1 convs stay in plain XLA: they are far too small to feed the MXU and a
    # Pallas launch per stage would be pure overhead.
    def pool(t, k):
        Bs, H, W, C = t.shape
        return t.reshape(Bs, H // k, k, W // k, k, C).mean(axis=(2, 4))

    def backbone_stage(t, w, b):
        return jnp.maximum(jnp.einsum("bhwc,oc->bhwo", t, w) + b, 0.0)

    f3_raw = backbone_stage(pool(x_nhwc, 8), params["bb3_w"], params["bb3_b"])
    f4 = backbone_stage(pool(x_nhwc, 16), params["bb4_w"], params["bb4_b"])
    f5_raw = backbone_stage(pool(x_nhwc, 32), params["bb5_w"], params["bb5_b"])

    FH, FW = f4.shape[1], f4.shape[2]
    f3 = interp_nhwc(f3_raw, (FH, FW))
    f5 = interp_nhwc(f5_raw, (FH, FW))

    # Fused FPN: (f3u+f4u+f5u) + f_down composed into a single (B*HW, 896)@(896, 32) matmul
    # + ReLU, bf16 operands / f32 accumulate.
    w_unify = jnp.concatenate([params["f3u_w"], params["f4u_w"], params["f5u_w"]], axis=1)
    w_eff = jnp.dot(w_unify.T, params["fd_w"].T)                              # (896, 32)
    b_eff = (jnp.dot(params["f3u_b"] + params["f4u_b"] + params["f5u_b"], params["fd_w"].T)
             + params["fd_b"])
    xcat = jnp.concatenate([f3, f4, f5], axis=-1).reshape(B * FH * FW, -1)
    f_seq = matmul_bias(xcat.astype(jnp.bfloat16), w_eff.astype(jnp.bfloat16),
                        b_eff, act="relu").reshape(B, FH * FW, -1)            # (B, S, 32) f32

    S = FH * FW
    E = f_seq.shape[-1]
    pe = jnp.asarray(_sinusoidal_pe_np(S, E))
    anchors = jnp.asarray(_anchor_table_np(FH, FW, img_dim))

    # PE add + both transformer encoder layers + crop head + anchor add, one fused kernel.
    x_reg = encoder_stack(f_seq, params["enc_layers"], params["crop_w"], params["crop_b"],
                          pe, anchors)                                        # (B, S, 4)

    m_norm = subject_mask(subject_xyxy, B, FH, FW)                            # (B, S)
    r, w = score_select(params, f_seq, x_reg, m_norm, FH, FW, img_dim)        # (B, 4), (B, S)
    return r, x_reg, w.reshape(B, FH, FW)


# ---------------------------------------------------------------------------
# Deterministic parameter initialization (shapes mirror the PyTorch module, arch='resnet18')
# ---------------------------------------------------------------------------
def init_params(key, in_channels):
    f_dim, f_down, d_model, ffn = 256, 32, 32, 2048
    keys = iter(jax.random.split(key, 64))

    def rnd(shape, scale=0.05):
        return scale * jax.random.normal(next(keys), shape, jnp.float32)

    p = {}
    p["bb3_w"], p["bb3_b"] = rnd((128, in_channels)), rnd((128,), 0.01)
    p["bb4_w"], p["bb4_b"] = rnd((256, in_channels)), rnd((256,), 0.01)
    p["bb5_w"], p["bb5_b"] = rnd((512, in_channels)), rnd((512,), 0.01)
    p["f3u_w"], p["f3u_b"] = rnd((f_dim, 128)), rnd((f_dim,), 0.01)
    p["f4u_w"], p["f4u_b"] = rnd((f_dim, 256)), rnd((f_dim,), 0.01)
    p["f5u_w"], p["f5u_b"] = rnd((f_dim, 512)), rnd((f_dim,), 0.01)
    p["fd_w"], p["fd_b"] = rnd((f_down, f_dim)), rnd((f_down,), 0.01)
    layers = []
    for _ in range(2):
        layers.append(dict(
            in_w=rnd((3 * d_model, d_model)), in_b=rnd((3 * d_model,), 0.01),
            out_w=rnd((d_model, d_model)), out_b=rnd((d_model,), 0.01),
            ln1_g=jnp.ones((d_model,), jnp.float32), ln1_b=jnp.zeros((d_model,), jnp.float32),
            ff1_w=rnd((ffn, d_model)), ff1_b=rnd((ffn,), 0.01),
            ff2_w=rnd((d_model, ffn)), ff2_b=rnd((d_model,), 0.01),
            ln2_g=jnp.ones((d_model,), jnp.float32), ln2_b=jnp.zeros((d_model,), jnp.float32),
        ))
    p["enc_layers"] = layers
    p["crop_w"], p["crop_b"] = rnd((4, d_model)), rnd((4,), 0.01)
    p["score_conv_w"], p["score_conv_b"] = rnd((128, 2 * f_down, 5, 5)), rnd((128,), 0.01)
    p["score_fc1_w"], p["score_fc1_b"] = rnd((128, 128)), rnd((128,), 0.01)
    p["score_fc2_w"], p["score_fc2_b"] = rnd((1, 128)), rnd((1,), 0.01)
    return p


if __name__ == "__main__":
    in_channels = 4          # image + subject-mask channel (gencrop)
    img_dim = 64             # feature map is (img_dim // 16)^2 = 16 candidate crops
    B = 2

    key = jax.random.PRNGKey(0)
    kp, kx = jax.random.split(key)
    params = init_params(kp, in_channels)
    x = jax.random.normal(kx, (B, in_channels, img_dim, img_dim), jnp.float32)
    subject_xyxy = jnp.asarray([[8.0, 8.0, 40.0, 48.0],
                                [16.0, 4.0, 56.0, 36.0]], jnp.float32)

    fwd = jax.jit(functools.partial(cropping_model_forward, img_dim=img_dim))
    r, x_reg, w = fwd(params, x, subject_xyxy)
    (r, x_reg, w) = jax.block_until_ready((r, x_reg, w))

    M = (img_dim // 16) ** 2
    assert r.shape == (B, 4)
    assert x_reg.shape == (B, M, 4)
    assert w.shape == (B, img_dim // 16, img_dim // 16)
    assert bool(jnp.all(jnp.isfinite(r))) and bool(jnp.all(jnp.isfinite(w)))
    assert bool(jnp.all(jnp.isfinite(x_reg)))
    print("KERNEL_OK")
</pallas_src>

<mosaic_0001>
module attributes {stable_mosaic.version = 11 : i64} {
  func.func @_matmul_bias_kernel(%arg0: i32, %arg1: memref<32x896xbf16, #tpu.memory_space<vmem>>, %arg2: memref<896x32xbf16, #tpu.memory_space<vmem>>, %arg3: memref<1x32xf32, #tpu.memory_space<vmem>>, %arg4: memref<32x32xf32, #tpu.memory_space<vmem>>) attributes {dimension_semantics = [#tpu.dimension_semantics<parallel>], iteration_bounds = array<i64: 1>, scalar_prefetch = 0 : i64, scratch_operands = 0 : i64, tpu.core_type = #tpu.core_type<tc>, window_params = [{transform_indices = @transform_0, window_bounds = array<i64: 32, 896>}, {pipeline_mode = #tpu.pipeline_mode<synchronous>, transform_indices = @transform_1, window_bounds = array<i64: 896, 32>}, {pipeline_mode = #tpu.pipeline_mode<synchronous>, transform_indices = @transform_2, window_bounds = array<i64: 1, 32>}, {transform_indices = @transform_3, window_bounds = array<i64: 32, 32>}]} {
    %c0 = arith.constant 0 : index
    %c0_0 = arith.constant 0 : index
    %0 = vector.load %arg1[%c0, %c0_0] : memref<32x896xbf16, #tpu.memory_space<vmem>>, vector<32x896xbf16>
    %c0_1 = arith.constant 0 : index
    %c0_2 = arith.constant 0 : index
    %1 = vector.load %arg2[%c0_1, %c0_2] : memref<896x32xbf16, #tpu.memory_space<vmem>>, vector<896x32xbf16>
    %cst = arith.constant dense<0.000000e+00> : vector<32x32xf32>
    %2 = tpu.matmul %0, %1, %cst {dimension_numbers = #tpu.dot_dimension_numbers<[1], [0], [0], [1], [0, 0, 1, 1], [], []>} : vector<32x896xbf16>, vector<896x32xbf16>, vector<32x32xf32> -> vector<32x32xf32>
    %c0_3 = arith.constant 0 : index
    %c0_4 = arith.constant 0 : index
    %3 = vector.load %arg3[%c0_3, %c0_4] : memref<1x32xf32, #tpu.memory_space<vmem>>, vector<1x32xf32>
    %4 = vector.broadcast %3 : vector<1x32xf32> to vector<32x32xf32>
    %5 = arith.addf %2, %4 : vector<32x32xf32>
    %cst_5 = arith.constant 0.000000e+00 : f32
    %6 = vector.broadcast %cst_5 : f32 to vector<32x32xf32>
    %7 = arith.maximumf %5, %6 : vector<32x32xf32>
    %c0_6 = arith.constant 0 : index
    %c0_7 = arith.constant 0 : index
    %8 = vector.load %arg4[%c0_6, %c0_7] : memref<32x32xf32, #tpu.memory_space<vmem>>, vector<32x32xf32>
    tpu.vector_store %arg4[%c0_6, %c0_7], %7 {strides = array<i32>} : memref<32x32xf32, #tpu.memory_space<vmem>>, vector<32x32xf32>,
    return
  }
  func.func @transform_0(%arg0: i32) -> (i32, i32) {
    %c0_i32 = arith.constant 0 : i32
    %c0_i32_0 = arith.constant 0 : i32
    return %arg0, %c0_i32 : i32, i32
  }
  func.func @transform_1(%arg0: i32) -> (i32, i32) {
    %c0_i32 = arith.constant 0 : i32
    %c0_i32_0 = arith.constant 0 : i32
    %c0_i32_1 = arith.constant 0 : i32
    return %c0_i32, %c0_i32_0 : i32, i32
  }
  func.func @transform_2(%arg0: i32) -> (i32, i32) {
    %c0_i32 = arith.constant 0 : i32
    %c0_i32_0 = arith.constant 0 : i32
    %c0_i32_1 = arith.constant 0 : i32
    return %c0_i32, %c0_i32_0 : i32, i32
  }
  func.func @transform_3(%arg0: i32) -> (i32, i32) {
    %c0_i32 = arith.constant 0 : i32
    %c0_i32_0 = arith.constant 0 : i32
    return %arg0, %c0_i32 : i32, i32
  }
}

module attributes {stable_mosaic.version = 11 : i64} {
  func.func @_encoder_stack_kernel(%arg0: i32, %arg1: memref<1x16x32xf32, #tpu.memory_space<vmem>>, %arg2: memref<16x32xf32, #tpu.memory_space<vmem>>, %arg3: memref<32x96xf32, #tpu.memory_space<vmem>>, %arg4: memref<1x96xf32, #tpu.memory_space<vmem>>, %arg5: memref<32x32xf32, #tpu.memory_space<vmem>>, %arg6: memref<1x32xf32, #tpu.memory_space<vmem>>, %arg7: memref<1x32xf32, #tpu.memory_space<vmem>>, %arg8: memref<1x32xf32, #tpu.memory_space<vmem>>, %arg9: memref<32x2048xbf16, #tpu.memory_space<vmem>>, %arg10: memref<1x2048xf32, #tpu.memory_space<vmem>>, %arg11: memref<2048x32xbf16, #tpu.memory_space<vmem>>, %arg12: memref<1x32xf32, #tpu.memory_space<vmem>>, %arg13: memref<1x32xf32, #tpu.memory_space<vmem>>, %arg14: memref<1x32xf32, #tpu.memory_space<vmem>>, %arg15: memref<32x96xf32, #tpu.memory_space<vmem>>, %arg16: memref<1x96xf32, #tpu.memory_space<vmem>>, %arg17: memref<32x32xf32, #tpu.memory_space<vmem>>, %arg18: memref<1x32xf32, #tpu.memory_space<vmem>>, %arg19: memref<1x32xf32, #tpu.memory_space<vmem>>, %arg20: memref<1x32xf32, #tpu.memory_space<vmem>>, %arg21: memref<32x2048xbf16, #tpu.memory_space<vmem>>, %arg22: memref<1x2048xf32, #tpu.memory_space<vmem>>, %arg23: memref<2048x32xbf16, #tpu.memory_space<vmem>>, %arg24: memref<1x32xf32, #tpu.memory_space<vmem>>, %arg25: memref<1x32xf32, #tpu.memory_space<vmem>>, %arg26: memref<1x32xf32, #tpu.memory_space<vmem>>, %arg27: memref<32x4xf32, #tpu.memory_space<vmem>>, %arg28: memref<1x4xf32, #tpu.memory_space<vmem>>, %arg29: memref<16x4xf32, #tpu.memory_space<vmem>>, %arg30: memref<1x16x4xf32, #tpu.memory_space<vmem>>) attributes {dimension_semantics = [#tpu.dimension_semantics<parallel>], iteration_bounds = array<i64: 2>, scalar_prefetch = 0 : i64, scratch_operands = 0 : i64, tpu.core_type = #tpu.core_type<tc>, window_params = [{transform_indices = @transform_0, window_bounds = array<i64: 1, 16, 32>}, {pipeline_mode = #tpu.pipeline_mode<synchronous>, transform_indices = @transform_1, window_bounds = array<i64: 16, 32>}, {pipeline_mode = #tpu.pipeline_mode<synchronous>, transform_indices = @transform_2, window_bounds = array<i64: 32, 96>}, {pipeline_mode = #tpu.pipeline_mode<synchronous>, transform_indices = @transform_3, window_bounds = array<i64: 1, 96>}, {pipeline_mode = #tpu.pipeline_mode<synchronous>, transform_indices = @transform_4, window_bounds = array<i64: 32, 32>}, {pipeline_mode = #tpu.pipeline_mode<synchronous>, transform_indices = @transform_5, window_bounds = array<i64: 1, 32>}, {pipeline_mode = #tpu.pipeline_mode<synchronous>, transform_indices = @transform_6, window_bounds = array<i64: 1, 32>}, {pipeline_mode = #tpu.pipeline_mode<synchronous>, transform_indices = @transform_7, window_bounds = array<i64: 1, 32>}, {pipeline_mode = #tpu.pipeline_mode<synchronous>, transform_indices = @transform_8, window_bounds = array<i64: 32, 2048>}, {pipeline_mode = #tpu.pipeline_mode<synchronous>, transform_indices = @transform_9, window_bounds = array<i64: 1, 2048>}, {pipeline_mode = #tpu.pipeline_mode<synchronous>, transform_indices = @transform_10, window_bounds = array<i64: 2048, 32>}, {pipeline_mode = #tpu.pipeline_mode<synchronous>, transform_indices = @transform_11, window_bounds = array<i64: 1, 32>}, {pipeline_mode = #tpu.pipeline_mode<synchronous>, transform_indices = @transform_12, window_bounds = array<i64: 1, 32>}, {pipeline_mode = #tpu.pipeline_mode<synchronous>, transform_indices = @transform_13, window_bounds = array<i64: 1, 32>}, {pipeline_mode = #tpu.pipeline_mode<synchronous>, transform_indices = @transform_14, window_bounds = array<i64: 32, 96>}, {pipeline_mode = #tpu.pipeline_mode<synchronous>, transform_indices = @transform_15, window_bounds = array<i64: 1, 96>}, {pipeline_mode = #tpu.pipeline_mode<synchronous>, transform_indices = @transform_16, window_bounds = array<i64: 32, 32>}, {pipeline_mode = #tpu.pipeline_mode<synchronous>, transform_indices = @transform_17, window_bounds = array<i64: 1, 32>}, {pipeline_mode = #tpu.pipeline_mode<synchronous>, transform_indices = @transform_18, window_bounds = array<i64: 1, 32>}, {pipeline_mode = #tpu.pipeline_mode<synchronous>, transform_indices = @transform_19, window_bounds = array<i64: 1, 32>}, {pipeline_mode = #tpu.pipeline_mode<synchronous>, transform_indices = @transform_20, window_bounds = array<i64: 32, 2048>}, {pipeline_mode = #tpu.pipeline_mode<synchronous>, transform_indices = @transform_21, window_bounds = array<i64: 1, 2048>}, {pipeline_mode = #tpu.pipeline_mode<synchronous>, transform_indices = @transform_22, window_bounds = array<i64: 2048, 32>}, {pipeline_mode = #tpu.pipeline_mode<synchronous>, transform_indices = @transform_23, window_bounds = array<i64: 1, 32>}, {pipeline_mode = #tpu.pipeline_mode<synchronous>, transform_indices = @transform_24, window_bounds = array<i64: 1, 32>}, {pipeline_mode = #tpu.pipeline_mode<synchronous>, transform_indices = @transform_25, window_bounds = array<i64: 1, 32>}, {pipeline_mode = #tpu.pipeline_mode<synchronous>, transform_indices = @transform_26, window_bounds = array<i64: 32, 4>}, {pipeline_mode = #tpu.pipeline_mode<synchronous>, transform_indices = @transform_27, window_bounds = array<i64: 1, 4>}, {pipeline_mode = #tpu.pipeline_mode<synchronous>, transform_indices = @transform_28, window_bounds = array<i64: 16, 4>}, {transform_indices = @transform_29, window_bounds = array<i64: 1, 16, 4>}]} {
    %c0 = arith.constant 0 : index
    %c0_0 = arith.constant 0 : index
    %c0_1 = arith.constant 0 : index
    %0 = vector.load %arg1[%c0, %c0_0, %c0_1] : memref<1x16x32xf32, #tpu.memory_space<vmem>>, vector<1x16x32xf32>
    %1 = vector.shape_cast %0 : vector<1x16x32xf32> to vector<16x32xf32>
    %c0_2 = arith.constant 0 : index
    %c0_3 = arith.constant 0 : index
    %2 = vector.load %arg2[%c0_2, %c0_3] : memref<16x32xf32, #tpu.memory_space<vmem>>, vector<16x32xf32>
    %3 = arith.addf %1, %2 : vector<16x32xf32>
    %c0_4 = arith.constant 0 : index
    %c0_5 = arith.constant 0 : index
    %4 = vector.load %arg3[%c0_4, %c0_5] : memref<32x96xf32, #tpu.memory_space<vmem>>, vector<32x96xf32>
    %c0_6 = arith.constant 0 : index
    %c0_7 = arith.constant 0 : index
    %5 = vector.load %arg4[%c0_6, %c0_7] : memref<1x96xf32, #tpu.memory_space<vmem>>, vector<1x96xf32>
    %c0_8 = arith.constant 0 : index
    %c0_9 = arith.constant 0 : index
    %6 = vector.load %arg5[%c0_8, %c0_9] : memref<32x32xf32, #tpu.memory_space<vmem>>, vector<32x32xf32>
    %c0_10 = arith.constant 0 : index
    %c0_11 = arith.constant 0 : index
    %7 = vector.load %arg6[%c0_10, %c0_11] : memref<1x32xf32, #tpu.memory_space<vmem>>, vector<1x32xf32>
    %c0_12 = arith.constant 0 : index
    %c0_13 = arith.constant 0 : index
    %8 = vector.load %arg7[%c0_12, %c0_13] : memref<1x32xf32, #tpu.memory_space<vmem>>, vector<1x32xf32>
    %c0_14 = arith.constant 0 : index
    %c0_15 = arith.constant 0 : index
    %9 = vector.load %arg8[%c0_14, %c0_15] : memref<1x32xf32, #tpu.memory_space<vmem>>, vector<1x32xf32>
    %c0_16 = arith.constant 0 : index
    %c0_17 = arith.constant 0 : index
    %10 = vector.load %arg9[%c0_16, %c0_17] : memref<32x2048xbf16, #tpu.memory_space<vmem>>, vector<32x2048xbf16>
    %c0_18 = arith.constant 0 : index
    %c0_19 = arith.constant 0 : index
    %11 = vector.load %arg10[%c0_18, %c0_19] : memref<1x2048xf32, #tpu.memory_space<vmem>>, vector<1x2048xf32>
    %c0_20 = arith.constant 0 : index
    %c0_21 = arith.constant 0 : index
    %12 = vector.load %arg11[%c0_20, %c0_21] : memref<2048x32xbf16, #tpu.memory_space<vmem>>, vector<2048x32xbf16>
    %c0_22 = arith.constant 0 : index
    %c0_23 = arith.constant 0 : index
    %13 = vector.load %arg12[%c0_22, %c0_23] : memref<1x32xf32, #tpu.memory_space<vmem>>, vector<1x32xf32>
    %c0_24 = arith.constant 0 : index
    %c0_25 = arith.constant 0 : index
    %14 = vector.load %arg13[%c0_24, %c0_25] : memref<1x32xf32, #tpu.memory_space<vmem>>, vector<1x32xf32>
    %c0_26 = arith.constant 0 : index
    %c0_27 = arith.constant 0 : index
    %15 = vector.load %arg14[%c0_26, %c0_27] : memref<1x32xf32, #tpu.memory_space<vmem>>, vector<1x32xf32>
    %cst = arith.constant dense<0.000000e+00> : vector<16x96xf32>
    %16 = tpu.matmul %3, %4, %cst {dimension_numbers = #tpu.dot_dimension_numbers<[1], [0], [0], [1], [0, 0, 1, 1], [], []>} : vector<16x32xf32>, vector<32x96xf32>, vector<16x96xf32> -> vector<16x96xf32>
    %17 = vector.broadcast %5 : vector<1x96xf32> to vector<16x96xf32>
    %18 = arith.addf %16, %17 : vector<16x96xf32>
    %19 = vector.extract_strided_slice %18 {offsets = [0, 0], sizes = [16, 32], strides = [1, 1]} : vector<16x96xf32> to vector<16x32xf32>
    %20 = vector.extract_strided_slice %18 {offsets = [0, 32], sizes = [16, 32], strides = [1, 1]} : vector<16x96xf32> to vector<16x32xf32>
    %21 = vector.extract_strided_slice %18 {offsets = [0, 64], sizes = [16, 32], strides = [1, 1]} : vector<16x96xf32> to vector<16x32xf32>
    %cst_28 = arith.constant 0.000000e+00 : f32
    %22 = vector.broadcast %cst_28 : f32 to vector<16x32xf32>
    %23 = vector.extract_strided_slice %19 {offsets = [0, 0], sizes = [16, 4], strides = [1, 1]} : vector<16x32xf32> to vector<16x4xf32>
    %24 = vector.extract_strided_slice %20 {offsets = [0, 0], sizes = [16, 4], strides = [1, 1]} : vector<16x32xf32> to vector<16x4xf32>
    %25 = vector.extract_strided_slice %21 {offsets = [0, 0], sizes = [16, 4], strides = [1, 1]} : vector<16x32xf32> to vector<16x4xf32>
    %cst_29 = arith.constant dense<0.000000e+00> : vector<16x16xf32>
    %26 = tpu.matmul %23, %24, %cst_29 {dimension_numbers = #tpu.dot_dimension_numbers<[1], [1], [0], [0], [0, 0, 1, 0], [], []>} : vector<16x4xf32>, vector<16x4xf32>, vector<16x16xf32> -> vector<16x16xf32>
    %cst_30 = arith.constant 5.000000e-01 : f32
    %27 = vector.broadcast %cst_30 : f32 to vector<16x16xf32>
    %28 = arith.mulf %26, %27 : vector<16x16xf32>
    %cst_31 = arith.constant dense<0xFF800000> : vector<16xf32>
    %29 = vector.multi_reduction <maximumf>, %28, %cst_31 [1] : vector<16x16xf32> to vector<16xf32>
    %30 = vector.shape_cast %29 : vector<16xf32> to vector<16x1xf32>
    %31 = vector.broadcast %30 : vector<16x1xf32> to vector<16x16xf32>
    %32 = arith.subf %28, %31 : vector<16x16xf32>
    %33 = math.exp %32 : vector<16x16xf32>
    %cst_32 = arith.constant dense<0.000000e+00> : vector<16xf32>
    %34 = vector.multi_reduction <add>, %33, %cst_32 [1] : vector<16x16xf32> to vector<16xf32>
    %35 = vector.shape_cast %34 : vector<16xf32> to vector<16x1xf32>
    %36 = vector.broadcast %35 : vector<16x1xf32> to vector<16x16xf32>
    %37 = arith.divf %33, %36 : vector<16x16xf32>
    %cst_33 = arith.constant dense<0.000000e+00> : vector<16x4xf32>
    %38 = tpu.matmul %37, %25, %cst_33 {dimension_numbers = #tpu.dot_dimension_numbers<[1], [0], [0], [1], [0, 0, 1, 1], [], []>} : vector<16x16xf32>, vector<16x4xf32>, vector<16x4xf32> -> vector<16x4xf32>
    %39 = vector.extract_strided_slice %6 {offsets = [0, 0], sizes = [32, 4], strides = [1, 1]} : vector<32x32xf32> to vector<32x4xf32>
    %cst_34 = arith.constant dense<0.000000e+00> : vector<16x32xf32>
    %40 = tpu.matmul %38, %39, %cst_34 {dimension_numbers = #tpu.dot_dimension_numbers<[1], [1], [0], [0], [0, 0, 1, 0], [], []>} : vector<16x4xf32>, vector<32x4xf32>, vector<16x32xf32> -> vector<16x32xf32>
    %41 = arith.addf %22, %40 : vector<16x32xf32>
    %42 = vector.extract_strided_slice %19 {offsets = [0, 4], sizes = [16, 4], strides = [1, 1]} : vector<16x32xf32> to vector<16x4xf32>
    %43 = vector.extract_strided_slice %20 {offsets = [0, 4], sizes = [16, 4], strides = [1, 1]} : vector<16x32xf32> to vector<16x4xf32>
    %44 = vector.extract_strided_slice %21 {offsets = [0, 4], sizes = [16, 4], strides = [1, 1]} : vector<16x32xf32> to vector<16x4xf32>
    %cst_35 = arith.constant dense<0.000000e+00> : vector<16x16xf32>
    %45 = tpu.matmul %42, %43, %cst_35 {dimension_numbers = #tpu.dot_dimension_numbers<[1], [1], [0], [0], [0, 0, 1, 0], [], []>} : vector<16x4xf32>, vector<16x4xf32>, vector<16x16xf32> -> vector<16x16xf32>
    %cst_36 = arith.constant 5.000000e-01 : f32
    %46 = vector.broadcast %cst_36 : f32 to vector<16x16xf32>
    %47 = arith.mulf %45, %46 : vector<16x16xf32>
    %cst_37 = arith.constant dense<0xFF800000> : vector<16xf32>
    %48 = vector.multi_reduction <maximumf>, %47, %cst_37 [1] : vector<16x16xf32> to vector<16xf32>
    %49 = vector.shape_cast %48 : vector<16xf32> to vector<16x1xf32>
    %50 = vector.broadcast %49 : vector<16x1xf32> to vector<16x16xf32>
    %51 = arith.subf %47, %50 : vector<16x16xf32>
    %52 = math.exp %51 : vector<16x16xf32>
    %cst_38 = arith.constant dense<0.000000e+00> : vector<16xf32>
    %53 = vector.multi_reduction <add>, %52, %cst_38 [1] : vector<16x16xf32> to vector<16xf32>
    %54 = vector.shape_cast %53 : vector<16xf32> to vector<16x1xf32>
    %55 = vector.broadcast %54 : vector<16x1xf32> to vector<16x16xf32>
    %56 = arith.divf %52, %55 : vector<16x16xf32>
    %cst_39 = arith.constant dense<0.000000e+00> : vector<16x4xf32>
    %57 = tpu.matmul %56, %44, %cst_39 {dimension_numbers = #tpu.dot_dimension_numbers<[1], [0], [0], [1], [0, 0, 1, 1], [], []>} : vector<16x16xf32>, vector<16x4xf32>, vector<16x4xf32> -> vector<16x4xf32>
    %58 = vector.extract_strided_slice %6 {offsets = [0, 4], sizes = [32, 4], strides = [1, 1]} : vector<32x32xf32> to vector<32x4xf32>
    %cst_40 = arith.constant dense<0.000000e+00> : vector<16x32xf32>
    %59 = tpu.matmul %57, %58, %cst_40 {dimension_numbers = #tpu.dot_dimension_numbers<[1], [1], [0], [0], [0, 0, 1, 0], [], []>} : vector<16x4xf32>, vector<32x4xf32>, vector<16x32xf32> -> vector<16x32xf32>
    %60 = arith.addf %41, %59 : vector<16x32xf32>
    %61 = vector.extract_strided_slice %19 {offsets = [0, 8], sizes = [16, 4], strides = [1, 1]} : vector<16x32xf32> to vector<16x4xf32>
    %62 = vector.extract_strided_slice %20 {offsets = [0, 8], sizes = [16, 4], strides = [1, 1]} : vector<16x32xf32> to vector<16x4xf32>
    %63 = vector.extract_strided_slice %21 {offsets = [0, 8], sizes = [16, 4], strides = [1, 1]} : vector<16x32xf32> to vector<16x4xf32>
    %cst_41 = arith.constant dense<0.000000e+00> : vector<16x16xf32>
    %64 = tpu.matmul %61, %62, %cst_41 {dimension_numbers = #tpu.dot_dimension_numbers<[1], [1], [0], [0], [0, 0, 1, 0], [], []>} : vector<16x4xf32>, vector<16x4xf32>, vector<16x16xf32> -> vector<16x16xf32>
    %cst_42 = arith.constant 5.000000e-01 : f32
    %65 = vector.broadcast %cst_42 : f32 to vector<16x16xf32>
    %66 = arith.mulf %64, %65 : vector<16x16xf32>
    %cst_43 = arith.constant dense<0xFF800000> : vector<16xf32>
    %67 = vector.multi_reduction <maximumf>, %66, %cst_43 [1] : vector<16x16xf32> to vector<16xf32>
    %68 = vector.shape_cast %67 : vector<16xf32> to vector<16x1xf32>
    %69 = vector.broadcast %68 : vector<16x1xf32> to vector<16x16xf32>
    %70 = arith.subf %66, %69 : vector<16x16xf32>
    %71 = math.exp %70 : vector<16x16xf32>
    %cst_44 = arith.constant dense<0.000000e+00> : vector<16xf32>
    %72 = vector.multi_reduction <add>, %71, %cst_44 [1] : vector<16x16xf32> to vector<16xf32>
    %73 = vector.shape_cast %72 : vector<16xf32> to vector<16x1xf32>
    %74 = vector.broadcast %73 : vector<16x1xf32> to vector<16x16xf32>
    %75 = arith.divf %71, %74 : vector<16x16xf32>
    %cst_45 = arith.constant dense<0.000000e+00> : vector<16x4xf32>
    %76 = tpu.matmul %75, %63, %cst_45 {dimension_numbers = #tpu.dot_dimension_numbers<[1], [0], [0], [1], [0, 0, 1, 1], [], []>} : vector<16x16xf32>, vector<16x4xf32>, vector<16x4xf32> -> vector<16x4xf32>
    %77 = vector.extract_strided_slice %6 {offsets = [0, 8], sizes = [32, 4], strides = [1, 1]} : vector<32x32xf32> to vector<32x4xf32>
    %cst_46 = arith.constant dense<0.000000e+00> : vector<16x32xf32>
    %78 = tpu.matmul %76, %77, %cst_46 {dimension_numbers = #tpu.dot_dimension_numbers<[1], [1], [0], [0], [0, 0, 1, 0], [], []>} : vector<16x4xf32>, vector<32x4xf32>, vector<16x32xf32> -> vector<16x32xf32>
    %79 = arith.addf %60, %78 : vector<16x32xf32>
    %80 = vector.extract_strided_slice %19 {offsets = [0, 12], sizes = [16, 4], strides = [1, 1]} : vector<16x32xf32> to vector<16x4xf32>
    %81 = vector.extract_strided_slice %20 {offsets = [0, 12], sizes = [16, 4], strides = [1, 1]} : vector<16x32xf32> to vector<16x4xf32>
    %82 = vector.extract_strided_slice %21 {offsets = [0, 12], sizes = [16, 4], strides = [1, 1]} : vector<16x32xf32> to vector<16x4xf32>
    %cst_47 = arith.constant dense<0.000000e+00> : vector<16x16xf32>
    %83 = tpu.matmul %80, %81, %cst_47 {dimension_numbers = #tpu.dot_dimension_numbers<[1], [1], [0], [0], [0, 0, 1, 0], [], []>} : vector<16x4xf32>, vector<16x4xf32>, vector<16x16xf32> -> vector<16x16xf32>
    %cst_48 = arith.constant 5.000000e-01 : f32
    %84 = vector.broadcast %cst_48 : f32 to vector<16x16xf32>
    %85 = arith.mulf %83, %84 : vector<16x16xf32>
    %cst_49 = arith.constant dense<0xFF800000> : vector<16xf32>
    %86 = vector.multi_reduction <maximumf>, %85, %cst_49 [1] : vector<16x16xf32> to vector<16xf32>
    %87 = vector.shape_cast %86 : vector<16xf32> to vector<16x1xf32>
    %88 = vector.broadcast %87 : vector<16x1xf32> to vector<16x16xf32>
    %89 = arith.subf %85, %88 : vector<16x16xf32>
    %90 = math.exp %89 : vector<16x16xf32>
    %cst_50 = arith.constant dense<0.000000e+00> : vector<16xf32>
    %91 = vector.multi_reduction <add>, %90, %cst_50 [1] : vector<16x16xf32> to vector<16xf32>
    %92 = vector.shape_cast %91 : vector<16xf32> to vector<16x1xf32>
    %93 = vector.broadcast %92 : vector<16x1xf32> to vector<16x16xf32>
    %94 = arith.divf %90, %93 : vector<16x16xf32>
    %cst_51 = arith.constant dense<0.000000e+00> : vector<16x4xf32>
    %95 = tpu.matmul %94, %82, %cst_51 {dimension_numbers = #tpu.dot_dimension_numbers<[1], [0], [0], [1], [0, 0, 1, 1], [], []>} : vector<16x16xf32>, vector<16x4xf32>, vector<16x4xf32> -> vector<16x4xf32>
    %96 = vector.extract_strided_slice %6 {offsets = [0, 12], sizes = [32, 4], strides = [1, 1]} : vector<32x32xf32> to vector<32x4xf32>
    %cst_52 = arith.constant dense<0.000000e+00> : vector<16x32xf32>
    %97 = tpu.matmul %95, %96, %cst_52 {dimension_numbers = #tpu.dot_dimension_numbers<[1], [1], [0], [0], [0, 0, 1, 0], [], []>} : vector<16x4xf32>, vector<32x4xf32>, vector<16x32xf32> -> vector<16x32xf32>
    %98 = arith.addf %79, %97 : vector<16x32xf32>
    %99 = vector.extract_strided_slice %19 {offsets = [0, 16], sizes = [16, 4], strides = [1, 1]} : vector<16x32xf32> to vector<16x4xf32>
    %100 = vector.extract_strided_slice %20 {offsets = [0, 16], sizes = [16, 4], strides = [1, 1]} : vector<16x32xf32> to vector<16x4xf32>
    %101 = vector.extract_strided_slice %21 {offsets = [0, 16], sizes = [16, 4], strides = [1, 1]} : vector<16x32xf32> to vector<16x4xf32>
    %cst_53 = arith.constant dense<0.000000e+00> : vector<16x16xf32>
    %102 = tpu.matmul %99, %100, %cst_53 {dimension_numbers = #tpu.dot_dimension_numbers<[1], [1], [0], [0], [0, 0, 1, 0], [], []>} : vector<16x4xf32>, vector<16x4xf32>, vector<16x16xf32> -> vector<16x16xf32>
    %cst_54 = arith.constant 5.000000e-01 : f32
    %103 = vector.broadcast %cst_54 : f32 to vector<16x16xf32>
    %104 = arith.mulf %102, %103 : vector<16x16xf32>
    %cst_55 = arith.constant dense<0xFF800000> : vector<16xf32>
    %105 = vector.multi_reduction <maximumf>, %104, %cst_55 [1] : vector<16x16xf32> to vector<16xf32>
    %106 = vector.shape_cast %105 : vector<16xf32> to vector<16x1xf32>
    %107 = vector.broadcast %106 : vector<16x1xf32> to vector<16x16xf32>
    %108 = arith.subf %104, %107 : vector<16x16xf32>
    %109 = math.exp %108 : vector<16x16xf32>
    %cst_56 = arith.constant dense<0.000000e+00> : vector<16xf32>
    %110 = vector.multi_reduction <add>, %109, %cst_56 [1] : vector<16x16xf32> to vector<16xf32>
    %111 = vector.shape_cast %110 : vector<16xf32> to vector<16x1xf32>
    %112 = vector.broadcast %111 : vector<16x1xf32> to vector<16x16xf32>
    %113 = arith.divf %109, %112 : vector<16x16xf32>
    %cst_57 = arith.constant dense<0.000000e+00> : vector<16x4xf32>
    %114 = tpu.matmul %113, %101, %cst_57 {dimension_numbers = #tpu.dot_dimension_numbers<[1], [0], [0], [1], [0, 0, 1, 1], [], []>} : vector<16x16xf32>, vector<16x4xf32>, vector<16x4xf32> -> vector<16x4xf32>
    %115 = vector.extract_strided_slice %6 {offsets = [0, 16], sizes = [32, 4], strides = [1, 1]} : vector<32x32xf32> to vector<32x4xf32>
    %cst_58 = arith.constant dense<0.000000e+00> : vector<16x32xf32>
    %116 = tpu.matmul %114, %115, %cst_58 {dimension_numbers = #tpu.dot_dimension_numbers<[1], [1], [0], [0], [0, 0, 1, 0], [], []>} : vector<16x4xf32>, vector<32x4xf32>, vector<16x32xf32> -> vector<16x32xf32>
    %117 = arith.addf %98, %116 : vector<16x32xf32>
    %118 = vector.extract_strided_slice %19 {offsets = [0, 20], sizes = [16, 4], strides = [1, 1]} : vector<16x32xf32> to vector<16x4xf32>
    %119 = vector.extract_strided_slice %20 {offsets = [0, 20], sizes = [16, 4], strides = [1, 1]} : vector<16x32xf32> to vector<16x4xf32>
    %120 = vector.extract_strided_slice %21 {offsets = [0, 20], sizes = [16, 4], strides = [1, 1]} : vector<16x32xf32> to vector<16x4xf32>
    %cst_59 = arith.constant dense<0.000000e+00> : vector<16x16xf32>
    %121 = tpu.matmul %118, %119, %cst_59 {dimension_numbers = #tpu.dot_dimension_numbers<[1], [1], [0], [0], [0, 0, 1, 0], [], []>} : vector<16x4xf32>, vector<16x4xf32>, vector<16x16xf32> -> vector<16x16xf32>
    %cst_60 = arith.constant 5.000000e-01 : f32
    %122 = vector.broadcast %cst_60 : f32 to vector<16x16xf32>
    %123 = arith.mulf %121, %122 : vector<16x16xf32>
    %cst_61 = arith.constant dense<0xFF800000> : vector<16xf32>
    %124 = vector.multi_reduction <maximumf>, %123, %cst_61 [1] : vector<16x16xf32> to vector<16xf32>
    %125 = vector.shape_cast %124 : vector<16xf32> to vector<16x1xf32>
    %126 = vector.broadcast %125 : vector<16x1xf32> to vector<16x16xf32>
    %127 = arith.subf %123, %126 : vector<16x16xf32>
    %128 = math.exp %127 : vector<16x16xf32>
    %cst_62 = arith.constant dense<0.000000e+00> : vector<16xf32>
    %129 = vector.multi_reduction <add>, %128, %cst_62 [1] : vector<16x16xf32> to vector<16xf32>
    %130 = vector.shape_cast %129 : vector<16xf32> to vector<16x1xf32>
    %131 = vector.broadcast %130 : vector<16x1xf32> to vector<16x16xf32>
    %132 = arith.divf %128, %131 : vector<16x16xf32>
    %cst_63 = arith.constant dense<0.000000e+00> : vector<16x4xf32>
    %133 = tpu.matmul %132, %120, %cst_63 {dimension_numbers = #tpu.dot_dimension_numbers<[1], [0], [0], [1], [0, 0, 1, 1], [], []>} : vector<16x16xf32>, vector<16x4xf32>, vector<16x4xf32> -> vector<16x4xf32>
    %134 = vector.extract_strided_slice %6 {offsets = [0, 20], sizes = [32, 4], strides = [1, 1]} : vector<32x32xf32> to vector<32x4xf32>
    %cst_64 = arith.constant dense<0.000000e+00> : vector<16x32xf32>
    %135 = tpu.matmul %133, %134, %cst_64 {dimension_numbers = #tpu.dot_dimension_numbers<[1], [1], [0], [0], [0, 0, 1, 0], [], []>} : vector<16x4xf32>, vector<32x4xf32>, vector<16x32xf32> -> vector<16x32xf32>
    %136 = arith.addf %117, %135 : vector<16x32xf32>
    %137 = vector.extract_strided_slice %19 {offsets = [0, 24], sizes = [16, 4], strides = [1, 1]} : vector<16x32xf32> to vector<16x4xf32>
    %138 = vector.extract_strided_slice %20 {offsets = [0, 24], sizes = [16, 4], strides = [1, 1]} : vector<16x32xf32> to vector<16x4xf32>
    %139 = vector.extract_strided_slice %21 {offsets = [0, 24], sizes = [16, 4], strides = [1, 1]} : vector<16x32xf32> to vector<16x4xf32>
    %cst_65 = arith.constant dense<0.000000e+00> : vector<16x16xf32>
    %140 = tpu.matmul %137, %138, %cst_65 {dimension_numbers = #tpu.dot_dimension_numbers<[1], [1], [0], [0], [0, 0, 1, 0], [], []>} : vector<16x4xf32>, vector<16x4xf32>, vector<16x16xf32> -> vector<16x16xf32>
    %cst_66 = arith.constant 5.000000e-01 : f32
    %141 = vector.broadcast %cst_66 : f32 to vector<16x16xf32>
    %142 = arith.mulf %140, %141 : vector<16x16xf32>
    %cst_67 = arith.constant dense<0xFF800000> : vector<16xf32>
    %143 = vector.multi_reduction <maximumf>, %142, %cst_67 [1] : vector<16x16xf32> to vector<16xf32>
    %144 = vector.shape_cast %143 : vector<16xf32> to vector<16x1xf32>
    %145 = vector.broadcast %144 : vector<16x1xf32> to vector<16x16xf32>
    %146 = arith.subf %142, %145 : vector<16x16xf32>
    %147 = math.exp %146 : vector<16x16xf32>
    %cst_68 = arith.constant dense<0.000000e+00> : vector<16xf32>
    %148 = vector.multi_reduction <add>, %147, %cst_68 [1] : vector<16x16xf32> to vector<16xf32>
    %149 = vector.shape_cast %148 : vector<16xf32> to vector<16x1xf32>
    %150 = vector.broadcast %149 : vector<16x1xf32> to vector<16x16xf32>
    %151 = arith.divf %147, %150 : vector<16x16xf32>
    %cst_69 = arith.constant dense<0.000000e+00> : vector<16x4xf32>
    %152 = tpu.matmul %151, %139, %cst_69 {dimension_numbers = #tpu.dot_dimension_numbers<[1], [0], [0], [1], [0, 0, 1, 1], [], []>} : vector<16x16xf32>, vector<16x4xf32>, vector<16x4xf32> -> vector<16x4xf32>
    %153 = vector.extract_strided_slice %6 {offsets = [0, 24], sizes = [32, 4], strides = [1, 1]} : vector<32x32xf32> to vector<32x4xf32>
    %cst_70 = arith.constant dense<0.000000e+00> : vector<16x32xf32>
    %154 = tpu.matmul %152, %153, %cst_70 {dimension_numbers = #tpu.dot_dimension_numbers<[1], [1], [0], [0], [0, 0, 1, 0], [], []>} : vector<16x4xf32>, vector<32x4xf32>, vector<16x32xf32> -> vector<16x32xf32>
    %155 = arith.addf %136, %154 : vector<16x32xf32>
    %156 = vector.extract_strided_slice %19 {offsets = [0, 28], sizes = [16, 4], strides = [1, 1]} : vector<16x32xf32> to vector<16x4xf32>
    %157 = vector.extract_strided_slice %20 {offsets = [0, 28], sizes = [16, 4], strides = [1, 1]} : vector<16x32xf32> to vector<16x4xf32>
    %158 = vector.extract_strided_slice %21 {offsets = [0, 28], sizes = [16, 4], strides = [1, 1]} : vector<16x32xf32> to vector<16x4xf32>
    %cst_71 = arith.constant dense<0.000000e+00> : vector<16x16xf32>
    %159 = tpu.matmul %156, %157, %cst_71 {dimension_numbers = #tpu.dot_dimension_numbers<[1], [1], [0], [0], [0, 0, 1, 0], [], []>} : vector<16x4xf32>, vector<16x4xf32>, vector<16x16xf32> -> vector<16x16xf32>
    %cst_72 = arith.constant 5.000000e-01 : f32
    %160 = vector.broadcast %cst_72 : f32 to vector<16x16xf32>
    %161 = arith.mulf %159, %160 : vector<16x16xf32>
    %cst_73 = arith.constant dense<0xFF800000> : vector<16xf32>
    %162 = vector.multi_reduction <maximumf>, %161, %cst_73 [1] : vector<16x16xf32> to vector<16xf32>
    %163 = vector.shape_cast %162 : vector<16xf32> to vector<16x1xf32>
    %164 = vector.broadcast %163 : vector<16x1xf32> to vector<16x16xf32>
    %165 = arith.subf %161, %164 : vector<16x16xf32>
    %166 = math.exp %165 : vector<16x16xf32>
    %cst_74 = arith.constant dense<0.000000e+00> : vector<16xf32>
    %167 = vector.multi_reduction <add>, %166, %cst_74 [1] : vector<16x16xf32> to vector<16xf32>
    %168 = vector.shape_cast %167 : vector<16xf32> to vector<16x1xf32>
    %169 = vector.broadcast %168 : vector<16x1xf32> to vector<16x16xf32>
    %170 = arith.divf %166, %169 : vector<16x16xf32>
    %cst_75 = arith.constant dense<0.000000e+00> : vector<16x4xf32>
    %171 = tpu.matmul %170, %158, %cst_75 {dimension_numbers = #tpu.dot_dimension_numbers<[1], [0], [0], [1], [0, 0, 1, 1], [], []>} : vector<16x16xf32>, vector<16x4xf32>, vector<16x4xf32> -> vector<16x4xf32>
    %172 = vector.extract_strided_slice %6 {offsets = [0, 28], sizes = [32, 4], strides = [1, 1]} : vector<32x32xf32> to vector<32x4xf32>
    %cst_76 = arith.constant dense<0.000000e+00> : vector<16x32xf32>
    %173 = tpu.matmul %171, %172, %cst_76 {dimension_numbers = #tpu.dot_dimension_numbers<[1], [1], [0], [0], [0, 0, 1, 0], [], []>} : vector<16x4xf32>, vector<32x4xf32>, vector<16x32xf32> -> vector<16x32xf32>
    %174 = arith.addf %155, %173 : vector<16x32xf32>
    %175 = arith.addf %3, %174 : vector<16x32xf32>
    %176 = vector.broadcast %7 : vector<1x32xf32> to vector<16x32xf32>
    %177 = arith.addf %175, %176 : vector<16x32xf32>
    %cst_77 = arith.constant dense<0.000000e+00> : vector<16xf32>
    %178 = vector.multi_reduction <add>, %177, %cst_77 [1] : vector<16x32xf32> to vector<16xf32>
    %179 = vector.shape_cast %178 : vector<16xf32> to vector<16x1xf32>
    %cst_78 = arith.constant 3.200000e+01 : f32
    %180 = vector.broadcast %cst_78 : f32 to vector<16x1xf32>
    %181 = arith.divf %179, %180 : vector<16x1xf32>
    %182 = vector.broadcast %181 : vector<16x1xf32> to vector<16x32xf32>
    %183 = arith.subf %177, %182 : vector<16x32xf32>
    %184 = arith.mulf %183, %183 : vector<16x32xf32>
    %cst_79 = arith.constant dense<0.000000e+00> : vector<16xf32>
    %185 = vector.multi_reduction <add>, %184, %cst_79 [1] : vector<16x32xf32> to vector<16xf32>
    %186 = vector.shape_cast %185 : vector<16xf32> to vector<16x1xf32>
    %cst_80 = arith.constant 3.200000e+01 : f32
    %187 = vector.broadcast %cst_80 : f32 to vector<16x1xf32>
    %188 = arith.divf %186, %187 : vector<16x1xf32>
    %189 = vector.broadcast %181 : vector<16x1xf32> to vector<16x32xf32>
    %190 = arith.subf %177, %189 : vector<16x32xf32>
    %cst_81 = arith.constant 9.99999974E-6 : f32
    %191 = vector.broadcast %cst_81 : f32 to vector<16x1xf32>
    %192 = arith.addf %188, %191 : vector<16x1xf32>
    %193 = math.rsqrt %192 : vector<16x1xf32>
    %194 = vector.broadcast %193 : vector<16x1xf32> to vector<16x32xf32>
    %195 = arith.mulf %190, %194 : vector<16x32xf32>
    %196 = vector.broadcast %8 : vector<1x32xf32> to vector<16x32xf32>
    %197 = arith.mulf %195, %196 : vector<16x32xf32>
    %198 = vector.broadcast %9 : vector<1x32xf32> to vector<16x32xf32>
    %199 = arith.addf %197, %198 : vector<16x32xf32>
    %200 = arith.truncf %199 : vector<16x32xf32> to vector<16x32xbf16>
    %cst_82 = arith.constant dense<0.000000e+00> : vector<16x2048xf32>
    %201 = tpu.matmul %200, %10, %cst_82 {dimension_numbers = #tpu.dot_dimension_numbers<[1], [0], [0], [1], [0, 0, 1, 1], [], []>} : vector<16x32xbf16>, vector<32x2048xbf16>, vector<16x2048xf32> -> vector<16x2048xf32>
    %202 = vector.broadcast %11 : vector<1x2048xf32> to vector<16x2048xf32>
    %203 = arith.addf %201, %202 : vector<16x2048xf32>
    %cst_83 = arith.constant 0.000000e+00 : f32
    %204 = vector.broadcast %cst_83 : f32 to vector<16x2048xf32>
    %205 = arith.maximumf %203, %204 : vector<16x2048xf32>
    %206 = arith.truncf %205 : vector<16x2048xf32> to vector<16x2048xbf16>
    %cst_84 = arith.constant dense<0.000000e+00> : vector<16x32xf32>
    %207 = tpu.matmul %206, %12, %cst_84 {dimension_numbers = #tpu.dot_dimension_numbers<[1], [0], [0], [1], [0, 0, 1, 1], [], []>} : vector<16x2048xbf16>, vector<2048x32xbf16>, vector<16x32xf32> -> vector<16x32xf32>
    %208 = vector.broadcast %13 : vector<1x32xf32> to vector<16x32xf32>
    %209 = arith.addf %207, %208 : vector<16x32xf32>
    %210 = arith.addf %199, %209 : vector<16x32xf32>
    %cst_85 = arith.constant dense<0.000000e+00> : vector<16xf32>
    %211 = vector.multi_reduction <add>, %210, %cst_85 [1] : vector<16x32xf32> to vector<16xf32>
    %212 = vector.shape_cast %211 : vector<16xf32> to vector<16x1xf32>
    %cst_86 = arith.constant 3.200000e+01 : f32
    %213 = vector.broadcast %cst_86 : f32 to vector<16x1xf32>
    %214 = arith.divf %212, %213 : vector<16x1xf32>
    %215 = vector.broadcast %214 : vector<16x1xf32> to vector<16x32xf32>
    %216 = arith.subf %210, %215 : vector<16x32xf32>
    %217 = arith.mulf %216, %216 : vector<16x32xf32>
    %cst_87 = arith.constant dense<0.000000e+00> : vector<16xf32>
    %218 = vector.multi_reduction <add>, %217, %cst_87 [1] : vector<16x32xf32> to vector<16xf32>
    %219 = vector.shape_cast %218 : vector<16xf32> to vector<16x1xf32>
    %cst_88 = arith.constant 3.200000e+01 : f32
    %220 = vector.broadcast %cst_88 : f32 to vector<16x1xf32>
    %221 = arith.divf %219, %220 : vector<16x1xf32>
    %222 = vector.broadcast %214 : vector<16x1xf32> to vector<16x32xf32>
    %223 = arith.subf %210, %222 : vector<16x32xf32>
    %cst_89 = arith.constant 9.99999974E-6 : f32
    %224 = vector.broadcast %cst_89 : f32 to vector<16x1xf32>
    %225 = arith.addf %221, %224 : vector<16x1xf32>
    %226 = math.rsqrt %225 : vector<16x1xf32>
    %227 = vector.broadcast %226 : vector<16x1xf32> to vector<16x32xf32>
    %228 = arith.mulf %223, %227 : vector<16x32xf32>
    %229 = vector.broadcast %14 : vector<1x32xf32> to vector<16x32xf32>
    %230 = arith.mulf %228, %229 : vector<16x32xf32>
    %231 = vector.broadcast %15 : vector<1x32xf32> to vector<16x32xf32>
    %232 = arith.addf %230, %231 : vector<16x32xf32>
    %c0_90 = arith.constant 0 : index
    %c0_91 = arith.constant 0 : index
    %233 = vector.load %arg15[%c0_90, %c0_91] : memref<32x96xf32, #tpu.memory_space<vmem>>, vector<32x96xf32>
    %c0_92 = arith.constant 0 : index
    %c0_93 = arith.constant 0 : index
    %234 = vector.load %arg16[%c0_92, %c0_93] : memref<1x96xf32, #tpu.memory_space<vmem>>, vector<1x96xf32>
    %c0_94 = arith.constant 0 : index
    %c0_95 = arith.constant 0 : index
    %235 = vector.load %arg17[%c0_94, %c0_95] : memref<32x32xf32, #tpu.memory_space<vmem>>, vector<32x32xf32>
    %c0_96 = arith.constant 0 : index
    %c0_97 = arith.constant 0 : index
    %236 = vector.load %arg18[%c0_96, %c0_97] : memref<1x32xf32, #tpu.memory_space<vmem>>, vector<1x32xf32>
    %c0_98 = arith.constant 0 : index
    %c0_99 = arith.constant 0 : index
    %237 = vector.load %arg19[%c0_98, %c0_99] : memref<1x32xf32, #tpu.memory_space<vmem>>, vector<1x32xf32>
    %c0_100 = arith.constant 0 : index
    %c0_101 = arith.constant 0 : index
    %238 = vector.load %arg20[%c0_100, %c0_101] : memref<1x32xf32, #tpu.memory_space<vmem>>, vector<1x32xf32>
    %c0_102 = arith.constant 0 : index
    %c0_103 = arith.constant 0 : index
    %239 = vector.load %arg21[%c0_102, %c0_103] : memref<32x2048xbf16, #tpu.memory_space<vmem>>, vector<32x2048xbf16>
    %c0_104 = arith.constant 0 : index
    %c0_105 = arith.constant 0 : index
    %240 = vector.load %arg22[%c0_104, %c0_105] : memref<1x2048xf32, #tpu.memory_space<vmem>>, vector<1x2048xf32>
    %c0_106 = arith.constant 0 : index
    %c0_107 = arith.constant 0 : index
    %241 = vector.load %arg23[%c0_106, %c0_107] : memref<2048x32xbf16, #tpu.memory_space<vmem>>, vector<2048x32xbf16>
    %c0_108 = arith.constant 0 : index
    %c0_109 = arith.constant 0 : index
    %242 = vector.load %arg24[%c0_108, %c0_109] : memref<1x32xf32, #tpu.memory_space<vmem>>, vector<1x32xf32>
    %c0_110 = arith.constant 0 : index
    %c0_111 = arith.constant 0 : index
    %243 = vector.load %arg25[%c0_110, %c0_111] : memref<1x32xf32, #tpu.memory_space<vmem>>, vector<1x32xf32>
    %c0_112 = arith.constant 0 : index
    %c0_113 = arith.constant 0 : index
    %244 = vector.load %arg26[%c0_112, %c0_113] : memref<1x32xf32, #tpu.memory_space<vmem>>, vector<1x32xf32>
    %cst_114 = arith.constant dense<0.000000e+00> : vector<16x96xf32>
    %245 = tpu.matmul %232, %233, %cst_114 {dimension_numbers = #tpu.dot_dimension_numbers<[1], [0], [0], [1], [0, 0, 1, 1], [], []>} : vector<16x32xf32>, vector<32x96xf32>, vector<16x96xf32> -> vector<16x96xf32>
    %246 = vector.broadcast %234 : vector<1x96xf32> to vector<16x96xf32>
    %247 = arith.addf %245, %246 : vector<16x96xf32>
    %248 = vector.extract_strided_slice %247 {offsets = [0, 0], sizes = [16, 32], strides = [1, 1]} : vector<16x96xf32> to vector<16x32xf32>
    %249 = vector.extract_strided_slice %247 {offsets = [0, 32], sizes = [16, 32], strides = [1, 1]} : vector<16x96xf32> to vector<16x32xf32>
    %250 = vector.extract_strided_slice %247 {offsets = [0, 64], sizes = [16, 32], strides = [1, 1]} : vector<16x96xf32> to vector<16x32xf32>
    %cst_115 = arith.constant 0.000000e+00 : f32
    %251 = vector.broadcast %cst_115 : f32 to vector<16x32xf32>
    %252 = vector.extract_strided_slice %248 {offsets = [0, 0], sizes = [16, 4], strides = [1, 1]} : vector<16x32xf32> to vector<16x4xf32>
    %253 = vector.extract_strided_slice %249 {offsets = [0, 0], sizes = [16, 4], strides = [1, 1]} : vector<16x32xf32> to vector<16x4xf32>
    %254 = vector.extract_strided_slice %250 {offsets = [0, 0], sizes = [16, 4], strides = [1, 1]} : vector<16x32xf32> to vector<16x4xf32>
    %cst_116 = arith.constant dense<0.000000e+00> : vector<16x16xf32>
    %255 = tpu.matmul %252, %253, %cst_116 {dimension_numbers = #tpu.dot_dimension_numbers<[1], [1], [0], [0], [0, 0, 1, 0], [], []>} : vector<16x4xf32>, vector<16x4xf32>, vector<16x16xf32> -> vector<16x16xf32>
    %cst_117 = arith.constant 5.000000e-01 : f32
    %256 = vector.broadcast %cst_117 : f32 to vector<16x16xf32>
    %257 = arith.mulf %255, %256 : vector<16x16xf32>
    %cst_118 = arith.constant dense<0xFF800000> : vector<16xf32>
    %258 = vector.multi_reduction <maximumf>, %257, %cst_118 [1] : vector<16x16xf32> to vector<16xf32>
    %259 = vector.shape_cast %258 : vector<16xf32> to vector<16x1xf32>
    %260 = vector.broadcast %259 : vector<16x1xf32> to vector<16x16xf32>
    %261 = arith.subf %257, %260 : vector<16x16xf32>
    %262 = math.exp %261 : vector<16x16xf32>
    %cst_119 = arith.constant dense<0.000000e+00> : vector<16xf32>
    %263 = vector.multi_reduction <add>, %262, %cst_119 [1] : vector<16x16xf32> to vector<16xf32>
    %264 = vector.shape_cast %263 : vector<16xf32> to vector<16x1xf32>
    %265 = vector.broadcast %264 : vector<16x1xf32> to vector<16x16xf32>
    %266 = arith.divf %262, %265 : vector<16x16xf32>
    %cst_120 = arith.constant dense<0.000000e+00> : vector<16x4xf32>
    %267 = tpu.matmul %266, %254, %cst_120 {dimension_numbers = #tpu.dot_dimension_numbers<[1], [0], [0], [1], [0, 0, 1, 1], [], []>} : vector<16x16xf32>, vector<16x4xf32>, vector<16x4xf32> -> vector<16x4xf32>
    %268 = vector.extract_strided_slice %235 {offsets = [0, 0], sizes = [32, 4], strides = [1, 1]} : vector<32x32xf32> to vector<32x4xf32>
    %cst_121 = arith.constant dense<0.000000e+00> : vector<16x32xf32>
    %269 = tpu.matmul %267, %268, %cst_121 {dimension_numbers = #tpu.dot_dimension_numbers<[1], [1], [0], [0], [0, 0, 1, 0], [], []>} : vector<16x4xf32>, vector<32x4xf32>, vector<16x32xf32> -> vector<16x32xf32>
    %270 = arith.addf %251, %269 : vector<16x32xf32>
    %271 = vector.extract_strided_slice %248 {offsets = [0, 4], sizes = [16, 4], strides = [1, 1]} : vector<16x32xf32> to vector<16x4xf32>
    %272 = vector.extract_strided_slice %249 {offsets = [0, 4], sizes = [16, 4], strides = [1, 1]} : vector<16x32xf32> to vector<16x4xf32>
    %273 = vector.extract_strided_slice %250 {offsets = [0, 4], sizes = [16, 4], strides = [1, 1]} : vector<16x32xf32> to vector<16x4xf32>
    %cst_122 = arith.constant dense<0.000000e+00> : vector<16x16xf32>
    %274 = tpu.matmul %271, %272, %cst_122 {dimension_numbers = #tpu.dot_dimension_numbers<[1], [1], [0], [0], [0, 0, 1, 0], [], []>} : vector<16x4xf32>, vector<16x4xf32>, vector<16x16xf32> -> vector<16x16xf32>
    %cst_123 = arith.constant 5.000000e-01 : f32
    %275 = vector.broadcast %cst_123 : f32 to vector<16x16xf32>
    %276 = arith.mulf %274, %275 : vector<16x16xf32>
    %cst_124 = arith.constant dense<0xFF800000> : vector<16xf32>
    %277 = vector.multi_reduction <maximumf>, %276, %cst_124 [1] : vector<16x16xf32> to vector<16xf32>
    %278 = vector.shape_cast %277 : vector<16xf32> to vector<16x1xf32>
    %279 = vector.broadcast %278 : vector<16x1xf32> to vector<16x16xf32>
    %280 = arith.subf %276, %279 : vector<16x16xf32>
    %281 = math.exp %280 : vector<16x16xf32>
    %cst_125 = arith.constant dense<0.000000e+00> : vector<16xf32>
    %282 = vector.multi_reduction <add>, %281, %cst_125 [1] : vector<16x16xf32> to vector<16xf32>
    %283 = vector.shape_cast %282 : vector<16xf32> to vector<16x1xf32>
    %284 = vector.broadcast %283 : vector<16x1xf32> to vector<16x16xf32>
    %285 = arith.divf %281, %284 : vector<16x16xf32>
    %cst_126 = arith.constant dense<0.000000e+00> : vector<16x4xf32>
    %286 = tpu.matmul %285, %273, %cst_126 {dimension_numbers = #tpu.dot_dimension_numbers<[1], [0], [0], [1], [0, 0, 1, 1], [], []>} : vector<16x16xf32>, vector<16x4xf32>, vector<16x4xf32> -> vector<16x4xf32>
    %287 = vector.extract_strided_slice %235 {offsets = [0, 4], sizes = [32, 4], strides = [1, 1]} : vector<32x32xf32> to vector<32x4xf32>
    %cst_127 = arith.constant dense<0.000000e+00> : vector<16x32xf32>
    %288 = tpu.matmul %286, %287, %cst_127 {dimension_numbers = #tpu.dot_dimension_numbers<[1], [1], [0], [0], [0, 0, 1, 0], [], []>} : vector<16x4xf32>, vector<32x4xf32>, vector<16x32xf32> -> vector<16x32xf32>
    %289 = arith.addf %270, %288 : vector<16x32xf32>
    %290 = vector.extract_strided_slice %248 {offsets = [0, 8], sizes = [16, 4], strides = [1, 1]} : vector<16x32xf32> to vector<16x4xf32>
    %291 = vector.extract_strided_slice %249 {offsets = [0, 8], sizes = [16, 4], strides = [1, 1]} : vector<16x32xf32> to vector<16x4xf32>
    %292 = vector.extract_strided_slice %250 {offsets = [0, 8], sizes = [16, 4], strides = [1, 1]} : vector<16x32xf32> to vector<16x4xf32>
    %cst_128 = arith.constant dense<0.000000e+00> : vector<16x16xf32>
    %293 = tpu.matmul %290, %291, %cst_128 {dimension_numbers = #tpu.dot_dimension_numbers<[1], [1], [0], [0], [0, 0, 1, 0], [], []>} : vector<16x4xf32>, vector<16x4xf32>, vector<16x16xf32> -> vector<16x16xf32>
    %cst_129 = arith.constant 5.000000e-01 : f32
    %294 = vector.broadcast %cst_129 : f32 to vector<16x16xf32>
    %295 = arith.mulf %293, %294 : vector<16x16xf32>
    %cst_130 = arith.constant dense<0xFF800000> : vector<16xf32>
    %296 = vector.multi_reduction <maximumf>, %295, %cst_130 [1] : vector<16x16xf32> to vector<16xf32>
    %297 = vector.shape_cast %296 : vector<16xf32> to vector<16x1xf32>
    %298 = vector.broadcast %297 : vector<16x1xf32> to vector<16x16xf32>
    %299 = arith.subf %295, %298 : vector<16x16xf32>
    %300 = math.exp %299 : vector<16x16xf32>
    %cst_131 = arith.constant dense<0.000000e+00> : vector<16xf32>
    %301 = vector.multi_reduction <add>, %300, %cst_131 [1] : vector<16x16xf32> to vector<16xf32>
    %302 = vector.shape_cast %301 : vector<16xf32> to vector<16x1xf32>
    %303 = vector.broadcast %302 : vector<16x1xf32> to vector<16x16xf32>
    %304 = arith.divf %300, %303 : vector<16x16xf32>
    %cst_132 = arith.constant dense<0.000000e+00> : vector<16x4xf32>
    %305 = tpu.matmul %304, %292, %cst_132 {dimension_numbers = #tpu.dot_dimension_numbers<[1], [0], [0], [1], [0, 0, 1, 1], [], []>} : vector<16x16xf32>, vector<16x4xf32>, vector<16x4xf32> -> vector<16x4xf32>
    %306 = vector.extract_strided_slice %235 {offsets = [0, 8], sizes = [32, 4], strides = [1, 1]} : vector<32x32xf32> to vector<32x4xf32>
    %cst_133 = arith.constant dense<0.000000e+00> : vector<16x32xf32>
    %307 = tpu.matmul %305, %306, %cst_133 {dimension_numbers = #tpu.dot_dimension_numbers<[1], [1], [0], [0], [0, 0, 1, 0], [], []>} : vector<16x4xf32>, vector<32x4xf32>, vector<16x32xf32> -> vector<16x32xf32>
    %308 = arith.addf %289, %307 : vector<16x32xf32>
    %309 = vector.extract_strided_slice %248 {offsets = [0, 12], sizes = [16, 4], strides = [1, 1]} : vector<16x32xf32> to vector<16x4xf32>
    %310 = vector.extract_strided_slice %249 {offsets = [0, 12], sizes = [16, 4], strides = [1, 1]} : vector<16x32xf32> to vector<16x4xf32>
    %311 = vector.extract_strided_slice %250 {offsets = [0, 12], sizes = [16, 4], strides = [1, 1]} : vector<16x32xf32> to vector<16x4xf32>
    %cst_134 = arith.constant dense<0.000000e+00> : vector<16x16xf32>
    %312 = tpu.matmul %309, %310, %cst_134 {dimension_numbers = #tpu.dot_dimension_numbers<[1], [1], [0], [0], [0, 0, 1, 0], [], []>} : vector<16x4xf32>, vector<16x4xf32>, vector<16x16xf32> -> vector<16x16xf32>
    %cst_135 = arith.constant 5.000000e-01 : f32
    %313 = vector.broadcast %cst_135 : f32 to vector<16x16xf32>
    %314 = arith.mulf %312, %313 : vector<16x16xf32>
    %cst_136 = arith.constant dense<0xFF800000> : vector<16xf32>
    %315 = vector.multi_reduction <maximumf>, %314, %cst_136 [1] : vector<16x16xf32> to vector<16xf32>
    %316 = vector.shape_cast %315 : vector<16xf32> to vector<16x1xf32>
    %317 = vector.broadcast %316 : vector<16x1xf32> to vector<16x16xf32>
    %318 = arith.subf %314, %317 : vector<16x16xf32>
    %319 = math.exp %318 : vector<16x16xf32>
    %cst_137 = arith.constant dense<0.000000e+00> : vector<16xf32>
    %320 = vector.multi_reduction <add>, %319, %cst_137 [1] : vector<16x16xf32> to vector<16xf32>
    %321 = vector.shape_cast %320 : vector<16xf32> to vector<16x1xf32>
    %322 = vector.broadcast %321 : vector<16x1xf32> to vector<16x16xf32>
    %323 = arith.divf %319, %322 : vector<16x16xf32>
    %cst_138 = arith.constant dense<0.000000e+00> : vector<16x4xf32>
    %324 = tpu.matmul %323, %311, %cst_138 {dimension_numbers = #tpu.dot_dimension_numbers<[1], [0], [0], [1], [0, 0, 1, 1], [], []>} : vector<16x16xf32>, vector<16x4xf32>, vector<16x4xf32> -> vector<16x4xf32>
    %325 = vector.extract_strided_slice %235 {offsets = [0, 12], sizes = [32, 4], strides = [1, 1]} : vector<32x32xf32> to vector<32x4xf32>
    %cst_139 = arith.constant dense<0.000000e+00> : vector<16x32xf32>
    %326 = tpu.matmul %324, %325, %cst_139 {dimension_numbers = #tpu.dot_dimension_numbers<[1], [1], [0], [0], [0, 0, 1, 0], [], []>} : vector<16x4xf32>, vector<32x4xf32>, vector<16x32xf32> -> vector<16x32xf32>
    %327 = arith.addf %308, %326 : vector<16x32xf32>
    %328 = vector.extract_strided_slice %248 {offsets = [0, 16], sizes = [16, 4], strides = [1, 1]} : vector<16x32xf32> to vector<16x4xf32>
    %329 = vector.extract_strided_slice %249 {offsets = [0, 16], sizes = [16, 4], strides = [1, 1]} : vector<16x32xf32> to vector<16x4xf32>
    %330 = vector.extract_strided_slice %250 {offsets = [0, 16], sizes = [16, 4], strides = [1, 1]} : vector<16x32xf32> to vector<16x4xf32>
    %cst_140 = arith.constant dense<0.000000e+00> : vector<16x16xf32>
    %331 = tpu.matmul %328, %329, %cst_140 {dimension_numbers = #tpu.dot_dimension_numbers<[1], [1], [0], [0], [0, 0, 1, 0], [], []>} : vector<16x4xf32>, vector<16x4xf32>, vector<16x16xf32> -> vector<16x16xf32>
    %cst_141 = arith.constant 5.000000e-01 : f32
    %332 = vector.broadcast %cst_141 : f32 to vector<16x16xf32>
    %333 = arith.mulf %331, %332 : vector<16x16xf32>
    %cst_142 = arith.constant dense<0xFF800000> : vector<16xf32>
    %334 = vector.multi_reduction <maximumf>, %333, %cst_142 [1] : vector<16x16xf32> to vector<16xf32>
    %335 = vector.shape_cast %334 : vector<16xf32> to vector<16x1xf32>
    %336 = vector.broadcast %335 : vector<16x1xf32> to vector<16x16xf32>
    %337 = arith.subf %333, %336 : vector<16x16xf32>
    %338 = math.exp %337 : vector<16x16xf32>
    %cst_143 = arith.constant dense<0.000000e+00> : vector<16xf32>
    %339 = vector.multi_reduction <add>, %338, %cst_143 [1] : vector<16x16xf32> to vector<16xf32>
    %340 = vector.shape_cast %339 : vector<16xf32> to vector<16x1xf32>
    %341 = vector.broadcast %340 : vector<16x1xf32> to vector<16x16xf32>
    %342 = arith.divf %338, %341 : vector<16x16xf32>
    %cst_144 = arith.constant dense<0.000000e+00> : vector<16x4xf32>
    %343 = tpu.matmul %342, %330, %cst_144 {dimension_numbers = #tpu.dot_dimension_numbers<[1], [0], [0], [1], [0, 0, 1, 1], [], []>} : vector<16x16xf32>, vector<16x4xf32>, vector<16x4xf32> -> vector<16x4xf32>
    %344 = vector.extract_strided_slice %235 {offsets = [0, 16], sizes = [32, 4], strides = [1, 1]} : vector<32x32xf32> to vector<32x4xf32>
    %cst_145 = arith.constant dense<0.000000e+00> : vector<16x32xf32>
    %345 = tpu.matmul %343, %344, %cst_145 {dimension_numbers = #tpu.dot_dimension_numbers<[1], [1], [0], [0], [0, 0, 1, 0], [], []>} : vector<16x4xf32>, vector<32x4xf32>, vector<16x32xf32> -> vector<16x32xf32>
    %346 = arith.addf %327, %345 : vector<16x32xf32>
    %347 = vector.extract_strided_slice %248 {offsets = [0, 20], sizes = [16, 4], strides = [1, 1]} : vector<16x32xf32> to vector<16x4xf32>
    %348 = vector.extract_strided_slice %249 {offsets = [0, 20], sizes = [16, 4], strides = [1, 1]} : vector<16x32xf32> to vector<16x4xf32>
    %349 = vector.extract_strided_slice %250 {offsets = [0, 20], sizes = [16, 4], strides = [1, 1]} : vector<16x32xf32> to vector<16x4xf32>
    %cst_146 = arith.constant dense<0.000000e+00> : vector<16x16xf32>
    %350 = tpu.matmul %347, %348, %cst_146 {dimension_numbers = #tpu.dot_dimension_numbers<[1], [1], [0], [0], [0, 0, 1, 0], [], []>} : vector<16x4xf32>, vector<16x4xf32>, vector<16x16xf32> -> vector<16x16xf32>
    %cst_147 = arith.constant 5.000000e-01 : f32
    %351 = vector.broadcast %cst_147 : f32 to vector<16x16xf32>
    %352 = arith.mulf %350, %351 : vector<16x16xf32>
    %cst_148 = arith.constant dense<0xFF800000> : vector<16xf32>
    %353 = vector.multi_reduction <maximumf>, %352, %cst_148 [1] : vector<16x16xf32> to vector<16xf32>
    %354 = vector.shape_cast %353 : vector<16xf32> to vector<16x1xf32>
    %355 = vector.broadcast %354 : vector<16x1xf32> to vector<16x16xf32>
    %356 = arith.subf %352, %355 : vector<16x16xf32>
    %357 = math.exp %356 : vector<16x16xf32>
    %cst_149 = arith.constant dense<0.000000e+00> : vector<16xf32>
    %358 = vector.multi_reduction <add>, %357, %cst_149 [1] : vector<16x16xf32> to vector<16xf32>
    %359 = vector.shape_cast %358 : vector<16xf32> to vector<16x1xf32>
    %360 = vector.broadcast %359 : vector<16x1xf32> to vector<16x16xf32>
    %361 = arith.divf %357, %360 : vector<16x16xf32>
    %cst_150 = arith.constant dense<0.000000e+00> : vector<16x4xf32>
    %362 = tpu.matmul %361, %349, %cst_150 {dimension_numbers = #tpu.dot_dimension_numbers<[1], [0], [0], [1], [0, 0, 1, 1], [], []>} : vector<16x16xf32>, vector<16x4xf32>, vector<16x4xf32> -> vector<16x4xf32>
    %363 = vector.extract_strided_slice %235 {offsets = [0, 20], sizes = [32, 4], strides = [1, 1]} : vector<32x32xf32> to vector<32x4xf32>
    %cst_151 = arith.constant dense<0.000000e+00> : vector<16x32xf32>
    %364 = tpu.matmul %362, %363, %cst_151 {dimension_numbers = #tpu.dot_dimension_numbers<[1], [1], [0], [0], [0, 0, 1, 0], [], []>} : vector<16x4xf32>, vector<32x4xf32>, vector<16x32xf32> -> vector<16x32xf32>
    %365 = arith.addf %346, %364 : vector<16x32xf32>
    %366 = vector.extract_strided_slice %248 {offsets = [0, 24], sizes = [16, 4], strides = [1, 1]} : vector<16x32xf32> to vector<16x4xf32>
    %367 = vector.extract_strided_slice %249 {offsets = [0, 24], sizes = [16, 4], strides = [1, 1]} : vector<16x32xf32> to vector<16x4xf32>
    %368 = vector.extract_strided_slice %250 {offsets = [0, 24], sizes = [16, 4], strides = [1, 1]} : vector<16x32xf32> to vector<16x4xf32>
    %cst_152 = arith.constant dense<0.000000e+00> : vector<16x16xf32>
    %369 = tpu.matmul %366, %367, %cst_152 {dimension_numbers = #tpu.dot_dimension_numbers<[1], [1], [0], [0], [0, 0, 1, 0], [], []>} : vector<16x4xf32>, vector<16x4xf32>, vector<16x16xf32> -> vector<16x16xf32>
    %cst_153 = arith.constant 5.000000e-01 : f32
    %370 = vector.broadcast %cst_153 : f32 to vector<16x16xf32>
    %371 = arith.mulf %369, %370 : vector<16x16xf32>
    %cst_154 = arith.constant dense<0xFF800000> : vector<16xf32>
    %372 = vector.multi_reduction <maximumf>, %371, %cst_154 [1] : vector<16x16xf32> to vector<16xf32>
    %373 = vector.shape_cast %372 : vector<16xf32> to vector<16x1xf32>
    %374 = vector.broadcast %373 : vector<16x1xf32> to vector<16x16xf32>
    %375 = arith.subf %371, %374 : vector<16x16xf32>
    %376 = math.exp %375 : vector<16x16xf32>
    %cst_155 = arith.constant dense<0.000000e+00> : vector<16xf32>
    %377 = vector.multi_reduction <add>, %376, %cst_155 [1] : vector<16x16xf32> to vector<16xf32>
    %378 = vector.shape_cast %377 : vector<16xf32> to vector<16x1xf32>
    %379 = vector.broadcast %378 : vector<16x1xf32> to vector<16x16xf32>
    %380 = arith.divf %376, %379 : vector<16x16xf32>
    %cst_156 = arith.constant dense<0.000000e+00> : vector<16x4xf32>
    %381 = tpu.matmul %380, %368, %cst_156 {dimension_numbers = #tpu.dot_dimension_numbers<[1], [0], [0], [1], [0, 0, 1, 1], [], []>} : vector<16x16xf32>, vector<16x4xf32>, vector<16x4xf32> -> vector<16x4xf32>
    %382 = vector.extract_strided_slice %235 {offsets = [0, 24], sizes = [32, 4], strides = [1, 1]} : vector<32x32xf32> to vector<32x4xf32>
    %cst_157 = arith.constant dense<0.000000e+00> : vector<16x32xf32>
    %383 = tpu.matmul %381, %382, %cst_157 {dimension_numbers = #tpu.dot_dimension_numbers<[1], [1], [0], [0], [0, 0, 1, 0], [], []>} : vector<16x4xf32>, vector<32x4xf32>, vector<16x32xf32> -> vector<16x32xf32>
    %384 = arith.addf %365, %383 : vector<16x32xf32>
    %385 = vector.extract_strided_slice %248 {offsets = [0, 28], sizes = [16, 4], strides = [1, 1]} : vector<16x32xf32> to vector<16x4xf32>
    %386 = vector.extract_strided_slice %249 {offsets = [0, 28], sizes = [16, 4], strides = [1, 1]} : vector<16x32xf32> to vector<16x4xf32>
    %387 = vector.extract_strided_slice %250 {offsets = [0, 28], sizes = [16, 4], strides = [1, 1]} : vector<16x32xf32> to vector<16x4xf32>
    %cst_158 = arith.constant dense<0.000000e+00> : vector<16x16xf32>
    %388 = tpu.matmul %385, %386, %cst_158 {dimension_numbers = #tpu.dot_dimension_numbers<[1], [1], [0], [0], [0, 0, 1, 0], [], []>} : vector<16x4xf32>, vector<16x4xf32>, vector<16x16xf32> -> vector<16x16xf32>
    %cst_159 = arith.constant 5.000000e-01 : f32
    %389 = vector.broadcast %cst_159 : f32 to vector<16x16xf32>
    %390 = arith.mulf %388, %389 : vector<16x16xf32>
    %cst_160 = arith.constant dense<0xFF800000> : vector<16xf32>
    %391 = vector.multi_reduction <maximumf>, %390, %cst_160 [1] : vector<16x16xf32> to vector<16xf32>
    %392 = vector.shape_cast %391 : vector<16xf32> to vector<16x1xf32>
    %393 = vector.broadcast %392 : vector<16x1xf32> to vector<16x16xf32>
    %394 = arith.subf %390, %393 : vector<16x16xf32>
    %395 = math.exp %394 : vector<16x16xf32>
    %cst_161 = arith.constant dense<0.000000e+00> : vector<16xf32>
    %396 = vector.multi_reduction <add>, %395, %cst_161 [1] : vector<16x16xf32> to vector<16xf32>
    %397 = vector.shape_cast %396 : vector<16xf32> to vector<16x1xf32>
    %398 = vector.broadcast %397 : vector<16x1xf32> to vector<16x16xf32>
    %399 = arith.divf %395, %398 : vector<16x16xf32>
    %cst_162 = arith.constant dense<0.000000e+00> : vector<16x4xf32>
    %400 = tpu.matmul %399, %387, %cst_162 {dimension_numbers = #tpu.dot_dimension_numbers<[1], [0], [0], [1], [0, 0, 1, 1], [], []>} : vector<16x16xf32>, vector<16x4xf32>, vector<16x4xf32> -> vector<16x4xf32>
    %401 = vector.extract_strided_slice %235 {offsets = [0, 28], sizes = [32, 4], strides = [1, 1]} : vector<32x32xf32> to vector<32x4xf32>
    %cst_163 = arith.constant dense<0.000000e+00> : vector<16x32xf32>
    %402 = tpu.matmul %400, %401, %cst_163 {dimension_numbers = #tpu.dot_dimension_numbers<[1], [1], [0], [0], [0, 0, 1, 0], [], []>} : vector<16x4xf32>, vector<32x4xf32>, vector<16x32xf32> -> vector<16x32xf32>
    %403 = arith.addf %384, %402 : vector<16x32xf32>
    %404 = arith.addf %232, %403 : vector<16x32xf32>
    %405 = vector.broadcast %236 : vector<1x32xf32> to vector<16x32xf32>
    %406 = arith.addf %404, %405 : vector<16x32xf32>
    %cst_164 = arith.constant dense<0.000000e+00> : vector<16xf32>
    %407 = vector.multi_reduction <add>, %406, %cst_164 [1] : vector<16x32xf32> to vector<16xf32>
    %408 = vector.shape_cast %407 : vector<16xf32> to vector<16x1xf32>
    %cst_165 = arith.constant 3.200000e+01 : f32
    %409 = vector.broadcast %cst_165 : f32 to vector<16x1xf32>
    %410 = arith.divf %408, %409 : vector<16x1xf32>
    %411 = vector.broadcast %410 : vector<16x1xf32> to vector<16x32xf32>
    %412 = arith.subf %406, %411 : vector<16x32xf32>
    %413 = arith.mulf %412, %412 : vector<16x32xf32>
    %cst_166 = arith.constant dense<0.000000e+00> : vector<16xf32>
    %414 = vector.multi_reduction <add>, %413, %cst_166 [1] : vector<16x32xf32> to vector<16xf32>
    %415 = vector.shape_cast %414 : vector<16xf32> to vector<16x1xf32>
    %cst_167 = arith.constant 3.200000e+01 : f32
    %416 = vector.broadcast %cst_167 : f32 to vector<16x1xf32>
    %417 = arith.divf %415, %416 : vector<16x1xf32>
    %418 = vector.broadcast %410 : vector<16x1xf32> to vector<16x32xf32>
    %419 = arith.subf %406, %418 : vector<16x32xf32>
    %cst_168 = arith.constant 9.99999974E-6 : f32
    %420 = vector.broadcast %cst_168 : f32 to vector<16x1xf32>
    %421 = arith.addf %417, %420 : vector<16x1xf32>
    %422 = math.rsqrt %421 : vector<16x1xf32>
    %423 = vector.broadcast %422 : vector<16x1xf32> to vector<16x32xf32>
    %424 = arith.mulf %419, %423 : vector<16x32xf32>
    %425 = vector.broadcast %237 : vector<1x32xf32> to vector<16x32xf32>
    %426 = arith.mulf %424, %425 : vector<16x32xf32>
    %427 = vector.broadcast %238 : vector<1x32xf32> to vector<16x32xf32>
    %428 = arith.addf %426, %427 : vector<16x32xf32>
    %429 = arith.truncf %428 : vector<16x32xf32> to vector<16x32xbf16>
    %cst_169 = arith.constant dense<0.000000e+00> : vector<16x2048xf32>
    %430 = tpu.matmul %429, %239, %cst_169 {dimension_numbers = #tpu.dot_dimension_numbers<[1], [0], [0], [1], [0, 0, 1, 1], [], []>} : vector<16x32xbf16>, vector<32x2048xbf16>, vector<16x2048xf32> -> vector<16x2048xf32>
    %431 = vector.broadcast %240 : vector<1x2048xf32> to vector<16x2048xf32>
    %432 = arith.addf %430, %431 : vector<16x2048xf32>
    %cst_170 = arith.constant 0.000000e+00 : f32
    %433 = vector.broadcast %cst_170 : f32 to vector<16x2048xf32>
    %434 = arith.maximumf %432, %433 : vector<16x2048xf32>
    %435 = arith.truncf %434 : vector<16x2048xf32> to vector<16x2048xbf16>
    %cst_171 = arith.constant dense<0.000000e+00> : vector<16x32xf32>
    %436 = tpu.matmul %435, %241, %cst_171 {dimension_numbers = #tpu.dot_dimension_numbers<[1], [0], [0], [1], [0, 0, 1, 1], [], []>} : vector<16x2048xbf16>, vector<2048x32xbf16>, vector<16x32xf32> -> vector<16x32xf32>
    %437 = vector.broadcast %242 : vector<1x32xf32> to vector<16x32xf32>
    %438 = arith.addf %436, %437 : vector<16x32xf32>
    %439 = arith.addf %428, %438 : vector<16x32xf32>
    %cst_172 = arith.constant dense<0.000000e+00> : vector<16xf32>
    %440 = vector.multi_reduction <add>, %439, %cst_172 [1] : vector<16x32xf32> to vector<16xf32>
    %441 = vector.shape_cast %440 : vector<16xf32> to vector<16x1xf32>
    %cst_173 = arith.constant 3.200000e+01 : f32
    %442 = vector.broadcast %cst_173 : f32 to vector<16x1xf32>
    %443 = arith.divf %441, %442 : vector<16x1xf32>
    %444 = vector.broadcast %443 : vector<16x1xf32> to vector<16x32xf32>
    %445 = arith.subf %439, %444 : vector<16x32xf32>
    %446 = arith.mulf %445, %445 : vector<16x32xf32>
    %cst_174 = arith.constant dense<0.000000e+00> : vector<16xf32>
    %447 = vector.multi_reduction <add>, %446, %cst_174 [1] : vector<16x32xf32> to vector<16xf32>
    %448 = vector.shape_cast %447 : vector<16xf32> to vector<16x1xf32>
    %cst_175 = arith.constant 3.200000e+01 : f32
    %449 = vector.broadcast %cst_175 : f32 to vector<16x1xf32>
    %450 = arith.divf %448, %449 : vector<16x1xf32>
    %451 = vector.broadcast %443 : vector<16x1xf32> to vector<16x32xf32>
    %452 = arith.subf %439, %451 : vector<16x32xf32>
    %cst_176 = arith.constant 9.99999974E-6 : f32
    %453 = vector.broadcast %cst_176 : f32 to vector<16x1xf32>
    %454 = arith.addf %450, %453 : vector<16x1xf32>
    %455 = math.rsqrt %454 : vector<16x1xf32>
    %456 = vector.broadcast %455 : vector<16x1xf32> to vector<16x32xf32>
    %457 = arith.mulf %452, %456 : vector<16x32xf32>
    %458 = vector.broadcast %243 : vector<1x32xf32> to vector<16x32xf32>
    %459 = arith.mulf %457, %458 : vector<16x32xf32>
    %460 = vector.broadcast %244 : vector<1x32xf32> to vector<16x32xf32>
    %461 = arith.addf %459, %460 : vector<16x32xf32>
    %c0_177 = arith.constant 0 : index
    %c0_178 = arith.constant 0 : index
    %462 = vector.load %arg27[%c0_177, %c0_178] : memref<32x4xf32, #tpu.memory_space<vmem>>, vector<32x4xf32>
    %c0_179 = arith.constant 0 : index
    %c0_180 = arith.constant 0 : index
    %463 = vector.load %arg28[%c0_179, %c0_180] : memref<1x4xf32, #tpu.memory_space<vmem>>, vector<1x4xf32>
    %c0_181 = arith.constant 0 : index
    %c0_182 = arith.constant 0 : index
    %464 = vector.load %arg29[%c0_181, %c0_182] : memref<16x4xf32, #tpu.memory_space<vmem>>, vector<16x4xf32>
    %cst_183 = arith.constant dense<0.000000e+00> : vector<16x4xf32>
    %465 = tpu.matmul %461, %462, %cst_183 {dimension_numbers = #tpu.dot_dimension_numbers<[1], [0], [0], [1], [0, 0, 1, 1], [], []>} : vector<16x32xf32>, vector<32x4xf32>, vector<16x4xf32> -> vector<16x4xf32>
    %466 = vector.broadcast %463 : vector<1x4xf32> to vector<16x4xf32>
    %467 = arith.addf %465, %466 : vector<16x4xf32>
    %468 = arith.addf %467, %464 : vector<16x4xf32>
    %c0_184 = arith.constant 0 : index
    %c0_185 = arith.constant 0 : index
    %c0_186 = arith.constant 0 : index
    %469 = vector.load %arg30[%c0_184, %c0_185, %c0_186] : memref<1x16x4xf32, #tpu.memory_space<vmem>>, vector<1x16x4xf32>
    %470 = vector.shape_cast %469 : vector<1x16x4xf32> to vector<16x4xf32>
    %471 = vector.shape_cast %468 : vector<16x4xf32> to vector<1x16x4xf32>
    tpu.vector_store %arg30[%c0_184, %c0_185, %c0_186], %471 {strides = array<i32>} : memref<1x16x4xf32, #tpu.memory_space<vmem>>, vector<1x16x4xf32>,
    return
  }
  func.func @transform_0(%arg0: i32) -> (i32, i32, i32) {
    %c0_i32 = arith.constant 0 : i32
    %c0_i32_0 = arith.constant 0 : i32
    %c0_i32_1 = arith.constant 0 : i32
    return %arg0, %c0_i32, %c0_i32_0 : i32, i32, i32
  }
  func.func @transform_1(%arg0: i32) -> (i32, i32) {
    %c0_i32 = arith.constant 0 : i32
    %c0_i32_0 = arith.constant 0 : i32
    %c0_i32_1 = arith.constant 0 : i32
    return %c0_i32, %c0_i32_0 : i32, i32
  }
  func.func @transform_2(%arg0: i32) -> (i32, i32) {
    %c0_i32 = arith.constant 0 : i32
    %c0_i32_0 = arith.constant 0 : i32
    %c0_i32_1 = arith.constant 0 : i32
    return %c0_i32, %c0_i32_0 : i32, i32
  }
  func.func @transform_3(%arg0: i32) -> (i32, i32) {
    %c0_i32 = arith.constant 0 : i32
    %c0_i32_0 = arith.constant 0 : i32
    %c0_i32_1 = arith.constant 0 : i32
    return %c0_i32, %c0_i32_0 : i32, i32
  }
  func.func @transform_4(%arg0: i32) -> (i32, i32) {
    %c0_i32 = arith.constant 0 : i32
    %c0_i32_0 = arith.constant 0 : i32
    %c0_i32_1 = arith.constant 0 : i32
    return %c0_i32, %c0_i32_0 : i32, i32
  }
  func.func @transform_5(%arg0: i32) -> (i32, i32) {
    %c0_i32 = arith.constant 0 : i32
    %c0_i32_0 = arith.constant 0 : i32
    %c0_i32_1 = arith.constant 0 : i32
    return %c0_i32, %c0_i32_0 : i32, i32
  }
  func.func @transform_6(%arg0: i32) -> (i32, i32) {
    %c0_i32 = arith.constant 0 : i32
    %c0_i32_0 = arith.constant 0 : i32
    %c0_i32_1 = arith.constant 0 : i32
    return %c0_i32, %c0_i32_0 : i32, i32
  }
  func.func @transform_7(%arg0: i32) -> (i32, i32) {
    %c0_i32 = arith.constant 0 : i32
    %c0_i32_0 = arith.constant 0 : i32
    %c0_i32_1 = arith.constant 0 : i32
    return %c0_i32, %c0_i32_0 : i32, i32
  }
  func.func @transform_8(%arg0: i32) -> (i32, i32) {
    %c0_i32 = arith.constant 0 : i32
    %c0_i32_0 = arith.constant 0 : i32
    %c0_i32_1 = arith.constant 0 : i32
    return %c0_i32, %c0_i32_0 : i32, i32
  }
  func.func @transform_9(%arg0: i32) -> (i32, i32) {
    %c0_i32 = arith.constant 0 : i32
    %c0_i32_0 = arith.constant 0 : i32
    %c0_i32_1 = arith.constant 0 : i32
    return %c0_i32, %c0_i32_0 : i32, i32
  }
  func.func @transform_10(%arg0: i32) -> (i32, i32) {
    %c0_i32 = arith.constant 0 : i32
    %c0_i32_0 = arith.constant 0 : i32
    %c0_i32_1 = arith.constant 0 : i32
    return %c0_i32, %c0_i32_0 : i32, i32
  }
  func.func @transform_11(%arg0: i32) -> (i32, i32) {
    %c0_i32 = arith.constant 0 : i32
    %c0_i32_0 = arith.constant 0 : i32
    %c0_i32_1 = arith.constant 0 : i32
    return %c0_i32, %c0_i32_0 : i32, i32
  }
  func.func @transform_12(%arg0: i32) -> (i32, i32) {
    %c0_i32 = arith.constant 0 : i32
    %c0_i32_0 = arith.constant 0 : i32
    %c0_i32_1 = arith.constant 0 : i32
    return %c0_i32, %c0_i32_0 : i32, i32
  }
  func.func @transform_13(%arg0: i32) -> (i32, i32) {
    %c0_i32 = arith.constant 0 : i32
    %c0_i32_0 = arith.constant 0 : i32
    %c0_i32_1 = arith.constant 0 : i32
    return %c0_i32, %c0_i32_0 : i32, i32
  }
  func.func @transform_14(%arg0: i32) -> (i32, i32) {
    %c0_i32 = arith.constant 0 : i32
    %c0_i32_0 = arith.constant 0 : i32
    %c0_i32_1 = arith.constant 0 : i32
    return %c0_i32, %c0_i32_0 : i32, i32
  }
  func.func @transform_15(%arg0: i32) -> (i32, i32) {
    %c0_i32 = arith.constant 0 : i32
    %c0_i32_0 = arith.constant 0 : i32
    %c0_i32_1 = arith.constant 0 : i32
    return %c0_i32, %c0_i32_0 : i32, i32
  }
  func.func @transform_16(%arg0: i32) -> (i32, i32) {
    %c0_i32 = arith.constant 0 : i32
    %c0_i32_0 = arith.constant 0 : i32
    %c0_i32_1 = arith.constant 0 : i32
    return %c0_i32, %c0_i32_0 : i32, i32
  }
  func.func @transform_17(%arg0: i32) -> (i32, i32) {
    %c0_i32 = arith.constant 0 : i32
    %c0_i32_0 = arith.constant 0 : i32
    %c0_i32_1 = arith.constant 0 : i32
    return %c0_i32, %c0_i32_0 : i32, i32
  }
  func.func @transform_18(%arg0: i32) -> (i32, i32) {
    %c0_i32 = arith.constant 0 : i32
    %c0_i32_0 = arith.constant 0 : i32
    %c0_i32_1 = arith.constant 0 : i32
    return %c0_i32, %c0_i32_0 : i32, i32
  }
  func.func @transform_19(%arg0: i32) -> (i32, i32) {
    %c0_i32 = arith.constant 0 : i32
    %c0_i32_0 = arith.constant 0 : i32
    %c0_i32_1 = arith.constant 0 : i32
    return %c0_i32, %c0_i32_0 : i32, i32
  }
  func.func @transform_20(%arg0: i32) -> (i32, i32) {
    %c0_i32 = arith.constant 0 : i32
    %c0_i32_0 = arith.constant 0 : i32
    %c0_i32_1 = arith.constant 0 : i32
    return %c0_i32, %c0_i32_0 : i32, i32
  }
  func.func @transform_21(%arg0: i32) -> (i32, i32) {
    %c0_i32 = arith.constant 0 : i32
    %c0_i32_0 = arith.constant 0 : i32
    %c0_i32_1 = arith.constant 0 : i32
    return %c0_i32, %c0_i32_0 : i32, i32
  }
  func.func @transform_22(%arg0: i32) -> (i32, i32) {
    %c0_i32 = arith.constant 0 : i32
    %c0_i32_0 = arith.constant 0 : i32
    %c0_i32_1 = arith.constant 0 : i32
    return %c0_i32, %c0_i32_0 : i32, i32
  }
  func.func @transform_23(%arg0: i32) -> (i32, i32) {
    %c0_i32 = arith.constant 0 : i32
    %c0_i32_0 = arith.constant 0 : i32
    %c0_i32_1 = arith.constant 0 : i32
    return %c0_i32, %c0_i32_0 : i32, i32
  }
  func.func @transform_24(%arg0: i32) -> (i32, i32) {
    %c0_i32 = arith.constant 0 : i32
    %c0_i32_0 = arith.constant 0 : i32
    %c0_i32_1 = arith.constant 0 : i32
    return %c0_i32, %c0_i32_0 : i32, i32
  }
  func.func @transform_25(%arg0: i32) -> (i32, i32) {
    %c0_i32 = arith.constant 0 : i32
    %c0_i32_0 = arith.constant 0 : i32
    %c0_i32_1 = arith.constant 0 : i32
    return %c0_i32, %c0_i32_0 : i32, i32
  }
  func.func @transform_26(%arg0: i32) -> (i32, i32) {
    %c0_i32 = arith.constant 0 : i32
    %c0_i32_0 = arith.constant 0 : i32
    %c0_i32_1 = arith.constant 0 : i32
    return %c0_i32, %c0_i32_0 : i32, i32
  }
  func.func @transform_27(%arg0: i32) -> (i32, i32) {
    %c0_i32 = arith.constant 0 : i32
    %c0_i32_0 = arith.constant 0 : i32
    %c0_i32_1 = arith.constant 0 : i32
    return %c0_i32, %c0_i32_0 : i32, i32
  }
  func.func @transform_28(%arg0: i32) -> (i32, i32) {
    %c0_i32 = arith.constant 0 : i32
    %c0_i32_0 = arith.constant 0 : i32
    %c0_i32_1 = arith.constant 0 : i32
    return %c0_i32, %c0_i32_0 : i32, i32
  }
  func.func @transform_29(%arg0: i32) -> (i32, i32, i32) {
    %c0_i32 = arith.constant 0 : i32
    %c0_i32_0 = arith.constant 0 : i32
    %c0_i32_1 = arith.constant 0 : i32
    return %arg0, %c0_i32, %c0_i32_0 : i32, i32, i32
  }
}

module attributes {stable_mosaic.version = 11 : i64} {
  func.func @_score_select_kernel(%arg0: i32, %arg1: memref<1x16x32xbf16, #tpu.memory_space<vmem>>, %arg2: memref<1x800x16xbf16, #tpu.memory_space<vmem>>, %arg3: memref<1600x128xbf16, #tpu.memory_space<vmem>>, %arg4: memref<1x128xf32, #tpu.memory_space<vmem>>, %arg5: memref<128x128xf32, #tpu.memory_space<vmem>>, %arg6: memref<1x128xf32, #tpu.memory_space<vmem>>, %arg7: memref<128x1xf32, #tpu.memory_space<vmem>>, %arg8: memref<1x1xf32, #tpu.memory_space<vmem>>, %arg9: memref<1x16x4xf32, #tpu.memory_space<vmem>>, %arg10: memref<1x16x1xf32, #tpu.memory_space<vmem>>, %arg11: memref<1x1x4xf32, #tpu.memory_space<vmem>>, %arg12: memref<1x16x1xf32, #tpu.memory_space<vmem>>) attributes {dimension_semantics = [#tpu.dimension_semantics<parallel>], iteration_bounds = array<i64: 2>, scalar_prefetch = 0 : i64, scratch_operands = 0 : i64, tpu.core_type = #tpu.core_type<tc>, window_params = [{transform_indices = @transform_0, window_bounds = array<i64: 1, 16, 32>}, {transform_indices = @transform_1, window_bounds = array<i64: 1, 800, 16>}, {pipeline_mode = #tpu.pipeline_mode<synchronous>, transform_indices = @transform_2, window_bounds = array<i64: 1600, 128>}, {pipeline_mode = #tpu.pipeline_mode<synchronous>, transform_indices = @transform_3, window_bounds = array<i64: 1, 128>}, {pipeline_mode = #tpu.pipeline_mode<synchronous>, transform_indices = @transform_4, window_bounds = array<i64: 128, 128>}, {pipeline_mode = #tpu.pipeline_mode<synchronous>, transform_indices = @transform_5, window_bounds = array<i64: 1, 128>}, {pipeline_mode = #tpu.pipeline_mode<synchronous>, transform_indices = @transform_6, window_bounds = array<i64: 128, 1>}, {pipeline_mode = #tpu.pipeline_mode<synchronous>, transform_indices = @transform_7, window_bounds = array<i64: 1, 1>}, {transform_indices = @transform_8, window_bounds = array<i64: 1, 16, 4>}, {transform_indices = @transform_9, window_bounds = array<i64: 1, 16, 1>}, {transform_indices = @transform_10, window_bounds = array<i64: 1, 1, 4>}, {transform_indices = @transform_11, window_bounds = array<i64: 1, 16, 1>}]} {
    %c0 = arith.constant 0 : index
    %c0_0 = arith.constant 0 : index
    %c0_1 = arith.constant 0 : index
    %0 = vector.load %arg1[%c0, %c0_0, %c0_1] : memref<1x16x32xbf16, #tpu.memory_space<vmem>>, vector<1x16x32xbf16>
    %1 = vector.shape_cast %0 : vector<1x16x32xbf16> to vector<16x32xbf16>
    %c0_2 = arith.constant 0 : index
    %c0_3 = arith.constant 0 : index
    %c0_4 = arith.constant 0 : index
    %2 = vector.load %arg2[%c0_2, %c0_3, %c0_4] : memref<1x800x16xbf16, #tpu.memory_space<vmem>>, vector<1x800x16xbf16>
    %3 = vector.shape_cast %2 : vector<1x800x16xbf16> to vector<800x16xbf16>
    %cst = arith.constant dense<0.000000e+00> : vector<800x32xf32>
    %4 = tpu.matmul %3, %1, %cst {dimension_numbers = #tpu.dot_dimension_numbers<[1], [0], [0], [1], [0, 0, 1, 1], [], []>} : vector<800x16xbf16>, vector<16x32xbf16>, vector<800x32xf32> -> vector<800x32xf32>
    %5 = vector.extract_strided_slice %4 {offsets = [0, 0], sizes = [16, 32], strides = [1, 1]} : vector<800x32xf32> to vector<16x32xf32>
    %6 = vector.extract_strided_slice %4 {offsets = [16, 0], sizes = [16, 32], strides = [1, 1]} : vector<800x32xf32> to vector<16x32xf32>
    %7 = vector.extract_strided_slice %4 {offsets = [32, 0], sizes = [16, 32], strides = [1, 1]} : vector<800x32xf32> to vector<16x32xf32>
    %8 = vector.extract_strided_slice %4 {offsets = [48, 0], sizes = [16, 32], strides = [1, 1]} : vector<800x32xf32> to vector<16x32xf32>
    %9 = vector.extract_strided_slice %4 {offsets = [64, 0], sizes = [16, 32], strides = [1, 1]} : vector<800x32xf32> to vector<16x32xf32>
    %10 = vector.extract_strided_slice %4 {offsets = [80, 0], sizes = [16, 32], strides = [1, 1]} : vector<800x32xf32> to vector<16x32xf32>
    %11 = vector.extract_strided_slice %4 {offsets = [96, 0], sizes = [16, 32], strides = [1, 1]} : vector<800x32xf32> to vector<16x32xf32>
    %12 = vector.extract_strided_slice %4 {offsets = [112, 0], sizes = [16, 32], strides = [1, 1]} : vector<800x32xf32> to vector<16x32xf32>
    %13 = vector.extract_strided_slice %4 {offsets = [128, 0], sizes = [16, 32], strides = [1, 1]} : vector<800x32xf32> to vector<16x32xf32>
    %14 = vector.extract_strided_slice %4 {offsets = [144, 0], sizes = [16, 32], strides = [1, 1]} : vector<800x32xf32> to vector<16x32xf32>
    %15 = vector.extract_strided_slice %4 {offsets = [160, 0], sizes = [16, 32], strides = [1, 1]} : vector<800x32xf32> to vector<16x32xf32>
    %16 = vector.extract_strided_slice %4 {offsets = [176, 0], sizes = [16, 32], strides = [1, 1]} : vector<800x32xf32> to vector<16x32xf32>
    %17 = vector.extract_strided_slice %4 {offsets = [192, 0], sizes = [16, 32], strides = [1, 1]} : vector<800x32xf32> to vector<16x32xf32>
    %18 = vector.extract_strided_slice %4 {offsets = [208, 0], sizes = [16, 32], strides = [1, 1]} : vector<800x32xf32> to vector<16x32xf32>
    %19 = vector.extract_strided_slice %4 {offsets = [224, 0], sizes = [16, 32], strides = [1, 1]} : vector<800x32xf32> to vector<16x32xf32>
    %20 = vector.extract_strided_slice %4 {offsets = [240, 0], sizes = [16, 32], strides = [1, 1]} : vector<800x32xf32> to vector<16x32xf32>
    %21 = vector.extract_strided_slice %4 {offsets = [256, 0], sizes = [16, 32], strides = [1, 1]} : vector<800x32xf32> to vector<16x32xf32>
    %22 = vector.extract_strided_slice %4 {offsets = [272, 0], sizes = [16, 32], strides = [1, 1]} : vector<800x32xf32> to vector<16x32xf32>
    %23 = vector.extract_strided_slice %4 {offsets = [288, 0], sizes = [16, 32], strides = [1, 1]} : vector<800x32xf32> to vector<16x32xf32>
    %24 = vector.extract_strided_slice %4 {offsets = [304, 0], sizes = [16, 32], strides = [1, 1]} : vector<800x32xf32> to vector<16x32xf32>
    %25 = vector.extract_strided_slice %4 {offsets = [320, 0], sizes = [16, 32], strides = [1, 1]} : vector<800x32xf32> to vector<16x32xf32>
    %26 = vector.extract_strided_slice %4 {offsets = [336, 0], sizes = [16, 32], strides = [1, 1]} : vector<800x32xf32> to vector<16x32xf32>
    %27 = vector.extract_strided_slice %4 {offsets = [352, 0], sizes = [16, 32], strides = [1, 1]} : vector<800x32xf32> to vector<16x32xf32>
    %28 = vector.extract_strided_slice %4 {offsets = [368, 0], sizes = [16, 32], strides = [1, 1]} : vector<800x32xf32> to vector<16x32xf32>
    %29 = vector.extract_strided_slice %4 {offsets = [384, 0], sizes = [16, 32], strides = [1, 1]} : vector<800x32xf32> to vector<16x32xf32>
    %30 = vector.extract_strided_slice %4 {offsets = [400, 0], sizes = [16, 32], strides = [1, 1]} : vector<800x32xf32> to vector<16x32xf32>
    %31 = vector.extract_strided_slice %4 {offsets = [416, 0], sizes = [16, 32], strides = [1, 1]} : vector<800x32xf32> to vector<16x32xf32>
    %32 = vector.extract_strided_slice %4 {offsets = [432, 0], sizes = [16, 32], strides = [1, 1]} : vector<800x32xf32> to vector<16x32xf32>
    %33 = vector.extract_strided_slice %4 {offsets = [448, 0], sizes = [16, 32], strides = [1, 1]} : vector<800x32xf32> to vector<16x32xf32>
    %34 = vector.extract_strided_slice %4 {offsets = [464, 0], sizes = [16, 32], strides = [1, 1]} : vector<800x32xf32> to vector<16x32xf32>
    %35 = vector.extract_strided_slice %4 {offsets = [480, 0], sizes = [16, 32], strides = [1, 1]} : vector<800x32xf32> to vector<16x32xf32>
    %36 = vector.extract_strided_slice %4 {offsets = [496, 0], sizes = [16, 32], strides = [1, 1]} : vector<800x32xf32> to vector<16x32xf32>
    %37 = vector.extract_strided_slice %4 {offsets = [512, 0], sizes = [16, 32], strides = [1, 1]} : vector<800x32xf32> to vector<16x32xf32>
    %38 = vector.extract_strided_slice %4 {offsets = [528, 0], sizes = [16, 32], strides = [1, 1]} : vector<800x32xf32> to vector<16x32xf32>
    %39 = vector.extract_strided_slice %4 {offsets = [544, 0], sizes = [16, 32], strides = [1, 1]} : vector<800x32xf32> to vector<16x32xf32>
    %40 = vector.extract_strided_slice %4 {offsets = [560, 0], sizes = [16, 32], strides = [1, 1]} : vector<800x32xf32> to vector<16x32xf32>
    %41 = vector.extract_strided_slice %4 {offsets = [576, 0], sizes = [16, 32], strides = [1, 1]} : vector<800x32xf32> to vector<16x32xf32>
    %42 = vector.extract_strided_slice %4 {offsets = [592, 0], sizes = [16, 32], strides = [1, 1]} : vector<800x32xf32> to vector<16x32xf32>
    %43 = vector.extract_strided_slice %4 {offsets = [608, 0], sizes = [16, 32], strides = [1, 1]} : vector<800x32xf32> to vector<16x32xf32>
    %44 = vector.extract_strided_slice %4 {offsets = [624, 0], sizes = [16, 32], strides = [1, 1]} : vector<800x32xf32> to vector<16x32xf32>
    %45 = vector.extract_strided_slice %4 {offsets = [640, 0], sizes = [16, 32], strides = [1, 1]} : vector<800x32xf32> to vector<16x32xf32>
    %46 = vector.extract_strided_slice %4 {offsets = [656, 0], sizes = [16, 32], strides = [1, 1]} : vector<800x32xf32> to vector<16x32xf32>
    %47 = vector.extract_strided_slice %4 {offsets = [672, 0], sizes = [16, 32], strides = [1, 1]} : vector<800x32xf32> to vector<16x32xf32>
    %48 = vector.extract_strided_slice %4 {offsets = [688, 0], sizes = [16, 32], strides = [1, 1]} : vector<800x32xf32> to vector<16x32xf32>
    %49 = vector.extract_strided_slice %4 {offsets = [704, 0], sizes = [16, 32], strides = [1, 1]} : vector<800x32xf32> to vector<16x32xf32>
    %50 = vector.extract_strided_slice %4 {offsets = [720, 0], sizes = [16, 32], strides = [1, 1]} : vector<800x32xf32> to vector<16x32xf32>
    %51 = vector.extract_strided_slice %4 {offsets = [736, 0], sizes = [16, 32], strides = [1, 1]} : vector<800x32xf32> to vector<16x32xf32>
    %52 = vector.extract_strided_slice %4 {offsets = [752, 0], sizes = [16, 32], strides = [1, 1]} : vector<800x32xf32> to vector<16x32xf32>
    %53 = vector.extract_strided_slice %4 {offsets = [768, 0], sizes = [16, 32], strides = [1, 1]} : vector<800x32xf32> to vector<16x32xf32>
    %54 = vector.extract_strided_slice %4 {offsets = [784, 0], sizes = [16, 32], strides = [1, 1]} : vector<800x32xf32> to vector<16x32xf32>
    %55 = tpu.concatenate %5, %6, %7, %8, %9, %10, %11, %12, %13, %14, %15, %16, %17, %18, %19, %20 in 1 : vector<16x32xf32>, vector<16x32xf32>, vector<16x32xf32>, vector<16x32xf32>, vector<16x32xf32>, vector<16x32xf32>, vector<16x32xf32>, vector<16x32xf32>, vector<16x32xf32>, vector<16x32xf32>, vector<16x32xf32>, vector<16x32xf32>, vector<16x32xf32>, vector<16x32xf32>, vector<16x32xf32>, vector<16x32xf32> -> vector<16x512xf32>
    %56 = tpu.concatenate %21, %22, %23, %24, %25, %26, %27, %28, %29, %30, %31, %32, %33, %34, %35, %36 in 1 : vector<16x32xf32>, vector<16x32xf32>, vector<16x32xf32>, vector<16x32xf32>, vector<16x32xf32>, vector<16x32xf32>, vector<16x32xf32>, vector<16x32xf32>, vector<16x32xf32>, vector<16x32xf32>, vector<16x32xf32>, vector<16x32xf32>, vector<16x32xf32>, vector<16x32xf32>, vector<16x32xf32>, vector<16x32xf32> -> vector<16x512xf32>
    %57 = tpu.concatenate %37, %38, %39, %40, %41, %42, %43, %44, %45, %46, %47, %48, %49, %50, %51, %52 in 1 : vector<16x32xf32>, vector<16x32xf32>, vector<16x32xf32>, vector<16x32xf32>, vector<16x32xf32>, vector<16x32xf32>, vector<16x32xf32>, vector<16x32xf32>, vector<16x32xf32>, vector<16x32xf32>, vector<16x32xf32>, vector<16x32xf32>, vector<16x32xf32>, vector<16x32xf32>, vector<16x32xf32>, vector<16x32xf32> -> vector<16x512xf32>
    %58 = tpu.concatenate %53, %54 in 1 : vector<16x32xf32>, vector<16x32xf32> -> vector<16x64xf32>
    %59 = tpu.concatenate %55, %56, %57, %58 in 1 : vector<16x512xf32>, vector<16x512xf32>, vector<16x512xf32>, vector<16x64xf32> -> vector<16x1600xf32>
    %60 = arith.truncf %59 : vector<16x1600xf32> to vector<16x1600xbf16>
    %c0_5 = arith.constant 0 : index
    %c0_6 = arith.constant 0 : index
    %61 = vector.load %arg3[%c0_5, %c0_6] : memref<1600x128xbf16, #tpu.memory_space<vmem>>, vector<1600x128xbf16>
    %cst_7 = arith.constant dense<0.000000e+00> : vector<16x128xf32>
    %62 = tpu.matmul %60, %61, %cst_7 {dimension_numbers = #tpu.dot_dimension_numbers<[1], [0], [0], [1], [0, 0, 1, 1], [], []>} : vector<16x1600xbf16>, vector<1600x128xbf16>, vector<16x128xf32> -> vector<16x128xf32>
    %c0_8 = arith.constant 0 : index
    %c0_9 = arith.constant 0 : index
    %63 = vector.load %arg4[%c0_8, %c0_9] : memref<1x128xf32, #tpu.memory_space<vmem>>, vector<1x128xf32>
    %64 = vector.broadcast %63 : vector<1x128xf32> to vector<16x128xf32>
    %65 = arith.addf %62, %64 : vector<16x128xf32>
    %cst_10 = arith.constant 0.000000e+00 : f32
    %66 = vector.broadcast %cst_10 : f32 to vector<16x128xf32>
    %67 = arith.maximumf %65, %66 : vector<16x128xf32>
    %c0_11 = arith.constant 0 : index
    %c0_12 = arith.constant 0 : index
    %68 = vector.load %arg5[%c0_11, %c0_12] : memref<128x128xf32, #tpu.memory_space<vmem>>, vector<128x128xf32>
    %cst_13 = arith.constant dense<0.000000e+00> : vector<16x128xf32>
    %69 = tpu.matmul %67, %68, %cst_13 {dimension_numbers = #tpu.dot_dimension_numbers<[1], [0], [0], [1], [0, 0, 1, 1], [], []>} : vector<16x128xf32>, vector<128x128xf32>, vector<16x128xf32> -> vector<16x128xf32>
    %c0_14 = arith.constant 0 : index
    %c0_15 = arith.constant 0 : index
    %70 = vector.load %arg6[%c0_14, %c0_15] : memref<1x128xf32, #tpu.memory_space<vmem>>, vector<1x128xf32>
    %71 = vector.broadcast %70 : vector<1x128xf32> to vector<16x128xf32>
    %72 = arith.addf %69, %71 : vector<16x128xf32>
    %cst_16 = arith.constant 0.000000e+00 : f32
    %73 = vector.broadcast %cst_16 : f32 to vector<16x128xf32>
    %74 = arith.maximumf %72, %73 : vector<16x128xf32>
    %c0_17 = arith.constant 0 : index
    %c0_18 = arith.constant 0 : index
    %75 = vector.load %arg7[%c0_17, %c0_18] : memref<128x1xf32, #tpu.memory_space<vmem>>, vector<128x1xf32>
    %cst_19 = arith.constant dense<0.000000e+00> : vector<16x1xf32>
    %76 = tpu.matmul %74, %75, %cst_19 {dimension_numbers = #tpu.dot_dimension_numbers<[1], [0], [0], [1], [0, 0, 1, 1], [], []>} : vector<16x128xf32>, vector<128x1xf32>, vector<16x1xf32> -> vector<16x1xf32>
    %c0_20 = arith.constant 0 : index
    %c0_21 = arith.constant 0 : index
    %77 = vector.load %arg8[%c0_20, %c0_21] : memref<1x1xf32, #tpu.memory_space<vmem>>, vector<1x1xf32>
    %78 = vector.broadcast %77 : vector<1x1xf32> to vector<16x1xf32>
    %79 = arith.addf %76, %78 : vector<16x1xf32>
    %c0_22 = arith.constant 0 : index
    %c0_23 = arith.constant 0 : index
    %c0_24 = arith.constant 0 : index
    %80 = vector.load %arg10[%c0_22, %c0_23, %c0_24] : memref<1x16x1xf32, #tpu.memory_space<vmem>>, vector<1x16x1xf32>
    %81 = vector.shape_cast %80 : vector<1x16x1xf32> to vector<16x1xf32>
    %82 = arith.mulf %79, %81 : vector<16x1xf32>
    %cst_25 = arith.constant dense<0xFF800000> : vector<1xf32>
    %83 = vector.multi_reduction <maximumf>, %82, %cst_25 [0] : vector<16x1xf32> to vector<1xf32>
    %84 = vector.shape_cast %83 : vector<1xf32> to vector<1x1xf32>
    %85 = vector.broadcast %84 : vector<1x1xf32> to vector<16x1xf32>
    %86 = arith.subf %82, %85 : vector<16x1xf32>
    %87 = math.exp %86 : vector<16x1xf32>
    %cst_26 = arith.constant dense<0.000000e+00> : vector<1xf32>
    %88 = vector.multi_reduction <add>, %87, %cst_26 [0] : vector<16x1xf32> to vector<1xf32>
    %89 = vector.shape_cast %88 : vector<1xf32> to vector<1x1xf32>
    %90 = vector.broadcast %89 : vector<1x1xf32> to vector<16x1xf32>
    %91 = arith.divf %87, %90 : vector<16x1xf32>
    %c0_27 = arith.constant 0 : index
    %c0_28 = arith.constant 0 : index
    %c0_29 = arith.constant 0 : index
    %92 = vector.load %arg12[%c0_27, %c0_28, %c0_29] : memref<1x16x1xf32, #tpu.memory_space<vmem>>, vector<1x16x1xf32>
    %93 = vector.shape_cast %92 : vector<1x16x1xf32> to vector<16x1xf32>
    %94 = vector.shape_cast %91 : vector<16x1xf32> to vector<1x16x1xf32>
    tpu.vector_store %arg12[%c0_27, %c0_28, %c0_29], %94 {strides = array<i32>} : memref<1x16x1xf32, #tpu.memory_space<vmem>>, vector<1x16x1xf32>,
    %c0_30 = arith.constant 0 : index
    %c0_31 = arith.constant 0 : index
    %c0_32 = arith.constant 0 : index
    %95 = vector.load %arg9[%c0_30, %c0_31, %c0_32] : memref<1x16x4xf32, #tpu.memory_space<vmem>>, vector<1x16x4xf32>
    %96 = vector.shape_cast %95 : vector<1x16x4xf32> to vector<16x4xf32>
    %97 = vector.broadcast %91 : vector<16x1xf32> to vector<16x4xf32>
    %98 = arith.mulf %96, %97 : vector<16x4xf32>
    %cst_33 = arith.constant dense<0.000000e+00> : vector<4xf32>
    %99 = vector.multi_reduction <add>, %98, %cst_33 [0] : vector<16x4xf32> to vector<4xf32>
    %100 = vector.shape_cast %99 : vector<4xf32> to vector<1x4xf32>
    %c0_34 = arith.constant 0 : index
    %c0_35 = arith.constant 0 : index
    %c0_36 = arith.constant 0 : index
    %101 = vector.load %arg11[%c0_34, %c0_35, %c0_36] : memref<1x1x4xf32, #tpu.memory_space<vmem>>, vector<1x1x4xf32>
    %102 = vector.shape_cast %101 : vector<1x1x4xf32> to vector<1x4xf32>
    %103 = vector.shape_cast %100 : vector<1x4xf32> to vector<1x1x4xf32>
    tpu.vector_store %arg11[%c0_34, %c0_35, %c0_36], %103 {strides = array<i32>} : memref<1x1x4xf32, #tpu.memory_space<vmem>>, vector<1x1x4xf32>,
    return
  }
  func.func @transform_0(%arg0: i32) -> (i32, i32, i32) {
    %c0_i32 = arith.constant 0 : i32
    %c0_i32_0 = arith.constant 0 : i32
    %c0_i32_1 = arith.constant 0 : i32
    return %arg0, %c0_i32, %c0_i32_0 : i32, i32, i32
  }
  func.func @transform_1(%arg0: i32) -> (i32, i32, i32) {
    %c0_i32 = arith.constant 0 : i32
    %c0_i32_0 = arith.constant 0 : i32
    %c0_i32_1 = arith.constant 0 : i32
    return %arg0, %c0_i32, %c0_i32_0 : i32, i32, i32
  }
  func.func @transform_2(%arg0: i32) -> (i32, i32) {
    %c0_i32 = arith.constant 0 : i32
    %c0_i32_0 = arith.constant 0 : i32
    %c0_i32_1 = arith.constant 0 : i32
    return %c0_i32, %c0_i32_0 : i32, i32
  }
  func.func @transform_3(%arg0: i32) -> (i32, i32) {
    %c0_i32 = arith.constant 0 : i32
    %c0_i32_0 = arith.constant 0 : i32
    %c0_i32_1 = arith.constant 0 : i32
    return %c0_i32, %c0_i32_0 : i32, i32
  }
  func.func @transform_4(%arg0: i32) -> (i32, i32) {
    %c0_i32 = arith.constant 0 : i32
    %c0_i32_0 = arith.constant 0 : i32
    %c0_i32_1 = arith.constant 0 : i32
    return %c0_i32, %c0_i32_0 : i32, i32
  }
  func.func @transform_5(%arg0: i32) -> (i32, i32) {
    %c0_i32 = arith.constant 0 : i32
    %c0_i32_0 = arith.constant 0 : i32
    %c0_i32_1 = arith.constant 0 : i32
    return %c0_i32, %c0_i32_0 : i32, i32
  }
  func.func @transform_6(%arg0: i32) -> (i32, i32) {
    %c0_i32 = arith.constant 0 : i32
    %c0_i32_0 = arith.constant 0 : i32
    %c0_i32_1 = arith.constant 0 : i32
    return %c0_i32, %c0_i32_0 : i32, i32
  }
  func.func @transform_7(%arg0: i32) -> (i32, i32) {
    %c0_i32 = arith.constant 0 : i32
    %c0_i32_0 = arith.constant 0 : i32
    %c0_i32_1 = arith.constant 0 : i32
    return %c0_i32, %c0_i32_0 : i32, i32
  }
  func.func @transform_8(%arg0: i32) -> (i32, i32, i32) {
    %c0_i32 = arith.constant 0 : i32
    %c0_i32_0 = arith.constant 0 : i32
    %c0_i32_1 = arith.constant 0 : i32
    return %arg0, %c0_i32, %c0_i32_0 : i32, i32, i32
  }
  func.func @transform_9(%arg0: i32) -> (i32, i32, i32) {
    %c0_i32 = arith.constant 0 : i32
    %c0_i32_0 = arith.constant 0 : i32
    %c0_i32_1 = arith.constant 0 : i32
    return %arg0, %c0_i32, %c0_i32_0 : i32, i32, i32
  }
  func.func @transform_10(%arg0: i32) -> (i32, i32, i32) {
    %c0_i32 = arith.constant 0 : i32
    %c0_i32_0 = arith.constant 0 : i32
    %c0_i32_1 = arith.constant 0 : i32
    return %arg0, %c0_i32, %c0_i32_0 : i32, i32, i32
  }
  func.func @transform_11(%arg0: i32) -> (i32, i32, i32) {
    %c0_i32 = arith.constant 0 : i32
    %c0_i32_0 = arith.constant 0 : i32
    %c0_i32_1 = arith.constant 0 : i32
    return %arg0, %c0_i32, %c0_i32_0 : i32, i32, i32
  }
}

</mosaic_0001>

<bundles_post_ra>
// kernel: cropping_model_forward.3
= control target key start
LH: loop header
LB: loop body
LE: loop exit
PB: predicated region body
PF: predicated region fallthrough
CT: control target
= control target key end

     0   :  { %vm758_vm0 = vcmask 261120   ;;  %s1277_s1 = inlined_call_operand.vmem [shape: bf16[896,32], index: 1, kind: input, shape index: {}]   ;;  %s1278_s0 = inlined_call_operand.vmem [shape: bf16[32,896], index: 0, kind: input, shape index: {}]   ;;  %s1279_s2 = inlined_call_operand.vmem [shape: f32[1,32], index: 2, kind: input, shape index: {}]   ;;  %s1280_s3 = inlined_call_operand.vmem [shape: f32[32,32], index: 3, kind: output, shape index: {}]  }
   0x1   :  { %v952_v0 = vld [vmem:[%s1277_s1 + $0x40] sm:$0xff]   ;;  %v956_v4 = vld [vmem:[%s1277_s1 + $0x48] sm:$0xff]   ;;  %v960_v8 = vld [vmem:[%s1277_s1 + $0x50] sm:$0xff]  }
   0x2   :  { %v953_v1 = vld [vmem:[%s1277_s1] sm:$0xff]   ;;  %838 = vmatprep.subr.bf16.mxu0 %v952_v0  ;;  %v957_v5 = vld [vmem:[%s1277_s1 + $0x8] sm:$0xff]   ;;  %v961_v9 = vld [vmem:[%s1277_s1 + $0x10] sm:$0xff]  }
   0x3   :  { %v954_v2 = vld [vmem:[%s1277_s1 + $0xc0] sm:$0xff]   ;;  %839 = vmatpush3.bf16.msra.mxu0 %v953_v1  ;;  %v958_v6 = vld [vmem:[%s1277_s1 + $0xc8] sm:$0xff]   ;;  %v962_v10 = vld [vmem:[%s1277_s1 + $0xd0] sm:$0xff]  }
   0x4   :  { %v955_v3 = vld [vmem:[%s1277_s1 + $0x80] sm:$0xff]   ;;  %866 = vmatprep.subr.bf16.mxu1 %v954_v2  ;;  %840 = vmatprep.subr.bf16.mxu0 %v956_v4  ;;  %v959_v7 = vld [vmem:[%s1277_s1 + $0x88] sm:$0xff]   ;;  %v963_v11 = vld [vmem:[%s1277_s1 + $0x90] sm:$0xff]  }
   0x5   :  { %867 = vmatpush3.bf16.msra.mxu1 %v955_v3  ;;  %v964_v12 = vld [vmem:[%s1277_s1 + $0x58] sm:$0xff]   ;;  %v968_v16 = vld [vmem:[%s1277_s1 + $0x60] sm:$0xff]   ;;  %v972_v20 = vld [vmem:[%s1277_s1 + $0x68] sm:$0xff]  }
   0x6   :  { %868 = vmatprep.subr.bf16.mxu1 %v958_v6  ;;  %v965_v13 = vld [vmem:[%s1277_s1 + $0x18] sm:$0xff]   ;;  %v969_v17 = vld [vmem:[%s1277_s1 + $0x20] sm:$0xff]   ;;  %v973_v21 = vld [vmem:[%s1277_s1 + $0x28] sm:$0xff]  }
   0x7   :  { %841 = vmatpush3.bf16.msra.mxu0 %v957_v5  ;;  %v966_v14 = vld [vmem:[%s1277_s1 + $0xd8] sm:$0xff]   ;;  %v970_v18 = vld [vmem:[%s1277_s1 + $0xe0] sm:$0xff]   ;;  %v974_v22 = vld [vmem:[%s1277_s1 + $0xe8] sm:$0xff]  }
   0x8   :  { %842 = vmatprep.subr.bf16.mxu0 %v960_v8  ;;  %v967_v15 = vld [vmem:[%s1277_s1 + $0x98] sm:$0xff]   ;;  %v971_v19 = vld [vmem:[%s1277_s1 + $0xa0] sm:$0xff]   ;;  %v975_v23 = vld [vmem:[%s1277_s1 + $0xa8] sm:$0xff]  }
   0x9   :  { %869 = vmatpush3.bf16.msra.mxu1 %v959_v7  ;;  %v976_v24 = vld [vmem:[%s1277_s1 + $0x70] sm:$0xff]   ;;  %v980_v28 = vld [vmem:[%s1277_s1 + $0x78] sm:$0xff]   ;;  %v985_v32 = vld [vmem:[%s1278_s0 + $0x4] ss:$28 sps:$4 sm:$0xff]  }
   0xa   :  { %870 = vmatprep.subr.bf16.mxu1 %v962_v10  ;;  %v977_v25 = vld [vmem:[%s1277_s1 + $0x30] sm:$0xff]   ;;  %v981_v29 = vld [vmem:[%s1277_s1 + $0x38] sm:$0xff]   ;;  %590 = vmatprep.mubr.bf16.mxu0 %v985_v32  ;;  %v987_v34 = vld [vmem:[%s1277_s1 + $0x140] sm:$0xff]  }
   0xb   :  { %843 = vmatpush3.bf16.msra.mxu0 %v961_v9  ;;  %v978_v26 = vld [vmem:[%s1277_s1 + $0xf0] sm:$0xff]   ;;  %v982_v30 = vld [vmem:[%s1277_s1 + $0xf8] sm:$0xff]   ;;  %v988_v35 = vld [vmem:[%s1278_s0 + $0x8] ss:$28 sps:$4 sm:$0xff]  }
   0xc   :  { %844 = vmatprep.subr.bf16.mxu0 %v964_v12  ;;  %v979_v27 = vld [vmem:[%s1277_s1 + $0xb0] sm:$0xff]   ;;  %v983_v31 = vld [vmem:[%s1278_s0] ss:$28 sps:$4 sm:$0xff]   ;;  %v990_v36 = vld [vmem:[%s1278_s0 + $0xc] ss:$28 sps:$4 sm:$0xff]  }
   0xd   :  { %871 = vmatpush3.bf16.msra.mxu1 %v963_v11  ;;  %v986_v33 = vld [vmem:[%s1277_s1 + $0xb8] sm:$0xff]   ;;  %v991_v37 = vld [vmem:[%s1277_s1 + $0x100] sm:$0xff]   ;;  %639 = vmatprep.mubr.bf16.mxu1 %v990_v36  ;;  %v992_v38 = vld [vmem:[%s1277_s1 + $0x148] sm:$0xff]  }
   0xe   :  { %872 = vmatprep.subr.bf16.mxu1 %v966_v14  ;;  %v993_v39 = vld [vmem:[%s1277_s1 + $0x180] sm:$0xff]   ;;  %v994_v40 = vld [vmem:[%s1277_s1 + $0x108] sm:$0xff]   ;;  %v995_v41 = vld [vmem:[%s1277_s1 + $0x150] sm:$0xff]  }
   0xf   :  { %845 = vmatpush3.bf16.msra.mxu0 %v965_v13  ;;  %v996_v42 = vld [vmem:[%s1277_s1 + $0x188] sm:$0xff]   ;;  %v997_v43 = vld [vmem:[%s1277_s1 + $0x110] sm:$0xff]   ;;  %v998_v44 = vld [vmem:[%s1277_s1 + $0x158] sm:$0xff]  }
  0x10   :  { %846 = vmatprep.subr.bf16.mxu0 %v968_v16  ;;  %v999_v45 = vld [vmem:[%s1277_s1 + $0x190] sm:$0xff]   ;;  %v1000_v46 = vld [vmem:[%s1277_s1 + $0x118] sm:$0xff]   ;;  %v1001_v47 = vld [vmem:[%s1277_s1 + $0x160] sm:$0xff]  }
  0x11   :  { %873 = vmatpush3.bf16.msra.mxu1 %v967_v15  ;;  %v1002_v48 = vld [vmem:[%s1277_s1 + $0x198] sm:$0xff]   ;;  %v1003_v49 = vld [vmem:[%s1277_s1 + $0x120] sm:$0xff]   ;;  %v1006_v51 = vld [vmem:[%s1277_s1 + $0x168] sm:$0xff]  }
  0x12   :  { %874 = vmatprep.subr.bf16.mxu1 %v970_v18  ;;  %v1004_v50 = vld [vmem:[%s1278_s0 + $0x3c] ss:$28 sps:$4 sm:$0xff]   ;;  %v1007_v52 = vld [vmem:[%s1277_s1 + $0x1a0] sm:$0xff]   ;;  %v1009_v54 = vld [vmem:[%s1277_s1 + $0x128] sm:$0xff]  }
  0x13   :  { %847 = vmatpush3.bf16.msra.mxu0 %v969_v17  ;;  %v1008_v53 = vld [vmem:[%s1278_s0 + $0x38] ss:$28 sps:$4 sm:$0xff]   ;;  %v1010_v55 = vld [vmem:[%s1278_s0 + $0x44] ss:$28 sps:$4 sm:$0xff]   ;;  %v1014_v58 = vld [vmem:[%s1277_s1 + $0x1a8] sm:$0xff]  }
  0x14   :  { %848 = vmatprep.subr.bf16.mxu0 %v972_v20  ;;  %v1012_v56 = vld [vmem:[%s1278_s0 + $0x40] ss:$28 sps:$4 sm:$0xff]   ;;  %v1013_v57 = vld [vmem:[%s1277_s1 + $0x170] sm:$0xff]   ;;  %v1025_v3 = vld [vmem:[%s1278_s0 + $0x4c] ss:$28 sps:$4 sm:$0xff]  }
  0x15   :  { %875 = vmatpush3.bf16.msra.mxu1 %v971_v19  ;;  %v1015_v59 = vld [vmem:[%s1277_s1 + $0x130] sm:$0xff]   ;;  %v1016_v60 = vld [vmem:[%s1277_s1 + $0x178] sm:$0xff]   ;;  %v1027_v5 = vld [vmem:[%s1278_s0 + $0x48] ss:$28 sps:$4 sm:$0xff]  }
  0x16   :  { %876 = vmatprep.subr.bf16.mxu1 %v974_v22  ;;  %v1017_v61 = vld [vmem:[%s1277_s1 + $0x1b0] sm:$0xff]   ;;  %v1018_v62 = vld [vmem:[%s1277_s1 + $0x138] sm:$0xff]   ;;  %v767_v7 = vld [vmem:[%s1279_s2] ss:$0 sm:$0xff] }
  0x17   :  { %849 = vmatpush3.bf16.msra.mxu0 %v973_v21  ;;  %v1021_v63 = vld [vmem:[%s1278_s0 + $0x14] ss:$28 sps:$4 sm:$0xff]   ;;  %v1022_v0 = vld [vmem:[%s1277_s1 + $0x1b8] sm:$0xff]  }
  0x18   :  { %850 = vmatprep.subr.bf16.mxu0 %v976_v24  ;;  %v1023_v1 = vld [vmem:[%s1278_s0 + $0x18] ss:$28 sps:$4 sm:$0xff]   ;;  %v1019_v2 = vld [vmem:[%s1278_s0 + $0x10] ss:$28 sps:$4 sm:$0xff]  }
  0x19   :  { %877 = vmatpush3.bf16.msra.mxu1 %v975_v23  ;;  %v1024_v4 = vld [vmem:[%s1278_s0 + $0x50] ss:$28 sps:$4 sm:$0xff]  }
  0x1a   :  { %878 = vmatprep.subr.bf16.mxu1 %v978_v26 }
  0x1b   :  { %851 = vmatpush3.bf16.msra.mxu0 %v977_v25 }
  0x1c   :  { %852 = vmatprep.subr.bf16.mxu0 %v980_v28 }
  0x1d   :  { %879 = vmatpush3.bf16.msra.mxu1 %v979_v27 }
  0x1e   :  { %880 = vmatprep.subr.bf16.mxu1 %v982_v30 }
  0x1f   :  { %853 = vmatpush3.bf16.msra.mxu0 %v981_v29 }
  0x20   :  { %894 = vmatprep.subr.bf16.mxu0 %v987_v34 }
  0x21   :  { %881 = vmatpush3.bf16.msra.mxu1 %v986_v33 }
  0x22   :  { %591 = vmatmul.mubr.bf16.vlgmr.msra.gmra.mrb[0].mxu0 %v983_v31  ;;  %932 = vmatprep.subr.bf16.mxu1 %v993_v39 }
  0x23   :  { %895 = vmatpush3.bf16.msra.mxu0 %v991_v37  ;;  %598 = vmatprep.mubr.bf16.mxu0 %v1004_v50 }
  0x24   :  { %640 = vmatmul.mubr.bf16.vlgmr.msra.gmra.mrb[0].mxu1 %v988_v35  ;;  %896 = vmatprep.subr.bf16.mxu0 %v992_v38 }
  0x25   :  { %933 = vmatpush3.bf16.msra.mxu1 %v993_v39  ;;  %647 = vmatprep.mubr.bf16.mxu1 %v1010_v55 }
  0x26   :  { %934 = vmatprep.subr.bf16.mxu1 %v996_v42 }
  0x27   :  { %897 = vmatpush3.bf16.msra.mxu0 %v994_v40 }
  0x28   :  { %898 = vmatprep.subr.bf16.mxu0 %v995_v41 }
  0x29   :  { %935 = vmatpush3.bf16.msra.mxu1 %v996_v42 }
  0x2a   :  { %936 = vmatprep.subr.bf16.mxu1 %v999_v45  ;;  %599 = vmatmul.mubr.bf16.gmra.mrb[4].mxu0 %v1008_v53 }
  0x2b   :  { %899 = vmatpush3.bf16.msra.mxu0 %v997_v43  ;;  %688 = vmatprep.mubr.bf16.mxu0 %v1021_v63 }
  0x2c   :  { %900 = vmatprep.subr.bf16.mxu0 %v998_v44  ;;  %648 = vmatmul.mubr.bf16.gmra.mrb[4].mxu1 %v1012_v56 }
  0x2d   :  { %937 = vmatpush3.bf16.msra.mxu1 %v999_v45  ;;  %948 = vmatprep.mubr.bf16.mxu1 %v1023_v1 }
  0x2e   :  { %938 = vmatprep.subr.bf16.mxu1 %v1002_v48 }
  0x2f   :  { %901 = vmatpush3.bf16.msra.mxu0 %v1000_v46 }
  0x30   :  { %902 = vmatprep.subr.bf16.mxu0 %v1001_v47 }
  0x31   :  { %939 = vmatpush3.bf16.msra.mxu1 %v1002_v48 }
  0x32   :  { %940 = vmatprep.subr.bf16.mxu1 %v1007_v52 }
  0x33   :  { %903 = vmatpush3.bf16.msra.mxu0 %v1003_v49 }
  0x34   :  { %904 = vmatprep.subr.bf16.mxu0 %v1006_v51 }
  0x35   :  { %941 = vmatpush3.bf16.msra.mxu1 %v1007_v52 }
  0x36   :  { %942 = vmatprep.subr.bf16.mxu1 %v1014_v58 }
  0x37   :  { %905 = vmatpush3.bf16.msra.mxu0 %v1009_v54 }
  0x38   :  { %906 = vmatprep.subr.bf16.mxu0 %v1013_v57 }
  0x39   :  { %943 = vmatpush3.bf16.msra.mxu1 %v1014_v58 }
  0x3a   :  { %944 = vmatprep.subr.bf16.mxu1 %v1017_v61 }
  0x3b   :  { %907 = vmatpush3.bf16.msra.mxu0 %v1015_v59 }
  0x3c   :  { %908 = vmatprep.subr.bf16.mxu0 %v1016_v60 }
  0x3d   :  { %945 = vmatpush3.bf16.msra.mxu1 %v1017_v61 }
  0x3e   :  { %946 = vmatprep.subr.bf16.mxu1 %v1022_v0 }
  0x3f   :  { %909 = vmatpush3.bf16.msra.mxu0 %v1018_v62 }
  0x41   :  { %947 = vmatpush3.bf16.msra.mxu1 %v1022_v0 }
  0x42   :  { %689 = vmatmul.mubr.bf16.vlgmr.msra.gmra.mrb[8].mxu0 %v1019_v2 }
  0x43   :  { %696 = vmatprep.mubr.bf16.mxu0 %v1025_v3 }
  0x44   :  { %949 = vmatmul.mubr.bf16.vlgmr.msra.gmra.mrb[8].mxu1 %v1024_v4 }
  0x4a   :  { %697 = vmatmul.mubr.bf16.gmra.mrb[12].mxu0 %v1027_v5 }
  0xf5   :  { %v854_v6 = vpop.f32.mrb[0].mxu0 }
  0xf6   :  { %v855_v8 = vpop.f32.mrb[1].mxu0 }
  0xf7   :  { %v856_v9 = vadd.f32 %v855_v8, %v854_v6  ;;  %v857_v10 = vpop.f32.mrb[2].mxu0  ;;  %v882_v11 = vpop.f32.mrb[0].mxu1 }
  0xf8   :  { %v858_v12 = vpop.f32.mrb[3].mxu0  ;;  %v883_v15 = vpop.f32.mrb[1].mxu1 }
  0xf9   :  { %v593_v13 = vadd.f32 %v856_v9, %v767_v7  ;;  %v859_v14 = vadd.f32 %v858_v12, %v857_v10  ;;  %v884_v16 = vadd.f32 %v883_v15, %v882_v11  ;;  %v885_v17 = vpop.f32.mrb[2].mxu1 }
  0xfa   :  { %v886_v19 = vpop.f32.mrb[3].mxu1 }
  0xfb   :  { %v596_v18 = vadd.f32 %v859_v14, %v767_v7  ;;  %v642_v20 = vadd.f32 %v884_v16, %v593_v13  ;;  %v887_v21 = vadd.f32 %v886_v19, %v885_v17 }
  0xfd   :  { %v645_v22 = vadd.f32 %v887_v21, %v596_v18  ;;  %v860_v23 = vpop.f32.mrb[4].mxu0 }
  0xfe   :  { %v861_v24 = vpop.f32.mrb[5].mxu0 }
  0xff   :  { %v862_v25 = vadd.f32 %v861_v24, %v860_v23  ;;  %v863_v26 = vpop.f32.mrb[6].mxu0  ;;  %v888_v27 = vpop.f32.mrb[4].mxu1 }
 0x100   :  { %v864_v28 = vpop.f32.mrb[7].mxu0  ;;  %v889_v31 = vpop.f32.mrb[5].mxu1 }
 0x101   :  { %v601_v29 = vadd.f32 %v862_v25, %v767_v7  ;;  %v865_v30 = vadd.f32 %v864_v28, %v863_v26  ;;  %v890_v32 = vadd.f32 %v889_v31, %v888_v27  ;;  %v891_v33 = vpop.f32.mrb[6].mxu1 }
 0x102   :  { %v892_v35 = vpop.f32.mrb[7].mxu1 }
 0x103   :  { %v604_v34 = vadd.f32 %v865_v30, %v767_v7  ;;  %v650_v36 = vadd.f32 %v890_v32, %v601_v29  ;;  %v893_v37 = vadd.f32 %v892_v35, %v891_v33 }
 0x105   :  { %v653_v38 = vadd.f32 %v893_v37, %v604_v34 }
 0x115   :  { %v910_v39 = vpop.f32.mrb[8].mxu0 }
 0x116   :  { %v911_v40 = vpop.f32.mrb[9].mxu0 }
 0x117   :  { %v912_v41 = vadd.f32 %v911_v40, %v910_v39  ;;  %v913_v42 = vpop.f32.mrb[10].mxu0  ;;  %v950_v44 = vpop.f32.mrb[8].mxu1 }
 0x118   :  { %v914_v43 = vpop.f32.mrb[11].mxu0  ;;  %v739_v47 = vpop.f32.mrb[9].mxu1 }
 0x119   :  { %v915_v45 = vadd.f32 %v914_v43, %v913_v42  ;;  %v691_v46 = vadd.f32 %v912_v41, %v642_v20  ;;  %v951_v48 = vpop.f32.mrb[10].mxu1 }
 0x11a   :  { %v742_v51 = vpop.f32.mrb[11].mxu1 }
 0x11b   :  { %v740_v49 = vadd.f32 %v739_v47, %v691_v46  ;;  %v694_v50 = vadd.f32 %v915_v45, %v645_v22 }
 0x11d   :  { %v754_v52 = vmax.f32 %v740_v49, 0.0  ;;  %v743_v53 = vadd.f32 %v742_v51, %v694_v50  ;;  %v916_v54 = vpop.f32.mrb[12].mxu0 }
 0x11e   :  { %v917_v55 = vpop.f32.mrb[13].mxu0 }
 0x11f   :  { %759 = vst.msk [vmem:[%s1280_s3] sm:$0xff] %vm758_vm0, %v754_v52  ;;  %v755_v56 = vmax.f32 %v743_v53, 0.0  ;;  %v918_v57 = vadd.f32 %v917_v55, %v916_v54  ;;  %v919_v58 = vpop.f32.mrb[14].mxu0 }
 0x120   :  { %v920_v59 = vpop.f32.mrb[15].mxu0 }
 0x121   :  { %760 = vst.msk [vmem:[%s1280_s3 + $0x8] sm:$0xff] %vm758_vm0, %v755_v56  ;;  %v699_v60 = vadd.f32 %v918_v57, %v650_v36  ;;  %v921_v61 = vadd.f32 %v920_v59, %v919_v58 }
 0x123   :  { %v748_v62 = vadd.f32 %v950_v44, %v699_v60  ;;  %v702_v63 = vadd.f32 %v921_v61, %v653_v38 }
 0x125   :  { %v756_v0 = vmax.f32 %v748_v62, 0.0  ;;  %v751_v1 = vadd.f32 %v951_v48, %v702_v63 }
 0x127   :  { %761 = vst.msk [vmem:[%s1280_s3 + $0x10] sm:$0xff] %vm758_vm0, %v756_v0  ;;  %v757_v2 = vmax.f32 %v751_v1, 0.0 }
 0x129   :  { %762 = vst.msk [vmem:[%s1280_s3 + $0x18] sm:$0xff] %vm758_vm0, %v757_v2 }

// kernel: cropping_model_forward.4
= control target key start
LH: loop header
LB: loop body
LE: loop exit
PB: predicated region body
PF: predicated region fallthrough
CT: control target
= control target key end

     0   :  { %s13110_s6 = smov 1   ;;  %s13111_s10 = smov 2   ;;  %s14553_s0 = inlined_call_operand.smem [shape: u32[30], index: -1, kind: input, shape index: {}] }
   0x1   :  { %s13171_s5 = sld [smem:[%s14553_s0]]   ;;  %s13112_s14 = smov 3  }
   0x2   :  { %s13176_s9 = sld [smem:[%s14553_s0 + %s13110_s6]]   ;;  %s13113_s18 = smov 4  }
   0x3   :  { %s13181_s13 = sld [smem:[%s14553_s0 + %s13111_s10]]   ;;  %s13114_s22 = smov 5  }
   0x4   :  { %s13186_s17 = sld [smem:[%s14553_s0 + %s13112_s14]]   ;;  %s13115_s26 = smov 6  }
   0x5   :  { %s13191_s21 = sld [smem:[%s14553_s0 + %s13113_s18]]   ;;  %s13116_s30 = smov 7  }
   0x6   :  { %s13196_s25 = sld [smem:[%s14553_s0 + %s13114_s22]]   ;;  %s13117_s4 = smov 8  }
   0x7   :  { %s13201_s29 = sld [smem:[%s14553_s0 + %s13115_s26]]   ;;  %s13118_s10 = smov 9  }
   0x8   :  { %s13206_s3 = sld [smem:[%s14553_s0 + %s13116_s30]]   ;;  %s13119_s15 = smov 10  }
   0x9   :  { %s13211_s8 = sld [smem:[%s14553_s0 + %s13117_s4]]   ;;  %s13120_s20 = smov 11  }
   0xa   :  { %s13216_s14 = sld [smem:[%s14553_s0 + %s13118_s10]]   ;;  %s13121_s26 = smov 12  }
   0xb   :  { %s13221_s19 = sld [smem:[%s14553_s0 + %s13119_s15]]   ;;  %s13122_s1 = smov 13  }
   0xc   :  { %s13226_s24 = sld [smem:[%s14553_s0 + %s13120_s20]]   ;;  %s13123_s7 = smov 14  }
   0xd   :  { %s13231_s30 = sld [smem:[%s14553_s0 + %s13121_s26]]   ;;  %s13124_s15 = smov 15  }
   0xe   :  { %s13236_s6 = sld [smem:[%s14553_s0 + %s13122_s1]]   ;;  %s13125_s22 = smov 16  }
   0xf   :  { %s13241_s12 = sld [smem:[%s14553_s0 + %s13123_s7]]   ;;  %s13126_s28 = smov 17  }
  0x10   :  { %s13246_s20 = sld [smem:[%s14553_s0 + %s13124_s15]]   ;;  %s13127_s7 = smov 18  }
  0x11   :  { %s13251_s27 = sld [smem:[%s14553_s0 + %s13125_s22]]   ;;  %s13128_s15 = smov 19  }
  0x12   :  { %s13256_s4 = sld [smem:[%s14553_s0 + %s13126_s28]]   ;;  %s13129_s22 = smov 20  }
  0x13   :  { %s13130_s28 = smov 21  }
  0x14   :  { %14574 = sst [smem:[#allocation2_spill]] %s13236_s6 }
  0x15   :  { %s13261_s6 = sld [smem:[%s14553_s0 + %s13127_s7]]   ;;  %s13131_s7 = smov 22  }
  0x16   :  { %14575 = sst [smem:[#allocation3_spill]] %s13246_s20 }
  0x17   :  { %14576 = sst [smem:[#allocation4_spill]] %s13251_s27 }
  0x18   :  { %14577 = sst [smem:[#allocation5_spill]] %s13256_s4 }
  0x19   :  { %s13266_s20 = sld [smem:[%s14553_s0 + %s13128_s15]]   ;;  %s13132_s15 = smov 23  }
  0x1a   :  { %s13271_s27 = sld [smem:[%s14553_s0 + %s13129_s22]]   ;;  %s13133_s22 = smov 24  }
  0x1b   :  { %14578 = sst [smem:[#allocation6_spill]] %s13261_s6 }
  0x1c   :  { %s13276_s4 = sld [smem:[%s14553_s0 + %s13130_s28]]   ;;  %s13134_s28 = smov 25  }
  0x1d   :  { %s13281_s6 = sld [smem:[%s14553_s0 + %s13131_s7]]   ;;  %s13135_s7 = smov 26  }
  0x1f   :  { %14579 = sst [smem:[#allocation7_spill]] %s13266_s20 }
  0x20   :  { %14580 = sst [smem:[#allocation8_spill]] %s13271_s27 }
  0x21   :  { %s13286_s20 = sld [smem:[%s14553_s0 + %s13132_s15]]   ;;  %s13136_s15 = smov 27  }
  0x22   :  { %14581 = sst [smem:[#allocation9_spill]] %s13276_s4 }
  0x23   :  { %14582 = sst [smem:[#allocation10_spill]] %s13281_s6 }
  0x24   :  { %s13291_s27 = sld [smem:[%s14553_s0 + %s13133_s22]]   ;;  %s13137_s22 = smov 28  }
  0x25   :  { %s13296_s4 = sld [smem:[%s14553_s0 + %s13134_s28]]   ;;  %s13138_s28 = smov 29  }
  0x26   :  { %s13301_s6 = sld [smem:[%s14553_s0 + %s13135_s7]]   ;;  %s13318_s7 = smov 0  }
  0x27   :  { %14583 = sst [smem:[#allocation11_spill]] %s13286_s20 }
  0x28   :  { %s13306_s20 = sld [smem:[%s14553_s0 + %s13136_s15]]  }
  0x2a   :  { %14584 = sst [smem:[#allocation12_spill]] %s13291_s27 }
  0x2b   :  { %14585 = sst [smem:[#allocation13_spill]] %s13296_s4 }
  0x2c   :  { %s13311_s27 = sld [smem:[%s14553_s0 + %s13137_s22]]  }
  0x2d   :  { %s13316_s4 = sld [smem:[%s14553_s0 + %s13138_s28]]  }
  0x2e LB: > { %s10348_s10 = sadd.s32 4294967295, %s13108_s7   ;;  %p10352_p0 = scmp.ge.s32.totalorder %s13108_s7, 1  ;;  %s13108_s7 = sphi %s13318_s7, %s69_s7  }
  0x2f   : > { %p817_p1 = scmp.lt.s32.totalorder %s13108_s7, 3 }
  0x31   : > { %p818_p2 = pnand %p10352_p0, %p817_p1 }
  0x32   : > { %v910_v0 = vld [vmem:[%s13181_s13] sm:$0xff] (!%p818_p2)  ;;  %v911_v1 = vld [vmem:[%s13181_s13 + $0x8] sm:$0xff] (!%p818_p2)  ;;  %v912_v2 = vld [vmem:[%s13181_s13 + $0x10] sm:$0xff] (!%p818_p2)  ;;  %p893_p3 = scmp.lt.s32.totalorder (!%p818_p2), %s10348_s10, 1  ;;  %vm1221_vm0 = vcmask (!%p818_p2), 261120   ;;  %vm1309_vm1 = vcmask (!%p818_p2), 31744  }
  0x33   : > { %821 = sbr.rel (%p818_p2) target bundleno = 11234 (0x2be2), region = 136  ;;  %v11937_v3 = vpack.c.bf16 (!%p818_p2), %v911_v1, %v910_v0  ;;  %v913_v4 = vld [vmem:[%s13181_s13 + $0x18] sm:$0xff] (!%p818_p2)  ;;  %v906_v6 = vld [vmem:[%s13176_s9] sm:$0xff] (!%p818_p2)  ;;  %v907_v7 = vld [vmem:[%s13176_s9 + $0x8] sm:$0xff] (!%p818_p2)  ;;  %s13139_s15 = smov (!%p818_p2), 88   ;;  %vm1395_vm3 = vcmask (!%p818_p2), 130048  }
  0x34   : > { %v11941_v5 = vpack.c.bf16 (!%p818_p2), %v913_v4, %v912_v2  ;;  %v10357_v12 = vld [vmem:[%s13186_s17] ss:$0 sm:$0xff] (!%p818_p2)  ;;  %s13140_s16 = smov (!%p818_p2), 96   ;;  %s13141_s18 = smov (!%p818_p2), 124   ;;  %vm13373_vm2 = vmpackc.low (!%p818_p2), %vm1309_vm1, %vm1309_vm1 }
  0x35   : > { %11938 = vmatprep.subr.bf16.mxu0 (!%p818_p2), %v11937_v3  ;;  %s14567_s22 = smov (!%p818_p2), 92   ;;  %s13143_s23 = smov (!%p818_p2), 120  }
  0x36   : > { %11940 = vmatpush3.bf16.msra.mxu0 (!%p818_p2), %v11937_v3  ;;  %s14561_s26 = smov (!%p818_p2), 84   ;;  %s13145_s28 = smov (!%p818_p2), 116  }
  0x37   : > { %11942 = vmatprep.subr.bf16.mxu0 (!%p818_p2), %v11941_v5  ;;  %s14564_s1 = smov (!%p818_p2), 56   ;;  %s14559_s2 = smov (!%p818_p2), 80  }
  0x3a   : > { %s14616_s10 = smov (!%p893_p3, %s10348_s10), 1  ;;  %11944 = vmatpush3.bf16.msra.mxu0 %v11941_v5 }
  0x3b   : > { %s14558_s0 = sshll.u32 %s14616_s10, 4 }
  0x3c   : > { %s897_s11 = scalar_lea.vmem %s13171_s5, %s14558_s0  ;;  %s14560_s0 = smov 52  }
  0x3d   : > { %v904_v8 = vld [vmem:[%s897_s11] sm:$0xff]  ;;  %v905_v9 = vld [vmem:[%s897_s11 + $0x8] sm:$0xff]  ;;  %s13148_s11 = smov 112  }
  0x3e   : > { %v13338_v10 = vadd.f32 %v906_v6, %v904_v8  ;;  %v13340_v11 = vadd.f32 %v907_v7, %v905_v9 }
  0x40   : > { %11512 = vmatprep.mubr.msk.f32.mxu0 %vm1221_vm0, %v13338_v10 }
  0x41   : > { %11513 = vmatmul.mubr.msk.f32.vlgmr.msra.gmra.mrb[0].mxu0 %vm1221_vm0, %v13340_v11 }
 0x114   : > { %v11514_v13 = vpop.f32.mrb[0].mxu0 }
 0x115   : > { %v13347_v14 = vadd.f32 %v11514_v13, %v10357_v12  ;;  %v1294_v15 = vpop.f32.mrb[1].mxu0 }
 0x116   : > { %v13349_v16 = vadd.f32 %v10357_v12, %v1294_v15 }
 0x118   : > { %11519 = vmatprep.mubr.msk.f32.mxu1 %vm1309_vm1, %v13349_v16  ;;  %v13355_v17 = vpack.i.bf16 %v13347_v14, %v13349_v16 }
 0x11a   : > { %12413 = vrot.lane.b32.xlu1 %v13355_v17, %s13139_s15  ;;  %12403 = vrot.lane.b32.xlu0 %v13355_v17, %s13140_s16 }
 0x11e   : > { %1505 = vrot.lane.b32.xlu1 %v13349_v16, %s13141_s18  ;;  %12408 = vrot.lane.b32.xlu0 %v13355_v17, %s14567_s22  ;;  %s14569_s22 = smov 40  }
 0x122   : > { %1897 = vrot.lane.b32.xlu1 %v13349_v16, %s13143_s23  ;;  %1507 = vrot.lane.b32.xlu0 %v13347_v14, %s13141_s18 }
 0x126   : > { %1899 = vrot.lane.b32.xlu0 %v13347_v14, %s13143_s23 }
 0x18c   : > { %v12404_v18 = vpop.permute.xlu0 %12403  ;;  %v12414_v26 = vpop.permute.xlu1 %12413 }
 0x18d   : > { %v12406_v19 = vunpack.i.h.bf16 %v12404_v18  ;;  %v12405_v20 = vunpack.i.l.bf16 %v12404_v18  ;;  %v12416_v28 = vunpack.i.h.bf16 %v12414_v26  ;;  %v12415_v29 = vunpack.i.l.bf16 %v12414_v26 }
 0x18f   : > { %v11945_v22 = vpack.c.bf16 %v12406_v19, %v12405_v20  ;;  %v11989_v30 = vpack.c.bf16 %v12416_v28, %v12415_v29 }
 0x190   : > { %v12409_v23 = vpop.permute.xlu0 %12408  ;;  %v1506_v31 = vpop.permute.xlu1 %1505 }
 0x191   : > { %v12411_v24 = vunpack.i.h.bf16 %v12409_v23  ;;  %v12410_v25 = vunpack.i.l.bf16 %v12409_v23  ;;  %11947 = vmatprep.subr.msk.bf16.mxu1 %vm13373_vm2, %v11945_v22 }
 0x192   : > { %11950 = vmatpush3.bf16.xpose.msk.msra.mxu1 %vm13373_vm2, %v11945_v22 }
 0x193   : > { %v11955_v27 = vpack.c.bf16 %v12411_v24, %v12410_v25 }
 0x194   : > { %v1508_v32 = vpop.permute.xlu0 %1507  ;;  %v1898_v33 = vpop.permute.xlu1 %1897 }
 0x195   : > { %11957 = vmatprep.subr.msk.bf16.mxu1 %vm13373_vm2, %v11955_v27 }
 0x198   : > { %v1900_v34 = vpop.permute.xlu0 %1899 }
 0x199   : > { %11520 = vmatmul.mubr.msk.f32.vlgmr.msra.gmra.mrb[0].mxu1 %vm1309_vm1, %v13347_v14 }
 0x19a   : > { %11960 = vmatpush3.bf16.xpose.msk.msra.mxu1 %vm13373_vm2, %v11955_v27  ;;  %11533 = vmatprep.mubr.msk.f32.mxu1 %vm1309_vm1, %v1506_v31 }
 0x19b   : > { %11991 = vmatprep.subr.msk.bf16.mxu1 %vm13373_vm2, %v11989_v30 }
 0x1a1   : > { %11534 = vmatmul.mubr.msk.f32.vlgmr.msra.gmra.mrb[2].mxu1 %vm1309_vm1, %v1508_v32 }
 0x1a2   : > { %11994 = vmatpush3.bf16.xpose.msk.msra.mxu1 %vm13373_vm2, %v11989_v30  ;;  %11569 = vmatprep.mubr.msk.f32.mxu1 %vm1309_vm1, %v1898_v33 }
 0x1a9   : > { %11570 = vmatmul.mubr.msk.f32.vlgmr.msra.gmra.mrb[4].mxu1 %vm1309_vm1, %v1900_v34 }
 0x26c   : > { %v13395_v35 = vpop.f32.mrb[0].mxu1 }
 0x26d   : > { %v13397_v36 = vpop.f32.mrb[1].mxu1 }
 0x274   : > { %v13399_v37 = vpop.f32.mrb[2].mxu1 }
 0x275   : > { %v13401_v38 = vpop.f32.mrb[3].mxu1 }
 0x27c   : > { %v11571_v39 = vpop.f32.mrb[4].mxu1 }
 0x27d   : > { %v1989_v40 = vmul.f32 0.5, %v11571_v39  ;;  %v1979_v41 = vpop.f32.mrb[5].mxu1 }
 0x27e   : > { %v1988_v42 = vmul.f32 0.5, %v1979_v41 }
 0x27f   : > { %v1993_v43 = vsel %vm1395_vm3, %v1989_v40, -inf }
 0x280   : > { %1994 = vmax.xlane.f32.xlu0 %v1993_v43  ;;  %v1990_v44 = vsel %vm1395_vm3, %v1988_v42, -inf }
 0x281   : > { %1991 = vmax.xlane.f32.xlu1 %v1990_v44 }
 0x30d   : > { %v1995_v45 = vpop.xlane.xlu0 %1994 }
 0x30e   : > { %v1997_v46 = vsub.f32 %v1989_v40, %v1995_v45  ;;  %v1992_v47 = vpop.xlane.xlu1 %1991 }
 0x30f   : > { %v1996_v48 = vsub.f32 %v1988_v42, %v1992_v47 }
 0x310   : > { %v2000_v49 = vmul.f32 1.442695, %v1997_v46 }
 0x311   : > { %v1998_v50 = vmul.f32 1.442695, %v1996_v48 }
 0x312   : > { %12958 = vpow2.f32 %v2000_v49 }
 0x313   : > { %12960 = vpow2.f32 %v1998_v50 }
 0x31c   : > { %v12959_v51 = vpop.eup %12958 }
 0x31d   : > { %v12961_v52 = vpop.eup %12960  ;;  %v2005_v53 = vsel %vm1395_vm3, %v12959_v51, 0.0 }
 0x31e   : > { %2006 = vadd.xlane.f32.xlu1 %v2005_v53  ;;  %v2002_v54 = vsel %vm1395_vm3, %v12961_v52, 0.0 }
 0x31f   : > { %2003 = vadd.xlane.f32.xlu0 %v2002_v54 }
 0x32f   : > { %12423 = vrot.lane.b32.xlu1 %v13355_v17, %s14561_s26  ;;  %s14563_s26 = smov 48  }
 0x333   : > { %2198 = vrot.lane.b32.xlu1 %v13349_v16, %s13145_s28 }
 0x335   : > { %12418 = vrot.lane.b32.xlu0 %v13355_v17, %s14564_s1  ;;  %s14566_s1 = smov 44  }
 0x339   : > { %2200 = vrot.lane.b32.xlu0 %v13347_v14, %s13145_s28 }
 0x3ab   : > { %v2007_v55 = vpop.xlane.xlu1 %2006 }
 0x3ac   : > { %12962 = vrcp.f32 %v2007_v55  ;;  %v2004_v56 = vpop.xlane.xlu0 %2003 }
 0x3ad   : > { %12964 = vrcp.f32 %v2004_v56 }
 0x3af   : > { %v12424_v57 = vpop.permute.xlu1 %12423 }
 0x3b0   : > { %v12419_v58 = vpop.permute.xlu0 %12418  ;;  %v12426_v59 = vunpack.i.h.bf16 %v12424_v57  ;;  %v12425_v60 = vunpack.i.l.bf16 %v12424_v57 }
 0x3b1   : > { %v12421_v61 = vunpack.i.h.bf16 %v12419_v58  ;;  %v12420_v62 = vunpack.i.l.bf16 %v12419_v58 }
 0x3b2   : > { %v12011_v0 = vpack.c.bf16 %v12426_v59, %v12425_v60 }
 0x3b3   : > { %v11995_v63 = vpack.c.bf16 %v12421_v61, %v12420_v62  ;;  %v2199_v5 = vpop.permute.xlu1 %2198 }
 0x3b4   : > { %v2201_v6 = vpop.permute.xlu0 %2200 }
 0x3b5   : > { %11996 = vmatprep.subr.bf16.mxu1 %v11995_v63 }
 0x3b6   : > { %v12963_v1 = vpop.eup %12962  ;;  %11998 = vmatpush3.bf16.msra.mxu1 %v11995_v63 }
 0x3b7   : > { %v12965_v2 = vpop.eup %12964  ;;  %12013 = vmatprep.subr.msk.bf16.mxu1 %vm13373_vm2, %v12011_v0  ;;  %v2011_v4 = vmul.f32 %v12963_v1, %v12959_v51 }
 0x3b8   : > { %v2009_v3 = vmul.f32 %v12965_v2, %v12961_v52 }
 0x3ba   : > { %11576 = vmatprep.mubr.msk.f32.mxu1 %vm1395_vm3, %v2009_v3 }
 0x3bb   : > { %11577 = vmatmul.mubr.msk.f32.vlgmr.msra.gmra.mrb[6].mxu1 %vm1395_vm3, %v2011_v4 }
 0x3bc   : > { %11594 = vmatprep.mubr.msk.f32.mxu1 %vm1309_vm1, %v2199_v5 }
 0x3bf   : > { %12016 = vmatpush3.bf16.xpose.msk.msra.mxu1 %vm13373_vm2, %v12011_v0 }
 0x3c6   : > { %11595 = vmatmul.mubr.msk.f32.vlgmr.msra.gmra.mrb[8].mxu1 %vm1309_vm1, %v2201_v6 }
 0x48e   : > { %v13423_v7 = vpop.f32.mrb[6].mxu1 }
 0x48f   : > { %v13425_v8 = vpop.f32.mrb[7].mxu1 }
 0x499   : > { %v11596_v9 = vpop.f32.mrb[8].mxu1 }
 0x49a   : > { %v2290_v12 = vmul.f32 0.5, %v11596_v9  ;;  %v2280_v13 = vpop.f32.mrb[9].mxu1 }
 0x49b   : > { %v2289_v15 = vmul.f32 0.5, %v2280_v13 }
 0x49c   : > { %v2294_v18 = vsel %vm1395_vm3, %v2290_v12, -inf }
 0x49d   : > { %2295 = vmax.xlane.f32.xlu0 %v2294_v18  ;;  %v2291_v19 = vsel %vm1395_vm3, %v2289_v15, -inf }
 0x49e   : > { %2292 = vmax.xlane.f32.xlu1 %v2291_v19 }
 0x52a   : > { %v2296_v20 = vpop.xlane.xlu0 %2295 }
 0x52b   : > { %v2298_v22 = vsub.f32 %v2290_v12, %v2296_v20  ;;  %v2293_v23 = vpop.xlane.xlu1 %2292 }
 0x52c   : > { %v2297_v24 = vsub.f32 %v2289_v15, %v2293_v23 }
 0x52d   : > { %v2301_v25 = vmul.f32 1.442695, %v2298_v22 }
 0x52e   : > { %v2299_v26 = vmul.f32 1.442695, %v2297_v24 }
 0x52f   : > { %12966 = vpow2.f32 %v2301_v25 }
 0x530   : > { %12968 = vpow2.f32 %v2299_v26 }
 0x539   : > { %v12967_v27 = vpop.eup %12966 }
 0x53a   : > { %v12969_v28 = vpop.eup %12968  ;;  %v2306_v29 = vsel %vm1395_vm3, %v12967_v27, 0.0 }
 0x53b   : > { %2307 = vadd.xlane.f32.xlu1 %v2306_v29  ;;  %v2303_v30 = vsel %vm1395_vm3, %v12969_v28, 0.0 }
 0x53c   : > { %2304 = vadd.xlane.f32.xlu0 %v2303_v30 }
 0x54c   : > { %12433 = vrot.lane.b32.xlu1 %v13355_v17, %s14559_s2  ;;  %s14562_s2 = smov 76  }
 0x550   : > { %2499 = vrot.lane.b32.xlu1 %v13349_v16, %s13148_s11 }
 0x552   : > { %12428 = vrot.lane.b32.xlu0 %v13355_v17, %s14560_s0  ;;  %s13151_s0 = smov 108  }
 0x556   : > { %2501 = vrot.lane.b32.xlu0 %v13347_v14, %s13148_s11 }
 0x5c8   : > { %v2308_v31 = vpop.xlane.xlu1 %2307 }
 0x5c9   : > { %12970 = vrcp.f32 %v2308_v31  ;;  %v2305_v32 = vpop.xlane.xlu0 %2304 }
 0x5ca   : > { %12972 = vrcp.f32 %v2305_v32 }
 0x5cc   : > { %v12434_v33 = vpop.permute.xlu1 %12433 }
 0x5cd   : > { %v12429_v34 = vpop.permute.xlu0 %12428  ;;  %v12436_v39 = vunpack.i.h.bf16 %v12434_v33  ;;  %v12435_v40 = vunpack.i.l.bf16 %v12434_v33 }
 0x5ce   : > { %v12431_v41 = vunpack.i.h.bf16 %v12429_v34  ;;  %v12430_v42 = vunpack.i.l.bf16 %v12429_v34 }
 0x5cf   : > { %v12033_v44 = vpack.c.bf16 %v12436_v39, %v12435_v40 }
 0x5d0   : > { %v12017_v43 = vpack.c.bf16 %v12431_v41, %v12430_v42  ;;  %v2500_v49 = vpop.permute.xlu1 %2499 }
 0x5d1   : > { %v2502_v50 = vpop.permute.xlu0 %2501 }
 0x5d2   : > { %12018 = vmatprep.subr.bf16.mxu1 %v12017_v43 }
 0x5d3   : > { %v12971_v45 = vpop.eup %12970  ;;  %12020 = vmatpush3.bf16.msra.mxu1 %v12017_v43 }
 0x5d4   : > { %v12973_v46 = vpop.eup %12972  ;;  %12035 = vmatprep.subr.msk.bf16.mxu1 %vm13373_vm2, %v12033_v44  ;;  %v2312_v48 = vmul.f32 %v12971_v45, %v12967_v27 }
 0x5d5   : > { %v2310_v47 = vmul.f32 %v12973_v46, %v12969_v28 }
 0x5d7   : > { %11601 = vmatprep.mubr.msk.f32.mxu1 %vm1395_vm3, %v2310_v47 }
 0x5d8   : > { %11602 = vmatmul.mubr.msk.f32.vlgmr.msra.gmra.mrb[10].mxu1 %vm1395_vm3, %v2312_v48 }
 0x5d9   : > { %11619 = vmatprep.mubr.msk.f32.mxu1 %vm1309_vm1, %v2500_v49 }
 0x5dc   : > { %12038 = vmatpush3.bf16.xpose.msk.msra.mxu1 %vm13373_vm2, %v12033_v44 }
 0x5e3   : > { %11620 = vmatmul.mubr.msk.f32.vlgmr.msra.gmra.mrb[12].mxu1 %vm1309_vm1, %v2502_v50 }
 0x6ab   : > { %v13447_v51 = vpop.f32.mrb[10].mxu1 }
 0x6ac   : > { %v13449_v52 = vpop.f32.mrb[11].mxu1 }
 0x6b6   : > { %v11621_v53 = vpop.f32.mrb[12].mxu1 }
 0x6b7   : > { %v2591_v54 = vmul.f32 0.5, %v11621_v53  ;;  %v2581_v55 = vpop.f32.mrb[13].mxu1 }
 0x6b8   : > { %v2590_v56 = vmul.f32 0.5, %v2581_v55 }
 0x6b9   : > { %v2595_v57 = vsel %vm1395_vm3, %v2591_v54, -inf }
 0x6ba   : > { %2596 = vmax.xlane.f32.xlu0 %v2595_v57  ;;  %v2592_v58 = vsel %vm1395_vm3, %v2590_v56, -inf }
 0x6bb   : > { %2593 = vmax.xlane.f32.xlu1 %v2592_v58 }
 0x747   : > { %v2597_v59 = vpop.xlane.xlu0 %2596 }
 0x748   : > { %v2599_v60 = vsub.f32 %v2591_v54, %v2597_v59  ;;  %v2594_v61 = vpop.xlane.xlu1 %2593 }
 0x749   : > { %v2598_v62 = vsub.f32 %v2590_v56, %v2594_v61 }
 0x74a   : > { %v2602_v63 = vmul.f32 1.442695, %v2599_v60 }
 0x74b   : > { %v2600_v0 = vmul.f32 1.442695, %v2598_v62 }
 0x74c   : > { %12974 = vpow2.f32 %v2602_v63 }
 0x74d   : > { %12976 = vpow2.f32 %v2600_v0 }
 0x756   : > { %v12975_v1 = vpop.eup %12974 }
 0x757   : > { %v12977_v2 = vpop.eup %12976  ;;  %v2607_v3 = vsel %vm1395_vm3, %v12975_v1, 0.0 }
 0x758   : > { %2608 = vadd.xlane.f32.xlu1 %v2607_v3  ;;  %v2604_v4 = vsel %vm1395_vm3, %v12977_v2, 0.0 }
 0x759   : > { %2605 = vadd.xlane.f32.xlu0 %v2604_v4 }
 0x769   : > { %12443 = vrot.lane.b32.xlu1 %v13355_v17, %s14562_s2  ;;  %s14565_s2 = smov 72  }
 0x76d   : > { %2800 = vrot.lane.b32.xlu1 %v13349_v16, %s13151_s0 }
 0x76f   : > { %12438 = vrot.lane.b32.xlu0 %v13355_v17, %s14563_s26  ;;  %s13154_s26 = smov 104  }
 0x773   : > { %2802 = vrot.lane.b32.xlu0 %v13347_v14, %s13151_s0 }
 0x7e5   : > { %v2609_v5 = vpop.xlane.xlu1 %2608 }
 0x7e6   : > { %12978 = vrcp.f32 %v2609_v5  ;;  %v2606_v6 = vpop.xlane.xlu0 %2605 }
 0x7e7   : > { %12980 = vrcp.f32 %v2606_v6 }
 0x7e9   : > { %v12444_v9 = vpop.permute.xlu1 %12443 }
 0x7ea   : > { %v12439_v12 = vpop.permute.xlu0 %12438  ;;  %v12446_v13 = vunpack.i.h.bf16 %v12444_v9  ;;  %v12445_v15 = vunpack.i.l.bf16 %v12444_v9 }
 0x7eb   : > { %v12441_v18 = vunpack.i.h.bf16 %v12439_v12  ;;  %v12440_v19 = vunpack.i.l.bf16 %v12439_v12 }
 0x7ec   : > { %v12055_v22 = vpack.c.bf16 %v12446_v13, %v12445_v15 }
 0x7ed   : > { %v12039_v20 = vpack.c.bf16 %v12441_v18, %v12440_v19  ;;  %v2801_v27 = vpop.permute.xlu1 %2800 }
 0x7ee   : > { %v2803_v28 = vpop.permute.xlu0 %2802 }
 0x7ef   : > { %12040 = vmatprep.subr.bf16.mxu1 %v12039_v20 }
 0x7f0   : > { %v12979_v23 = vpop.eup %12978  ;;  %12042 = vmatpush3.bf16.msra.mxu1 %v12039_v20 }
 0x7f1   : > { %v12981_v24 = vpop.eup %12980  ;;  %12057 = vmatprep.subr.msk.bf16.mxu1 %vm13373_vm2, %v12055_v22  ;;  %v2613_v26 = vmul.f32 %v12979_v23, %v12975_v1 }
 0x7f2   : > { %v2611_v25 = vmul.f32 %v12981_v24, %v12977_v2 }
 0x7f4   : > { %11626 = vmatprep.mubr.msk.f32.mxu1 %vm1395_vm3, %v2611_v25 }
 0x7f5   : > { %11627 = vmatmul.mubr.msk.f32.vlgmr.msra.gmra.mrb[14].mxu1 %vm1395_vm3, %v2613_v26 }
 0x7f6   : > { %11644 = vmatprep.mubr.msk.f32.mxu1 %vm1309_vm1, %v2801_v27 }
 0x7f9   : > { %12060 = vmatpush3.bf16.xpose.msk.msra.mxu1 %vm13373_vm2, %v12055_v22 }
 0x800   : > { %11645 = vmatmul.mubr.msk.f32.vlgmr.msra.gmra.mrb[16].mxu1 %vm1309_vm1, %v2803_v28 }
 0x8c8   : > { %v13471_v29 = vpop.f32.mrb[14].mxu1 }
 0x8c9   : > { %v13473_v30 = vpop.f32.mrb[15].mxu1 }
 0x8d3   : > { %v11646_v31 = vpop.f32.mrb[16].mxu1 }
 0x8d4   : > { %v2892_v32 = vmul.f32 0.5, %v11646_v31  ;;  %v2882_v33 = vpop.f32.mrb[17].mxu1 }
 0x8d5   : > { %v2891_v34 = vmul.f32 0.5, %v2882_v33  ;;  %v1393_v33 = vmul.f32 0.5, %v13397_v36 }
 0x8d6   : > { %v2896_v39 = vsel %vm1395_vm3, %v2892_v32, -inf }
 0x8d7   : > { %2897 = vmax.xlane.f32.xlu0 %v2896_v39  ;;  %v2893_v40 = vsel %vm1395_vm3, %v2891_v34, -inf  ;;  %v1597_v39 = vmul.f32 0.5, %v13399_v37 }
 0x8d8   : > { %2894 = vmax.xlane.f32.xlu1 %v2893_v40  ;;  %v1396_v40 = vsel %vm1395_vm3, %v1393_v33, -inf }
 0x964   : > { %v2898_v41 = vpop.xlane.xlu0 %2897 }
 0x965   : > { %v2900_v42 = vsub.f32 %v2892_v32, %v2898_v41  ;;  %v2895_v43 = vpop.xlane.xlu1 %2894  ;;  %v1596_v41 = vmul.f32 0.5, %v13401_v38 }
 0x966   : > { %v2899_v44 = vsub.f32 %v2891_v34, %v2895_v43  ;;  %v1394_v34 = vmul.f32 0.5, %v13395_v35 }
 0x967   : > { %v2903_v45 = vmul.f32 1.442695, %v2900_v42  ;;  %v1601_v42 = vsel %vm1395_vm3, %v1597_v39, -inf  ;;  %v1598_v43 = vsel %vm1395_vm3, %v1596_v41, -inf }
 0x968   : > { %v2901_v46 = vmul.f32 1.442695, %v2899_v44 }
 0x969   : > { %12982 = vpow2.f32 %v2903_v45 }
 0x96a   : > { %12984 = vpow2.f32 %v2901_v46 }
 0x973   : > { %v12983_v47 = vpop.eup %12982 }
 0x974   : > { %v12985_v48 = vpop.eup %12984  ;;  %v2908_v49 = vsel %vm1395_vm3, %v12983_v47, 0.0 }
 0x975   : > { %2909 = vadd.xlane.f32.xlu1 %v2908_v49  ;;  %v2905_v50 = vsel %vm1395_vm3, %v12985_v48, 0.0 }
 0x976   : > { %2906 = vadd.xlane.f32.xlu0 %v2905_v50 }
 0x986   : > { %12453 = vrot.lane.b32.xlu1 %v13355_v17, %s14565_s2  ;;  %s14568_s2 = smov 68  }
 0x98a   : > { %3101 = vrot.lane.b32.xlu1 %v13349_v16, %s13154_s26 }
 0x98c   : > { %12448 = vrot.lane.b32.xlu0 %v13355_v17, %s14566_s1  ;;  %s14572_s1 = smov 100  }
 0x990   : > { %3103 = vrot.lane.b32.xlu0 %v13347_v14, %s13154_s26 }
 0xa02   : > { %v2910_v53 = vpop.xlane.xlu1 %2909 }
 0xa03   : > { %12986 = vrcp.f32 %v2910_v53  ;;  %v2907_v54 = vpop.xlane.xlu0 %2906 }
 0xa04   : > { %12988 = vrcp.f32 %v2907_v54 }
 0xa06   : > { %v12454_v55 = vpop.permute.xlu1 %12453 }
 0xa07   : > { %v12449_v56 = vpop.permute.xlu0 %12448  ;;  %v12456_v57 = vunpack.i.h.bf16 %v12454_v55  ;;  %v12455_v58 = vunpack.i.l.bf16 %v12454_v55 }
 0xa08   : > { %v12451_v59 = vunpack.i.h.bf16 %v12449_v56  ;;  %v12450_v60 = vunpack.i.l.bf16 %v12449_v56 }
 0xa09   : > { %v12077_v62 = vpack.c.bf16 %v12456_v57, %v12455_v58 }
 0xa0a   : > { %v12061_v61 = vpack.c.bf16 %v12451_v59, %v12450_v60  ;;  %v3102_v3 = vpop.permute.xlu1 %3101 }
 0xa0b   : > { %v3104_v4 = vpop.permute.xlu0 %3103 }
 0xa0c   : > { %12062 = vmatprep.subr.bf16.mxu1 %v12061_v61 }
 0xa0d   : > { %v12987_v63 = vpop.eup %12986  ;;  %12064 = vmatpush3.bf16.msra.mxu1 %v12061_v61 }
 0xa0e   : > { %v12989_v0 = vpop.eup %12988  ;;  %12079 = vmatprep.subr.msk.bf16.mxu1 %vm13373_vm2, %v12077_v62  ;;  %v2914_v2 = vmul.f32 %v12987_v63, %v12983_v47 }
 0xa0f   : > { %v2912_v1 = vmul.f32 %v12989_v0, %v12985_v48 }
 0xa11   : > { %11651 = vmatprep.mubr.msk.f32.mxu1 %vm1395_vm3, %v2912_v1 }
 0xa12   : > { %11652 = vmatmul.mubr.msk.f32.vlgmr.msra.gmra.mrb[18].mxu1 %vm1395_vm3, %v2914_v2 }
 0xa13   : > { %11669 = vmatprep.mubr.msk.f32.mxu1 %vm1309_vm1, %v3102_v3 }
 0xa16   : > { %12082 = vmatpush3.bf16.xpose.msk.msra.mxu1 %vm13373_vm2, %v12077_v62 }
 0xa1d   : > { %11670 = vmatmul.mubr.msk.f32.vlgmr.msra.gmra.mrb[20].mxu1 %vm1309_vm1, %v3104_v4 }
 0xae5   : > { %v13495_v5 = vpop.f32.mrb[18].mxu1 }
 0xae6   : > { %v13497_v6 = vpop.f32.mrb[19].mxu1 }
 0xaf0   : > { %v11671_v9 = vpop.f32.mrb[20].mxu1 }
 0xaf1   : > { %v3193_v12 = vmul.f32 0.5, %v11671_v9  ;;  %v3183_v13 = vpop.f32.mrb[21].mxu1 }
 0xaf2   : > { %v3192_v15 = vmul.f32 0.5, %v3183_v13 }
 0xaf3   : > { %v3197_v18 = vsel %vm1395_vm3, %v3193_v12, -inf }
 0xaf4   : > { %3198 = vmax.xlane.f32.xlu0 %v3197_v18  ;;  %v3194_v19 = vsel %vm1395_vm3, %v3192_v15, -inf }
 0xaf5   : > { %3195 = vmax.xlane.f32.xlu1 %v3194_v19 }
 0xb81   : > { %v3199_v20 = vpop.xlane.xlu0 %3198 }
 0xb82   : > { %v3201_v22 = vsub.f32 %v3193_v12, %v3199_v20  ;;  %v3196_v23 = vpop.xlane.xlu1 %3195 }
 0xb83   : > { %v3200_v24 = vsub.f32 %v3192_v15, %v3196_v23 }
 0xb84   : > { %v3204_v25 = vmul.f32 1.442695, %v3201_v22 }
 0xb85   : > { %v3202_v26 = vmul.f32 1.442695, %v3200_v24 }
 0xb86   : > { %12990 = vpow2.f32 %v3204_v25 }
 0xb87   : > { %12992 = vpow2.f32 %v3202_v26 }
 0xb90   : > { %v12991_v27 = vpop.eup %12990 }
 0xb91   : > { %v12993_v28 = vpop.eup %12992  ;;  %v3209_v31 = vsel %vm1395_vm3, %v12991_v27, 0.0 }
 0xb92   : > { %3210 = vadd.xlane.f32.xlu1 %v3209_v31  ;;  %v3206_v32 = vsel %vm1395_vm3, %v12993_v28, 0.0 }
 0xb93   : > { %3207 = vadd.xlane.f32.xlu0 %v3206_v32 }
 0xba3   : > { %12463 = vrot.lane.b32.xlu1 %v13355_v17, %s14568_s2  ;;  %s14570_s2 = smov 60  }
 0xba7   : > { %3402 = vrot.lane.b32.xlu1 %v13349_v16, %s14572_s1  ;;  %v1399_v16 = vsel %vm1395_vm3, %v1394_v34, -inf }
 0xba9   : > { %12458 = vrot.lane.b32.xlu0 %v13355_v17, %s14569_s22  ;;  %s13160_s22 = smov 64  }
 0xbad   : > { %3404 = vrot.lane.b32.xlu0 %v13347_v14, %s14572_s1 }
 0xbcb   : > { %1397 = vmax.xlane.f32.xlu1 %v1396_v40 }
 0xbcc   : > { %1400 = vmax.xlane.f32.xlu0 %v1399_v16 }
 0xbcf   : > { %1602 = vmax.xlane.f32.xlu1 %v1601_v42 }
 0xbd0   : > { %1599 = vmax.xlane.f32.xlu0 %v1598_v43 }
 0xc1f   : > { %v3211_v14 = vpop.xlane.xlu1 %3210 }
 0xc20   : > { %12994 = vrcp.f32 %v3211_v14  ;;  %v3208_v36 = vpop.xlane.xlu0 %3207 }
 0xc21   : > { %12996 = vrcp.f32 %v3208_v36 }
 0xc23   : > { %v12464_v35 = vpop.permute.xlu1 %12463 }
 0xc24   : > { %v12459_v37 = vpop.permute.xlu0 %12458  ;;  %v12466_v44 = vunpack.i.h.bf16 %v12464_v35  ;;  %v12465_v45 = vunpack.i.l.bf16 %v12464_v35 }
 0xc25   : > { %v12461_v46 = vunpack.i.h.bf16 %v12459_v37  ;;  %v12460_v38 = vunpack.i.l.bf16 %v12459_v37 }
 0xc26   : > { %v12099_v48 = vpack.c.bf16 %v12466_v44, %v12465_v45 }
 0xc27   : > { %v12083_v47 = vpack.c.bf16 %v12461_v46, %v12460_v38  ;;  %v3403_v55 = vpop.permute.xlu1 %3402 }
 0xc28   : > { %v3405_v56 = vpop.permute.xlu0 %3404 }
 0xc29   : > { %12084 = vmatprep.subr.bf16.mxu1 %v12083_v47 }
 0xc2a   : > { %v12995_v49 = vpop.eup %12994  ;;  %12086 = vmatpush3.bf16.msra.mxu1 %v12083_v47 }
 0xc2b   : > { %v12997_v50 = vpop.eup %12996  ;;  %12101 = vmatprep.subr.msk.bf16.mxu1 %vm13373_vm2, %v12099_v48  ;;  %v3215_v54 = vmul.f32 %v12995_v49, %v12991_v27 }
 0xc2c   : > { %v3213_v53 = vmul.f32 %v12997_v50, %v12993_v28 }
 0xc2e   : > { %11676 = vmatprep.mubr.msk.f32.mxu1 %vm1395_vm3, %v3213_v53 }
 0xc2f   : > { %11677 = vmatmul.mubr.msk.f32.vlgmr.msra.gmra.mrb[22].mxu1 %vm1395_vm3, %v3215_v54 }
 0xc30   : > { %11694 = vmatprep.mubr.msk.f32.mxu1 %vm1309_vm1, %v3403_v55 }
 0xc33   : > { %12104 = vmatpush3.bf16.xpose.msk.msra.mxu1 %vm13373_vm2, %v12099_v48 }
 0xc3a   : > { %11695 = vmatmul.mubr.msk.f32.vlgmr.msra.gmra.mrb[24].mxu1 %vm1309_vm1, %v3405_v56 }
 0xc58   : > { %v1398_v57 = vpop.xlane.xlu1 %1397 }
 0xc59   : > { %v1402_v58 = vsub.f32 %v1393_v33, %v1398_v57  ;;  %v1401_v59 = vpop.xlane.xlu0 %1400 }
 0xc5a   : > { %v1403_v60 = vsub.f32 %v1394_v34, %v1401_v59 }
 0xc5b   : > { %v1404_v61 = vmul.f32 1.442695, %v1402_v58 }
 0xc5c   : > { %v1406_v62 = vmul.f32 1.442695, %v1403_v60  ;;  %v1603_v63 = vpop.xlane.xlu1 %1602 }
 0xc5d   : > { %12998 = vpow2.f32 %v1404_v61  ;;  %v1605_v0 = vsub.f32 %v1597_v39, %v1603_v63  ;;  %v1600_v1 = vpop.xlane.xlu0 %1599  ;;  %v915_v63 = vld [vmem:[%s13191_s21] sm:$0xff] }
 0xc5e   : > { %13000 = vpow2.f32 %v1406_v62  ;;  %v1604_v2 = vsub.f32 %v1596_v41, %v1600_v1 }
 0xc5f   : > { %v1608_v3 = vmul.f32 1.442695, %v1605_v0  ;;  %v916_v0 = vld [vmem:[%s13191_s21 + $0x8] sm:$0xff] }
 0xc60   : > { %v1606_v4 = vmul.f32 1.442695, %v1604_v2  ;;  %v12482_v1 = vpack.i.bf16 %v916_v0, %v915_v63  ;;  %v917_v2 = vld [vmem:[%s13191_s21 + $0x10] sm:$0xff] }
 0xc61   : > { %13002 = vpow2.f32 %v1608_v3  ;;  %v918_v3 = vld [vmem:[%s13191_s21 + $0x18] sm:$0xff] }
 0xc62   : > { %13004 = vpow2.f32 %v1606_v4  ;;  %v12487_v4 = vpack.i.bf16 %v918_v3, %v917_v2 }
 0xc67   : > { %v12999_v9 = vpop.eup %12998 }
 0xc68   : > { %v13001_v12 = vpop.eup %13000  ;;  %v1408_v13 = vsel %vm1395_vm3, %v12999_v9, 0.0 }
 0xc69   : > { %1409 = vadd.xlane.f32.xlu0 %v1408_v13  ;;  %v1411_v15 = vsel %vm1395_vm3, %v13001_v12, 0.0 }
 0xc6a   : > { %1412 = vadd.xlane.f32.xlu1 %v1411_v15 }
 0xc6b   : > { %v13003_v18 = vpop.eup %13002 }
 0xc6c   : > { %v13005_v19 = vpop.eup %13004  ;;  %v1613_v20 = vsel %vm1395_vm3, %v13003_v18, 0.0 }
 0xc6d   : > { %v1610_v22 = vsel %vm1395_vm3, %v13005_v19, 0.0 }
 0xc6e   : > { %1611 = vadd.xlane.f32.xlu0 %v1610_v22  ;;  %1614 = vadd.xlane.f32.xlu1 %v1613_v20 }
 0xc7f   : > { %12473 = vrot.lane.b32.xlu1 %v13355_v17, %s14570_s2  ;;  %s14571_s2 = smov 36  }
 0xc84   : > { %12468 = vrot.lane.b32.xlu0 %v13355_v17, %s13160_s22 }
 0xcf6   : > { %v1410_v23 = vpop.xlane.xlu0 %1409 }
 0xcf7   : > { %13006 = vrcp.f32 %v1410_v23  ;;  %v1413_v24 = vpop.xlane.xlu1 %1412 }
 0xcf8   : > { %13008 = vrcp.f32 %v1413_v24 }
 0xcfb   : > { %v1612_v25 = vpop.xlane.xlu0 %1611  ;;  %v1615_v26 = vpop.xlane.xlu1 %1614 }
 0xcfc   : > { %13010 = vrcp.f32 %v1612_v25 }
 0xcfd   : > { %13012 = vrcp.f32 %v1615_v26 }
 0xcff   : > { %v12469_v27 = vpop.permute.xlu0 %12468  ;;  %v12474_v28 = vpop.permute.xlu1 %12473 }
 0xd00   : > { %v12471_v31 = vunpack.i.h.bf16 %v12469_v27  ;;  %v12470_v32 = vunpack.i.l.bf16 %v12469_v27  ;;  %v12476_v33 = vunpack.i.h.bf16 %v12474_v28  ;;  %v12475_v34 = vunpack.i.l.bf16 %v12474_v28 }
 0xd01   : > { %v13007_v39 = vpop.eup %13006 }
 0xd02   : > { %v13535_v40 = vpop.f32.mrb[22].mxu1  ;;  %v11951_v41 = vpack.c.bf16 %v12471_v31, %v12470_v32  ;;  %v1415_v16 = vmul.f32 %v13007_v39, %v12999_v9  ;;  %v13009_v42 = vpop.eup %13008  ;;  %v11961_v14 = vpack.c.bf16 %v12476_v33, %v12475_v34 }
 0xd03   : > { %v13537_v43 = vpop.f32.mrb[23].mxu1  ;;  %v1417_v35 = vmul.f32 %v13009_v42, %v13001_v12  ;;  %v11977_v42 = vpack.c.bf16 %v916_v0, %v915_v63 }
 0xd04   : > { %11952 = vmatprep.subr.bf16.mxu0 %v11951_v41  ;;  %11526 = vmatprep.mubr.msk.f32.mxu0 %vm1395_vm3, %v1415_v16 }
 0xd05   : > { %11954 = vmatpush3.bf16.msra.mxu0 %v11951_v41 }
 0xd06   : > { %v13011_v36 = vpop.eup %13010  ;;  %11962 = vmatprep.subr.bf16.mxu0 %v11961_v14 }
 0xd07   : > { %v13013_v37 = vpop.eup %13012  ;;  %v1617_v44 = vmul.f32 %v13011_v36, %v13005_v19 }
 0xd08   : > { %11527 = vmatmul.mubr.msk.f32.vlgmr.msra.gmra.mrb[2].mxu0 %vm1395_vm3, %v1417_v35  ;;  %v1619_v45 = vmul.f32 %v13013_v37, %v13003_v18 }
 0xd09   : > { %11964 = vmatpush3.bf16.msra.mxu0 %v11961_v14  ;;  %11540 = vmatprep.mubr.msk.f32.mxu0 %vm1395_vm3, %v1617_v44  ;;  %v11983_v14 = vpack.c.bf16 %v918_v3, %v917_v2 }
 0xd0c   : > { %11541 = vmatmul.mubr.msk.f32.vlgmr.msra.gmra.mrb[4].mxu0 %vm1395_vm3, %v1619_v45 }
 0xd0d   : > { %v11696_v46 = vpop.f32.mrb[24].mxu1 }
 0xd0e   : > { %v3494_v38 = vmul.f32 0.5, %v11696_v46  ;;  %v3484_v47 = vpop.f32.mrb[25].mxu1 }
 0xd0f   : > { %v3493_v48 = vmul.f32 0.5, %v3484_v47 }
 0xd10   : > { %v3498_v49 = vsel %vm1395_vm3, %v3494_v38, -inf }
 0xd11   : > { %3499 = vmax.xlane.f32.xlu0 %v3498_v49  ;;  %v3495_v50 = vsel %vm1395_vm3, %v3493_v48, -inf }
 0xd12   : > { %3496 = vmax.xlane.f32.xlu1 %v3495_v50 }
 0xd9e   : > { %v3500_v53 = vpop.xlane.xlu0 %3499 }
 0xd9f   : > { %v3502_v54 = vsub.f32 %v3494_v38, %v3500_v53  ;;  %v3497_v55 = vpop.xlane.xlu1 %3496 }
 0xda0   : > { %v3501_v56 = vsub.f32 %v3493_v48, %v3497_v55 }
 0xda1   : > { %v3505_v57 = vmul.f32 1.442695, %v3502_v54 }
 0xda2   : > { %v3503_v58 = vmul.f32 1.442695, %v3501_v56 }
 0xda3   : > { %13014 = vpow2.f32 %v3505_v57 }
 0xda4   : > { %13016 = vpow2.f32 %v3503_v58 }
 0xdad   : > { %v13015_v59 = vpop.eup %13014 }
 0xdae   : > { %v13017_v60 = vpop.eup %13016  ;;  %v3510_v61 = vsel %vm1395_vm3, %v13015_v59, 0.0 }
 0xdaf   : > { %3511 = vadd.xlane.f32.xlu1 %v3510_v61  ;;  %v3507_v62 = vsel %vm1395_vm3, %v13017_v60, 0.0 }
 0xdb0   : > { %3508 = vadd.xlane.f32.xlu0 %v3507_v62 }
 0xdc0   : > { %12483 = vrot.lane.b32.xlu1 %v12482_v1, %s13141_s18 }
 0xdc4   : > { %12488 = vrot.lane.b32.xlu1 %v12487_v4, %s13141_s18 }
 0xdc6   : > { %12478 = vrot.lane.b32.xlu0 %v13355_v17, %s14571_s2  ;;  %s14588_s2 = sld [smem:[#allocation2_spill]] }
 0xdc8   : > { %12498 = vrot.lane.b32.xlu1 %v12487_v4, %s13143_s23 }
 0xdca   : > { %12493 = vrot.lane.b32.xlu0 %v12482_v1, %s13143_s23 }
 0xdcc   : > { %12508 = vrot.lane.b32.xlu1 %v12487_v4, %s13145_s28 }
 0xdce   : > { %12503 = vrot.lane.b32.xlu0 %v12482_v1, %s13145_s28 }
 0xdd0   : > { %12518 = vrot.lane.b32.xlu1 %v12487_v4, %s13148_s11 }
 0xdd2   : > { %12513 = vrot.lane.b32.xlu0 %v12482_v1, %s13148_s11 }
 0xdd4   : > { %12528 = vrot.lane.b32.xlu1 %v12487_v4, %s13151_s0 }
 0xdd6   : > { %12523 = vrot.lane.b32.xlu0 %v12482_v1, %s13151_s0 }
 0xdd8   : > { %12538 = vrot.lane.b32.xlu1 %v12487_v4, %s13154_s26 }
 0xdda   : > { %12533 = vrot.lane.b32.xlu0 %v12482_v1, %s13154_s26 }
 0xddb   : > { %v11528_v17 = vpop.f32.mrb[2].mxu0 }
 0xddc   : > { %v1496_v9 = vpop.f32.mrb[3].mxu0  ;;  %12548 = vrot.lane.b32.xlu1 %v12487_v4, %s14572_s1 }
 0xdde   : > { %12543 = vrot.lane.b32.xlu0 %v12482_v1, %s14572_s1  ;;  %s14589_s1 = sld [smem:[#allocation3_spill]] }
 0xddf   : > { %v11542_v12 = vpop.f32.mrb[4].mxu0 }
 0xde0   : > { %v1698_v13 = vpop.f32.mrb[5].mxu0 }
 0xde1   : > { %11551 = vmatprep.mubr.msk.f32.mxu0 %vm1309_vm1, %v1698_v13 }
 0xe3c   : > { %v3512_v15 = vpop.xlane.xlu1 %3511 }
 0xe3d   : > { %13018 = vrcp.f32 %v3512_v15  ;;  %v3509_v18 = vpop.xlane.xlu0 %3508 }
 0xe3e   : > { %13020 = vrcp.f32 %v3509_v18 }
 0xe40   : > { %v12484_v19 = vpop.permute.xlu1 %12483 }
 0xe41   : > { %v12486_v20 = vunpack.i.h.bf16 %v12484_v19  ;;  %v12485_v22 = vunpack.i.l.bf16 %v12484_v19  ;;  %v12479_v23 = vpop.permute.xlu0 %12478 }
 0xe42   : > { %v12481_v24 = vunpack.i.h.bf16 %v12479_v23  ;;  %v12480_v25 = vunpack.i.l.bf16 %v12479_v23 }
 0xe43   : > { %v11965_v26 = vpack.c.bf16 %v12486_v20, %v12485_v22 }
 0xe44   : > { %v12105_v27 = vpack.c.bf16 %v12481_v24, %v12480_v25  ;;  %v12489_v28 = vpop.permute.xlu1 %12488 }
 0xe45   : > { %11967 = vmatprep.subr.msk.bf16.mxu0 %vm13373_vm2, %v11965_v26  ;;  %v12491_v31 = vunpack.i.h.bf16 %v12489_v28  ;;  %v12490_v32 = vunpack.i.l.bf16 %v12489_v28  ;;  %v12494_v36 = vpop.permute.xlu0 %12493 }
 0xe46   : > { %11970 = vmatpush3.bf16.xpose.msk.msra.mxu0 %vm13373_vm2, %v11965_v26  ;;  %12106 = vmatprep.subr.bf16.mxu1 %v12105_v27  ;;  %v12496_v35 = vunpack.i.h.bf16 %v12494_v36  ;;  %v12495_v37 = vunpack.i.l.bf16 %v12494_v36 }
 0xe47   : > { %v13019_v33 = vpop.eup %13018  ;;  %12108 = vmatpush3.bf16.msra.mxu1 %v12105_v27  ;;  %v11971_v34 = vpack.c.bf16 %v12491_v31, %v12490_v32  ;;  %v10456_v31 = vld [vmem:[%s13196_s25] ss:$0 sm:$0xff] }
 0xe48   : > { %v13021_v39 = vpop.eup %13020  ;;  %v3516_v16 = vmul.f32 %v13019_v33, %v13015_v59  ;;  %v11999_v44 = vpack.c.bf16 %v12496_v35, %v12495_v37  ;;  %v12499_v45 = vpop.permute.xlu1 %12498 }
 0xe49   : > { %v3514_v41 = vmul.f32 %v13021_v39, %v13017_v60  ;;  %11973 = vmatprep.subr.msk.bf16.mxu0 %vm13373_vm2, %v11971_v34  ;;  %v12501_v46 = vunpack.i.h.bf16 %v12499_v45  ;;  %v12500_v38 = vunpack.i.l.bf16 %v12499_v45  ;;  %v12504_v48 = vpop.permute.xlu0 %12503 }
 0xe4a   : > { %v12506_v49 = vunpack.i.h.bf16 %v12504_v48  ;;  %v12505_v50 = vunpack.i.l.bf16 %v12504_v48  ;;  %v929_v48 = vld [vmem:[%s13211_s8 + $0x38] sm:$0xff] }
 0xe4b   : > { %11701 = vmatprep.mubr.msk.f32.mxu1 %vm1395_vm3, %v3514_v41  ;;  %v12005_v47 = vpack.c.bf16 %v12501_v46, %v12500_v38  ;;  %v922_v38 = vld [vmem:[%s13211_s8] sm:$0xff] }
 0xe4c   : > { %11702 = vmatmul.mubr.msk.f32.vlgmr.msra.gmra.mrb[26].mxu1 %vm1395_vm3, %v3516_v16  ;;  %v12021_v53 = vpack.c.bf16 %v12506_v49, %v12505_v50  ;;  %v12509_v54 = vpop.permute.xlu1 %12508  ;;  %v937_v50 = vld [vmem:[%s13211_s8 + $0x78] sm:$0xff] }
 0xe4d   : > { %v12511_v55 = vunpack.i.h.bf16 %v12509_v54  ;;  %v12510_v56 = vunpack.i.l.bf16 %v12509_v54  ;;  %v12514_v58 = vpop.permute.xlu0 %12513  ;;  %v10473_v54 = vcombine.low %v929_v48, %v937_v50 }
 0xe4e   : > { %11976 = vmatpush3.bf16.xpose.msk.msra.mxu0 %vm13373_vm2, %v11971_v34  ;;  %v12515_v59 = vunpack.i.l.bf16 %v12514_v58 }
 0xe4f   : > { %11979 = vmatprep.subr.msk.bf16.mxu0 %vm13373_vm2, %v11977_v42  ;;  %v12027_v57 = vpack.c.bf16 %v12511_v55, %v12510_v56  ;;  %v10474_v55 = vcombine.high %v929_v48, %v937_v50  ;;  %v938_v56 = vld [vmem:[%s13211_s8 + $0x80] sm:$0xff] }
 0xe50   : > { %v12519_v61 = vpop.permute.xlu1 %12518  ;;  %v926_v48 = vld [vmem:[%s13211_s8 + $0x20] sm:$0xff] }
 0xe51   : > { %v12520_v62 = vunpack.i.l.bf16 %v12519_v61  ;;  %v12524_v0 = vpop.permute.xlu0 %12523 }
 0xe52   : > { %v12525_v1 = vunpack.i.l.bf16 %v12524_v0 }
 0xe54   : > { %v12529_v3 = vpop.permute.xlu1 %12528 }
 0xe55   : > { %11552 = vmatmul.mubr.msk.f32.vlgmr.msra.gmra.mrb[6].mxu0 %vm1309_vm1, %v11542_v12  ;;  %v12530_v4 = vunpack.i.l.bf16 %v12529_v3 }
 0xe56   : > { %11982 = vmatpush3.bf16.xpose.msk.msra.mxu0 %vm13373_vm2, %v11977_v42  ;;  %11562 = vmatprep.mubr.msk.f32.mxu0 %vm1309_vm1, %v1496_v9  ;;  %v12534_v9 = vpop.permute.xlu0 %12533 }
 0xe57   : > { %11985 = vmatprep.subr.msk.bf16.mxu0 %vm13373_vm2, %v11983_v14  ;;  %v12535_v12 = vunpack.i.l.bf16 %v12534_v9 }
 0xe58   : > { %v12539_v15 = vpop.permute.xlu1 %12538 }
 0xe59   : > { %v12540_v18 = vunpack.i.l.bf16 %v12539_v15 }
 0xe5a   : > { %v12544_v20 = vpop.permute.xlu0 %12543 }
 0xe5b   : > { %v12545_v22 = vunpack.i.l.bf16 %v12544_v20 }
 0xe5c   : > { %v12549_v24 = vpop.permute.xlu1 %12548 }
 0xe5d   : > { %v12550_v25 = vunpack.i.l.bf16 %v12549_v24 }
 0xe5e   : > { %11988 = vmatpush3.bf16.xpose.msk.msra.mxu0 %vm13373_vm2, %v11983_v14 }
 0xe5f   : > { %12001 = vmatprep.subr.msk.bf16.mxu0 %vm13373_vm2, %v11999_v44 }
 0xe65   : > { %11563 = vmatmul.mubr.msk.f32.vlgmr.msra.gmra.mrb[6].mxu0 %vm1309_vm1, %v11528_v17 }
 0xe66   : > { %12004 = vmatpush3.bf16.xpose.msk.msra.mxu0 %vm13373_vm2, %v11999_v44  ;;  %11587 = vmatprep.mubr.msk.f32.mxu0 %vm1309_vm1, %v13425_v8  ;;  %v12516_v8 = vunpack.i.h.bf16 %v12514_v58  ;;  %v945_v58 = vld [vmem:[%s13211_s8 + $0xb8] sm:$0xff] }
 0xe67   : > { %12007 = vmatprep.subr.msk.bf16.mxu0 %vm13373_vm2, %v12005_v47 }
 0xe68   : > { %v12043_v60 = vpack.c.bf16 %v12516_v8, %v12515_v59 }
 0xe6e   : > { %12010 = vmatpush3.bf16.xpose.msk.msra.mxu0 %vm13373_vm2, %v12005_v47  ;;  %v930_v47 = vld [vmem:[%s13211_s8 + $0x40] sm:$0xff] }
 0xe6f   : > { %12023 = vmatprep.subr.msk.bf16.mxu0 %vm13373_vm2, %v12021_v53  ;;  %v10460_v49 = vcombine.high %v922_v38, %v930_v47 }
 0xe71   : > { %4002 = vmatprep.subr.bf16.mxu1 %v10460_v49  ;;  %v934_v49 = vld [vmem:[%s13211_s8 + $0x60] sm:$0xff] }
 0xe75   : > { %11588 = vmatmul.mubr.msk.f32.vlgmr.msra.gmra.mrb[6].mxu0 %vm1309_vm1, %v13423_v7  ;;  %v12521_v7 = vunpack.i.h.bf16 %v12519_v61 }
 0xe76   : > { %12026 = vmatpush3.bf16.xpose.msk.msra.mxu0 %vm13373_vm2, %v12021_v53  ;;  %11612 = vmatprep.mubr.msk.f32.mxu0 %vm1309_vm1, %v13449_v52  ;;  %v12526_v52 = vunpack.i.h.bf16 %v12524_v0  ;;  %v10459_v53 = vcombine.low %v922_v38, %v930_v47  ;;  %v931_v0 = vld [vmem:[%s13211_s8 + $0x48] sm:$0xff] }
 0xe77   : > { %12029 = vmatprep.subr.msk.bf16.mxu0 %vm13373_vm2, %v12027_v57  ;;  %v12049_v63 = vpack.c.bf16 %v12521_v7, %v12520_v62  ;;  %v13162_v62 = vmov 0  }
 0xe78   : > { %v12065_v2 = vpack.c.bf16 %v12526_v52, %v12525_v1  ;;  %4003 = vmatpush1.bf16.msra.mxu1 %v10459_v53  ;;  %4034 = vmatprep.mubr.bf16.mxu1 %v13162_v62  ;;  %v10468_v53 = vcombine.high %v926_v48, %v934_v49 }
 0xe7e   : > { %12032 = vmatpush3.bf16.xpose.msk.msra.mxu0 %vm13373_vm2, %v12027_v57  ;;  %v946_v57 = vld [vmem:[%s13211_s8 + $0xc0] sm:$0xff] }
 0xe7f   : > { %12045 = vmatprep.subr.msk.bf16.mxu0 %vm13373_vm2, %v12043_v60  ;;  %v10475_v8 = vcombine.low %v938_v56, %v946_v57  ;;  %v10476_v59 = vcombine.high %v938_v56, %v946_v57  ;;  %v10467_v56 = vcombine.low %v926_v48, %v934_v49 }
 0xe81   : > { %4004 = vmatprep.subr.bf16.mxu1 %v10476_v59 }
 0xe82   : > { %4005 = vmatpush1.bf16.msra.mxu1 %v10475_v8  ;;  %v935_v8 = vld [vmem:[%s13211_s8 + $0x68] sm:$0xff] }
 0xe85   : > { %11613 = vmatmul.mubr.msk.f32.vlgmr.msra.gmra.mrb[6].mxu0 %vm1309_vm1, %v13447_v51  ;;  %v12531_v51 = vunpack.i.h.bf16 %v12529_v3 }
 0xe86   : > { %12048 = vmatpush3.bf16.xpose.msk.msra.mxu0 %vm13373_vm2, %v12043_v60  ;;  %11637 = vmatprep.mubr.msk.f32.mxu0 %vm1309_vm1, %v13473_v30  ;;  %v12536_v30 = vunpack.i.h.bf16 %v12534_v9  ;;  %v953_v60 = vld [vmem:[%s13211_s8 + $0xf8] sm:$0xff] }
 0xe87   : > { %12051 = vmatprep.subr.msk.bf16.mxu0 %vm13373_vm2, %v12049_v63  ;;  %v12071_v17 = vpack.c.bf16 %v12531_v51, %v12530_v4  ;;  %v10489_v61 = vcombine.low %v945_v58, %v953_v60  ;;  %v10490_v7 = vcombine.high %v945_v58, %v953_v60  ;;  %v927_v58 = vld [vmem:[%s13211_s8 + $0x28] sm:$0xff] }
 0xe88   : > { %v12087_v13 = vpack.c.bf16 %v12536_v30, %v12535_v12  ;;  %v10470_v60 = vcombine.high %v927_v58, %v935_v8 }
 0xe8e   : > { %12054 = vmatpush3.bf16.xpose.msk.msra.mxu0 %vm13373_vm2, %v12049_v63  ;;  %v923_v63 = vld [vmem:[%s13211_s8 + $0x8] sm:$0xff] }
 0xe8f   : > { %12067 = vmatprep.subr.msk.bf16.mxu0 %vm13373_vm2, %v12065_v2  ;;  %v10461_v52 = vcombine.low %v923_v63, %v931_v0  ;;  %v10462_v1 = vcombine.high %v923_v63, %v931_v0  ;;  %v10469_v63 = vcombine.low %v927_v58, %v935_v8 }
 0xe91   : > { %4045 = vmatprep.subr.bf16.mxu1 %v10462_v1  ;;  %v936_v1 = vld [vmem:[%s13211_s8 + $0x70] sm:$0xff] }
 0xe95   : > { %11638 = vmatmul.mubr.msk.f32.vlgmr.msra.gmra.mrb[6].mxu0 %vm1309_vm1, %v13471_v29  ;;  %v12541_v29 = vunpack.i.h.bf16 %v12539_v15  ;;  %v10457_v15 = vld [vmem:[%s13201_s29] ss:$0 sm:$0xff] }
 0xe96   : > { %12070 = vmatpush3.bf16.xpose.msk.msra.mxu0 %vm13373_vm2, %v12065_v2  ;;  %11662 = vmatprep.mubr.msk.f32.mxu0 %vm1309_vm1, %v13497_v6  ;;  %v12546_v6 = vunpack.i.h.bf16 %v12544_v20  ;;  %v12707_v2 = vld [vmem:[%s13221_s19 + $0xc0] sm:$0xff]  }
 0xe97   : > { %12073 = vmatprep.subr.msk.bf16.mxu0 %vm13373_vm2, %v12071_v17  ;;  %v12093_v19 = vpack.c.bf16 %v12541_v29, %v12540_v18  ;;  %v10458_v20 = vld [vmem:[%s13206_s3] ss:$0 sm:$0xff] }
 0xe98   : > { %v12109_v23 = vpack.c.bf16 %v12546_v6, %v12545_v22  ;;  %v939_v22 = vld [vmem:[%s13211_s8 + $0x88] sm:$0xff] }
 0xe9e   : > { %12076 = vmatpush3.bf16.xpose.msk.msra.mxu0 %vm13373_vm2, %v12071_v17 }
 0xe9f   : > { %12089 = vmatprep.subr.msk.bf16.mxu0 %vm13373_vm2, %v12087_v13 }
 0xea5   : > { %11663 = vmatmul.mubr.msk.f32.vlgmr.msra.gmra.mrb[6].mxu0 %vm1309_vm1, %v13495_v5  ;;  %v12551_v5 = vunpack.i.h.bf16 %v12549_v24 }
 0xea6   : > { %12092 = vmatpush3.bf16.xpose.msk.msra.mxu0 %vm13373_vm2, %v12087_v13  ;;  %11687 = vmatprep.mubr.msk.f32.mxu0 %vm1309_vm1, %v13537_v43 }
 0xea7   : > { %12095 = vmatprep.subr.msk.bf16.mxu0 %vm13373_vm2, %v12093_v19  ;;  %v12115_v26 = vpack.c.bf16 %v12551_v5, %v12550_v25 }
 0xeae   : > { %12098 = vmatpush3.bf16.xpose.msk.msra.mxu0 %vm13373_vm2, %v12093_v19 }
 0xeaf   : > { %12111 = vmatprep.subr.msk.bf16.mxu0 %vm13373_vm2, %v12109_v23 }
 0xeb5   : > { %11688 = vmatmul.mubr.msk.f32.vlgmr.msra.gmra.mrb[6].mxu0 %vm1309_vm1, %v13535_v40 }
 0xeb6   : > { %12114 = vmatpush3.bf16.xpose.msk.msra.mxu0 %vm13373_vm2, %v12109_v23  ;;  %v947_v23 = vld [vmem:[%s13211_s8 + $0xc8] sm:$0xff] }
 0xeb7   : > { %12117 = vmatprep.subr.msk.bf16.mxu0 %vm13373_vm2, %v12115_v26 }
 0xebe   : > { %12120 = vmatpush3.bf16.xpose.msk.msra.mxu0 %vm13373_vm2, %v12115_v26  ;;  %v10478_v26 = vcombine.high %v939_v22, %v947_v23 }
 0xebf   : > { %4303 = vmatprep.subr.bf16.mxu0 %v10474_v55  ;;  %v950_v55 = vld [vmem:[%s13211_s8 + $0xe0] sm:$0xff] }
 0xf1f   : > { %v11703_v43 = vpop.f32.mrb[26].mxu1 }
 0xf20   : > { %v3595_v27 = vpop.f32.mrb[27].mxu1 }
 0xf21   : > { %11712 = vmatprep.mubr.msk.f32.mxu0 %vm1309_vm1, %v3595_v27  ;;  %v924_v27 = vld [vmem:[%s13211_s8 + $0x10] sm:$0xff] }
 0xf22   : > { %11713 = vmatmul.mubr.msk.f32.vlgmr.msra.gmra.mrb[6].mxu0 %vm1309_vm1, %v11703_v43  ;;  %v12709_v43 = vld [vmem:[%s13221_s19 + $0x80] sm:$0xff]  }
 0xf23   : > { %4304 = vmatpush1.bf16.msra.mxu0 %v10473_v54  ;;  %4335 = vmatprep.mubr.bf16.mxu0 %v13162_v62  ;;  %v942_v54 = vld [vmem:[%s13211_s8 + $0xa0] sm:$0xff] }
 0xf24   : > { %4305 = vmatprep.subr.bf16.mxu0 %v10490_v7  ;;  %v10484_v57 = vcombine.high %v942_v54, %v950_v55  ;;  %v10483_v59 = vcombine.low %v942_v54, %v950_v55  ;;  %v951_v7 = vld [vmem:[%s13211_s8 + $0xe8] sm:$0xff] }
 0xf27   : > { %4306 = vmatpush1.bf16.msra.mxu0 %v10489_v61  ;;  %v943_v61 = vld [vmem:[%s13211_s8 + $0xa8] sm:$0xff] }
 0xf28   : > { %11050 = vmatprep.subr.bf16.mxu0 %v12707_v2  ;;  %v10486_v0 = vcombine.high %v943_v61, %v951_v7  ;;  %v10485_v2 = vcombine.low %v943_v61, %v951_v7 }
 0xff5   : > { %v11714_v28 = vpop.f32.mrb[6].mxu0 }
 0xff6   : > { %v3704_v32 = vadd.f32 %v11714_v28, %v13340_v11  ;;  %v3692_v40 = vpop.f32.mrb[7].mxu0  ;;  %v932_v28 = vld [vmem:[%s13211_s8 + $0x50] sm:$0xff] }
 0xff7   : > { %v3703_v33 = vadd.f32 %v3692_v40, %v13338_v10  ;;  %v10464_v40 = vcombine.high %v924_v27, %v932_v28 }
 0xff8   : > { %v3712_v34 = vadd.f32 %v10456_v31, %v3704_v32  ;;  %v10477_v32 = vcombine.low %v939_v22, %v947_v23  ;;  %v12714_v22 = vld [vmem:[%s13221_s19 + $0x60] sm:$0xff]  }
 0xff9   : > { %v3711_v39 = vadd.f32 %v10456_v31, %v3703_v33  ;;  %v12711_v31 = vld [vmem:[%s13221_s19 + $0xc8] sm:$0xff]   ;;  %v12716_v23 = vld [vmem:[%s13221_s19 + $0x20] sm:$0xff]  }
 0xffa   : > { %v3716_v41 = vsel %vm1221_vm0, %v3712_v34, 0.0  ;;  %v12713_v33 = vld [vmem:[%s13221_s19 + $0x88] sm:$0xff]  }
 0xffb   : > { %3717 = vadd.xlane.f32.xlu1 %v3716_v41  ;;  %v3713_v16 = vsel %vm1221_vm0, %v3711_v39, 0.0  ;;  %v12715_v41 = vld [vmem:[%s13221_s19 + $0xd0] sm:$0xff]  }
 0xffc   : > { %3714 = vadd.xlane.f32.xlu0 %v3713_v16  ;;  %v10463_v16 = vcombine.low %v924_v27, %v932_v28  ;;  %v12723_v27 = vld [vmem:[%s13221_s19 + $0xe0] sm:$0xff]   ;;  %v12724_v28 = vld [vmem:[%s13221_s19 + $0x30] sm:$0xff]  }
0x1088   : > { %v3718_v42 = vpop.xlane.xlu1 %3717 }
0x1089   : > { %v3721_v14 = vmul.f32 0.03125, %v3718_v42  ;;  %v3715_v36 = vpop.xlane.xlu0 %3714 }
0x108a   : > { %v3720_v35 = vmul.f32 0.03125, %v3715_v36  ;;  %v925_v36 = vld [vmem:[%s13211_s8 + $0x18] sm:$0xff] }
0x108b   : > { %v3723_v11 = vsub.f32 %v3712_v34, %v3721_v14  ;;  %v940_v34 = vld [vmem:[%s13211_s8 + $0x90] sm:$0xff] }
0x108c   : > { %v3722_v37 = vsub.f32 %v3711_v39, %v3720_v35  ;;  %v948_v39 = vld [vmem:[%s13211_s8 + $0xd0] sm:$0xff]  ;;  %v933_v35 = vld [vmem:[%s13211_s8 + $0x58] sm:$0xff] }
0x108d   : > { %v3725_v45 = vmul.f32 %v3723_v11, %v3723_v11  ;;  %v10480_v42 = vcombine.high %v940_v34, %v948_v39  ;;  %v12717_v14 = vld [vmem:[%s13221_s19 + $0x90] sm:$0xff]   ;;  %v10465_v38 = vcombine.low %v925_v36, %v933_v35 }
0x108e   : > { %v3724_v44 = vmul.f32 %v3722_v37, %v3722_v37 }
0x108f   : > { %v3729_v46 = vsel %vm1221_vm0, %v3725_v45, 0.0  ;;  %v941_v45 = vld [vmem:[%s13211_s8 + $0x98] sm:$0xff] }
0x1090   : > { %v3726_v10 = vsel %vm1221_vm0, %v3724_v44, 0.0  ;;  %v10466_v44 = vcombine.high %v925_v36, %v933_v35  ;;  %v12739_v36 = vld [vmem:[%s13221_s19 + $0x1c0] sm:$0xff]   ;;  %v3759_v35 = vlaneseq }
0x1091   : > { %3727 = vadd.xlane.f32.xlu0 %v3726_v10  ;;  %v12721_v10 = vld [vmem:[%s13221_s19 + $0x98] sm:$0xff]  }
0x1095   : > { %3730 = vadd.xlane.f32.xlu0 %v3729_v46  ;;  %v949_v46 = vld [vmem:[%s13211_s8 + $0xd8] sm:$0xff] }
0x1096   : > { %v10482_v47 = vcombine.high %v941_v45, %v949_v46  ;;  %v10481_v50 = vcombine.low %v941_v45, %v949_v46  ;;  %v13774_v45 = vld [vmem:[%s13216_s14 + $0x8] sm:$0xff] }
0x111e   : > { %v3728_v3 = vpop.xlane.xlu0 %3727 }
0x111f   : > { %v3732_v51 = vmul.f32 0.03125, %v3728_v3 }
0x1121   : > { %v3734_v4 = vadd.f32 1e-05, %v3732_v51  ;;  %v944_v51 = vld [vmem:[%s13211_s8 + $0xb0] sm:$0xff] }
0x1122   : > { %v3731_v17 = vpop.xlane.xlu0 %3730 }
0x1123   : > { %13022 = vrsqrt.f32 %v3734_v4  ;;  %v3733_v9 = vmul.f32 0.03125, %v3731_v17  ;;  %v952_v4 = vld [vmem:[%s13211_s8 + $0xf0] sm:$0xff] }
0x1125   : > { %v3735_v30 = vadd.f32 1e-05, %v3733_v9  ;;  %v10488_v9 = vcombine.high %v944_v51, %v952_v4 }
0x1127   : > { %13024 = vrsqrt.f32 %v3735_v30  ;;  %v10487_v30 = vcombine.low %v944_v51, %v952_v4 }
0x112d   : > { %v13023_v12 = vpop.eup %13022 }
0x112e   : > { %v3738_v13 = vmul.f32 %v13023_v12, %v3722_v37  ;;  %v10479_v37 = vcombine.low %v940_v34, %v948_v39  ;;  %v12702_v12 = vld [vmem:[%s13221_s19 + $0x40] sm:$0xff]   ;;  %v12729_v34 = vld [vmem:[%s13221_s19 + $0xa8] sm:$0xff]   ;;  %v12730_v39 = vld [vmem:[%s13221_s19 + $0xf0] sm:$0xff]  }
0x1130   : > { %v3746_v18 = vmul.f32 %v10457_v15, %v3738_v13  ;;  %v12703_v13 = vld [vmem:[%s13221_s19] sm:$0xff]  }
0x1131   : > { %v13025_v29 = vpop.eup %13024 }
0x1132   : > { %v3739_v19 = vmul.f32 %v13025_v29, %v3723_v11  ;;  %v13683_v24 = vadd.f32 %v10458_v20, %v3746_v18  ;;  %v12719_v11 = vld [vmem:[%s13221_s19 + $0xd8] sm:$0xff]   ;;  %v12705_v29 = vld [vmem:[%s13221_s19 + $0x8] sm:$0xff]   ;;  %v12706_v18 = vld [vmem:[%s13221_s19 + $0x50] sm:$0xff]  }
0x1134   : > { %v3747_v6 = vmul.f32 %v10457_v15, %v3739_v19  ;;  %v12704_v15 = vld [vmem:[%s13221_s19 + $0x48] sm:$0xff]   ;;  %v12708_v19 = vld [vmem:[%s13221_s19 + $0x10] sm:$0xff]  }
0x1136   : > { %v13685_v5 = vadd.f32 %v10458_v20, %v3747_v6  ;;  %v12710_v20 = vld [vmem:[%s13221_s19 + $0x58] sm:$0xff]  }
0x1137   : > { %v12712_v6 = vld [vmem:[%s13221_s19 + $0x18] sm:$0xff]  }
0x1138   : > { %v13689_v25 = vpack.c.bf16 %v13685_v5, %v13683_v24 }
0x113a   : > { %10491 = vmatmul.mubr.msk.bf16.vlgmr.msra.gmra.mrb[28].mxu1 %vm1221_vm0, %v13689_v25  ;;  %10498 = vmatmul.mubr.msk.bf16.vlgmr.msra.gmra.mrb[8].mxu0 %vm1221_vm0, %v13689_v25 }
0x113b   : > { %4046 = vmatpush1.bf16.msra.mxu1 %v10461_v52  ;;  %4077 = vmatprep.mubr.bf16.mxu1 %v13162_v62  ;;  %v928_v52 = vld [vmem:[%s13211_s8 + $0x30] sm:$0xff] }
0x113c   : > { %4047 = vmatprep.subr.bf16.mxu1 %v10478_v26  ;;  %11051 = vmatpush3.bf16.msra.mxu0 %v12709_v43  ;;  %v10472_v3 = vcombine.high %v928_v52, %v936_v1  ;;  %v10471_v17 = vcombine.low %v928_v52, %v936_v1  ;;  %v12720_v26 = vld [vmem:[%s13221_s19 + $0x28] sm:$0xff]   ;;  %v12722_v43 = vld [vmem:[%s13221_s19 + $0x70] sm:$0xff]  }
0x113d   : > { %11052 = vmatprep.subr.bf16.mxu0 %v12711_v31  ;;  %v12725_v31 = vld [vmem:[%s13221_s19 + $0xa0] sm:$0xff]  }
0x113f   : > { %4048 = vmatpush1.bf16.msra.mxu1 %v10477_v32  ;;  %v12726_v32 = vld [vmem:[%s13221_s19 + $0x78] sm:$0xff]  }
0x1140   : > { %4088 = vmatprep.subr.bf16.mxu1 %v10464_v40  ;;  %11053 = vmatpush3.bf16.msra.mxu0 %v12713_v33  ;;  %v12727_v40 = vld [vmem:[%s13221_s19 + $0xe8] sm:$0xff]   ;;  %v12728_v33 = vld [vmem:[%s13221_s19 + $0x38] sm:$0xff]  }
0x1141   : > { %11054 = vmatprep.subr.bf16.mxu0 %v12715_v41  ;;  %v12731_v41 = vld [vmem:[%s13221_s19 + $0x140] sm:$0xff]  }
0x1142   : > { %10492 = vmatmul.mubr.msk.bf16.vlgmr.msra.gmra.mrb[32].mxu1 %vm1221_vm0, %v13689_v25 }
0x1143   : > { %4089 = vmatpush1.bf16.msra.mxu1 %v10463_v16  ;;  %4120 = vmatprep.mubr.bf16.mxu1 %v13162_v62  ;;  %v12732_v16 = vld [vmem:[%s13221_s19 + $0xb0] sm:$0xff]  }
0x1144   : > { %4090 = vmatprep.subr.bf16.mxu1 %v10480_v42  ;;  %11055 = vmatpush3.bf16.msra.mxu0 %v12717_v14  ;;  %v12734_v42 = vld [vmem:[%s13221_s19 + $0xf8] sm:$0xff]  }
0x1145   : > { %11056 = vmatprep.subr.bf16.mxu0 %v12719_v11  ;;  %v12736_v14 = vld [vmem:[%s13221_s19 + $0xb8] sm:$0xff]   ;;  %v3760_v11 = vshrl.u32 %v3759_v35, 7  ;;  %v12738_v35 = vld [vmem:[%s13221_s19 + $0x150] sm:$0xff]  }
0x1147   : > { %4091 = vmatpush1.bf16.msra.mxu1 %v10479_v37  ;;  %v13766_v37 = vsub.s32 0, %v3760_v11  ;;  %v13776_v46 = vsub.s32 1, %v3760_v11  ;;  %v13788_v55 = vsub.s32 2, %v3760_v11 }
0x1148   : > { %4131 = vmatprep.subr.bf16.mxu1 %v10466_v44  ;;  %11057 = vmatpush3.bf16.msra.mxu0 %v12721_v10  ;;  %v13768_v44 = vsub.s32 6, %v3760_v11  ;;  %v13771_v10 = vld [vmem:[%s13216_s14] sm:$0xff] }
0x1149   : > { %11058 = vmatprep.subr.bf16.mxu0 %v12723_v27  ;;  %v3766_v49 = vrot.slane %v13771_v10, %v13776_v46  ;;  %v3770_v4 = vrot.slane %v13771_v10, %v13788_v55 }
0x114a   : > { %10493 = vmatmul.mubr.msk.bf16.vlgmr.msra.gmra.mrb[36].mxu1 %vm1221_vm0, %v13689_v25  ;;  %v3818_v48 = vrot.slane %v13774_v45, %v13768_v44 }
0x114b   : > { %4132 = vmatpush1.bf16.msra.mxu1 %v10465_v38  ;;  %4163 = vmatprep.mubr.bf16.mxu1 %v13162_v62  ;;  %v13778_v38 = vsub.s32 7, %v3760_v11 }
0x114c   : > { %4133 = vmatprep.subr.bf16.mxu1 %v10482_v47  ;;  %11059 = vmatpush3.bf16.msra.mxu0 %v12725_v31  ;;  %v3762_v47 = vrot.slane %v13771_v10, %v13766_v37  ;;  %v13802_v31 = vsub.s32 4, %v3760_v11 }
0x114d   : > { %11060 = vmatprep.subr.bf16.mxu0 %v12727_v40 }
0x114f   : > { %4134 = vmatpush1.bf16.msra.mxu1 %v10481_v50  ;;  %v3822_v50 = vrot.slane %v13774_v45, %v13778_v38 }
0x1150   : > { %4174 = vmatprep.subr.bf16.mxu1 %v10468_v53  ;;  %11061 = vmatpush3.bf16.msra.mxu0 %v12729_v34 }
0x1151   : > { %11062 = vmatprep.subr.bf16.mxu0 %v12730_v39 }
0x1152   : > { %10494 = vmatmul.mubr.msk.bf16.vlgmr.msra.gmra.mrb[40].mxu1 %vm1221_vm0, %v13689_v25 }
0x1153   : > { %4175 = vmatpush1.bf16.msra.mxu1 %v10467_v56  ;;  %4206 = vmatprep.mubr.bf16.mxu1 %v13162_v62  ;;  %v13790_v56 = vsub.s32 3, %v3760_v11 }
0x1154   : > { %4176 = vmatprep.subr.bf16.mxu1 %v10484_v57  ;;  %11063 = vmatpush3.bf16.msra.mxu0 %v12732_v16  ;;  %v12737_v16 = vld [vmem:[%s13221_s19 + $0x108] sm:$0xff]  }
0x1155   : > { %11064 = vmatprep.subr.bf16.mxu0 %v12734_v42 }
0x1157   : > { %4177 = vmatpush1.bf16.msra.mxu1 %v10483_v59 }
0x1158   : > { %4217 = vmatprep.subr.bf16.mxu1 %v10470_v60  ;;  %11065 = vmatpush3.bf16.msra.mxu0 %v12736_v14 }
0x1159   : > { %11094 = vmatprep.subr.bf16.mxu0 %v12739_v36  ;;  %v3778_v36 = vrot.slane %v13771_v10, %v13802_v31 }
0x115a   : > { %10495 = vmatmul.mubr.msk.bf16.vlgmr.msra.gmra.mrb[44].mxu1 %vm1221_vm0, %v13689_v25 }
0x115b   : > { %4218 = vmatpush1.bf16.msra.mxu1 %v10469_v63  ;;  %4249 = vmatprep.mubr.bf16.mxu1 %v13162_v62 }
0x115c   : > { %4219 = vmatprep.subr.bf16.mxu1 %v10486_v0 }
0x115f   : > { %4220 = vmatpush1.bf16.msra.mxu1 %v10485_v2 }
0x1160   : > { %4260 = vmatprep.subr.bf16.mxu1 %v10472_v3 }
0x1162   : > { %10496 = vmatmul.mubr.msk.bf16.vlgmr.msra.gmra.mrb[48].mxu1 %vm1221_vm0, %v13689_v25 }
0x1163   : > { %4261 = vmatpush1.bf16.msra.mxu1 %v10471_v17  ;;  %4292 = vmatprep.mubr.bf16.mxu1 %v13162_v62  ;;  %v3774_v17 = vrot.slane %v13771_v10, %v13790_v56 }
0x1164   : > { %4262 = vmatprep.subr.bf16.mxu1 %v10488_v9 }
0x1167   : > { %4263 = vmatpush1.bf16.msra.mxu1 %v10487_v30 }
0x1168   : > { %11028 = vmatprep.subr.bf16.mxu1 %v12702_v12 }
0x116a   : > { %10497 = vmatmul.mubr.msk.bf16.vlgmr.msra.gmra.mrb[52].mxu1 %vm1221_vm0, %v13689_v25  ;;  %v12718_v25 = vld [vmem:[%s13221_s19 + $0x68] sm:$0xff]  }
0x116b   : > { %11029 = vmatpush3.bf16.msra.mxu1 %v12703_v13 }
0x116c   : > { %11030 = vmatprep.subr.bf16.mxu1 %v12704_v15 }
0x116f   : > { %11031 = vmatpush3.bf16.msra.mxu1 %v12705_v29 }
0x1170   : > { %11032 = vmatprep.subr.bf16.mxu1 %v12706_v18 }
0x1173   : > { %11033 = vmatpush3.bf16.msra.mxu1 %v12708_v19 }
0x1174   : > { %11034 = vmatprep.subr.bf16.mxu1 %v12710_v20 }
0x1177   : > { %11035 = vmatpush3.bf16.msra.mxu1 %v12712_v6 }
0x1178   : > { %11036 = vmatprep.subr.bf16.mxu1 %v12714_v22 }
0x117b   : > { %11037 = vmatpush3.bf16.msra.mxu1 %v12716_v23 }
0x117c   : > { %11038 = vmatprep.subr.bf16.mxu1 %v12718_v25 }
0x117f   : > { %11039 = vmatpush3.bf16.msra.mxu1 %v12720_v26  ;;  %v12733_v26 = vld [vmem:[%s13221_s19 + $0x100] sm:$0xff]  }
0x1180   : > { %11040 = vmatprep.subr.bf16.mxu1 %v12722_v43 }
0x1183   : > { %11041 = vmatpush3.bf16.msra.mxu1 %v12724_v28  ;;  %v12735_v28 = vld [vmem:[%s13221_s19 + $0x148] sm:$0xff]  }
0x1184   : > { %11042 = vmatprep.subr.bf16.mxu1 %v12726_v32 }
0x1187   : > { %11043 = vmatpush3.bf16.msra.mxu1 %v12728_v33  ;;  %v13804_v33 = vsub.s32 5, %v3760_v11 }
0x1188   : > { %11072 = vmatprep.subr.bf16.mxu1 %v12731_v41 }
0x120d   : > { %v4036_v53 = vpop.f32.mrb[28].mxu1  ;;  %v4337_v54 = vpop.f32.mrb[8].mxu0 }
0x120e   : > { %v4037_v57 = vadd.f32 %v4036_v53, %v3762_v47  ;;  %v4338_v58 = vadd.f32 %v4337_v54, %v3818_v48  ;;  %v4038_v8 = vpop.f32.mrb[29].mxu1  ;;  %v4339_v59 = vpop.f32.mrb[9].mxu0  ;;  %v12740_v54 = vld [vmem:[%s13221_s19 + $0x110] sm:$0xff]  }
0x120f   : > { %v4039_v60 = vadd.f32 %v4038_v8, %v3766_v49  ;;  %v4340_v61 = vadd.f32 %v4339_v59, %v3822_v50  ;;  %v4040_v7 = vpop.f32.mrb[30].mxu1  ;;  %v4341_v63 = vpop.f32.mrb[10].mxu0  ;;  %v12742_v59 = vld [vmem:[%s13221_s19 + $0x158] sm:$0xff]  }
0x1210   : > { %v4041_v0 = vadd.f32 %v4040_v7, %v3762_v47  ;;  %v4342_v52 = vadd.f32 %v4341_v63, %v3818_v48  ;;  %v4042_v1 = vpop.f32.mrb[31].mxu1  ;;  %v4343_v2 = vpop.f32.mrb[11].mxu0  ;;  %v4346_v9 = vmax.f32 %v4037_v57, 0.0  ;;  %v4360_v30 = vmax.f32 %v4338_v58, 0.0  ;;  %v12741_v57 = vld [vmem:[%s13221_s19 + $0x180] sm:$0xff]  }
0x1211   : > { %v4043_v3 = vadd.f32 %v4042_v1, %v3766_v49  ;;  %v4344_v51 = vadd.f32 %v4343_v2, %v3822_v50  ;;  %v4347_v15 = vmax.f32 %v4039_v60, 0.0  ;;  %v4361_v29 = vmax.f32 %v4340_v61, 0.0  ;;  %v12743_v60 = vld [vmem:[%s13221_s19 + $0x1c8] sm:$0xff]   ;;  %v12744_v1 = vld [vmem:[%s13221_s19 + $0x118] sm:$0xff]  }
0x1212   : > { %v4362_v12 = vmax.f32 %v4041_v0, 0.0  ;;  %v4376_v13 = vmax.f32 %v4342_v52, 0.0  ;;  %v3782_v48 = vrot.slane %v13771_v10, %v13804_v33  ;;  %v12745_v2 = vld [vmem:[%s13221_s19 + $0x188] sm:$0xff]  }
0x1213   : > { %v4363_v18 = vmax.f32 %v4043_v3, 0.0  ;;  %v4377_v19 = vmax.f32 %v4344_v51, 0.0 }
0x1214   : > { %v4378_v20 = vpack.c.bf16 %v4362_v12, %v4346_v9  ;;  %v13796_v6 = vpack.c.bf16 %v4376_v13, %v4360_v30  ;;  %v12747_v9 = vld [vmem:[%s13221_s19 + $0x1d0] sm:$0xff]   ;;  %v3790_v13 = vrot.slane %v13771_v10, %v13778_v38 }
0x1215   : > { %v4379_v22 = vpack.c.bf16 %v4363_v18, %v4347_v15  ;;  %v13798_v23 = vpack.c.bf16 %v4377_v19, %v4361_v29  ;;  %v4079_v25 = vpop.f32.mrb[32].mxu1  ;;  %v12748_v19 = vld [vmem:[%s13221_s19 + $0x120] sm:$0xff]  }
0x1216   : > { %v4080_v43 = vadd.f32 %v4079_v25, %v3770_v4  ;;  %v4081_v27 = vpop.f32.mrb[33].mxu1 }
0x1217   : > { %v4082_v32 = vadd.f32 %v4081_v27, %v3774_v17  ;;  %v4083_v40 = vpop.f32.mrb[34].mxu1  ;;  %5200 = vmatprep.mubr.bf16.mxu1 %v4379_v22 }
0x1218   : > { %v4084_v34 = vadd.f32 %v4083_v40, %v3770_v4  ;;  %v4085_v39 = vpop.f32.mrb[35].mxu1  ;;  %5201 = vmatmul.mubr.bf16.vlgmr.msra.gmra.mrb[56].mxu1 %v4378_v20  ;;  %v4348_v42 = vmax.f32 %v4080_v43, 0.0  ;;  %v3786_v4 = vrot.slane %v13771_v10, %v13768_v44  ;;  %v12749_v20 = vld [vmem:[%s13221_s19 + $0x190] sm:$0xff]   ;;  %v12751_v43 = vld [vmem:[%s13221_s19 + $0x1d8] sm:$0xff]  }
0x1219   : > { %v4086_v41 = vadd.f32 %v4085_v39, %v3774_v17  ;;  %11073 = vmatpush3.bf16.msra.mxu1 %v12733_v26  ;;  %v4349_v47 = vmax.f32 %v4082_v32, 0.0  ;;  %v12746_v17 = vld [vmem:[%s13221_s19 + $0x160] sm:$0xff]   ;;  %v12750_v26 = vld [vmem:[%s13221_s19 + $0x168] sm:$0xff]   ;;  %v12753_v39 = vld [vmem:[%s13221_s19 + $0x198] sm:$0xff]  }
0x121a   : > { %v4364_v14 = vmax.f32 %v4084_v34, 0.0  ;;  %11074 = vmatprep.subr.bf16.mxu1 %v12735_v28  ;;  %v12752_v34 = vld [vmem:[%s13221_s19 + $0x128] sm:$0xff]  }
0x121b   : > { %v4365_v11 = vmax.f32 %v4086_v41, 0.0 }
0x121c   : > { %v4380_v49 = vpack.c.bf16 %v4364_v14, %v4348_v42  ;;  %v3794_v42 = vrot.slane %v13774_v45, %v13766_v37  ;;  %v12754_v14 = vld [vmem:[%s13221_s19 + $0x170] sm:$0xff]  }
0x121d   : > { %v4381_v50 = vpack.c.bf16 %v4365_v11, %v4349_v47  ;;  %11075 = vmatpush3.bf16.msra.mxu1 %v12737_v16  ;;  %v4122_v53 = vpop.f32.mrb[36].mxu1  ;;  %v3798_v11 = vrot.slane %v13774_v45, %v13776_v46 }
0x121e   : > { %v4123_v58 = vadd.f32 %v4122_v53, %v3778_v36  ;;  %v4124_v8 = vpop.f32.mrb[37].mxu1  ;;  %11076 = vmatprep.subr.bf16.mxu1 %v12738_v35  ;;  %v12756_v53 = vld [vmem:[%s13221_s19 + $0x130] sm:$0xff]  }
0x121f   : > { %v4125_v61 = vadd.f32 %v4124_v8, %v3782_v48  ;;  %v4126_v7 = vpop.f32.mrb[38].mxu1  ;;  %5241 = vmatprep.mubr.bf16.mxu0 %v4381_v50  ;;  %v12758_v8 = vld [vmem:[%s13221_s19 + $0x178] sm:$0xff]  }
0x1220   : > { %v4127_v63 = vadd.f32 %v4126_v7, %v3778_v36  ;;  %v4128_v0 = vpop.f32.mrb[39].mxu1  ;;  %5242 = vmatmul.mubr.bf16.vlgmr.msra.gmra.mrb[12].mxu0 %v4380_v49  ;;  %v4350_v3 = vmax.f32 %v4123_v58, 0.0  ;;  %v12755_v36 = vld [vmem:[%s13221_s19 + $0x1e0] sm:$0xff]  }
0x1221   : > { %v4129_v52 = vadd.f32 %v4128_v0, %v3782_v48  ;;  %11077 = vmatpush3.bf16.msra.mxu1 %v12740_v54  ;;  %11095 = vmatpush3.bf16.msra.mxu0 %v12741_v57  ;;  %v4351_v30 = vmax.f32 %v4125_v61, 0.0  ;;  %v12757_v54 = vld [vmem:[%s13221_s19 + $0x1a0] sm:$0xff]  }
0x1222   : > { %v4366_v51 = vmax.f32 %v4127_v63, 0.0  ;;  %11078 = vmatprep.subr.bf16.mxu1 %v12742_v59  ;;  %11096 = vmatprep.subr.bf16.mxu0 %v12743_v60  ;;  %v12759_v59 = vld [vmem:[%s13221_s19 + $0x1e8] sm:$0xff]  }
0x1223   : > { %v4367_v12 = vmax.f32 %v4129_v52, 0.0  ;;  %v12760_v52 = vld [vmem:[%s13221_s19 + $0x138] sm:$0xff]  }
0x1224   : > { %v13824_v15 = vpack.c.bf16 %v4366_v51, %v4350_v3  ;;  %v3802_v51 = vrot.slane %v13774_v45, %v13788_v55 }
0x1225   : > { %v4383_v29 = vpack.c.bf16 %v4367_v12, %v4351_v30  ;;  %11079 = vmatpush3.bf16.msra.mxu1 %v12744_v1  ;;  %11097 = vmatpush3.bf16.msra.mxu0 %v12745_v2  ;;  %v4165_v18 = vpop.f32.mrb[40].mxu1  ;;  %v12761_v1 = vld [vmem:[%s13221_s19 + $0x1a8] sm:$0xff]   ;;  %v3806_v12 = vrot.slane %v13774_v45, %v13790_v56 }
0x1226   : > { %v4166_v22 = vadd.f32 %v4165_v18, %v3786_v4  ;;  %v4167_v25 = vpop.f32.mrb[41].mxu1  ;;  %11080 = vmatprep.subr.bf16.mxu1 %v12746_v17  ;;  %11098 = vmatprep.subr.bf16.mxu0 %v12747_v9  ;;  %v12763_v17 = vld [vmem:[%s13221_s19 + $0x240] sm:$0xff]  }
0x1227   : > { %v4168_v27 = vadd.f32 %v4167_v25, %v3790_v13  ;;  %v4169_v10 = vpop.f32.mrb[42].mxu1  ;;  %5282 = vmatprep.mubr.bf16.mxu1 %v4383_v29 }
0x1228   : > { %v4170_v28 = vadd.f32 %v4169_v10, %v3786_v4  ;;  %v4171_v32 = vpop.f32.mrb[43].mxu1  ;;  %v4352_v41 = vmax.f32 %v4166_v22, 0.0  ;;  %v12762_v4 = vld [vmem:[%s13221_s19 + $0x1f0] sm:$0xff]   ;;  %v12767_v10 = vld [vmem:[%s13221_s19 + $0x248] sm:$0xff]  }
0x1229   : > { %v4172_v40 = vadd.f32 %v4171_v32, %v3790_v13  ;;  %11081 = vmatpush3.bf16.msra.mxu1 %v12748_v19  ;;  %11099 = vmatpush3.bf16.msra.mxu0 %v12749_v20  ;;  %v4353_v35 = vmax.f32 %v4168_v27, 0.0  ;;  %v12764_v19 = vld [vmem:[%s13221_s19 + $0x1b0] sm:$0xff]   ;;  %v12765_v20 = vld [vmem:[%s13221_s19 + $0x200] sm:$0xff]  }
0x122a   : > { %v4368_v16 = vmax.f32 %v4170_v28, 0.0  ;;  %11082 = vmatprep.subr.bf16.mxu1 %v12750_v26  ;;  %11100 = vmatprep.subr.bf16.mxu0 %v12751_v43  ;;  %v12766_v26 = vld [vmem:[%s13221_s19 + $0x1f8] sm:$0xff]  }
0x122b   : > { %v4369_v47 = vmax.f32 %v4172_v40, 0.0 }
0x122c   : > { %v13838_v48 = vpack.c.bf16 %v4368_v16, %v4352_v41 }
0x122d   : > { %v4385_v49 = vpack.c.bf16 %v4369_v47, %v4353_v35  ;;  %11083 = vmatpush3.bf16.msra.mxu1 %v12752_v34  ;;  %11101 = vmatpush3.bf16.msra.mxu0 %v12753_v39  ;;  %v4208_v50 = vpop.f32.mrb[44].mxu1  ;;  %v12768_v34 = vld [vmem:[%s13221_s19 + $0x1b8] sm:$0xff]   ;;  %v12769_v39 = vld [vmem:[%s13221_s19 + $0x208] sm:$0xff]   ;;  %v3814_v47 = vrot.slane %v13774_v45, %v13804_v33 }
0x122e   : > { %v4209_v57 = vadd.f32 %v4208_v50, %v3794_v42  ;;  %v4210_v58 = vpop.f32.mrb[45].mxu1  ;;  %11084 = vmatprep.subr.bf16.mxu1 %v12754_v14  ;;  %11102 = vmatprep.subr.bf16.mxu0 %v12755_v36  ;;  %v12770_v14 = vld [vmem:[%s13221_s19 + $0x250] sm:$0xff]   ;;  %v12771_v36 = vld [vmem:[%s13221_s19 + $0x2c0] sm:$0xff]  }
0x122f   : > { %v4211_v60 = vadd.f32 %v4210_v58, %v3798_v11  ;;  %v4212_v61 = vpop.f32.mrb[46].mxu1  ;;  %5323 = vmatprep.mubr.bf16.mxu0 %v4385_v49 }
0x1230   : > { %v4213_v7 = vadd.f32 %v4212_v61, %v3794_v42  ;;  %v4214_v63 = vpop.f32.mrb[47].mxu1  ;;  %v4354_v2 = vmax.f32 %v4209_v57, 0.0  ;;  %v3810_v42 = vrot.slane %v13774_v45, %v13802_v31  ;;  %v12775_v45 = vld [vmem:[%s13221_s19 + $0x2c8] sm:$0xff]  }
0x1231   : > { %v4215_v0 = vadd.f32 %v4214_v63, %v3798_v11  ;;  %11085 = vmatpush3.bf16.msra.mxu1 %v12756_v53  ;;  %11103 = vmatpush3.bf16.msra.mxu0 %v12757_v54  ;;  %v4355_v9 = vmax.f32 %v4211_v60, 0.0  ;;  %v12772_v53 = vld [vmem:[%s13221_s19 + $0x210] sm:$0xff]   ;;  %v12773_v54 = vld [vmem:[%s13221_s19 + $0x280] sm:$0xff]  }
0x1232   : > { %v4370_v3 = vmax.f32 %v4213_v7, 0.0  ;;  %11086 = vmatprep.subr.bf16.mxu1 %v12758_v8  ;;  %11104 = vmatprep.subr.bf16.mxu0 %v12759_v59  ;;  %v12774_v8 = vld [vmem:[%s13221_s19 + $0x258] sm:$0xff]  }
0x1233   : > { %v4371_v30 = vmax.f32 %v4215_v0, 0.0  ;;  %v12776_v0 = vld [vmem:[%s13221_s19 + $0x218] sm:$0xff]  }
0x1234   : > { %v13852_v13 = vpack.c.bf16 %v4370_v3, %v4354_v2  ;;  %v12778_v3 = vld [vmem:[%s13221_s19 + $0x260] sm:$0xff]  }
0x1235   : > { %v4387_v29 = vpack.c.bf16 %v4371_v30, %v4355_v9  ;;  %11087 = vmatpush3.bf16.msra.mxu1 %v12760_v52  ;;  %11105 = vmatpush3.bf16.msra.mxu0 %v12761_v1  ;;  %v4251_v18 = vpop.f32.mrb[48].mxu1  ;;  %v12777_v52 = vld [vmem:[%s13221_s19 + $0x288] sm:$0xff]   ;;  %v12780_v30 = vld [vmem:[%s13221_s19 + $0x220] sm:$0xff]  }
0x1236   : > { %v4252_v22 = vadd.f32 %v4251_v18, %v3802_v51  ;;  %v4253_v25 = vpop.f32.mrb[49].mxu1  ;;  %11106 = vmatprep.subr.bf16.mxu0 %v12762_v4  ;;  %11116 = vmatprep.subr.bf16.mxu1 %v12763_v17  ;;  %v12783_v18 = vld [vmem:[%s13221_s19 + $0x2d8] sm:$0xff]  }
0x1237   : > { %v4254_v43 = vadd.f32 %v4253_v25, %v3806_v12  ;;  %v4255_v27 = vpop.f32.mrb[50].mxu1  ;;  %v12787_v25 = vld [vmem:[%s13221_s19 + $0x2e0] sm:$0xff]  }
0x1238   : > { %v4256_v28 = vadd.f32 %v4255_v27, %v3802_v51  ;;  %5283 = vmatmul.mubr.bf16.vlgmr.msra.gmra.mrb[60].mxu1 %v13824_v15  ;;  %v4257_v32 = vpop.f32.mrb[51].mxu1  ;;  %v4356_v41 = vmax.f32 %v4252_v22, 0.0  ;;  %v12779_v51 = vld [vmem:[%s13221_s19 + $0x2d0] sm:$0xff]   ;;  %v12790_v27 = vld [vmem:[%s13221_s19 + $0x278] sm:$0xff]  }
0x1239   : > { %v4258_v40 = vadd.f32 %v4257_v32, %v3806_v12  ;;  %11107 = vmatpush3.bf16.msra.mxu0 %v12764_v19  ;;  %11117 = vmatpush3.bf16.msra.mxu1 %v12765_v20  ;;  %v4357_v35 = vmax.f32 %v4254_v43, 0.0  ;;  %v12781_v12 = vld [vmem:[%s13221_s19 + $0x290] sm:$0xff]   ;;  %v12784_v19 = vld [vmem:[%s13221_s19 + $0x228] sm:$0xff]   ;;  %v12785_v20 = vld [vmem:[%s13221_s19 + $0x298] sm:$0xff]  }
0x123a   : > { %v4372_v16 = vmax.f32 %v4256_v28, 0.0  ;;  %5364 = vmatprep.mubr.bf16.mxu1 %v4387_v29  ;;  %11108 = vmatprep.subr.bf16.mxu0 %v12766_v26  ;;  %v12782_v29 = vld [vmem:[%s13221_s19 + $0x268] sm:$0xff]   ;;  %v12786_v22 = vld [vmem:[%s13221_s19 + $0x270] sm:$0xff]   ;;  %v12789_v43 = vld [vmem:[%s13221_s19 + $0x2a0] sm:$0xff]  }
0x123b   : > { %v4373_v15 = vmax.f32 %v4258_v40, 0.0  ;;  %11118 = vmatprep.subr.bf16.mxu1 %v12767_v10  ;;  %v12788_v26 = vld [vmem:[%s13221_s19 + $0x230] sm:$0xff]   ;;  %v12791_v10 = vld [vmem:[%s13221_s19 + $0x2e8] sm:$0xff]   ;;  %v12792_v28 = vld [vmem:[%s13221_s19 + $0x238] sm:$0xff]  }
0x123c   : > { %v13867_v11 = vpack.c.bf16 %v4372_v16, %v4356_v41  ;;  %v12793_v32 = vld [vmem:[%s13221_s19 + $0x2a8] sm:$0xff]   ;;  %v12794_v40 = vld [vmem:[%s13221_s19 + $0x2f0] sm:$0xff]   ;;  %v12797_v41 = vld [vmem:[%s13221_s19 + $0x300] sm:$0xff]  }
0x123d   : > { %v4389_v49 = vpack.c.bf16 %v4373_v15, %v4357_v35  ;;  %11109 = vmatpush3.bf16.msra.mxu0 %v12768_v34  ;;  %11119 = vmatpush3.bf16.msra.mxu1 %v12769_v39  ;;  %v4294_v50 = vpop.f32.mrb[52].mxu1  ;;  %v12795_v34 = vld [vmem:[%s13221_s19 + $0x340] sm:$0xff]   ;;  %v12796_v39 = vld [vmem:[%s13221_s19 + $0x2b0] sm:$0xff]   ;;  %v12798_v16 = vld [vmem:[%s13221_s19 + $0x2f8] sm:$0xff]  }
0x123e   : > { %v4295_v57 = vadd.f32 %v4294_v50, %v3810_v42  ;;  %v4296_v58 = vpop.f32.mrb[53].mxu1  ;;  %11120 = vmatprep.subr.bf16.mxu1 %v12770_v14  ;;  %11138 = vmatprep.subr.bf16.mxu0 %v12771_v36  ;;  %v12800_v14 = vld [vmem:[%s13221_s19 + $0x2b8] sm:$0xff]   ;;  %v12801_v36 = vld [vmem:[%s13221_s19 + $0x308] sm:$0xff]   ;;  %v12802_v35 = vld [vmem:[%s13221_s19 + $0x350] sm:$0xff]  }
0x123f   : > { %v4297_v59 = vadd.f32 %v4296_v58, %v3814_v47  ;;  %v4298_v60 = vpop.f32.mrb[54].mxu1  ;;  %v12803_v15 = vld [vmem:[%s13221_s19 + $0x3c0] sm:$0xff]   ;;  %v12807_v50 = vld [vmem:[%s13221_s19 + $0x3c8] sm:$0xff]   ;;  %v12811_v58 = vld [vmem:[%s13221_s19 + $0x3d0] sm:$0xff]  }
0x1240   : > { %v4299_v61 = vadd.f32 %v4298_v60, %v3810_v42  ;;  %5324 = vmatmul.mubr.bf16.vlgmr.msra.gmra.mrb[16].mxu0 %v13838_v48  ;;  %v4300_v7 = vpop.f32.mrb[55].mxu1  ;;  %v4358_v1 = vmax.f32 %v4295_v57, 0.0  ;;  %v12799_v42 = vld [vmem:[%s13221_s19 + $0x348] sm:$0xff]   ;;  %v12810_v57 = vld [vmem:[%s13221_s19 + $0x360] sm:$0xff]   ;;  %v12815_v60 = vld [vmem:[%s13221_s19 + $0x3d8] sm:$0xff]  }
0x1241   : > { %v4301_v63 = vadd.f32 %v4300_v7, %v3814_v47  ;;  %11121 = vmatpush3.bf16.msra.mxu1 %v12772_v53  ;;  %11139 = vmatpush3.bf16.msra.mxu0 %v12773_v54  ;;  %v4359_v4 = vmax.f32 %v4297_v59, 0.0  ;;  %v12804_v47 = vld [vmem:[%s13221_s19 + $0x310] sm:$0xff]   ;;  %v12808_v53 = vld [vmem:[%s13221_s19 + $0x318] sm:$0xff]   ;;  %v12809_v54 = vld [vmem:[%s13221_s19 + $0x388] sm:$0xff]  }
0x1242   : > { %v4374_v2 = vmax.f32 %v4299_v61, 0.0  ;;  %5405 = vmatprep.mubr.bf16.mxu0 %v4389_v49  ;;  %11122 = vmatprep.subr.bf16.mxu1 %v12774_v8  ;;  %v12805_v49 = vld [vmem:[%s13221_s19 + $0x380] sm:$0xff]   ;;  %v12814_v59 = vld [vmem:[%s13221_s19 + $0x368] sm:$0xff]   ;;  %v12818_v61 = vld [vmem:[%s13221_s19 + $0x370] sm:$0xff]  }
0x1243   : > { %v4375_v48 = vmax.f32 %v4301_v63, 0.0  ;;  %11140 = vmatprep.subr.bf16.mxu0 %v12775_v45  ;;  %v12812_v8 = vld [vmem:[%s13221_s19 + $0x320] sm:$0xff]   ;;  %v12817_v45 = vld [vmem:[%s13221_s19 + $0x398] sm:$0xff]   ;;  %v12820_v63 = vld [vmem:[%s13221_s19 + $0x330] sm:$0xff]  }
0x1244   : > { %v13878_v17 = vpack.c.bf16 %v4374_v2, %v4358_v1  ;;  %v12819_v7 = vld [vmem:[%s13221_s19 + $0x3e0] sm:$0xff]   ;;  %v12823_v1 = vld [vmem:[%s13221_s19 + $0x3e8] sm:$0xff]   ;;  %v12824_v2 = vld [vmem:[%s13221_s19 + $0x338] sm:$0xff]  }
0x1245   : > { %v4391_v9 = vpack.c.bf16 %v4375_v48, %v4359_v4  ;;  %11123 = vmatpush3.bf16.msra.mxu1 %v12776_v0  ;;  %11141 = vmatpush3.bf16.msra.mxu0 %v12777_v52  ;;  %v12821_v0 = vld [vmem:[%s13221_s19 + $0x3a0] sm:$0xff]   ;;  %v12822_v52 = vld [vmem:[%s13221_s19 + $0x378] sm:$0xff]   ;;  %v12827_v4 = vld [vmem:[%s13221_s19 + $0x3b0] sm:$0xff]  }
0x1246   : > { %11124 = vmatprep.subr.bf16.mxu1 %v12778_v3  ;;  %11142 = vmatprep.subr.bf16.mxu0 %v12779_v51  ;;  %v12825_v3 = vld [vmem:[%s13221_s19 + $0x3a8] sm:$0xff]   ;;  %v12826_v51 = vld [vmem:[%s13221_s19 + $0x3f0] sm:$0xff]   ;;  %v12828_v48 = vld [vmem:[%s13221_s19 + $0x3f8] sm:$0xff]  }
0x1249   : > { %11125 = vmatpush3.bf16.msra.mxu1 %v12780_v30  ;;  %11143 = vmatpush3.bf16.msra.mxu0 %v12781_v12 }
0x124a   : > { %11126 = vmatprep.subr.bf16.mxu1 %v12782_v29  ;;  %11144 = vmatprep.subr.bf16.mxu0 %v12783_v18 }
0x124d   : > { %11127 = vmatpush3.bf16.msra.mxu1 %v12784_v19  ;;  %11145 = vmatpush3.bf16.msra.mxu0 %v12785_v20 }
0x124e   : > { %11128 = vmatprep.subr.bf16.mxu1 %v12786_v22  ;;  %11146 = vmatprep.subr.bf16.mxu0 %v12787_v25  ;;  %v10499_v22 = vld [vmem:[%s13226_s24] ss:$0 sm:$0xff] }
0x1251   : > { %11129 = vmatpush3.bf16.msra.mxu1 %v12788_v26  ;;  %11147 = vmatpush3.bf16.msra.mxu0 %v12789_v43 }
0x1252   : > { %11130 = vmatprep.subr.bf16.mxu1 %v12790_v27  ;;  %11148 = vmatprep.subr.bf16.mxu0 %v12791_v10 }
0x1255   : > { %11131 = vmatpush3.bf16.msra.mxu1 %v12792_v28  ;;  %11149 = vmatpush3.bf16.msra.mxu0 %v12793_v32 }
0x1256   : > { %11150 = vmatprep.subr.bf16.mxu0 %v12794_v40  ;;  %11160 = vmatprep.subr.bf16.mxu1 %v12795_v34 }
0x1258   : > { %5365 = vmatmul.mubr.bf16.vlgmr.msra.gmra.mrb[64].mxu1 %v13852_v13  ;;  %v12806_v13 = vld [vmem:[%s13221_s19 + $0x358] sm:$0xff]  }
0x1259   : > { %11151 = vmatpush3.bf16.msra.mxu0 %v12796_v39  ;;  %11161 = vmatpush3.bf16.msra.mxu1 %v12797_v41 }
0x125a   : > { %5446 = vmatprep.mubr.bf16.mxu1 %v4391_v9  ;;  %11152 = vmatprep.subr.bf16.mxu0 %v12798_v16  ;;  %v12829_v9 = vld [vmem:[%s13221_s19 + $0x3b8] sm:$0xff]  }
0x125b   : > { %11162 = vmatprep.subr.bf16.mxu1 %v12799_v42 }
0x125d   : > { %11153 = vmatpush3.bf16.msra.mxu0 %v12800_v14  ;;  %11163 = vmatpush3.bf16.msra.mxu1 %v12801_v36 }
0x125e   : > { %11164 = vmatprep.subr.bf16.mxu1 %v12802_v35  ;;  %11182 = vmatprep.subr.bf16.mxu0 %v12803_v15 }
0x1260   : > { %5406 = vmatmul.mubr.bf16.vlgmr.msra.gmra.mrb[20].mxu0 %v13867_v11  ;;  %v12813_v11 = vld [vmem:[%s13221_s19 + $0x390] sm:$0xff]  }
0x1261   : > { %11165 = vmatpush3.bf16.msra.mxu1 %v12804_v47  ;;  %11183 = vmatpush3.bf16.msra.mxu0 %v12805_v49 }
0x1262   : > { %5487 = vmatprep.mubr.bf16.mxu0 %v13798_v23  ;;  %11166 = vmatprep.subr.bf16.mxu1 %v12806_v13  ;;  %v12816_v23 = vld [vmem:[%s13221_s19 + $0x328] sm:$0xff]  }
0x1263   : > { %11184 = vmatprep.subr.bf16.mxu0 %v12807_v50 }
0x1265   : > { %11167 = vmatpush3.bf16.msra.mxu1 %v12808_v53  ;;  %11185 = vmatpush3.bf16.msra.mxu0 %v12809_v54 }
0x1266   : > { %11168 = vmatprep.subr.bf16.mxu1 %v12810_v57  ;;  %11186 = vmatprep.subr.bf16.mxu0 %v12811_v58 }
0x1269   : > { %11169 = vmatpush3.bf16.msra.mxu1 %v12812_v8  ;;  %11187 = vmatpush3.bf16.msra.mxu0 %v12813_v11 }
0x126a   : > { %11170 = vmatprep.subr.bf16.mxu1 %v12814_v59  ;;  %11188 = vmatprep.subr.bf16.mxu0 %v12815_v60 }
0x126d   : > { %11171 = vmatpush3.bf16.msra.mxu1 %v12816_v23  ;;  %11189 = vmatpush3.bf16.msra.mxu0 %v12817_v45 }
0x126e   : > { %11172 = vmatprep.subr.bf16.mxu1 %v12818_v61  ;;  %11190 = vmatprep.subr.bf16.mxu0 %v12819_v7 }
0x1271   : > { %11173 = vmatpush3.bf16.msra.mxu1 %v12820_v63  ;;  %11191 = vmatpush3.bf16.msra.mxu0 %v12821_v0 }
0x1272   : > { %11174 = vmatprep.subr.bf16.mxu1 %v12822_v52  ;;  %11192 = vmatprep.subr.bf16.mxu0 %v12823_v1 }
0x1275   : > { %11175 = vmatpush3.bf16.msra.mxu1 %v12824_v2  ;;  %11193 = vmatpush3.bf16.msra.mxu0 %v12825_v3 }
0x1276   : > { %11194 = vmatprep.subr.bf16.mxu0 %v12826_v51 }
0x1278   : > { %5447 = vmatmul.mubr.bf16.vlgmr.msra.gmra.mrb[68].mxu1 %v13878_v17 }
0x1279   : > { %11195 = vmatpush3.bf16.msra.mxu0 %v12827_v4 }
0x127a   : > { %11196 = vmatprep.subr.bf16.mxu0 %v12828_v48 }
0x127d   : > { %11197 = vmatpush3.bf16.msra.mxu0 %v12829_v9 }
0x1280   : > { %5488 = vmatmul.mubr.bf16.vlgmr.msra.gmra.mrb[24].mxu0 %v13796_v6 }
0x12eb   : > { %v11044_v30 = vpop.f32.mrb[56].mxu1 }
0x12ec   : > { %v11045_v12 = vpop.f32.mrb[57].mxu1 }
0x12ed   : > { %v11046_v29 = vadd.f32 %v11045_v12, %v11044_v30  ;;  %v11047_v18 = vpop.f32.mrb[58].mxu1 }
0x12ee   : > { %v11048_v19 = vpop.f32.mrb[59].mxu1 }
0x12ef   : > { %v11049_v20 = vadd.f32 %v11048_v19, %v11047_v18  ;;  %v5203_v43 = vadd.f32 %v11046_v29, %v10499_v22 }
0x12f1   : > { %v5206_v17 = vadd.f32 %v11049_v20, %v10499_v22 }
0x12f3   : > { %v11066_v25 = vpop.f32.mrb[12].mxu0 }
0x12f4   : > { %v11067_v26 = vpop.f32.mrb[13].mxu0 }
0x12f5   : > { %v11068_v27 = vadd.f32 %v11067_v26, %v11066_v25  ;;  %v11069_v10 = vpop.f32.mrb[14].mxu0 }
0x12f6   : > { %v11070_v28 = vpop.f32.mrb[15].mxu0 }
0x12f7   : > { %v5244_v32 = vadd.f32 %v11068_v27, %v5203_v43  ;;  %v11071_v40 = vadd.f32 %v11070_v28, %v11069_v10 }
0x12f9   : > { %v5247_v34 = vadd.f32 %v11071_v40, %v5206_v17 }
0x130b   : > { %v11088_v39 = vpop.f32.mrb[60].mxu1 }
0x130c   : > { %v11089_v41 = vpop.f32.mrb[61].mxu1 }
0x130d   : > { %v11090_v6 = vadd.f32 %v11089_v41, %v11088_v39  ;;  %v11091_v16 = vpop.f32.mrb[62].mxu1 }
0x130e   : > { %v11092_v42 = vpop.f32.mrb[63].mxu1 }
0x130f   : > { %v5285_v14 = vadd.f32 %v11090_v6, %v5244_v32  ;;  %v11093_v36 = vadd.f32 %v11092_v42, %v11091_v16 }
0x1311   : > { %v5288_v35 = vadd.f32 %v11093_v36, %v5247_v34 }
0x1313   : > { %v11110_v15 = vpop.f32.mrb[16].mxu0 }
0x1314   : > { %v11111_v47 = vpop.f32.mrb[17].mxu0 }
0x1315   : > { %v11112_v49 = vadd.f32 %v11111_v47, %v11110_v15  ;;  %v11113_v13 = vpop.f32.mrb[18].mxu0  ;;  %v5540_v15 = vld [vmem:[%s13241_s12] sm:$0xff]  ;;  %v5541_v47 = vld [vmem:[%s13241_s12 + $0x8] sm:$0xff] }
0x1316   : > { %v11114_v50 = vpop.f32.mrb[19].mxu0 }
0x1317   : > { %v5326_v53 = vadd.f32 %v11112_v49, %v5285_v14  ;;  %v11115_v54 = vadd.f32 %v11114_v50, %v11113_v13  ;;  %v12121_v49 = vpack.c.bf16 %v5541_v47, %v5540_v15  ;;  %v5542_v13 = vld [vmem:[%s13241_s12 + $0x10] sm:$0xff]  ;;  %v5543_v50 = vld [vmem:[%s13241_s12 + $0x18] sm:$0xff] }
0x1319   : > { %v5329_v57 = vadd.f32 %v11115_v54, %v5288_v35  ;;  %12122 = vmatprep.subr.bf16.mxu1 %v12121_v49 }
0x131a   : > { %12124 = vmatpush3.bf16.msra.mxu1 %v12121_v49 }
0x132b   : > { %v11132_v58 = vpop.f32.mrb[64].mxu1 }
0x132c   : > { %v11133_v8 = vpop.f32.mrb[65].mxu1 }
0x132d   : > { %v11134_v11 = vadd.f32 %v11133_v8, %v11132_v58  ;;  %v11135_v59 = vpop.f32.mrb[66].mxu1 }
0x132e   : > { %v11136_v60 = vpop.f32.mrb[67].mxu1 }
0x132f   : > { %v5367_v23 = vadd.f32 %v11134_v11, %v5326_v53  ;;  %v11137_v45 = vadd.f32 %v11136_v60, %v11135_v59  ;;  %v12125_v53 = vpack.c.bf16 %v5543_v50, %v5542_v13 }
0x1331   : > { %v5370_v61 = vadd.f32 %v11137_v45, %v5329_v57  ;;  %12126 = vmatprep.subr.bf16.mxu1 %v12125_v53 }
0x1332   : > { %12128 = vmatpush3.bf16.msra.mxu1 %v12125_v53 }
0x1333   : > { %v11154_v7 = vpop.f32.mrb[20].mxu0 }
0x1334   : > { %v11155_v63 = vpop.f32.mrb[21].mxu0 }
0x1335   : > { %v11156_v0 = vadd.f32 %v11155_v63, %v11154_v7  ;;  %v11157_v52 = vpop.f32.mrb[22].mxu0  ;;  %v10629_v7 = vld [vmem:[%s14588_s2] ss:$0 sm:$0xff]  ;;  %s14594_s2 = smov 80  }
0x1336   : > { %v11158_v1 = vpop.f32.mrb[23].mxu0 }
0x1337   : > { %v5408_v2 = vadd.f32 %v11156_v0, %v5367_v23  ;;  %v11159_v3 = vadd.f32 %v11158_v1, %v11157_v52  ;;  %v10628_v23 = vld [vmem:[%s13231_s30] ss:$0 sm:$0xff] }
0x1339   : > { %v5411_v51 = vadd.f32 %v11159_v3, %v5370_v61  ;;  %v10630_v3 = vld [vmem:[%s14589_s1] ss:$0 sm:$0xff]  ;;  %s14593_s1 = smov 52  }
0x134b   : > { %v11176_v4 = vpop.f32.mrb[68].mxu1 }
0x134c   : > { %v11177_v48 = vpop.f32.mrb[69].mxu1 }
0x134d   : > { %v11178_v9 = vadd.f32 %v11177_v48, %v11176_v4  ;;  %v11179_v30 = vpop.f32.mrb[70].mxu1 }
0x134e   : > { %v11180_v12 = vpop.f32.mrb[71].mxu1 }
0x134f   : > { %v5449_v29 = vadd.f32 %v11178_v9, %v5408_v2  ;;  %v11181_v18 = vadd.f32 %v11180_v12, %v11179_v30 }
0x1351   : > { %v5452_v19 = vadd.f32 %v11181_v18, %v5411_v51 }
0x1353   : > { %v11198_v20 = vpop.f32.mrb[24].mxu0 }
0x1354   : > { %v11199_v22 = vpop.f32.mrb[25].mxu0 }
0x1355   : > { %v11200_v25 = vadd.f32 %v11199_v22, %v11198_v20  ;;  %v11201_v26 = vpop.f32.mrb[26].mxu0 }
0x1356   : > { %v11202_v43 = vpop.f32.mrb[27].mxu0 }
0x1357   : > { %v5490_v27 = vadd.f32 %v11200_v25, %v5449_v29  ;;  %v11203_v10 = vadd.f32 %v11202_v43, %v11201_v26 }
0x1359   : > { %v5493_v28 = vadd.f32 %v11203_v10, %v5452_v19  ;;  %v5496_v17 = vadd.f32 %v5490_v27, %v13683_v24 }
0x135b   : > { %v5498_v32 = vsel %vm1221_vm0, %v5496_v17, 0.0  ;;  %v5497_v40 = vadd.f32 %v5493_v28, %v13685_v5 }
0x135c   : > { %5499 = vadd.xlane.f32.xlu1 %v5498_v32 }
0x135d   : > { %v5501_v34 = vsel %vm1221_vm0, %v5497_v40, 0.0 }
0x135e   : > { %5502 = vadd.xlane.f32.xlu0 %v5501_v34 }
0x13e9   : > { %v5500_v39 = vpop.xlane.xlu1 %5499 }
0x13ea   : > { %v5504_v41 = vmul.f32 0.03125, %v5500_v39 }
0x13eb   : > { %v5503_v6 = vpop.xlane.xlu0 %5502 }
0x13ec   : > { %v5506_v16 = vsub.f32 %v5496_v17, %v5504_v41  ;;  %v5505_v42 = vmul.f32 0.03125, %v5503_v6 }
0x13ee   : > { %v5507_v14 = vsub.f32 %v5497_v40, %v5505_v42  ;;  %v5508_v36 = vmul.f32 %v5506_v16, %v5506_v16 }
0x13f0   : > { %v5510_v24 = vsel %vm1221_vm0, %v5508_v36, 0.0  ;;  %v5509_v35 = vmul.f32 %v5507_v14, %v5507_v14 }
0x13f1   : > { %5511 = vadd.xlane.f32.xlu1 %v5510_v24 }
0x13f2   : > { %v5513_v5 = vsel %vm1221_vm0, %v5509_v35, 0.0 }
0x13f3   : > { %5514 = vadd.xlane.f32.xlu0 %v5513_v5 }
0x147e   : > { %v5512_v54 = vpop.xlane.xlu1 %5511 }
0x147f   : > { %v5516_v57 = vmul.f32 0.03125, %v5512_v54 }
0x1480   : > { %v5515_v58 = vpop.xlane.xlu0 %5514 }
0x1481   : > { %v5518_v8 = vadd.f32 1e-05, %v5516_v57  ;;  %v5517_v11 = vmul.f32 0.03125, %v5515_v58 }
0x1483   : > { %13026 = vrsqrt.f32 %v5518_v8  ;;  %v5519_v59 = vadd.f32 1e-05, %v5517_v11 }
0x1485   : > { %13028 = vrsqrt.f32 %v5519_v59 }
0x148d   : > { %v13027_v60 = vpop.eup %13026 }
0x148e   : > { %v5522_v45 = vmul.f32 %v13027_v60, %v5506_v16 }
0x148f   : > { %v13029_v61 = vpop.eup %13028 }
0x1490   : > { %v5523_v63 = vmul.f32 %v13029_v61, %v5507_v14  ;;  %v5530_v0 = vmul.f32 %v10628_v23, %v5522_v45 }
0x1492   : > { %v5531_v52 = vmul.f32 %v10628_v23, %v5523_v63  ;;  %v13948_v1 = vadd.f32 %v10629_v7, %v5530_v0 }
0x1494   : > { %v13950_v2 = vadd.f32 %v10629_v7, %v5531_v52  ;;  %11723 = vmatprep.mubr.msk.f32.mxu1 %vm1221_vm0, %v13948_v1 }
0x1496   : > { %11724 = vmatmul.mubr.msk.f32.vlgmr.msra.gmra.mrb[72].mxu1 %vm1221_vm0, %v13950_v2 }
0x1569   : > { %v11725_v51 = vpop.f32.mrb[72].mxu1 }
0x156a   : > { %v13957_v4 = vadd.f32 %v11725_v51, %v10630_v3  ;;  %v5923_v48 = vpop.f32.mrb[73].mxu1 }
0x156b   : > { %v13959_v9 = vadd.f32 %v10630_v3, %v5923_v48 }
0x156d   : > { %11730 = vmatprep.mubr.msk.f32.mxu0 %vm1309_vm1, %v13959_v9  ;;  %v13965_v30 = vpack.i.bf16 %v13957_v4, %v13959_v9 }
0x156f   : > { %12553 = vrot.lane.b32.xlu1 %v13965_v30, %s13140_s16  ;;  %s14591_s16 = smov 56  }
0x1573   : > { %12558 = vrot.lane.b32.xlu1 %v13965_v30, %s13160_s22  ;;  %s14592_s22 = smov 84  }
0x1577   : > { %12568 = vrot.lane.b32.xlu1 %v13965_v30, %s13139_s15  ;;  %s14590_s15 = smov 92  }
0x157b   : > { %6132 = vrot.lane.b32.xlu1 %v13959_v9, %s13141_s18 }
0x157f   : > { %6134 = vrot.lane.b32.xlu1 %v13957_v4, %s13141_s18 }
0x1583   : > { %6524 = vrot.lane.b32.xlu1 %v13959_v9, %s13143_s23 }
0x1587   : > { %6526 = vrot.lane.b32.xlu1 %v13957_v4, %s13143_s23 }
0x15e1   : > { %v12554_v12 = vpop.permute.xlu1 %12553 }
0x15e2   : > { %v12556_v29 = vunpack.i.h.bf16 %v12554_v12  ;;  %v12555_v18 = vunpack.i.l.bf16 %v12554_v12 }
0x15e4   : > { %v12129_v19 = vpack.c.bf16 %v12556_v29, %v12555_v18 }
0x15e5   : > { %v12559_v20 = vpop.permute.xlu1 %12558 }
0x15e6   : > { %v12561_v22 = vunpack.i.h.bf16 %v12559_v20  ;;  %v12560_v25 = vunpack.i.l.bf16 %v12559_v20  ;;  %12131 = vmatprep.subr.msk.bf16.mxu0 %vm13373_vm2, %v12129_v19 }
0x15e7   : > { %12134 = vmatpush3.bf16.xpose.msk.msra.mxu0 %vm13373_vm2, %v12129_v19 }
0x15e8   : > { %v12135_v26 = vpack.c.bf16 %v12561_v22, %v12560_v25 }
0x15e9   : > { %v12569_v47 = vpop.permute.xlu1 %12568 }
0x15ea   : > { %12136 = vmatprep.subr.bf16.mxu1 %v12135_v26  ;;  %v12571_v57 = vunpack.i.h.bf16 %v12569_v47  ;;  %v12570_v58 = vunpack.i.l.bf16 %v12569_v47 }
0x15eb   : > { %12138 = vmatpush3.bf16.msra.mxu1 %v12135_v26 }
0x15ec   : > { %v12173_v60 = vpack.c.bf16 %v12571_v57, %v12570_v58 }
0x15ed   : > { %v6133_v8 = vpop.permute.xlu1 %6132 }
0x15ee   : > { %11731 = vmatmul.mubr.msk.f32.vlgmr.msra.gmra.mrb[28].mxu0 %vm1309_vm1, %v13957_v4 }
0x15f1   : > { %v6135_v23 = vpop.permute.xlu1 %6134 }
0x15f5   : > { %v6525_v45 = vpop.permute.xlu1 %6524 }
0x15f9   : > { %v6527_v61 = vpop.permute.xlu1 %6526 }
0x16c1   : > { %v11732_v43 = vpop.f32.mrb[28].mxu0 }
0x16c2   : > { %v6012_v27 = vpop.f32.mrb[29].mxu0  ;;  %v6022_v28 = vmul.f32 0.5, %v11732_v43 }
0x16c3   : > { %v6021_v10 = vmul.f32 0.5, %v6012_v27 }
0x16c4   : > { %v6026_v32 = vsel %vm1395_vm3, %v6022_v28, -inf }
0x16c5   : > { %v6023_v17 = vsel %vm1395_vm3, %v6021_v10, -inf }
0x16c6   : > { %6024 = vmax.xlane.f32.xlu0 %v6023_v17 }
0x16ca   : > { %6027 = vmax.xlane.f32.xlu0 %v6026_v32 }
0x1753   : > { %v6025_v40 = vpop.xlane.xlu0 %6024 }
0x1754   : > { %v6029_v34 = vsub.f32 %v6021_v10, %v6025_v40 }
0x1756   : > { %v6031_v6 = vmul.f32 1.442695, %v6029_v34 }
0x1757   : > { %v6028_v39 = vpop.xlane.xlu0 %6027 }
0x1758   : > { %v6030_v41 = vsub.f32 %v6022_v28, %v6028_v39 }
0x175a   : > { %v6033_v16 = vmul.f32 1.442695, %v6030_v41 }
0x175c   : > { %13030 = vpow2.f32 %v6033_v16 }
0x175d   : > { %13032 = vpow2.f32 %v6031_v6 }
0x1766   : > { %v13031_v42 = vpop.eup %13030 }
0x1767   : > { %v6038_v14 = vsel %vm1395_vm3, %v13031_v42, 0.0  ;;  %v13033_v36 = vpop.eup %13032 }
0x1768   : > { %6039 = vadd.xlane.f32.xlu0 %v6038_v14  ;;  %v6035_v24 = vsel %vm1395_vm3, %v13033_v36, 0.0 }
0x176c   : > { %6036 = vadd.xlane.f32.xlu0 %v6035_v24 }
0x1782   : > { %12563 = vrot.lane.b32.xlu0 %v13965_v30, %s14590_s15  ;;  %s14595_s15 = smov 48  }
0x17f5   : > { %v6040_v35 = vpop.xlane.xlu0 %6039 }
0x17f6   : > { %13034 = vrcp.f32 %v6040_v35 }
0x17f9   : > { %v6037_v5 = vpop.xlane.xlu0 %6036 }
0x17fa   : > { %13036 = vrcp.f32 %v6037_v5 }
0x17fd   : > { %v12564_v15 = vpop.permute.xlu0 %12563 }
0x17fe   : > { %v12566_v49 = vunpack.i.h.bf16 %v12564_v15  ;;  %v12565_v13 = vunpack.i.l.bf16 %v12564_v15 }
0x1800   : > { %v12139_v50 = vpack.c.bf16 %v12566_v49, %v12565_v13  ;;  %v13035_v53 = vpop.eup %13034 }
0x1801   : > { %v6044_v59 = vmul.f32 %v13035_v53, %v13031_v42 }
0x1802   : > { %12141 = vmatprep.subr.msk.bf16.mxu1 %vm13373_vm2, %v12139_v50 }
0x1804   : > { %v13037_v54 = vpop.eup %13036 }
0x1805   : > { %v6042_v11 = vmul.f32 %v13037_v54, %v13033_v36 }
0x1807   : > { %11737 = vmatprep.mubr.msk.f32.mxu1 %vm1395_vm3, %v6042_v11 }
0x1808   : > { %11738 = vmatmul.mubr.msk.f32.vlgmr.msra.gmra.mrb[74].mxu1 %vm1395_vm3, %v6044_v59 }
0x1809   : > { %12144 = vmatpush3.bf16.xpose.msk.msra.mxu1 %vm13373_vm2, %v12139_v50  ;;  %11744 = vmatprep.mubr.msk.f32.mxu1 %vm1309_vm1, %v6133_v8 }
0x180a   : > { %12175 = vmatprep.subr.msk.bf16.mxu1 %vm13373_vm2, %v12173_v60 }
0x1810   : > { %11745 = vmatmul.mubr.msk.f32.vlgmr.msra.gmra.mrb[76].mxu1 %vm1309_vm1, %v6135_v23 }
0x1811   : > { %12178 = vmatpush3.bf16.xpose.msk.msra.mxu1 %vm13373_vm2, %v12173_v60  ;;  %11780 = vmatprep.mubr.msk.f32.mxu1 %vm1309_vm1, %v6525_v45 }
0x1818   : > { %11781 = vmatmul.mubr.msk.f32.vlgmr.msra.gmra.mrb[78].mxu1 %vm1309_vm1, %v6527_v61 }
0x18db   : > { %v14007_v7 = vpop.f32.mrb[74].mxu1 }
0x18dc   : > { %v14009_v63 = vpop.f32.mrb[75].mxu1 }
0x18e3   : > { %v14011_v0 = vpop.f32.mrb[76].mxu1 }
0x18e4   : > { %v14013_v52 = vpop.f32.mrb[77].mxu1 }
0x18eb   : > { %v11782_v3 = vpop.f32.mrb[78].mxu1 }
0x18ec   : > { %v6616_v51 = vmul.f32 0.5, %v11782_v3  ;;  %v6606_v48 = vpop.f32.mrb[79].mxu1 }
0x18ed   : > { %v6615_v12 = vmul.f32 0.5, %v6606_v48 }
0x18ee   : > { %v6620_v29 = vsel %vm1395_vm3, %v6616_v51, -inf }
0x18ef   : > { %6621 = vmax.xlane.f32.xlu1 %v6620_v29  ;;  %v6617_v18 = vsel %vm1395_vm3, %v6615_v12, -inf }
0x18f0   : > { %6618 = vmax.xlane.f32.xlu0 %v6617_v18 }
0x1900   : > { %12573 = vrot.lane.b32.xlu1 %v13965_v30, %s14591_s16  ;;  %s14596_s16 = smov 76  }
0x1904   : > { %6825 = vrot.lane.b32.xlu1 %v13959_v9, %s13145_s28 }
0x1908   : > { %6827 = vrot.lane.b32.xlu1 %v13957_v4, %s13145_s28 }
0x197c   : > { %v6622_v19 = vpop.xlane.xlu1 %6621 }
0x197d   : > { %v6624_v20 = vsub.f32 %v6616_v51, %v6622_v19  ;;  %v6619_v22 = vpop.xlane.xlu0 %6618 }
0x197e   : > { %v6623_v25 = vsub.f32 %v6615_v12, %v6619_v22 }
0x197f   : > { %v6627_v26 = vmul.f32 1.442695, %v6624_v20 }
0x1980   : > { %v6625_v43 = vmul.f32 1.442695, %v6623_v25  ;;  %v12574_v27 = vpop.permute.xlu1 %12573 }
0x1981   : > { %13038 = vpow2.f32 %v6627_v26  ;;  %v12576_v10 = vunpack.i.h.bf16 %v12574_v27  ;;  %v12575_v28 = vunpack.i.l.bf16 %v12574_v27 }
0x1982   : > { %13040 = vpow2.f32 %v6625_v43 }
0x1983   : > { %v12179_v17 = vpack.c.bf16 %v12576_v10, %v12575_v28 }
0x1984   : > { %v6826_v47 = vpop.permute.xlu1 %6825 }
0x1985   : > { %12180 = vmatprep.subr.bf16.mxu1 %v12179_v17 }
0x1986   : > { %12182 = vmatpush3.bf16.msra.mxu1 %v12179_v17 }
0x1988   : > { %v6828_v49 = vpop.permute.xlu1 %6827 }
0x198b   : > { %v13039_v32 = vpop.eup %13038 }
0x198c   : > { %v6632_v40 = vsel %vm1395_vm3, %v13039_v32, 0.0  ;;  %v13041_v34 = vpop.eup %13040 }
0x198d   : > { %6633 = vadd.xlane.f32.xlu0 %v6632_v40  ;;  %v6629_v39 = vsel %vm1395_vm3, %v13041_v34, 0.0 }
0x1991   : > { %6630 = vadd.xlane.f32.xlu0 %v6629_v39 }
0x19a7   : > { %12578 = vrot.lane.b32.xlu0 %v13965_v30, %s14592_s22  ;;  %s14597_s22 = smov 44  }
0x1a1a   : > { %v6634_v41 = vpop.xlane.xlu0 %6633 }
0x1a1b   : > { %13042 = vrcp.f32 %v6634_v41 }
0x1a1e   : > { %v6631_v6 = vpop.xlane.xlu0 %6630 }
0x1a1f   : > { %13044 = vrcp.f32 %v6631_v6 }
0x1a22   : > { %v12579_v16 = vpop.permute.xlu0 %12578 }
0x1a23   : > { %v12581_v42 = vunpack.i.h.bf16 %v12579_v16  ;;  %v12580_v14 = vunpack.i.l.bf16 %v12579_v16 }
0x1a25   : > { %v12195_v36 = vpack.c.bf16 %v12581_v42, %v12580_v14  ;;  %v13043_v24 = vpop.eup %13042 }
0x1a26   : > { %v6638_v15 = vmul.f32 %v13043_v24, %v13039_v32 }
0x1a27   : > { %12197 = vmatprep.subr.msk.bf16.mxu1 %vm13373_vm2, %v12195_v36 }
0x1a29   : > { %v13045_v35 = vpop.eup %13044 }
0x1a2a   : > { %v6636_v5 = vmul.f32 %v13045_v35, %v13041_v34 }
0x1a2c   : > { %11787 = vmatprep.mubr.msk.f32.mxu1 %vm1395_vm3, %v6636_v5 }
0x1a2d   : > { %11788 = vmatmul.mubr.msk.f32.vlgmr.msra.gmra.mrb[80].mxu1 %vm1395_vm3, %v6638_v15 }
0x1a2e   : > { %12200 = vmatpush3.bf16.xpose.msk.msra.mxu1 %vm13373_vm2, %v12195_v36  ;;  %11805 = vmatprep.mubr.msk.f32.mxu1 %vm1309_vm1, %v6826_v47 }
0x1a35   : > { %11806 = vmatmul.mubr.msk.f32.vlgmr.msra.gmra.mrb[82].mxu1 %vm1309_vm1, %v6828_v49 }
0x1b00   : > { %v14035_v13 = vpop.f32.mrb[80].mxu1 }
0x1b01   : > { %v14037_v50 = vpop.f32.mrb[81].mxu1 }
0x1b08   : > { %v11807_v53 = vpop.f32.mrb[82].mxu1 }
0x1b09   : > { %v6917_v54 = vmul.f32 0.5, %v11807_v53  ;;  %v6907_v57 = vpop.f32.mrb[83].mxu1 }
0x1b0a   : > { %v6916_v58 = vmul.f32 0.5, %v6907_v57 }
0x1b0b   : > { %v6921_v8 = vsel %vm1395_vm3, %v6917_v54, -inf }
0x1b0c   : > { %6922 = vmax.xlane.f32.xlu1 %v6921_v8  ;;  %v6918_v11 = vsel %vm1395_vm3, %v6916_v58, -inf }
0x1b0d   : > { %6919 = vmax.xlane.f32.xlu0 %v6918_v11 }
0x1b1d   : > { %12583 = vrot.lane.b32.xlu1 %v13965_v30, %s14593_s1  ;;  %s14598_s1 = smov 72  }
0x1b21   : > { %7126 = vrot.lane.b32.xlu1 %v13959_v9, %s13148_s11 }
0x1b25   : > { %7128 = vrot.lane.b32.xlu1 %v13957_v4, %s13148_s11 }
0x1b99   : > { %v6923_v59 = vpop.xlane.xlu1 %6922 }
0x1b9a   : > { %v6925_v60 = vsub.f32 %v6917_v54, %v6923_v59  ;;  %v6920_v23 = vpop.xlane.xlu0 %6919 }
0x1b9b   : > { %v6924_v45 = vsub.f32 %v6916_v58, %v6920_v23 }
0x1b9c   : > { %v6928_v61 = vmul.f32 1.442695, %v6925_v60 }
0x1b9d   : > { %v6926_v3 = vmul.f32 1.442695, %v6924_v45  ;;  %v12584_v51 = vpop.permute.xlu1 %12583 }
0x1b9e   : > { %13046 = vpow2.f32 %v6928_v61  ;;  %v12586_v48 = vunpack.i.h.bf16 %v12584_v51  ;;  %v12585_v12 = vunpack.i.l.bf16 %v12584_v51 }
0x1b9f   : > { %13048 = vpow2.f32 %v6926_v3 }
0x1ba0   : > { %v12201_v29 = vpack.c.bf16 %v12586_v48, %v12585_v12 }
0x1ba1   : > { %v7127_v39 = vpop.permute.xlu1 %7126 }
0x1ba2   : > { %12202 = vmatprep.subr.bf16.mxu1 %v12201_v29 }
0x1ba3   : > { %12204 = vmatpush3.bf16.msra.mxu1 %v12201_v29 }
0x1ba5   : > { %v7129_v41 = vpop.permute.xlu1 %7128 }
0x1ba8   : > { %v13047_v18 = vpop.eup %13046 }
0x1ba9   : > { %v6933_v19 = vsel %vm1395_vm3, %v13047_v18, 0.0  ;;  %v13049_v20 = vpop.eup %13048 }
0x1baa   : > { %6934 = vadd.xlane.f32.xlu0 %v6933_v19  ;;  %v6930_v22 = vsel %vm1395_vm3, %v13049_v20, 0.0 }
0x1bae   : > { %6931 = vadd.xlane.f32.xlu0 %v6930_v22 }
0x1bc4   : > { %12588 = vrot.lane.b32.xlu0 %v13965_v30, %s14594_s2  ;;  %s14599_s2 = smov 40  }
0x1c37   : > { %v6935_v25 = vpop.xlane.xlu0 %6934 }
0x1c38   : > { %13050 = vrcp.f32 %v6935_v25 }
0x1c3b   : > { %v6932_v26 = vpop.xlane.xlu0 %6931 }
0x1c3c   : > { %13052 = vrcp.f32 %v6932_v26 }
0x1c3f   : > { %v12589_v43 = vpop.permute.xlu0 %12588 }
0x1c40   : > { %v12591_v27 = vunpack.i.h.bf16 %v12589_v43  ;;  %v12590_v10 = vunpack.i.l.bf16 %v12589_v43 }
0x1c42   : > { %v12217_v28 = vpack.c.bf16 %v12591_v27, %v12590_v10  ;;  %v13051_v17 = vpop.eup %13050 }
0x1c43   : > { %v6939_v34 = vmul.f32 %v13051_v17, %v13047_v18 }
0x1c44   : > { %12219 = vmatprep.subr.msk.bf16.mxu1 %vm13373_vm2, %v12217_v28 }
0x1c46   : > { %v13053_v32 = vpop.eup %13052 }
0x1c47   : > { %v6937_v40 = vmul.f32 %v13053_v32, %v13049_v20 }
0x1c49   : > { %11812 = vmatprep.mubr.msk.f32.mxu1 %vm1395_vm3, %v6937_v40 }
0x1c4a   : > { %11813 = vmatmul.mubr.msk.f32.vlgmr.msra.gmra.mrb[84].mxu1 %vm1395_vm3, %v6939_v34 }
0x1c4b   : > { %12222 = vmatpush3.bf16.xpose.msk.msra.mxu1 %vm13373_vm2, %v12217_v28  ;;  %11830 = vmatprep.mubr.msk.f32.mxu1 %vm1309_vm1, %v7127_v39 }
0x1c52   : > { %11831 = vmatmul.mubr.msk.f32.vlgmr.msra.gmra.mrb[86].mxu1 %vm1309_vm1, %v7129_v41 }
0x1d1d   : > { %v14059_v6 = vpop.f32.mrb[84].mxu1 }
0x1d1e   : > { %v14061_v16 = vpop.f32.mrb[85].mxu1 }
0x1d25   : > { %v11832_v42 = vpop.f32.mrb[86].mxu1 }
0x1d26   : > { %v7218_v14 = vmul.f32 0.5, %v11832_v42  ;;  %v7208_v36 = vpop.f32.mrb[87].mxu1 }
0x1d27   : > { %v7217_v24 = vmul.f32 0.5, %v7208_v36 }
0x1d28   : > { %v7222_v35 = vsel %vm1395_vm3, %v7218_v14, -inf }
0x1d29   : > { %7223 = vmax.xlane.f32.xlu1 %v7222_v35  ;;  %v7219_v5 = vsel %vm1395_vm3, %v7217_v24, -inf }
0x1d2a   : > { %7220 = vmax.xlane.f32.xlu0 %v7219_v5 }
0x1d3a   : > { %12593 = vrot.lane.b32.xlu1 %v13965_v30, %s14595_s15  ;;  %s14600_s15 = smov 100  }
0x1d3e   : > { %7427 = vrot.lane.b32.xlu1 %v13959_v9, %s13151_s0 }
0x1d42   : > { %7429 = vrot.lane.b32.xlu1 %v13957_v4, %s13151_s0 }
0x1db6   : > { %v7224_v15 = vpop.xlane.xlu1 %7223 }
0x1db7   : > { %v7226_v47 = vsub.f32 %v7218_v14, %v7224_v15  ;;  %v7221_v49 = vpop.xlane.xlu0 %7220 }
0x1db8   : > { %v7225_v53 = vsub.f32 %v7217_v24, %v7221_v49 }
0x1db9   : > { %v7229_v54 = vmul.f32 1.442695, %v7226_v47 }
0x1dba   : > { %v7227_v57 = vmul.f32 1.442695, %v7225_v53  ;;  %v12594_v58 = vpop.permute.xlu1 %12593 }
0x1dbb   : > { %13054 = vpow2.f32 %v7229_v54  ;;  %v12596_v8 = vunpack.i.h.bf16 %v12594_v58  ;;  %v12595_v11 = vunpack.i.l.bf16 %v12594_v58 }
0x1dbc   : > { %13056 = vpow2.f32 %v7227_v57 }
0x1dbd   : > { %v12223_v59 = vpack.c.bf16 %v12596_v8, %v12595_v11 }
0x1dbe   : > { %v7428_v26 = vpop.permute.xlu1 %7427 }
0x1dbf   : > { %12224 = vmatprep.subr.bf16.mxu1 %v12223_v59 }
0x1dc0   : > { %12226 = vmatpush3.bf16.msra.mxu1 %v12223_v59 }
0x1dc2   : > { %v7430_v43 = vpop.permute.xlu1 %7429 }
0x1dc5   : > { %v13055_v60 = vpop.eup %13054 }
0x1dc6   : > { %v7234_v23 = vsel %vm1395_vm3, %v13055_v60, 0.0  ;;  %v13057_v45 = vpop.eup %13056 }
0x1dc7   : > { %7235 = vadd.xlane.f32.xlu0 %v7234_v23  ;;  %v7231_v61 = vsel %vm1395_vm3, %v13057_v45, 0.0 }
0x1dcb   : > { %7232 = vadd.xlane.f32.xlu0 %v7231_v61 }
0x1de1   : > { %12598 = vrot.lane.b32.xlu0 %v13965_v30, %s14596_s16  ;;  %s14601_s16 = smov 60  }
0x1e54   : > { %v7236_v3 = vpop.xlane.xlu0 %7235 }
0x1e55   : > { %13058 = vrcp.f32 %v7236_v3 }
0x1e58   : > { %v7233_v51 = vpop.xlane.xlu0 %7232 }
0x1e59   : > { %13060 = vrcp.f32 %v7233_v51 }
0x1e5c   : > { %v12599_v48 = vpop.permute.xlu0 %12598 }
0x1e5d   : > { %v12601_v12 = vunpack.i.h.bf16 %v12599_v48  ;;  %v12600_v29 = vunpack.i.l.bf16 %v12599_v48 }
0x1e5f   : > { %v12239_v18 = vpack.c.bf16 %v12601_v12, %v12600_v29  ;;  %v13059_v19 = vpop.eup %13058 }
0x1e60   : > { %v7240_v25 = vmul.f32 %v13059_v19, %v13055_v60 }
0x1e61   : > { %12241 = vmatprep.subr.msk.bf16.mxu1 %vm13373_vm2, %v12239_v18 }
0x1e63   : > { %v13061_v20 = vpop.eup %13060 }
0x1e64   : > { %v7238_v22 = vmul.f32 %v13061_v20, %v13057_v45 }
0x1e66   : > { %11837 = vmatprep.mubr.msk.f32.mxu1 %vm1395_vm3, %v7238_v22 }
0x1e67   : > { %11838 = vmatmul.mubr.msk.f32.vlgmr.msra.gmra.mrb[88].mxu1 %vm1395_vm3, %v7240_v25 }
0x1e68   : > { %12244 = vmatpush3.bf16.xpose.msk.msra.mxu1 %vm13373_vm2, %v12239_v18  ;;  %11855 = vmatprep.mubr.msk.f32.mxu1 %vm1309_vm1, %v7428_v26 }
0x1e6f   : > { %11856 = vmatmul.mubr.msk.f32.vlgmr.msra.gmra.mrb[90].mxu1 %vm1309_vm1, %v7430_v43 }
0x1f3a   : > { %v14083_v27 = vpop.f32.mrb[88].mxu1 }
0x1f3b   : > { %v14085_v10 = vpop.f32.mrb[89].mxu1 }
0x1f42   : > { %v11857_v28 = vpop.f32.mrb[90].mxu1 }
0x1f43   : > { %v7519_v17 = vmul.f32 0.5, %v11857_v28  ;;  %v7509_v32 = vpop.f32.mrb[91].mxu1 }
0x1f44   : > { %v7518_v40 = vmul.f32 0.5, %v7509_v32 }
0x1f45   : > { %v7523_v34 = vsel %vm1395_vm3, %v7519_v17, -inf }
0x1f46   : > { %7524 = vmax.xlane.f32.xlu1 %v7523_v34  ;;  %v7520_v39 = vsel %vm1395_vm3, %v7518_v40, -inf }
0x1f47   : > { %7521 = vmax.xlane.f32.xlu0 %v7520_v39 }
0x1f57   : > { %12603 = vrot.lane.b32.xlu1 %v13965_v30, %s14597_s22  ;;  %s14602_s22 = smov 36  }
0x1f5b   : > { %7728 = vrot.lane.b32.xlu1 %v13959_v9, %s13154_s26 }
0x1f5f   : > { %7730 = vrot.lane.b32.xlu1 %v13957_v4, %s13154_s26 }
0x1fd3   : > { %v7525_v41 = vpop.xlane.xlu1 %7524 }
0x1fd4   : > { %v7527_v42 = vsub.f32 %v7519_v17, %v7525_v41  ;;  %v7522_v14 = vpop.xlane.xlu0 %7521  ;;  %v14120_v17 = vmul.f32 0.5, %v14011_v0 }
0x1fd5   : > { %v7526_v36 = vsub.f32 %v7518_v40, %v7522_v14 }
0x1fd6   : > { %v7530_v24 = vmul.f32 1.442695, %v7527_v42  ;;  %v6228_v32 = vsel %vm1395_vm3, %v14120_v17, -inf }
0x1fd7   : > { %v7528_v35 = vmul.f32 1.442695, %v7526_v36  ;;  %v12604_v5 = vpop.permute.xlu1 %12603 }
0x1fd8   : > { %13062 = vpow2.f32 %v7530_v24  ;;  %v12606_v15 = vunpack.i.h.bf16 %v12604_v5  ;;  %v12605_v47 = vunpack.i.l.bf16 %v12604_v5 }
0x1fd9   : > { %13064 = vpow2.f32 %v7528_v35 }
0x1fda   : > { %v12245_v49 = vpack.c.bf16 %v12606_v15, %v12605_v47 }
0x1fdb   : > { %v7729_v12 = vpop.permute.xlu1 %7728 }
0x1fdc   : > { %12246 = vmatprep.subr.bf16.mxu1 %v12245_v49 }
0x1fdd   : > { %12248 = vmatpush3.bf16.msra.mxu1 %v12245_v49 }
0x1fdf   : > { %v7731_v29 = vpop.permute.xlu1 %7730 }
0x1fe2   : > { %v13063_v53 = vpop.eup %13062 }
0x1fe3   : > { %v7535_v54 = vsel %vm1395_vm3, %v13063_v53, 0.0  ;;  %v13065_v57 = vpop.eup %13064 }
0x1fe4   : > { %7536 = vadd.xlane.f32.xlu0 %v7535_v54  ;;  %v7532_v58 = vsel %vm1395_vm3, %v13065_v57, 0.0 }
0x1fe8   : > { %7533 = vadd.xlane.f32.xlu0 %v7532_v58 }
0x1ffe   : > { %12608 = vrot.lane.b32.xlu0 %v13965_v30, %s14598_s1  ;;  %s14603_s1 = smov 68  }
0x2071   : > { %v7537_v8 = vpop.xlane.xlu0 %7536 }
0x2072   : > { %13066 = vrcp.f32 %v7537_v8 }
0x2075   : > { %v7534_v11 = vpop.xlane.xlu0 %7533 }
0x2076   : > { %13068 = vrcp.f32 %v7534_v11  ;;  %v6223_v11 = vmul.f32 0.5, %v14013_v52 }
0x2079   : > { %v12609_v59 = vpop.permute.xlu0 %12608 }
0x207a   : > { %v12611_v60 = vunpack.i.h.bf16 %v12609_v59  ;;  %v12610_v23 = vunpack.i.l.bf16 %v12609_v59  ;;  %v6225_v59 = vsel %vm1395_vm3, %v6223_v11, -inf }
0x207c   : > { %v12261_v45 = vpack.c.bf16 %v12611_v60, %v12610_v23  ;;  %v13067_v61 = vpop.eup %13066 }
0x207d   : > { %v7541_v48 = vmul.f32 %v13067_v61, %v13063_v53 }
0x207e   : > { %12263 = vmatprep.subr.msk.bf16.mxu1 %vm13373_vm2, %v12261_v45 }
0x2080   : > { %v13069_v3 = vpop.eup %13068 }
0x2081   : > { %v7539_v51 = vmul.f32 %v13069_v3, %v13065_v57 }
0x2083   : > { %11862 = vmatprep.mubr.msk.f32.mxu1 %vm1395_vm3, %v7539_v51 }
0x2084   : > { %11863 = vmatmul.mubr.msk.f32.vlgmr.msra.gmra.mrb[92].mxu1 %vm1395_vm3, %v7541_v48 }
0x2085   : > { %12266 = vmatpush3.bf16.xpose.msk.msra.mxu1 %vm13373_vm2, %v12261_v45  ;;  %11880 = vmatprep.mubr.msk.f32.mxu1 %vm1309_vm1, %v7729_v12 }
0x208c   : > { %11881 = vmatmul.mubr.msk.f32.vlgmr.msra.gmra.mrb[94].mxu1 %vm1309_vm1, %v7731_v29 }
0x2157   : > { %v14107_v18 = vpop.f32.mrb[92].mxu1 }
0x2158   : > { %v14109_v19 = vpop.f32.mrb[93].mxu1 }
0x215f   : > { %v11882_v20 = vpop.f32.mrb[94].mxu1 }
0x2160   : > { %v7820_v22 = vmul.f32 0.5, %v11882_v20  ;;  %v7810_v25 = vpop.f32.mrb[95].mxu1 }
0x2161   : > { %v7819_v26 = vmul.f32 0.5, %v7810_v25 }
0x2162   : > { %v7824_v43 = vsel %vm1395_vm3, %v7820_v22, -inf }
0x2163   : > { %7825 = vmax.xlane.f32.xlu1 %v7824_v43  ;;  %v7821_v28 = vsel %vm1395_vm3, %v7819_v26, -inf }
0x2164   : > { %7822 = vmax.xlane.f32.xlu0 %v7821_v28 }
0x2174   : > { %12613 = vrot.lane.b32.xlu1 %v13965_v30, %s14599_s2  ;;  %s14604_s2 = sld [smem:[#allocation4_spill]] }
0x2178   : > { %8029 = vrot.lane.b32.xlu1 %v13959_v9, %s14600_s15 }
0x217c   : > { %8031 = vrot.lane.b32.xlu1 %v13957_v4, %s14600_s15 }
0x21a0   : > { %6229 = vmax.xlane.f32.xlu1 %v6228_v32 }
0x21b1   : > { %12623 = vrot.lane.b32.xlu1 %v13965_v30, %s14601_s16  ;;  %s14612_s16 = sld [smem:[#allocation12_spill]] }
0x21b5   : > { %12628 = vrot.lane.b32.xlu1 %v13965_v30, %s14602_s22  ;;  %s14613_s22 = sld [smem:[#allocation13_spill]] }
0x21f0   : > { %v7826_v40 = vpop.xlane.xlu1 %7825 }
0x21f1   : > { %v7828_v34 = vsub.f32 %v7820_v22, %v7826_v40  ;;  %v7823_v39 = vpop.xlane.xlu0 %7822 }
0x21f2   : > { %v7827_v9 = vsub.f32 %v7819_v26, %v7823_v39 }
0x21f3   : > { %v7831_v41 = vmul.f32 1.442695, %v7828_v34 }
0x21f4   : > { %v7829_v42 = vmul.f32 1.442695, %v7827_v9  ;;  %v12614_v4 = vpop.permute.xlu1 %12613 }
0x21f5   : > { %13070 = vpow2.f32 %v7831_v41  ;;  %v12616_v0 = vunpack.i.h.bf16 %v12614_v4  ;;  %v12615_v14 = vunpack.i.l.bf16 %v12614_v4 }
0x21f6   : > { %13072 = vpow2.f32 %v7829_v42 }
0x21f7   : > { %v12267_v36 = vpack.c.bf16 %v12616_v0, %v12615_v14 }
0x21f8   : > { %v8030_v47 = vpop.permute.xlu1 %8029 }
0x21f9   : > { %12268 = vmatprep.subr.bf16.mxu1 %v12267_v36 }
0x21fa   : > { %12270 = vmatpush3.bf16.msra.mxu1 %v12267_v36 }
0x21fc   : > { %v8032_v49 = vpop.permute.xlu1 %8031 }
0x21ff   : > { %v13071_v24 = vpop.eup %13070 }
0x2200   : > { %v7836_v35 = vsel %vm1395_vm3, %v13071_v24, 0.0  ;;  %v13073_v5 = vpop.eup %13072 }
0x2201   : > { %7837 = vadd.xlane.f32.xlu0 %v7836_v35  ;;  %v7833_v15 = vsel %vm1395_vm3, %v13073_v5, 0.0 }
0x2205   : > { %7834 = vadd.xlane.f32.xlu0 %v7833_v15 }
0x221b   : > { %12618 = vrot.lane.b32.xlu0 %v13965_v30, %s14603_s1  ;;  %s14614_s1 = sshll.u32 %s14616_s10, 4 }
0x222d   : > { %v6230_v53 = vpop.xlane.xlu1 %6229 }
0x222e   : > { %v6232_v26 = vsub.f32 %v14120_v17, %v6230_v53 }
0x2230   : > { %v6235_v32 = vmul.f32 1.442695, %v6232_v26 }
0x2231   : > { %v12624_v54 = vpop.permute.xlu1 %12623 }
0x2232   : > { %v12626_v57 = vunpack.i.h.bf16 %v12624_v54  ;;  %v12625_v58 = vunpack.i.l.bf16 %v12624_v54 }
0x2234   : > { %v12145_v8 = vpack.c.bf16 %v12626_v57, %v12625_v58  ;;  %v5547_v57 = vld [vmem:[%s14604_s2 + $0x10] sm:$0xff]  ;;  %v5548_v58 = vld [vmem:[%s14604_s2 + $0x18] sm:$0xff] }
0x2235   : > { %v12629_v51 = vpop.permute.xlu1 %12628 }
0x2236   : > { %12146 = vmatprep.subr.bf16.mxu0 %v12145_v8  ;;  %v12631_v52 = vunpack.i.h.bf16 %v12629_v51  ;;  %v12630_v29 = vunpack.i.l.bf16 %v12629_v51 }
0x2237   : > { %12148 = vmatpush3.bf16.msra.mxu0 %v12145_v8  ;;  %v12637_v8 = vpack.i.bf16 %v5548_v58, %v5547_v57 }
0x2238   : > { %v12289_v25 = vpack.c.bf16 %v12631_v52, %v12630_v29 }
0x2239   : > { %12638 = vrot.lane.b32.xlu1 %v12637_v8, %s13141_s18 }
0x223a   : > { %6226 = vmax.xlane.f32.xlu0 %v6225_v59  ;;  %v5546_v59 = vld [vmem:[%s14604_s2 + $0x8] sm:$0xff] }
0x228e   : > { %v7838_v60 = vpop.xlane.xlu0 %7837 }
0x228f   : > { %13074 = vrcp.f32 %v7838_v60 }
0x2292   : > { %v7835_v23 = vpop.xlane.xlu0 %7834 }
0x2293   : > { %13076 = vrcp.f32 %v7835_v23 }
0x2296   : > { %v12619_v45 = vpop.permute.xlu0 %12618 }
0x2297   : > { %v12621_v30 = vunpack.i.h.bf16 %v12619_v45  ;;  %v12620_v61 = vunpack.i.l.bf16 %v12619_v45 }
0x2299   : > { %v12283_v3 = vpack.c.bf16 %v12621_v30, %v12620_v61  ;;  %v13075_v48 = vpop.eup %13074 }
0x229a   : > { %v7842_v22 = vmul.f32 %v13075_v48, %v13071_v24 }
0x229b   : > { %12285 = vmatprep.subr.msk.bf16.mxu1 %vm13373_vm2, %v12283_v3 }
0x229d   : > { %v13077_v12 = vpop.eup %13076 }
0x229e   : > { %v7840_v20 = vmul.f32 %v13077_v12, %v13073_v5 }
0x22a0   : > { %11887 = vmatprep.mubr.msk.f32.mxu1 %vm1395_vm3, %v7840_v20 }
0x22a1   : > { %11888 = vmatmul.mubr.msk.f32.vlgmr.msra.gmra.mrb[96].mxu1 %vm1395_vm3, %v7842_v22 }
0x22a2   : > { %12288 = vmatpush3.bf16.xpose.msk.msra.mxu1 %vm13373_vm2, %v12283_v3  ;;  %11905 = vmatprep.mubr.msk.f32.mxu1 %vm1309_vm1, %v8030_v47 }
0x22a3   : > { %12290 = vmatprep.subr.bf16.mxu1 %v12289_v25 }
0x22a9   : > { %11906 = vmatmul.mubr.msk.f32.vlgmr.msra.gmra.mrb[98].mxu1 %vm1309_vm1, %v8032_v49 }
0x22aa   : > { %12292 = vmatpush3.bf16.msra.mxu1 %v12289_v25 }
0x22c7   : > { %v6227_v43 = vpop.xlane.xlu0 %6226 }
0x22c8   : > { %v6231_v28 = vsub.f32 %v6223_v11, %v6227_v43  ;;  %v5545_v11 = vld [vmem:[%s14604_s2] sm:$0xff]  ;;  %v12639_v43 = vpop.permute.xlu1 %12638 }
0x22c9   : > { %v12642_v60 = vpack.i.bf16 %v5546_v59, %v5545_v11 }
0x22ca   : > { %v6233_v40 = vmul.f32 1.442695, %v6231_v28  ;;  %v12641_v28 = vunpack.i.h.bf16 %v12639_v43 }
0x22cb   : > { %12643 = vrot.lane.b32.xlu1 %v12642_v60, %s13143_s23 }
0x22cc   : > { %13078 = vpow2.f32 %v6233_v40 }
0x22cd   : > { %13080 = vpow2.f32 %v6235_v32  ;;  %v12640_v32 = vunpack.i.l.bf16 %v12639_v43 }
0x22cf   : > { %12648 = vrot.lane.b32.xlu1 %v12637_v8, %s13143_s23  ;;  %s14607_s23 = sld [smem:[#allocation10_spill]] }
0x22d3   : > { %12653 = vrot.lane.b32.xlu1 %v12642_v60, %s13145_s28 }
0x22d6   : > { %v13079_v34 = vpop.eup %13078 }
0x22d7   : > { %v6237_v39 = vsel %vm1395_vm3, %v13079_v34, 0.0  ;;  %v13081_v9 = vpop.eup %13080  ;;  %12658 = vrot.lane.b32.xlu1 %v12637_v8, %s13145_s28  ;;  %s14609_s28 = sld [smem:[#allocation7_spill]] }
0x22d8   : > { %6238 = vadd.xlane.f32.xlu0 %v6237_v39  ;;  %v6240_v41 = vsel %vm1395_vm3, %v13081_v9, 0.0 }
0x22db   : > { %12668 = vrot.lane.b32.xlu1 %v12637_v8, %s13148_s11 }
0x22dc   : > { %6241 = vadd.xlane.f32.xlu0 %v6240_v41 }
0x22df   : > { %12678 = vrot.lane.b32.xlu1 %v12637_v8, %s13151_s0 }
0x22e3   : > { %12688 = vrot.lane.b32.xlu1 %v12637_v8, %s13154_s26 }
0x22e7   : > { %12698 = vrot.lane.b32.xlu1 %v12637_v8, %s14600_s15 }
0x2365   : > { %v6239_v42 = vpop.xlane.xlu0 %6238 }
0x2366   : > { %13082 = vrcp.f32 %v6239_v42  ;;  %v12155_v42 = vpack.c.bf16 %v12641_v28, %v12640_v32 }
0x2369   : > { %v6242_v4 = vpop.xlane.xlu0 %6241 }
0x236a   : > { %13084 = vrcp.f32 %v6242_v4 }
0x2370   : > { %v13083_v0 = vpop.eup %13082 }
0x2371   : > { %v6244_v17 = vmul.f32 %v13083_v0, %v13079_v34 }
0x2373   : > { %11751 = vmatprep.mubr.msk.f32.mxu0 %vm1395_vm3, %v6244_v17 }
0x2374   : > { %v13085_v14 = vpop.eup %13084  ;;  %v14146_v36 = vpop.f32.mrb[96].mxu1 }
0x2375   : > { %v6246_v24 = vmul.f32 %v13085_v14, %v13081_v9  ;;  %v14148_v35 = vpop.f32.mrb[97].mxu1  ;;  %v12161_v14 = vpack.c.bf16 %v5546_v59, %v5545_v11 }
0x2377   : > { %11752 = vmatmul.mubr.msk.f32.vlgmr.msra.gmra.mrb[30].mxu0 %vm1395_vm3, %v6246_v24  ;;  %v12167_v24 = vpack.c.bf16 %v5548_v58, %v5547_v57 }
0x237c   : > { %v11907_v5 = vpop.f32.mrb[98].mxu1 }
0x237d   : > { %v8111_v15 = vpop.f32.mrb[99].mxu1  ;;  %v8121_v49 = vmul.f32 0.5, %v11907_v5  ;;  %v12644_v5 = vpop.permute.xlu1 %12643 }
0x237e   : > { %v8120_v47 = vmul.f32 0.5, %v8111_v15  ;;  %v12646_v15 = vunpack.i.h.bf16 %v12644_v5 }
0x237f   : > { %v8125_v54 = vsel %vm1395_vm3, %v8121_v49, -inf }
0x2380   : > { %v8122_v53 = vsel %vm1395_vm3, %v8120_v47, -inf }
0x2381   : > { %8123 = vmax.xlane.f32.xlu0 %v8122_v53  ;;  %v12649_v53 = vpop.permute.xlu1 %12648 }
0x2382   : > { %v12650_v57 = vunpack.i.l.bf16 %v12649_v53 }
0x2385   : > { %8126 = vmax.xlane.f32.xlu0 %v8125_v54  ;;  %v12651_v54 = vunpack.i.h.bf16 %v12649_v53  ;;  %v12654_v8 = vpop.permute.xlu1 %12653 }
0x2386   : > { %v12655_v11 = vunpack.i.l.bf16 %v12654_v8 }
0x2387   : > { %v12189_v58 = vpack.c.bf16 %v12651_v54, %v12650_v57 }
0x240e   : > { %v8124_v23 = vpop.xlane.xlu0 %8123 }
0x240f   : > { %v8128_v45 = vsub.f32 %v8120_v47, %v8124_v23  ;;  %v12645_v47 = vunpack.i.l.bf16 %v12644_v5 }
0x2411   : > { %v8130_v30 = vmul.f32 1.442695, %v8128_v45 }
0x2412   : > { %v8127_v61 = vpop.xlane.xlu0 %8126 }
0x2413   : > { %13086 = vpow2.f32 %v8130_v30  ;;  %v8129_v3 = vsub.f32 %v8121_v49, %v8127_v61  ;;  %v12183_v49 = vpack.c.bf16 %v12646_v15, %v12645_v47 }
0x2415   : > { %v8132_v51 = vmul.f32 1.442695, %v8129_v3 }
0x2417   : > { %13088 = vpow2.f32 %v8132_v51 }
0x241d   : > { %v13087_v48 = vpop.eup %13086 }
0x241e   : > { %v8134_v12 = vsel %vm1395_vm3, %v13087_v48, 0.0 }
0x241f   : > { %8135 = vadd.xlane.f32.xlu0 %v8134_v12 }
0x2421   : > { %v13089_v52 = vpop.eup %13088 }
0x2422   : > { %v8137_v29 = vsel %vm1395_vm3, %v13089_v52, 0.0 }
0x2423   : > { %8138 = vadd.xlane.f32.xlu0 %v8137_v29 }
0x2439   : > { %12633 = vrot.lane.b32.xlu0 %v12642_v60, %s13141_s18  ;;  %s14606_s18 = sld [smem:[#allocation8_spill]] }
0x243d   : > { %12663 = vrot.lane.b32.xlu0 %v12642_v60, %s13148_s11  ;;  %s14610_s11 = sld [smem:[#allocation9_spill]] }
0x2441   : > { %12673 = vrot.lane.b32.xlu0 %v12642_v60, %s13151_s0  ;;  %s14605_s0 = sld [smem:[#allocation5_spill]] }
0x2445   : > { %12683 = vrot.lane.b32.xlu0 %v12642_v60, %s13154_s26  ;;  %s14608_s26 = sld [smem:[#allocation6_spill]] }
0x2449   : > { %12693 = vrot.lane.b32.xlu0 %v12642_v60, %s14600_s15  ;;  %v12659_v60 = vpop.permute.xlu1 %12658  ;;  %s14611_s15 = sld [smem:[#allocation11_spill]] }
0x244a   : > { %v11753_v20 = vpop.f32.mrb[30].mxu0  ;;  %v12660_v23 = vunpack.i.l.bf16 %v12659_v60 }
0x244b   : > { %v6325_v22 = vpop.f32.mrb[31].mxu0 }
0x244c   : > { %11762 = vmatprep.mubr.msk.f32.mxu0 %vm1309_vm1, %v6325_v22 }
0x244d   : > { %v12669_v51 = vpop.permute.xlu1 %12668 }
0x2451   : > { %v12679_v22 = vpop.permute.xlu1 %12678 }
0x24ac   : > { %v8136_v25 = vpop.xlane.xlu0 %8135 }
0x24ad   : > { %13090 = vrcp.f32 %v8136_v25  ;;  %v12680_v25 = vunpack.i.l.bf16 %v12679_v22 }
0x24b0   : > { %v8139_v26 = vpop.xlane.xlu0 %8138 }
0x24b1   : > { %13092 = vrcp.f32 %v8139_v26 }
0x24b4   : > { %v12634_v40 = vpop.permute.xlu0 %12633 }
0x24b5   : > { %v12636_v34 = vunpack.i.h.bf16 %v12634_v40  ;;  %v12635_v39 = vunpack.i.l.bf16 %v12634_v40  ;;  %v12689_v40 = vpop.permute.xlu1 %12688 }
0x24b7   : > { %v13091_v9 = vpop.eup %13090  ;;  %v12149_v41 = vpack.c.bf16 %v12636_v34, %v12635_v39  ;;  %v12690_v34 = vunpack.i.l.bf16 %v12689_v40 }
0x24b8   : > { %v8141_v4 = vmul.f32 %v13091_v9, %v13087_v48  ;;  %v12664_v30 = vpop.permute.xlu0 %12663  ;;  %v12670_v48 = vunpack.i.l.bf16 %v12669_v51 }
0x24b9   : > { %12151 = vmatprep.subr.msk.bf16.mxu0 %vm13373_vm2, %v12149_v41  ;;  %v12665_v61 = vunpack.i.l.bf16 %v12664_v30 }
0x24ba   : > { %12154 = vmatpush3.bf16.xpose.msk.msra.mxu0 %vm13373_vm2, %v12149_v41  ;;  %11912 = vmatprep.mubr.msk.f32.mxu1 %vm1395_vm3, %v8141_v4  ;;  %v12699_v4 = vpop.permute.xlu1 %12698 }
0x24bb   : > { %v13093_v0 = vpop.eup %13092  ;;  %12157 = vmatprep.subr.msk.bf16.mxu0 %vm13373_vm2, %v12155_v42 }
0x24bc   : > { %v8143_v17 = vmul.f32 %v13093_v0, %v13089_v52  ;;  %v12674_v52 = vpop.permute.xlu0 %12673  ;;  %v12700_v0 = vunpack.i.l.bf16 %v12699_v4 }
0x24bd   : > { %v12675_v29 = vunpack.i.l.bf16 %v12674_v52 }
0x24be   : > { %11913 = vmatmul.mubr.msk.f32.vlgmr.msra.gmra.mrb[100].mxu1 %vm1395_vm3, %v8143_v17 }
0x24bf   : > { %8660 = vmatprep.mubr.bf16.mxu1 %v13162_v62 }
0x24c0   : > { %v12684_v43 = vpop.permute.xlu0 %12683 }
0x24c1   : > { %v12685_v28 = vunpack.i.l.bf16 %v12684_v43 }
0x24c2   : > { %12160 = vmatpush3.bf16.xpose.msk.msra.mxu0 %vm13373_vm2, %v12155_v42 }
0x24c3   : > { %12163 = vmatprep.subr.msk.bf16.mxu0 %vm13373_vm2, %v12161_v14 }
0x24c4   : > { %v12694_v9 = vpop.permute.xlu0 %12693 }
0x24c5   : > { %v12695_v41 = vunpack.i.l.bf16 %v12694_v9 }
0x24c9   : > { %11763 = vmatmul.mubr.msk.f32.vlgmr.msra.gmra.mrb[32].mxu0 %vm1309_vm1, %v11753_v20 }
0x24ca   : > { %12166 = vmatpush3.bf16.xpose.msk.msra.mxu0 %vm13373_vm2, %v12161_v14  ;;  %11773 = vmatprep.mubr.msk.f32.mxu0 %vm1309_vm1, %v14009_v63  ;;  %v12656_v63 = vunpack.i.h.bf16 %v12654_v8 }
0x24cb   : > { %12169 = vmatprep.subr.msk.bf16.mxu0 %vm13373_vm2, %v12167_v24 }
0x24cc   : > { %v12205_v59 = vpack.c.bf16 %v12656_v63, %v12655_v11 }
0x24d2   : > { %12172 = vmatpush3.bf16.xpose.msk.msra.mxu0 %vm13373_vm2, %v12167_v24  ;;  %v10729_v24 = vld [vmem:[%s14605_s0] ss:$0 sm:$0xff]  ;;  %s902_s0 = scalar_lea.vmem %s13316_s4, %s14614_s1 }
0x24d3   : > { %12185 = vmatprep.subr.msk.bf16.mxu0 %vm13373_vm2, %v12183_v49 }
0x24d9   : > { %11774 = vmatmul.mubr.msk.f32.vlgmr.msra.gmra.mrb[32].mxu0 %vm1309_vm1, %v14007_v7  ;;  %v12661_v7 = vunpack.i.h.bf16 %v12659_v60 }
0x24da   : > { %12188 = vmatpush3.bf16.xpose.msk.msra.mxu0 %vm13373_vm2, %v12183_v49  ;;  %11798 = vmatprep.mubr.msk.f32.mxu0 %vm1309_vm1, %v14037_v50  ;;  %v12666_v50 = vunpack.i.h.bf16 %v12664_v30  ;;  %v5559_v30 = vld [vmem:[%s14606_s18 + $0x38] sm:$0xff] }
0x24db   : > { %12191 = vmatprep.subr.msk.bf16.mxu0 %vm13373_vm2, %v12189_v58  ;;  %v12211_v45 = vpack.c.bf16 %v12661_v7, %v12660_v23  ;;  %v5552_v23 = vld [vmem:[%s14606_s18] sm:$0xff] }
0x24dc   : > { %v12227_v3 = vpack.c.bf16 %v12666_v50, %v12665_v61  ;;  %v5567_v61 = vld [vmem:[%s14606_s18 + $0x78] sm:$0xff] }
0x24e2   : > { %12194 = vmatpush3.bf16.xpose.msk.msra.mxu0 %vm13373_vm2, %v12189_v58 }
0x24e3   : > { %12207 = vmatprep.subr.msk.bf16.mxu0 %vm13373_vm2, %v12205_v59 }
0x24e9   : > { %11799 = vmatmul.mubr.msk.f32.vlgmr.msra.gmra.mrb[32].mxu0 %vm1309_vm1, %v14035_v13  ;;  %v12671_v13 = vunpack.i.h.bf16 %v12669_v51  ;;  %v10746_v51 = vcombine.low %v5559_v30, %v5567_v61 }
0x24ea   : > { %12210 = vmatpush3.bf16.xpose.msk.msra.mxu0 %vm13373_vm2, %v12205_v59  ;;  %11823 = vmatprep.mubr.msk.f32.mxu0 %vm1309_vm1, %v14061_v16  ;;  %v12676_v16 = vunpack.i.h.bf16 %v12674_v52  ;;  %v5575_v52 = vld [vmem:[%s14606_s18 + $0xb8] sm:$0xff] }
0x24eb   : > { %12213 = vmatprep.subr.msk.bf16.mxu0 %vm13373_vm2, %v12211_v45  ;;  %v12233_v12 = vpack.c.bf16 %v12671_v13, %v12670_v48  ;;  %v10747_v13 = vcombine.high %v5559_v30, %v5567_v61  ;;  %v5568_v48 = vld [vmem:[%s14606_s18 + $0x80] sm:$0xff]  ;;  %v12849_v61 = vld [vmem:[%s14607_s23 + $0x98] sm:$0xff]  }
0x24ec   : > { %v12249_v20 = vpack.c.bf16 %v12676_v16, %v12675_v29  ;;  %v5583_v29 = vld [vmem:[%s14606_s18 + $0xf8] sm:$0xff] }
0x24f2   : > { %12216 = vmatpush3.bf16.xpose.msk.msra.mxu0 %vm13373_vm2, %v12211_v45  ;;  %v5560_v45 = vld [vmem:[%s14606_s18 + $0x40] sm:$0xff] }
0x24f3   : > { %12229 = vmatprep.subr.msk.bf16.mxu0 %vm13373_vm2, %v12227_v3  ;;  %v10733_v50 = vcombine.high %v5552_v23, %v5560_v45 }
0x24f5   : > { %8628 = vmatprep.subr.bf16.mxu1 %v10733_v50 }
0x24f9   : > { %11824 = vmatmul.mubr.msk.f32.vlgmr.msra.gmra.mrb[32].mxu0 %vm1309_vm1, %v14059_v6  ;;  %v12681_v6 = vunpack.i.h.bf16 %v12679_v22  ;;  %v10762_v22 = vcombine.low %v5575_v52, %v5583_v29 }
0x24fa   : > { %12232 = vmatpush3.bf16.xpose.msk.msra.mxu0 %vm13373_vm2, %v12227_v3  ;;  %11848 = vmatprep.mubr.msk.f32.mxu0 %vm1309_vm1, %v14085_v10  ;;  %v12686_v10 = vunpack.i.h.bf16 %v12684_v43  ;;  %v10732_v3 = vcombine.low %v5552_v23, %v5560_v45  ;;  %v5563_v23 = vld [vmem:[%s14606_s18 + $0x58] sm:$0xff] }
0x24fb   : > { %12235 = vmatprep.subr.msk.bf16.mxu0 %vm13373_vm2, %v12233_v12  ;;  %v12255_v26 = vpack.c.bf16 %v12681_v6, %v12680_v25  ;;  %v10763_v6 = vcombine.high %v5575_v52, %v5583_v29  ;;  %v5553_v25 = vld [vmem:[%s14606_s18 + $0x8] sm:$0xff]  ;;  %v12847_v45 = vld [vmem:[%s14607_s23 + $0xd8] sm:$0xff]   ;;  %v5564_v52 = vld [vmem:[%s14606_s18 + $0x60] sm:$0xff] }
0x24fc   : > { %v12271_v32 = vpack.c.bf16 %v12686_v10, %v12685_v28  ;;  %8629 = vmatpush1.bf16.msra.mxu1 %v10732_v3  ;;  %v12835_v28 = vld [vmem:[%s14607_s23 + $0xc0] sm:$0xff]   ;;  %v5571_v3 = vld [vmem:[%s14606_s18 + $0x98] sm:$0xff] }
0x2502   : > { %12238 = vmatpush3.bf16.xpose.msk.msra.mxu0 %vm13373_vm2, %v12233_v12  ;;  %v5576_v12 = vld [vmem:[%s14606_s18 + $0xc0] sm:$0xff] }
0x2503   : > { %12251 = vmatprep.subr.msk.bf16.mxu0 %vm13373_vm2, %v12249_v20  ;;  %v10749_v16 = vcombine.high %v5568_v48, %v5576_v12 }
0x2505   : > { %8630 = vmatprep.subr.bf16.mxu1 %v10749_v16 }
0x2509   : > { %11849 = vmatmul.mubr.msk.f32.vlgmr.msra.gmra.mrb[32].mxu0 %vm1309_vm1, %v14083_v27  ;;  %v12691_v27 = vunpack.i.h.bf16 %v12689_v40 }
0x250a   : > { %12254 = vmatpush3.bf16.xpose.msk.msra.mxu0 %vm13373_vm2, %v12249_v20  ;;  %11873 = vmatprep.mubr.msk.f32.mxu0 %vm1309_vm1, %v14109_v19  ;;  %v12696_v19 = vunpack.i.h.bf16 %v12694_v9  ;;  %v10748_v20 = vcombine.low %v5568_v48, %v5576_v12  ;;  %v5556_v12 = vld [vmem:[%s14606_s18 + $0x20] sm:$0xff] }
0x250b   : > { %12257 = vmatprep.subr.msk.bf16.mxu0 %vm13373_vm2, %v12255_v26  ;;  %v12277_v39 = vpack.c.bf16 %v12691_v27, %v12690_v34  ;;  %v10741_v29 = vcombine.high %v5556_v12, %v5564_v52 }
0x250c   : > { %v12293_v42 = vpack.c.bf16 %v12696_v19, %v12695_v41  ;;  %8631 = vmatpush1.bf16.msra.mxu1 %v10748_v20  ;;  %v5572_v20 = vld [vmem:[%s14606_s18 + $0xa0] sm:$0xff] }
0x2512   : > { %12260 = vmatpush3.bf16.xpose.msk.msra.mxu0 %vm13373_vm2, %v12255_v26  ;;  %v5561_v26 = vld [vmem:[%s14606_s18 + $0x48] sm:$0xff] }
0x2513   : > { %12273 = vmatprep.subr.msk.bf16.mxu0 %vm13373_vm2, %v12271_v32  ;;  %v10735_v43 = vcombine.high %v5553_v25, %v5561_v26  ;;  %v10734_v10 = vcombine.low %v5553_v25, %v5561_v26  ;;  %v5557_v26 = vld [vmem:[%s14606_s18 + $0x28] sm:$0xff] }
0x2515   : > { %8671 = vmatprep.subr.bf16.mxu1 %v10735_v43  ;;  %v5565_v43 = vld [vmem:[%s14606_s18 + $0x68] sm:$0xff] }
0x2519   : > { %11874 = vmatmul.mubr.msk.f32.vlgmr.msra.gmra.mrb[32].mxu0 %vm1309_vm1, %v14107_v18  ;;  %v12701_v18 = vunpack.i.h.bf16 %v12699_v4 }
0x251a   : > { %12276 = vmatpush3.bf16.xpose.msk.msra.mxu0 %vm13373_vm2, %v12271_v32  ;;  %11898 = vmatprep.mubr.msk.f32.mxu0 %vm1309_vm1, %v14148_v35 }
0x251b   : > { %12279 = vmatprep.subr.msk.bf16.mxu0 %vm13373_vm2, %v12277_v39  ;;  %v12299_v17 = vpack.c.bf16 %v12701_v18, %v12700_v0 }
0x2522   : > { %12282 = vmatpush3.bf16.xpose.msk.msra.mxu0 %vm13373_vm2, %v12277_v39 }
0x2523   : > { %12295 = vmatprep.subr.msk.bf16.mxu0 %vm13373_vm2, %v12293_v42 }
0x2529   : > { %11899 = vmatmul.mubr.msk.f32.vlgmr.msra.gmra.mrb[32].mxu0 %vm1309_vm1, %v14146_v36 }
0x252a   : > { %12298 = vmatpush3.bf16.xpose.msk.msra.mxu0 %vm13373_vm2, %v12293_v42  ;;  %v10730_v42 = vld [vmem:[%s14608_s26] ss:$0 sm:$0xff] }
0x252b   : > { %12301 = vmatprep.subr.msk.bf16.mxu0 %vm13373_vm2, %v12299_v17 }
0x2532   : > { %12304 = vmatpush3.bf16.xpose.msk.msra.mxu0 %vm13373_vm2, %v12299_v17  ;;  %v10731_v17 = vld [vmem:[%s14609_s28] ss:$0 sm:$0xff] }
0x2533   : > { %8929 = vmatprep.subr.bf16.mxu0 %v10747_v13 }
0x2591   : > { %v11914_v35 = vpop.f32.mrb[100].mxu1 }
0x2592   : > { %v8222_v14 = vpop.f32.mrb[101].mxu1 }
0x2593   : > { %11923 = vmatprep.mubr.msk.f32.mxu0 %vm1309_vm1, %v8222_v14  ;;  %v5569_v14 = vld [vmem:[%s14606_s18 + $0x88] sm:$0xff] }
0x2594   : > { %11924 = vmatmul.mubr.msk.f32.vlgmr.msra.gmra.mrb[32].mxu0 %vm1309_vm1, %v11914_v35 }
0x2595   : > { %8961 = vmatprep.mubr.bf16.mxu0 %v13162_v62  ;;  %8930 = vmatpush1.bf16.msra.mxu0 %v10746_v51  ;;  %v5579_v51 = vld [vmem:[%s14606_s18 + $0xd8] sm:$0xff] }
0x2596   : > { %8931 = vmatprep.subr.bf16.mxu0 %v10763_v6  ;;  %v10755_v48 = vcombine.high %v5571_v3, %v5579_v51  ;;  %v10754_v16 = vcombine.low %v5571_v3, %v5579_v51  ;;  %v10740_v6 = vcombine.low %v5556_v12, %v5564_v52  ;;  %v12867_v3 = vld [vmem:[%s14607_s23 + $0x1c0] sm:$0xff]  }
0x2597   : > { %v14375_v51 = vld [vmem:[%s14610_s11] sm:$0xff] }
0x2598   : > { %v8392_v52 = vrot.slane %v14375_v51, %v13776_v46 }
0x2599   : > { %8932 = vmatpush1.bf16.msra.mxu0 %v10762_v22  ;;  %v5580_v22 = vld [vmem:[%s14606_s18 + $0xe0] sm:$0xff] }
0x259a   : > { %11344 = vmatprep.subr.bf16.mxu0 %v12835_v28  ;;  %v10757_v25 = vcombine.high %v5572_v20, %v5580_v22  ;;  %v10743_v28 = vcombine.high %v5557_v26, %v5565_v43 }
0x2667   : > { %v11925_v5 = vpop.f32.mrb[32].mxu0 }
0x2668   : > { %v8331_v36 = vadd.f32 %v11925_v5, %v13950_v2  ;;  %v8319_v15 = vpop.f32.mrb[33].mxu0 }
0x2669   : > { %v8330_v47 = vadd.f32 %v8319_v15, %v13948_v1 }
0x266a   : > { %v8339_v49 = vadd.f32 %v10729_v24, %v8331_v36 }
0x266b   : > { %v8338_v53 = vadd.f32 %v10729_v24, %v8330_v47  ;;  %v5577_v24 = vld [vmem:[%s14606_s18 + $0xc8] sm:$0xff] }
0x266c   : > { %v8343_v21 = vsel %vm1221_vm0, %v8339_v49, 0.0  ;;  %v10751_v47 = vcombine.high %v5569_v14, %v5577_v24 }
0x266d   : > { %8344 = vadd.xlane.f32.xlu1 %v8343_v21  ;;  %v8340_v54 = vsel %vm1221_vm0, %v8338_v53, 0.0  ;;  %v5562_v21 = vld [vmem:[%s14606_s18 + $0x50] sm:$0xff] }
0x266e   : > { %8341 = vadd.xlane.f32.xlu0 %v8340_v54  ;;  %v12839_v54 = vld [vmem:[%s14607_s23 + $0xc8] sm:$0xff]  }
0x26fa   : > { %v8345_v57 = vpop.xlane.xlu1 %8344 }
0x26fb   : > { %v8347_v58 = vmul.f32 0.03125, %v8345_v57  ;;  %v8342_v8 = vpop.xlane.xlu0 %8341  ;;  %v10750_v57 = vcombine.low %v5569_v14, %v5577_v24  ;;  %v12831_v14 = vld [vmem:[%s14607_s23] sm:$0xff]   ;;  %v12832_v24 = vld [vmem:[%s14607_s23 + $0x48] sm:$0xff]  }
0x26fc   : > { %v8346_v63 = vmul.f32 0.03125, %v8342_v8  ;;  %v12841_v8 = vld [vmem:[%s14607_s23 + $0x88] sm:$0xff]  }
0x26fd   : > { %v8349_v2 = vsub.f32 %v8339_v49, %v8347_v58  ;;  %v12837_v49 = vld [vmem:[%s14607_s23 + $0x80] sm:$0xff]  }
0x26fe   : > { %v8348_v11 = vsub.f32 %v8338_v53, %v8346_v63  ;;  %v5554_v53 = vld [vmem:[%s14606_s18 + $0x10] sm:$0xff] }
0x26ff   : > { %v8351_v60 = vmul.f32 %v8349_v2, %v8349_v2  ;;  %v10737_v58 = vcombine.high %v5554_v53, %v5562_v21  ;;  %v5570_v63 = vld [vmem:[%s14606_s18 + $0x90] sm:$0xff] }
0x2700   : > { %v8350_v59 = vmul.f32 %v8348_v11, %v8348_v11 }
0x2701   : > { %v8355_v7 = vsel %vm1221_vm0, %v8351_v60, 0.0  ;;  %v12845_v60 = vld [vmem:[%s14607_s23 + $0x90] sm:$0xff]  }
0x2702   : > { %v8352_v1 = vsel %vm1221_vm0, %v8350_v59, 0.0  ;;  %v10736_v59 = vcombine.low %v5554_v53, %v5562_v21  ;;  %v12838_v53 = vld [vmem:[%s14607_s23 + $0x58] sm:$0xff]  }
0x2703   : > { %8353 = vadd.xlane.f32.xlu0 %v8352_v1  ;;  %v12840_v21 = vld [vmem:[%s14607_s23 + $0x18] sm:$0xff]  }
0x2707   : > { %8356 = vadd.xlane.f32.xlu0 %v8355_v7  ;;  %v5555_v7 = vld [vmem:[%s14606_s18 + $0x18] sm:$0xff] }
0x2708   : > { %v10739_v50 = vcombine.high %v5555_v7, %v5563_v23  ;;  %v10738_v13 = vcombine.low %v5555_v7, %v5563_v23  ;;  %v12857_v7 = vld [vmem:[%s14607_s23 + $0xa8] sm:$0xff]   ;;  %v12858_v23 = vld [vmem:[%s14607_s23 + $0xf0] sm:$0xff]  }
0x2790   : > { %v8354_v32 = vpop.xlane.xlu0 %8353 }
0x2791   : > { %v8358_v40 = vmul.f32 0.03125, %v8354_v32  ;;  %v5573_v32 = vld [vmem:[%s14606_s18 + $0xa8] sm:$0xff] }
0x2793   : > { %v8360_v27 = vadd.f32 1e-05, %v8358_v40  ;;  %v5581_v40 = vld [vmem:[%s14606_s18 + $0xe8] sm:$0xff] }
0x2794   : > { %v8357_v34 = vpop.xlane.xlu0 %8356 }
0x2795   : > { %13094 = vrsqrt.f32 %v8360_v27  ;;  %v8359_v39 = vmul.f32 0.03125, %v8357_v34  ;;  %v10742_v27 = vcombine.low %v5557_v26, %v5565_v43  ;;  %v10759_v34 = vcombine.high %v5573_v32, %v5581_v40 }
0x2797   : > { %v8361_v9 = vadd.f32 1e-05, %v8359_v39  ;;  %v5558_v39 = vld [vmem:[%s14606_s18 + $0x30] sm:$0xff] }
0x2799   : > { %13096 = vrsqrt.f32 %v8361_v9  ;;  %v5566_v9 = vld [vmem:[%s14606_s18 + $0x70] sm:$0xff] }
0x279f   : > { %v13095_v19 = vpop.eup %13094 }
0x27a0   : > { %v8364_v41 = vmul.f32 %v13095_v19, %v8348_v11  ;;  %v12843_v11 = vld [vmem:[%s14607_s23 + $0xd0] sm:$0xff]   ;;  %v10758_v19 = vcombine.low %v5573_v32, %v5581_v40 }
0x27a2   : > { %v8372_v18 = vmul.f32 %v10730_v42, %v8364_v41  ;;  %v10745_v41 = vcombine.high %v5558_v39, %v5566_v9 }
0x27a3   : > { %v13097_v4 = vpop.eup %13096 }
0x27a4   : > { %v8365_v0 = vmul.f32 %v13097_v4, %v8349_v2  ;;  %v14291_v5 = vadd.f32 %v10731_v17, %v8372_v18  ;;  %v5578_v2 = vld [vmem:[%s14606_s18 + $0xd0] sm:$0xff]  ;;  %v10744_v18 = vcombine.low %v5558_v39, %v5566_v9 }
0x27a5   : > { %v10753_v1 = vcombine.high %v5570_v63, %v5578_v2  ;;  %v10752_v30 = vcombine.low %v5570_v63, %v5578_v2  ;;  %v5582_v4 = vld [vmem:[%s14606_s18 + $0xf0] sm:$0xff]  ;;  %v12851_v63 = vld [vmem:[%s14607_s23 + $0xe0] sm:$0xff]  }
0x27a6   : > { %v8373_v35 = vmul.f32 %v10730_v42, %v8365_v0  ;;  %v5574_v42 = vld [vmem:[%s14606_s18 + $0xb0] sm:$0xff] }
0x27a7   : > { %v10761_v0 = vcombine.high %v5574_v42, %v5582_v4  ;;  %v12852_v2 = vld [vmem:[%s14607_s23 + $0x30] sm:$0xff]  }
0x27a8   : > { %v14293_v36 = vadd.f32 %v10731_v17, %v8373_v35  ;;  %v10760_v17 = vcombine.low %v5574_v42, %v5582_v4  ;;  %v12830_v35 = vld [vmem:[%s14607_s23 + $0x40] sm:$0xff]   ;;  %v8400_v42 = vrot.slane %v14375_v51, %v13790_v56 }
0x27aa   : > { %v14297_v15 = vpack.c.bf16 %v14293_v36, %v14291_v5 }
0x27ac   : > { %10764 = vmatmul.mubr.msk.bf16.vlgmr.msra.gmra.mrb[104].mxu1 %vm1221_vm0, %v14297_v15  ;;  %10771 = vmatmul.mubr.msk.bf16.vlgmr.msra.gmra.mrb[36].mxu0 %vm1221_vm0, %v14297_v15 }
0x27ad   : > { %8672 = vmatpush1.bf16.msra.mxu1 %v10734_v10  ;;  %8703 = vmatprep.mubr.bf16.mxu1 %v13162_v62  ;;  %v10756_v10 = vcombine.low %v5572_v20, %v5580_v22 }
0x27ae   : > { %8673 = vmatprep.subr.bf16.mxu1 %v10751_v47  ;;  %11345 = vmatpush3.bf16.msra.mxu0 %v12837_v49  ;;  %v12833_v47 = vld [vmem:[%s14607_s23 + $0x8] sm:$0xff]   ;;  %v12834_v49 = vld [vmem:[%s14607_s23 + $0x50] sm:$0xff]  }
0x27af   : > { %11346 = vmatprep.subr.bf16.mxu0 %v12839_v54  ;;  %v12842_v54 = vld [vmem:[%s14607_s23 + $0x60] sm:$0xff]  }
0x27b1   : > { %8674 = vmatpush1.bf16.msra.mxu1 %v10750_v57  ;;  %v12846_v57 = vld [vmem:[%s14607_s23 + $0x68] sm:$0xff]  }
0x27b2   : > { %8714 = vmatprep.subr.bf16.mxu1 %v10737_v58  ;;  %11347 = vmatpush3.bf16.msra.mxu0 %v12841_v8  ;;  %v12848_v58 = vld [vmem:[%s14607_s23 + $0x28] sm:$0xff]   ;;  %v12850_v8 = vld [vmem:[%s14607_s23 + $0x70] sm:$0xff]  }
0x27b3   : > { %11348 = vmatprep.subr.bf16.mxu0 %v12843_v11  ;;  %v12853_v11 = vld [vmem:[%s14607_s23 + $0xa0] sm:$0xff]  }
0x27b4   : > { %10765 = vmatmul.mubr.msk.bf16.vlgmr.msra.gmra.mrb[108].mxu1 %vm1221_vm0, %v14297_v15 }
0x27b5   : > { %8715 = vmatpush1.bf16.msra.mxu1 %v10736_v59  ;;  %8746 = vmatprep.mubr.bf16.mxu1 %v13162_v62  ;;  %v12854_v59 = vld [vmem:[%s14607_s23 + $0x78] sm:$0xff]  }
0x27b6   : > { %8716 = vmatprep.subr.bf16.mxu1 %v10753_v1  ;;  %11349 = vmatpush3.bf16.msra.mxu0 %v12845_v60  ;;  %v12855_v1 = vld [vmem:[%s14607_s23 + $0xe8] sm:$0xff]   ;;  %v12856_v60 = vld [vmem:[%s14607_s23 + $0x38] sm:$0xff]  }
0x27b7   : > { %11350 = vmatprep.subr.bf16.mxu0 %v12847_v45  ;;  %v12859_v45 = vld [vmem:[%s14607_s23 + $0x140] sm:$0xff]  }
0x27b9   : > { %8717 = vmatpush1.bf16.msra.mxu1 %v10752_v30  ;;  %v12860_v30 = vld [vmem:[%s14607_s23 + $0xb0] sm:$0xff]  }
0x27ba   : > { %8757 = vmatprep.subr.bf16.mxu1 %v10739_v50  ;;  %11351 = vmatpush3.bf16.msra.mxu0 %v12849_v61  ;;  %v12862_v50 = vld [vmem:[%s14607_s23 + $0xf8] sm:$0xff]  }
0x27bb   : > { %11352 = vmatprep.subr.bf16.mxu0 %v12851_v63  ;;  %v12864_v61 = vld [vmem:[%s14607_s23 + $0xb8] sm:$0xff]  }
0x27bc   : > { %10766 = vmatmul.mubr.msk.bf16.vlgmr.msra.gmra.mrb[112].mxu1 %vm1221_vm0, %v14297_v15 }
0x27bd   : > { %8758 = vmatpush1.bf16.msra.mxu1 %v10738_v13  ;;  %8789 = vmatprep.mubr.bf16.mxu1 %v13162_v62  ;;  %v14378_v13 = vld [vmem:[%s14610_s11 + $0x8] sm:$0xff] }
0x27be   : > { %8759 = vmatprep.subr.bf16.mxu1 %v10755_v48  ;;  %11353 = vmatpush3.bf16.msra.mxu0 %v12853_v11  ;;  %v8388_v48 = vrot.slane %v14375_v51, %v13766_v37  ;;  %v8444_v12 = vrot.slane %v14378_v13, %v13768_v44 }
0x27bf   : > { %11354 = vmatprep.subr.bf16.mxu0 %v12855_v1 }
0x27c1   : > { %8760 = vmatpush1.bf16.msra.mxu1 %v10754_v16  ;;  %v8448_v16 = vrot.slane %v14378_v13, %v13778_v38 }
0x27c2   : > { %8800 = vmatprep.subr.bf16.mxu1 %v10741_v29  ;;  %11355 = vmatpush3.bf16.msra.mxu0 %v12857_v7 }
0x27c3   : > { %11356 = vmatprep.subr.bf16.mxu0 %v12858_v23 }
0x27c4   : > { %10767 = vmatmul.mubr.msk.bf16.vlgmr.msra.gmra.mrb[116].mxu1 %vm1221_vm0, %v14297_v15 }
0x27c5   : > { %8801 = vmatpush1.bf16.msra.mxu1 %v10740_v6  ;;  %8832 = vmatprep.mubr.bf16.mxu1 %v13162_v62 }
0x27c6   : > { %8802 = vmatprep.subr.bf16.mxu1 %v10757_v25  ;;  %11357 = vmatpush3.bf16.msra.mxu0 %v12860_v30  ;;  %v12866_v30 = vld [vmem:[%s14607_s23 + $0x150] sm:$0xff]  }
0x27c7   : > { %11358 = vmatprep.subr.bf16.mxu0 %v12862_v50 }
0x27c9   : > { %8803 = vmatpush1.bf16.msra.mxu1 %v10756_v10 }
0x27ca   : > { %8843 = vmatprep.subr.bf16.mxu1 %v10743_v28  ;;  %11359 = vmatpush3.bf16.msra.mxu0 %v12864_v61 }
0x27cb   : > { %11388 = vmatprep.subr.bf16.mxu0 %v12867_v3  ;;  %v8408_v3 = vrot.slane %v14375_v51, %v13804_v33 }
0x27cc   : > { %10768 = vmatmul.mubr.msk.bf16.vlgmr.msra.gmra.mrb[120].mxu1 %vm1221_vm0, %v14297_v15 }
0x27cd   : > { %8844 = vmatpush1.bf16.msra.mxu1 %v10742_v27  ;;  %8875 = vmatprep.mubr.bf16.mxu1 %v13162_v62 }
0x27ce   : > { %8845 = vmatprep.subr.bf16.mxu1 %v10759_v34 }
0x27d1   : > { %8846 = vmatpush1.bf16.msra.mxu1 %v10758_v19 }
0x27d2   : > { %8886 = vmatprep.subr.bf16.mxu1 %v10745_v41  ;;  %v8396_v41 = vrot.slane %v14375_v51, %v13788_v55 }
0x27d4   : > { %10769 = vmatmul.mubr.msk.bf16.vlgmr.msra.gmra.mrb[124].mxu1 %vm1221_vm0, %v14297_v15 }
0x27d5   : > { %8887 = vmatpush1.bf16.msra.mxu1 %v10744_v18  ;;  %8918 = vmatprep.mubr.bf16.mxu1 %v13162_v62  ;;  %v12836_v62 = vld [vmem:[%s14607_s23 + $0x10] sm:$0xff]  }
0x27d6   : > { %8888 = vmatprep.subr.bf16.mxu1 %v10761_v0 }
0x27d9   : > { %8889 = vmatpush1.bf16.msra.mxu1 %v10760_v17 }
0x27da   : > { %11322 = vmatprep.subr.bf16.mxu1 %v12830_v35 }
0x27dc   : > { %10770 = vmatmul.mubr.msk.bf16.vlgmr.msra.gmra.mrb[128].mxu1 %vm1221_vm0, %v14297_v15  ;;  %v12844_v15 = vld [vmem:[%s14607_s23 + $0x20] sm:$0xff]  }
0x27dd   : > { %11323 = vmatpush3.bf16.msra.mxu1 %v12831_v14 }
0x27de   : > { %11324 = vmatprep.subr.bf16.mxu1 %v12832_v24 }
0x27e1   : > { %11325 = vmatpush3.bf16.msra.mxu1 %v12833_v47 }
0x27e2   : > { %11326 = vmatprep.subr.bf16.mxu1 %v12834_v49 }
0x27e5   : > { %11327 = vmatpush3.bf16.msra.mxu1 %v12836_v62 }
0x27e6   : > { %11328 = vmatprep.subr.bf16.mxu1 %v12838_v53 }
0x27e9   : > { %11329 = vmatpush3.bf16.msra.mxu1 %v12840_v21 }
0x27ea   : > { %11330 = vmatprep.subr.bf16.mxu1 %v12842_v54 }
0x27ed   : > { %11331 = vmatpush3.bf16.msra.mxu1 %v12844_v15  ;;  %v12861_v15 = vld [vmem:[%s14607_s23 + $0x100] sm:$0xff]  }
0x27ee   : > { %11332 = vmatprep.subr.bf16.mxu1 %v12846_v57 }
0x27f1   : > { %11333 = vmatpush3.bf16.msra.mxu1 %v12848_v58 }
0x27f2   : > { %11334 = vmatprep.subr.bf16.mxu1 %v12850_v8  ;;  %v12863_v8 = vld [vmem:[%s14607_s23 + $0x148] sm:$0xff]  }
0x27f5   : > { %11335 = vmatpush3.bf16.msra.mxu1 %v12852_v2 }
0x27f6   : > { %11336 = vmatprep.subr.bf16.mxu1 %v12854_v59 }
0x27f9   : > { %11337 = vmatpush3.bf16.msra.mxu1 %v12856_v60  ;;  %v12865_v60 = vld [vmem:[%s14607_s23 + $0x108] sm:$0xff]  }
0x27fa   : > { %11366 = vmatprep.subr.bf16.mxu1 %v12859_v45  ;;  %v8404_v45 = vrot.slane %v14375_v51, %v13802_v31 }
0x287f   : > { %v8662_v29 = vpop.f32.mrb[104].mxu1  ;;  %v8963_v20 = vpop.f32.mrb[36].mxu0 }
0x2880   : > { %v8663_v22 = vadd.f32 %v8662_v29, %v8388_v48  ;;  %v8964_v6 = vadd.f32 %v8963_v20, %v8444_v12  ;;  %v8664_v25 = vpop.f32.mrb[105].mxu1  ;;  %v8965_v26 = vpop.f32.mrb[37].mxu0  ;;  %v12869_v29 = vld [vmem:[%s14607_s23 + $0x180] sm:$0xff]  }
0x2881   : > { %v8665_v43 = vadd.f32 %v8664_v25, %v8392_v52  ;;  %v8966_v10 = vadd.f32 %v8965_v26, %v8448_v16  ;;  %v8666_v28 = vpop.f32.mrb[106].mxu1  ;;  %v8967_v32 = vpop.f32.mrb[38].mxu0  ;;  %v12871_v25 = vld [vmem:[%s14607_s23 + $0x1c8] sm:$0xff]  }
0x2882   : > { %v8667_v40 = vadd.f32 %v8666_v28, %v8388_v48  ;;  %v8968_v27 = vadd.f32 %v8967_v32, %v8444_v12  ;;  %v8668_v34 = vpop.f32.mrb[107].mxu1  ;;  %v8969_v39 = vpop.f32.mrb[39].mxu0  ;;  %v8972_v4 = vmax.f32 %v8663_v22, 0.0  ;;  %v8986_v18 = vmax.f32 %v8964_v6, 0.0  ;;  %v12870_v6 = vld [vmem:[%s14607_s23 + $0x158] sm:$0xff]  }
0x2883   : > { %v8669_v9 = vadd.f32 %v8668_v34, %v8392_v52  ;;  %v8970_v19 = vadd.f32 %v8969_v39, %v8448_v16  ;;  %v8973_v35 = vmax.f32 %v8665_v43, 0.0  ;;  %v8987_v14 = vmax.f32 %v8966_v10, 0.0  ;;  %v12868_v16 = vld [vmem:[%s14607_s23 + $0x110] sm:$0xff]  }
0x2884   : > { %v8988_v0 = vmax.f32 %v8667_v40, 0.0  ;;  %v9002_v17 = vmax.f32 %v8968_v27, 0.0  ;;  %v12872_v40 = vld [vmem:[%s14607_s23 + $0x118] sm:$0xff]   ;;  %v12873_v27 = vld [vmem:[%s14607_s23 + $0x188] sm:$0xff]  }
0x2885   : > { %v8989_v24 = vmax.f32 %v8669_v9, 0.0  ;;  %v9003_v47 = vmax.f32 %v8970_v19, 0.0  ;;  %v8412_v9 = vrot.slane %v14375_v51, %v13768_v44  ;;  %v12874_v19 = vld [vmem:[%s14607_s23 + $0x160] sm:$0xff]  }
0x2886   : > { %v9004_v49 = vpack.c.bf16 %v8988_v0, %v8972_v4  ;;  %v14392_v62 = vpack.c.bf16 %v9002_v17, %v8986_v18  ;;  %v8416_v18 = vrot.slane %v14375_v51, %v13778_v38 }
0x2887   : > { %v9005_v53 = vpack.c.bf16 %v8989_v24, %v8973_v35  ;;  %v14394_v21 = vpack.c.bf16 %v9003_v47, %v8987_v14  ;;  %v8705_v54 = vpop.f32.mrb[108].mxu1  ;;  %v12876_v14 = vld [vmem:[%s14607_s23 + $0x120] sm:$0xff]   ;;  %v12877_v24 = vld [vmem:[%s14607_s23 + $0x190] sm:$0xff]  }
0x2888   : > { %v8706_v57 = vadd.f32 %v8705_v54, %v8396_v41  ;;  %v8707_v58 = vpop.f32.mrb[109].mxu1 }
0x2889   : > { %v8708_v63 = vadd.f32 %v8707_v58, %v8400_v42  ;;  %v8709_v2 = vpop.f32.mrb[110].mxu1  ;;  %9826 = vmatprep.mubr.bf16.mxu1 %v9005_v53  ;;  %v12879_v53 = vld [vmem:[%s14607_s23 + $0x1d8] sm:$0xff]   ;;  %v12880_v58 = vld [vmem:[%s14607_s23 + $0x128] sm:$0xff]  }
0x288a   : > { %v8710_v11 = vadd.f32 %v8709_v2, %v8396_v41  ;;  %v8711_v59 = vpop.f32.mrb[111].mxu1  ;;  %9827 = vmatmul.mubr.bf16.vlgmr.msra.gmra.mrb[132].mxu1 %v9004_v49  ;;  %v8974_v7 = vmax.f32 %v8706_v57, 0.0  ;;  %v12875_v41 = vld [vmem:[%s14607_s23 + $0x1d0] sm:$0xff]   ;;  %v12878_v49 = vld [vmem:[%s14607_s23 + $0x168] sm:$0xff]  }
0x288b   : > { %v8712_v1 = vadd.f32 %v8711_v59, %v8400_v42  ;;  %11367 = vmatpush3.bf16.msra.mxu1 %v12861_v15  ;;  %v8975_v50 = vmax.f32 %v8708_v63, 0.0  ;;  %v12882_v59 = vld [vmem:[%s14607_s23 + $0x170] sm:$0xff]  }
0x288c   : > { %v8990_v23 = vmax.f32 %v8710_v11, 0.0  ;;  %11368 = vmatprep.subr.bf16.mxu1 %v12863_v8  ;;  %v12881_v8 = vld [vmem:[%s14607_s23 + $0x198] sm:$0xff]   ;;  %v8420_v11 = vrot.slane %v14378_v13, %v13766_v37 }
0x288d   : > { %v8991_v61 = vmax.f32 %v8712_v1, 0.0  ;;  %v12883_v1 = vld [vmem:[%s14607_s23 + $0x1e0] sm:$0xff]  }
0x288e   : > { %v9006_v48 = vpack.c.bf16 %v8990_v23, %v8974_v7  ;;  %v8424_v23 = vrot.slane %v14378_v13, %v13776_v46 }
0x288f   : > { %v9007_v12 = vpack.c.bf16 %v8991_v61, %v8975_v50  ;;  %11369 = vmatpush3.bf16.msra.mxu1 %v12865_v60  ;;  %v8748_v52 = vpop.f32.mrb[112].mxu1  ;;  %v12884_v61 = vld [vmem:[%s14607_s23 + $0x130] sm:$0xff]  }
0x2890   : > { %v8749_v20 = vadd.f32 %v8748_v52, %v8404_v45  ;;  %v8750_v22 = vpop.f32.mrb[113].mxu1  ;;  %11370 = vmatprep.subr.bf16.mxu1 %v12866_v30  ;;  %v12887_v52 = vld [vmem:[%s14607_s23 + $0x1e8] sm:$0xff]  }
0x2891   : > { %v8751_v26 = vadd.f32 %v8750_v22, %v8408_v3  ;;  %v8752_v43 = vpop.f32.mrb[114].mxu1  ;;  %9867 = vmatprep.mubr.bf16.mxu0 %v9007_v12  ;;  %v12886_v12 = vld [vmem:[%s14607_s23 + $0x178] sm:$0xff]  }
0x2892   : > { %v8753_v10 = vadd.f32 %v8752_v43, %v8404_v45  ;;  %v8754_v28 = vpop.f32.mrb[115].mxu1  ;;  %9868 = vmatmul.mubr.bf16.vlgmr.msra.gmra.mrb[40].mxu0 %v9006_v48  ;;  %v8976_v34 = vmax.f32 %v8749_v20, 0.0 }
0x2893   : > { %v8755_v32 = vadd.f32 %v8754_v28, %v8408_v3  ;;  %11371 = vmatpush3.bf16.msra.mxu1 %v12868_v16  ;;  %11389 = vmatpush3.bf16.msra.mxu0 %v12869_v29  ;;  %v8977_v42 = vmax.f32 %v8751_v26, 0.0  ;;  %v12885_v3 = vld [vmem:[%s14607_s23 + $0x1a0] sm:$0xff]   ;;  %v12890_v28 = vld [vmem:[%s14607_s23 + $0x1f0] sm:$0xff]  }
0x2894   : > { %v8992_v39 = vmax.f32 %v8753_v10, 0.0  ;;  %11372 = vmatprep.subr.bf16.mxu1 %v12870_v6  ;;  %11390 = vmatprep.subr.bf16.mxu0 %v12871_v25  ;;  %v12888_v6 = vld [vmem:[%s14607_s23 + $0x138] sm:$0xff]   ;;  %v12889_v25 = vld [vmem:[%s14607_s23 + $0x1a8] sm:$0xff]   ;;  %v8428_v10 = vrot.slane %v14378_v13, %v13788_v55 }
0x2895   : > { %v8993_v4 = vmax.f32 %v8755_v32, 0.0  ;;  %v12891_v32 = vld [vmem:[%s14607_s23 + $0x240] sm:$0xff]  }
0x2896   : > { %v14416_v0 = vpack.c.bf16 %v8992_v39, %v8976_v34  ;;  %v8432_v34 = vrot.slane %v14378_v13, %v13790_v56  ;;  %v12895_v56 = vld [vmem:[%s14607_s23 + $0x248] sm:$0xff]  }
0x2897   : > { %v9009_v17 = vpack.c.bf16 %v8993_v4, %v8977_v42  ;;  %11373 = vmatpush3.bf16.msra.mxu1 %v12872_v40  ;;  %11391 = vmatpush3.bf16.msra.mxu0 %v12873_v27  ;;  %v8791_v35 = vpop.f32.mrb[116].mxu1  ;;  %v12893_v42 = vld [vmem:[%s14607_s23 + $0x200] sm:$0xff]  }
0x2898   : > { %v8792_v44 = vadd.f32 %v8791_v35, %v8412_v9  ;;  %v8793_v47 = vpop.f32.mrb[117].mxu1  ;;  %11374 = vmatprep.subr.bf16.mxu1 %v12874_v19  ;;  %11392 = vmatprep.subr.bf16.mxu0 %v12875_v41  ;;  %v12892_v41 = vld [vmem:[%s14607_s23 + $0x1b0] sm:$0xff]  }
0x2899   : > { %v8794_v54 = vadd.f32 %v8793_v47, %v8416_v18  ;;  %v8795_v38 = vpop.f32.mrb[118].mxu1  ;;  %9908 = vmatprep.mubr.bf16.mxu1 %v9009_v17  ;;  %v12896_v47 = vld [vmem:[%s14607_s23 + $0x1b8] sm:$0xff]  }
0x289a   : > { %v8796_v51 = vadd.f32 %v8795_v38, %v8412_v9  ;;  %v8797_v15 = vpop.f32.mrb[119].mxu1  ;;  %v8978_v63 = vmax.f32 %v8792_v44, 0.0  ;;  %v8436_v38 = vrot.slane %v14378_v13, %v13802_v31 }
0x289b   : > { %v8798_v57 = vadd.f32 %v8797_v15, %v8416_v18  ;;  %11375 = vmatpush3.bf16.msra.mxu1 %v12876_v14  ;;  %11393 = vmatpush3.bf16.msra.mxu0 %v12877_v24  ;;  %v8979_v60 = vmax.f32 %v8794_v54, 0.0  ;;  %v12894_v18 = vld [vmem:[%s14607_s23 + $0x1f8] sm:$0xff]   ;;  %v12899_v15 = vld [vmem:[%s14607_s23 + $0x2c0] sm:$0xff]  }
0x289c   : > { %v8994_v2 = vmax.f32 %v8796_v51, 0.0  ;;  %11376 = vmatprep.subr.bf16.mxu1 %v12878_v49  ;;  %11394 = vmatprep.subr.bf16.mxu0 %v12879_v53  ;;  %v12897_v49 = vld [vmem:[%s14607_s23 + $0x208] sm:$0xff]   ;;  %v12898_v51 = vld [vmem:[%s14607_s23 + $0x250] sm:$0xff]  }
0x289d   : > { %v8995_v7 = vmax.f32 %v8798_v57, 0.0 }
0x289e   : > { %v14430_v45 = vpack.c.bf16 %v8994_v2, %v8978_v63 }
0x289f   : > { %v9011_v30 = vpack.c.bf16 %v8995_v7, %v8979_v60  ;;  %11377 = vmatpush3.bf16.msra.mxu1 %v12880_v58  ;;  %11395 = vmatpush3.bf16.msra.mxu0 %v12881_v8  ;;  %v8834_v50 = vpop.f32.mrb[120].mxu1  ;;  %v8440_v58 = vrot.slane %v14378_v13, %v13804_v33  ;;  %v12902_v60 = vld [vmem:[%s14607_s23 + $0x258] sm:$0xff]   ;;  %v12903_v33 = vld [vmem:[%s14607_s23 + $0x2c8] sm:$0xff]  }
0x28a0   : > { %v8835_v37 = vadd.f32 %v8834_v50, %v8420_v11  ;;  %v8836_v48 = vpop.f32.mrb[121].mxu1  ;;  %11378 = vmatprep.subr.bf16.mxu1 %v12882_v59  ;;  %11396 = vmatprep.subr.bf16.mxu0 %v12883_v1  ;;  %v12901_v59 = vld [vmem:[%s14607_s23 + $0x280] sm:$0xff]  }
0x28a1   : > { %v8837_v16 = vadd.f32 %v8836_v48, %v8424_v23  ;;  %v8838_v46 = vpop.f32.mrb[122].mxu1  ;;  %9949 = vmatprep.mubr.bf16.mxu0 %v9011_v30 }
0x28a2   : > { %v8839_v29 = vadd.f32 %v8838_v46, %v8420_v11  ;;  %v8840_v20 = vpop.f32.mrb[123].mxu1  ;;  %v8980_v26 = vmax.f32 %v8835_v37, 0.0  ;;  %v12900_v11 = vld [vmem:[%s14607_s23 + $0x210] sm:$0xff]  }
0x28a3   : > { %v8841_v22 = vadd.f32 %v8840_v20, %v8424_v23  ;;  %11379 = vmatpush3.bf16.msra.mxu1 %v12884_v61  ;;  %11397 = vmatpush3.bf16.msra.mxu0 %v12885_v3  ;;  %v8981_v40 = vmax.f32 %v8837_v16, 0.0  ;;  %v12904_v61 = vld [vmem:[%s14607_s23 + $0x218] sm:$0xff]   ;;  %v12905_v3 = vld [vmem:[%s14607_s23 + $0x288] sm:$0xff]   ;;  %v12908_v20 = vld [vmem:[%s14607_s23 + $0x220] sm:$0xff]  }
0x28a4   : > { %v8996_v43 = vmax.f32 %v8839_v29, 0.0  ;;  %11380 = vmatprep.subr.bf16.mxu1 %v12886_v12  ;;  %11398 = vmatprep.subr.bf16.mxu0 %v12887_v52  ;;  %v12906_v12 = vld [vmem:[%s14607_s23 + $0x260] sm:$0xff]   ;;  %v12907_v52 = vld [vmem:[%s14607_s23 + $0x2d0] sm:$0xff]  }
0x28a5   : > { %v8997_v27 = vmax.f32 %v8841_v22, 0.0  ;;  %v12909_v22 = vld [vmem:[%s14607_s23 + $0x290] sm:$0xff]  }
0x28a6   : > { %v14444_v39 = vpack.c.bf16 %v8996_v43, %v8980_v26  ;;  %v12912_v26 = vld [vmem:[%s14607_s23 + $0x228] sm:$0xff]   ;;  %v12913_v43 = vld [vmem:[%s14607_s23 + $0x298] sm:$0xff]  }
0x28a7   : > { %v9013_v9 = vpack.c.bf16 %v8997_v27, %v8981_v40  ;;  %11381 = vmatpush3.bf16.msra.mxu1 %v12888_v6  ;;  %11399 = vmatpush3.bf16.msra.mxu0 %v12889_v25  ;;  %v8877_v19 = vpop.f32.mrb[124].mxu1  ;;  %v12910_v6 = vld [vmem:[%s14607_s23 + $0x268] sm:$0xff]   ;;  %v12911_v25 = vld [vmem:[%s14607_s23 + $0x2d8] sm:$0xff]   ;;  %v12917_v40 = vld [vmem:[%s14607_s23 + $0x2a0] sm:$0xff]  }
0x28a8   : > { %v8878_v55 = vadd.f32 %v8877_v19, %v8428_v10  ;;  %v8879_v4 = vpop.f32.mrb[125].mxu1  ;;  %11400 = vmatprep.subr.bf16.mxu0 %v12890_v28  ;;  %11410 = vmatprep.subr.bf16.mxu1 %v12891_v32  ;;  %v12915_v28 = vld [vmem:[%s14607_s23 + $0x2e0] sm:$0xff]   ;;  %v12916_v32 = vld [vmem:[%s14607_s23 + $0x230] sm:$0xff]   ;;  %v12918_v27 = vld [vmem:[%s14607_s23 + $0x278] sm:$0xff]  }
0x28a9   : > { %v8880_v17 = vadd.f32 %v8879_v4, %v8432_v34  ;;  %v8881_v35 = vpop.f32.mrb[126].mxu1  ;;  %v12921_v19 = vld [vmem:[%s14607_s23 + $0x2a8] sm:$0xff]   ;;  %v12925_v4 = vld [vmem:[%s14607_s23 + $0x300] sm:$0xff]  }
0x28aa   : > { %v8882_v14 = vadd.f32 %v8881_v35, %v8428_v10  ;;  %9909 = vmatmul.mubr.bf16.vlgmr.msra.gmra.mrb[136].mxu1 %v14416_v0  ;;  %v8883_v24 = vpop.f32.mrb[127].mxu1  ;;  %v8982_v53 = vmax.f32 %v8878_v55, 0.0  ;;  %v12914_v10 = vld [vmem:[%s14607_s23 + $0x270] sm:$0xff]   ;;  %v12928_v35 = vld [vmem:[%s14607_s23 + $0x2b8] sm:$0xff]  }
0x28ab   : > { %v8884_v44 = vadd.f32 %v8883_v24, %v8432_v34  ;;  %11401 = vmatpush3.bf16.msra.mxu0 %v12892_v41  ;;  %11411 = vmatpush3.bf16.msra.mxu1 %v12893_v42  ;;  %v8983_v57 = vmax.f32 %v8880_v17, 0.0  ;;  %v12919_v34 = vld [vmem:[%s14607_s23 + $0x2e8] sm:$0xff]   ;;  %v12922_v41 = vld [vmem:[%s14607_s23 + $0x2f0] sm:$0xff]   ;;  %v12923_v42 = vld [vmem:[%s14607_s23 + $0x340] sm:$0xff]  }
0x28ac   : > { %v8998_v54 = vmax.f32 %v8882_v14, 0.0  ;;  %9990 = vmatprep.mubr.bf16.mxu1 %v9013_v9  ;;  %11402 = vmatprep.subr.bf16.mxu0 %v12894_v18  ;;  %v12920_v9 = vld [vmem:[%s14607_s23 + $0x238] sm:$0xff]   ;;  %v12924_v55 = vld [vmem:[%s14607_s23 + $0x2b0] sm:$0xff]   ;;  %v12927_v17 = vld [vmem:[%s14607_s23 + $0x348] sm:$0xff]  }
0x28ad   : > { %v8999_v0 = vmax.f32 %v8884_v44, 0.0  ;;  %11412 = vmatprep.subr.bf16.mxu1 %v12895_v56  ;;  %v12926_v18 = vld [vmem:[%s14607_s23 + $0x2f8] sm:$0xff]   ;;  %v12929_v56 = vld [vmem:[%s14607_s23 + $0x308] sm:$0xff]   ;;  %v12930_v14 = vld [vmem:[%s14607_s23 + $0x350] sm:$0xff]  }
0x28ae   : > { %v14459_v8 = vpack.c.bf16 %v8998_v54, %v8982_v53  ;;  %v12931_v24 = vld [vmem:[%s14607_s23 + $0x3c0] sm:$0xff]   ;;  %v12932_v44 = vld [vmem:[%s14607_s23 + $0x310] sm:$0xff]   ;;  %v12936_v53 = vld [vmem:[%s14607_s23 + $0x318] sm:$0xff]  }
0x28af   : > { %v9015_v63 = vpack.c.bf16 %v8999_v0, %v8983_v57  ;;  %11403 = vmatpush3.bf16.msra.mxu0 %v12896_v47  ;;  %11413 = vmatpush3.bf16.msra.mxu1 %v12897_v49  ;;  %v8920_v2 = vpop.f32.mrb[128].mxu1  ;;  %v12933_v47 = vld [vmem:[%s14607_s23 + $0x380] sm:$0xff]   ;;  %v12935_v49 = vld [vmem:[%s14607_s23 + $0x3c8] sm:$0xff]   ;;  %v12941_v57 = vld [vmem:[%s14607_s23 + $0x390] sm:$0xff]  }
0x28b0   : > { %v8921_v31 = vadd.f32 %v8920_v2, %v8436_v38  ;;  %v8922_v1 = vpop.f32.mrb[129].mxu1  ;;  %11414 = vmatprep.subr.bf16.mxu1 %v12898_v51  ;;  %11432 = vmatprep.subr.bf16.mxu0 %v12899_v15  ;;  %v12937_v54 = vld [vmem:[%s14607_s23 + $0x388] sm:$0xff]   ;;  %v12939_v51 = vld [vmem:[%s14607_s23 + $0x3d0] sm:$0xff]   ;;  %v12940_v15 = vld [vmem:[%s14607_s23 + $0x320] sm:$0xff]  }
0x28b1   : > { %v8923_v7 = vadd.f32 %v8922_v1, %v8440_v58  ;;  %v8924_v23 = vpop.f32.mrb[130].mxu1  ;;  %v12942_v0 = vld [vmem:[%s14607_s23 + $0x368] sm:$0xff]   ;;  %v12947_v2 = vld [vmem:[%s14607_s23 + $0x3e0] sm:$0xff]  }
0x28b2   : > { %v8925_v13 = vadd.f32 %v8924_v23, %v8436_v38  ;;  %9950 = vmatmul.mubr.bf16.vlgmr.msra.gmra.mrb[44].mxu0 %v14430_v45  ;;  %v8926_v30 = vpop.f32.mrb[131].mxu1  ;;  %v8984_v37 = vmax.f32 %v8921_v31, 0.0  ;;  %v12938_v38 = vld [vmem:[%s14607_s23 + $0x360] sm:$0xff]   ;;  %v12950_v31 = vld [vmem:[%s14607_s23 + $0x378] sm:$0xff]   ;;  %v12951_v1 = vld [vmem:[%s14607_s23 + $0x3e8] sm:$0xff]  }
0x28b3   : > { %v8927_v50 = vadd.f32 %v8926_v30, %v8440_v58  ;;  %11415 = vmatpush3.bf16.msra.mxu1 %v12900_v11  ;;  %11433 = vmatpush3.bf16.msra.mxu0 %v12901_v59  ;;  %v8985_v16 = vmax.f32 %v8923_v7, 0.0  ;;  %v12943_v58 = vld [vmem:[%s14607_s23 + $0x3d8] sm:$0xff]   ;;  %v12948_v11 = vld [vmem:[%s14607_s23 + $0x330] sm:$0xff]   ;;  %v12949_v59 = vld [vmem:[%s14607_s23 + $0x3a0] sm:$0xff]  }
0x28b4   : > { %v9000_v48 = vmax.f32 %v8925_v13, 0.0  ;;  %10031 = vmatprep.mubr.bf16.mxu0 %v9015_v63  ;;  %11416 = vmatprep.subr.bf16.mxu1 %v12902_v60  ;;  %v12946_v63 = vld [vmem:[%s14607_s23 + $0x370] sm:$0xff]   ;;  %v12952_v60 = vld [vmem:[%s14607_s23 + $0x338] sm:$0xff]   ;;  %v12953_v7 = vld [vmem:[%s14607_s23 + $0x3a8] sm:$0xff]  }
0x28b5   : > { %v9001_v45 = vmax.f32 %v8927_v50, 0.0  ;;  %11434 = vmatprep.subr.bf16.mxu0 %v12903_v33  ;;  %v12954_v23 = vld [vmem:[%s14607_s23 + $0x3f0] sm:$0xff]   ;;  %v12956_v13 = vld [vmem:[%s14607_s23 + $0x3f8] sm:$0xff]  }
0x28b6   : > { %v14470_v46 = vpack.c.bf16 %v9000_v48, %v8984_v37  ;;  %v12955_v33 = vld [vmem:[%s14607_s23 + $0x3b0] sm:$0xff]   ;;  %v12957_v30 = vld [vmem:[%s14607_s23 + $0x3b8] sm:$0xff]  }
0x28b7   : > { %v9017_v29 = vpack.c.bf16 %v9001_v45, %v8985_v16  ;;  %11417 = vmatpush3.bf16.msra.mxu1 %v12904_v61  ;;  %11435 = vmatpush3.bf16.msra.mxu0 %v12905_v3 }
0x28b8   : > { %11418 = vmatprep.subr.bf16.mxu1 %v12906_v12  ;;  %11436 = vmatprep.subr.bf16.mxu0 %v12907_v52  ;;  %v10772_v52 = vld [vmem:[%s14611_s15] ss:$0 sm:$0xff] }
0x28bb   : > { %11419 = vmatpush3.bf16.msra.mxu1 %v12908_v20  ;;  %11437 = vmatpush3.bf16.msra.mxu0 %v12909_v22 }
0x28bc   : > { %11420 = vmatprep.subr.bf16.mxu1 %v12910_v6  ;;  %11438 = vmatprep.subr.bf16.mxu0 %v12911_v25 }
0x28bf   : > { %11421 = vmatpush3.bf16.msra.mxu1 %v12912_v26  ;;  %11439 = vmatpush3.bf16.msra.mxu0 %v12913_v43 }
0x28c0   : > { %11422 = vmatprep.subr.bf16.mxu1 %v12914_v10  ;;  %11440 = vmatprep.subr.bf16.mxu0 %v12915_v28 }
0x28c3   : > { %11423 = vmatpush3.bf16.msra.mxu1 %v12916_v32  ;;  %11441 = vmatpush3.bf16.msra.mxu0 %v12917_v40 }
0x28c4   : > { %11424 = vmatprep.subr.bf16.mxu1 %v12918_v27  ;;  %11442 = vmatprep.subr.bf16.mxu0 %v12919_v34 }
0x28c7   : > { %11425 = vmatpush3.bf16.msra.mxu1 %v12920_v9  ;;  %11443 = vmatpush3.bf16.msra.mxu0 %v12921_v19 }
0x28c8   : > { %11444 = vmatprep.subr.bf16.mxu0 %v12922_v41  ;;  %11454 = vmatprep.subr.bf16.mxu1 %v12923_v42 }
0x28ca   : > { %9991 = vmatmul.mubr.bf16.vlgmr.msra.gmra.mrb[140].mxu1 %v14444_v39  ;;  %v12934_v39 = vld [vmem:[%s14607_s23 + $0x358] sm:$0xff]  }
0x28cb   : > { %11445 = vmatpush3.bf16.msra.mxu0 %v12924_v55  ;;  %11455 = vmatpush3.bf16.msra.mxu1 %v12925_v4 }
0x28cc   : > { %10072 = vmatprep.mubr.bf16.mxu1 %v9017_v29  ;;  %11446 = vmatprep.subr.bf16.mxu0 %v12926_v18 }
0x28cd   : > { %11456 = vmatprep.subr.bf16.mxu1 %v12927_v17 }
0x28cf   : > { %11447 = vmatpush3.bf16.msra.mxu0 %v12928_v35  ;;  %11457 = vmatpush3.bf16.msra.mxu1 %v12929_v56 }
0x28d0   : > { %11458 = vmatprep.subr.bf16.mxu1 %v12930_v14  ;;  %11476 = vmatprep.subr.bf16.mxu0 %v12931_v24 }
0x28d2   : > { %10032 = vmatmul.mubr.bf16.vlgmr.msra.gmra.mrb[48].mxu0 %v14459_v8  ;;  %v12945_v8 = vld [vmem:[%s14607_s23 + $0x398] sm:$0xff]  }
0x28d3   : > { %11459 = vmatpush3.bf16.msra.mxu1 %v12932_v44  ;;  %11477 = vmatpush3.bf16.msra.mxu0 %v12933_v47 }
0x28d4   : > { %10113 = vmatprep.mubr.bf16.mxu0 %v14394_v21  ;;  %11460 = vmatprep.subr.bf16.mxu1 %v12934_v39  ;;  %v12944_v21 = vld [vmem:[%s14607_s23 + $0x328] sm:$0xff]  }
0x28d5   : > { %11478 = vmatprep.subr.bf16.mxu0 %v12935_v49 }
0x28d7   : > { %11461 = vmatpush3.bf16.msra.mxu1 %v12936_v53  ;;  %11479 = vmatpush3.bf16.msra.mxu0 %v12937_v54 }
0x28d8   : > { %11462 = vmatprep.subr.bf16.mxu1 %v12938_v38  ;;  %11480 = vmatprep.subr.bf16.mxu0 %v12939_v51 }
0x28db   : > { %11463 = vmatpush3.bf16.msra.mxu1 %v12940_v15  ;;  %11481 = vmatpush3.bf16.msra.mxu0 %v12941_v57 }
0x28dc   : > { %11464 = vmatprep.subr.bf16.mxu1 %v12942_v0  ;;  %11482 = vmatprep.subr.bf16.mxu0 %v12943_v58 }
0x28df   : > { %11465 = vmatpush3.bf16.msra.mxu1 %v12944_v21  ;;  %11483 = vmatpush3.bf16.msra.mxu0 %v12945_v8 }
0x28e0   : > { %11466 = vmatprep.subr.bf16.mxu1 %v12946_v63  ;;  %11484 = vmatprep.subr.bf16.mxu0 %v12947_v2 }
0x28e3   : > { %11467 = vmatpush3.bf16.msra.mxu1 %v12948_v11  ;;  %11485 = vmatpush3.bf16.msra.mxu0 %v12949_v59 }
0x28e4   : > { %11468 = vmatprep.subr.bf16.mxu1 %v12950_v31  ;;  %11486 = vmatprep.subr.bf16.mxu0 %v12951_v1 }
0x28e7   : > { %11469 = vmatpush3.bf16.msra.mxu1 %v12952_v60  ;;  %11487 = vmatpush3.bf16.msra.mxu0 %v12953_v7 }
0x28e8   : > { %11488 = vmatprep.subr.bf16.mxu0 %v12954_v23 }
0x28ea   : > { %10073 = vmatmul.mubr.bf16.vlgmr.msra.gmra.mrb[144].mxu1 %v14470_v46 }
0x28eb   : > { %11489 = vmatpush3.bf16.msra.mxu0 %v12955_v33 }
0x28ec   : > { %11490 = vmatprep.subr.bf16.mxu0 %v12956_v13 }
0x28ef   : > { %11491 = vmatpush3.bf16.msra.mxu0 %v12957_v30 }
0x28f2   : > { %10114 = vmatmul.mubr.bf16.vlgmr.msra.gmra.mrb[52].mxu0 %v14392_v62 }
0x295d   : > { %v11338_v50 = vpop.f32.mrb[132].mxu1 }
0x295e   : > { %v11339_v61 = vpop.f32.mrb[133].mxu1 }
0x295f   : > { %v11340_v3 = vadd.f32 %v11339_v61, %v11338_v50  ;;  %v11341_v37 = vpop.f32.mrb[134].mxu1 }
0x2960   : > { %v11342_v48 = vpop.f32.mrb[135].mxu1 }
0x2961   : > { %v11343_v12 = vadd.f32 %v11342_v48, %v11341_v37  ;;  %v9829_v29 = vadd.f32 %v11340_v3, %v10772_v52 }
0x2963   : > { %v9832_v46 = vadd.f32 %v11343_v12, %v10772_v52 }
0x2965   : > { %v11360_v16 = vpop.f32.mrb[40].mxu0 }
0x2966   : > { %v11361_v45 = vpop.f32.mrb[41].mxu0 }
0x2967   : > { %v11362_v20 = vadd.f32 %v11361_v45, %v11360_v16  ;;  %v11363_v22 = vpop.f32.mrb[42].mxu0 }
0x2968   : > { %v11364_v6 = vpop.f32.mrb[43].mxu0 }
0x2969   : > { %v9870_v25 = vadd.f32 %v11362_v20, %v9829_v29  ;;  %v11365_v26 = vadd.f32 %v11364_v6, %v11363_v22 }
0x296b   : > { %v9873_v43 = vadd.f32 %v11365_v26, %v9832_v46  ;;  %v10166_v26 = vld [vmem:[%s13301_s6] sm:$0xff] }
0x297d   : > { %v11382_v10 = vpop.f32.mrb[136].mxu1 }
0x297e   : > { %v11383_v28 = vpop.f32.mrb[137].mxu1 }
0x297f   : > { %v11384_v62 = vadd.f32 %v11383_v28, %v11382_v10  ;;  %v11385_v32 = vpop.f32.mrb[138].mxu1  ;;  %v10168_v28 = vld [vmem:[%s13301_s6 + $0x10] sm:$0xff] }
0x2980   : > { %v11386_v40 = vpop.f32.mrb[139].mxu1 }
0x2981   : > { %v9911_v27 = vadd.f32 %v11384_v62, %v9870_v25  ;;  %v11387_v34 = vadd.f32 %v11386_v40, %v11385_v32  ;;  %v10169_v62 = vld [vmem:[%s13301_s6 + $0x18] sm:$0xff] }
0x2982   : > { %v12309_v32 = vpack.c.bf16 %v10169_v62, %v10168_v28 }
0x2983   : > { %v9914_v9 = vadd.f32 %v11387_v34, %v9873_v43  ;;  %v10167_v43 = vld [vmem:[%s13301_s6 + $0x8] sm:$0xff] }
0x2984   : > { %v12305_v10 = vpack.c.bf16 %v10167_v43, %v10166_v26 }
0x2985   : > { %v11404_v19 = vpop.f32.mrb[44].mxu0 }
0x2986   : > { %v11405_v41 = vpop.f32.mrb[45].mxu0  ;;  %12306 = vmatprep.subr.bf16.mxu1 %v12305_v10 }
0x2987   : > { %v11406_v42 = vadd.f32 %v11405_v41, %v11404_v19  ;;  %v11407_v55 = vpop.f32.mrb[46].mxu0  ;;  %12308 = vmatpush3.bf16.msra.mxu1 %v12305_v10 }
0x2988   : > { %v11408_v4 = vpop.f32.mrb[47].mxu0  ;;  %12310 = vmatprep.subr.bf16.mxu1 %v12309_v32 }
0x2989   : > { %v9952_v18 = vadd.f32 %v11406_v42, %v9911_v27  ;;  %v11409_v17 = vadd.f32 %v11408_v4, %v11407_v55  ;;  %v10901_v55 = vld [vmem:[%s14612_s16] ss:$0 sm:$0xff] }
0x298b   : > { %v9955_v35 = vadd.f32 %v11409_v17, %v9914_v9  ;;  %12312 = vmatpush3.bf16.msra.mxu1 %v12309_v32  ;;  %v10902_v17 = vld [vmem:[%s14613_s22] ss:$0 sm:$0xff] }
0x299d   : > { %v11426_v56 = vpop.f32.mrb[140].mxu1 }
0x299e   : > { %v11427_v14 = vpop.f32.mrb[141].mxu1 }
0x299f   : > { %v11428_v24 = vadd.f32 %v11427_v14, %v11426_v56  ;;  %v11429_v44 = vpop.f32.mrb[142].mxu1 }
0x29a0   : > { %v11430_v47 = vpop.f32.mrb[143].mxu1 }
0x29a1   : > { %v9993_v39 = vadd.f32 %v11428_v24, %v9952_v18  ;;  %v11431_v49 = vadd.f32 %v11430_v47, %v11429_v44  ;;  %v10903_v47 = vld [vmem:[%s13306_s20] ss:$0 sm:$0xff] }
0x29a3   : > { %v9996_v53 = vadd.f32 %v11431_v49, %v9955_v35 }
0x29a5   : > { %v11448_v54 = vpop.f32.mrb[48].mxu0 }
0x29a6   : > { %v11449_v38 = vpop.f32.mrb[49].mxu0 }
0x29a7   : > { %v11450_v51 = vadd.f32 %v11449_v38, %v11448_v54  ;;  %v11451_v15 = vpop.f32.mrb[50].mxu0  ;;  %v10171_v54 = vld [vmem:[%s13311_s27] sm:$0xff] }
0x29a8   : > { %v11452_v57 = vpop.f32.mrb[51].mxu0 }
0x29a9   : > { %v10034_v0 = vadd.f32 %v11450_v51, %v9993_v39  ;;  %v11453_v58 = vadd.f32 %v11452_v57, %v11451_v15  ;;  %v10172_v39 = vld [vmem:[%s13311_s27 + $0x8] sm:$0xff] }
0x29ab   : > { %v10037_v21 = vadd.f32 %v11453_v58, %v9996_v53 }
0x29bd   : > { %v11470_v8 = vpop.f32.mrb[144].mxu1 }
0x29be   : > { %v11471_v63 = vpop.f32.mrb[145].mxu1 }
0x29bf   : > { %v11472_v2 = vadd.f32 %v11471_v63, %v11470_v8  ;;  %v11473_v11 = vpop.f32.mrb[146].mxu1 }
0x29c0   : > { %v11474_v59 = vpop.f32.mrb[147].mxu1 }
0x29c1   : > { %v10075_v31 = vadd.f32 %v11472_v2, %v10034_v0  ;;  %v11475_v1 = vadd.f32 %v11474_v59, %v11473_v11 }
0x29c3   : > { %v10078_v60 = vadd.f32 %v11475_v1, %v10037_v21 }
0x29c5   : > { %v11492_v7 = vpop.f32.mrb[52].mxu0 }
0x29c6   : > { %v11493_v23 = vpop.f32.mrb[53].mxu0 }
0x29c7   : > { %v11494_v33 = vadd.f32 %v11493_v23, %v11492_v7  ;;  %v11495_v13 = vpop.f32.mrb[54].mxu0 }
0x29c8   : > { %v11496_v30 = vpop.f32.mrb[55].mxu0 }
0x29c9   : > { %v10116_v50 = vadd.f32 %v11494_v33, %v10075_v31  ;;  %v11497_v61 = vadd.f32 %v11496_v30, %v11495_v13 }
0x29cb   : > { %v10119_v3 = vadd.f32 %v11497_v61, %v10078_v60  ;;  %v10122_v37 = vadd.f32 %v10116_v50, %v14291_v5 }
0x29cd   : > { %v10124_v48 = vsel %vm1221_vm0, %v10122_v37, 0.0  ;;  %v10123_v12 = vadd.f32 %v10119_v3, %v14293_v36 }
0x29ce   : > { %10125 = vadd.xlane.f32.xlu1 %v10124_v48 }
0x29cf   : > { %v10127_v52 = vsel %vm1221_vm0, %v10123_v12, 0.0 }
0x29d0   : > { %10128 = vadd.xlane.f32.xlu0 %v10127_v52 }
0x2a5b   : > { %v10126_v16 = vpop.xlane.xlu1 %10125 }
0x2a5c   : > { %v10130_v45 = vmul.f32 0.03125, %v10126_v16 }
0x2a5d   : > { %v10129_v29 = vpop.xlane.xlu0 %10128 }
0x2a5e   : > { %v10132_v20 = vsub.f32 %v10122_v37, %v10130_v45  ;;  %v10131_v22 = vmul.f32 0.03125, %v10129_v29 }
0x2a60   : > { %v10133_v6 = vsub.f32 %v10123_v12, %v10131_v22  ;;  %v10134_v46 = vmul.f32 %v10132_v20, %v10132_v20 }
0x2a62   : > { %v10136_v5 = vsel %vm1221_vm0, %v10134_v46, 0.0  ;;  %v10135_v25 = vmul.f32 %v10133_v6, %v10133_v6 }
0x2a63   : > { %10137 = vadd.xlane.f32.xlu1 %v10136_v5 }
0x2a64   : > { %v10139_v36 = vsel %vm1221_vm0, %v10135_v25, 0.0 }
0x2a65   : > { %10140 = vadd.xlane.f32.xlu0 %v10139_v36 }
0x2af0   : > { %v10138_v40 = vpop.xlane.xlu1 %10137 }
0x2af1   : > { %v10142_v27 = vmul.f32 0.03125, %v10138_v40 }
0x2af2   : > { %v10141_v34 = vpop.xlane.xlu0 %10140 }
0x2af3   : > { %v10144_v9 = vadd.f32 1e-05, %v10142_v27  ;;  %v10143_v19 = vmul.f32 0.03125, %v10141_v34 }
0x2af5   : > { %13098 = vrsqrt.f32 %v10144_v9  ;;  %v10145_v41 = vadd.f32 1e-05, %v10143_v19 }
0x2af7   : > { %13100 = vrsqrt.f32 %v10145_v41 }
0x2aff   : > { %v13099_v42 = vpop.eup %13098 }
0x2b00   : > { %v10148_v4 = vmul.f32 %v13099_v42, %v10132_v20 }
0x2b01   : > { %v13101_v18 = vpop.eup %13100 }
0x2b02   : > { %v10149_v35 = vmul.f32 %v13101_v18, %v10133_v6  ;;  %v10156_v56 = vmul.f32 %v10901_v55, %v10148_v4 }
0x2b04   : > { %v10157_v14 = vmul.f32 %v10901_v55, %v10149_v35  ;;  %v10164_v24 = vadd.f32 %v10902_v17, %v10156_v56 }
0x2b06   : > { %v10165_v44 = vadd.f32 %v10902_v17, %v10157_v14  ;;  %11934 = vmatprep.mubr.msk.f32.mxu1 %vm1221_vm0, %v10164_v24 }
0x2b08   : > { %11935 = vmatmul.mubr.msk.f32.vlgmr.msra.gmra.mrb[102].mxu1 %vm1221_vm0, %v10165_v44 }
0x2bdb   : > { %v11936_v49 = vpop.f32.mrb[102].mxu1 }
0x2bdc   : > { %v10257_v53 = vadd.f32 %v11936_v49, %v10903_v47  ;;  %v10251_v38 = vpop.f32.mrb[103].mxu1 }
0x2bdd   : > { %v10252_v51 = vadd.f32 %v10903_v47, %v10251_v38 }
0x2bde   : > { %v10261_v15 = vadd.f32 %v10257_v53, %v10172_v39 }
0x2bdf   : > { %v10260_v57 = vadd.f32 %v10252_v51, %v10171_v54 }
0x2be0   : > { %10263 = vst.msk [vmem:[%s902_s0 + $0x8] sm:$0xff] %vm1309_vm1, %v10261_v15 }
0x2be1   : > { %10262 = vst.msk [vmem:[%s902_s0] sm:$0xff] %vm1309_vm1, %v10260_v57 }
0x2be2 PF: > { %s69_s7 = sadd.s32 1, %s13108_s7  }
0x2be3   : > { %p66_p4 = scmp.ge.s32.totalorder %s69_s7, 4  }
0x2be5   :  { %68 = sbr.rel (!%p66_p4) target bundleno = 46 (0x2e), region = 195 }

// kernel: squeeze.27
= control target key start
LH: loop header
LB: loop body
LE: loop exit
PB: predicated region body
PF: predicated region fallthrough
CT: control target
= control target key end

     0   :  { %s106_s0 = inlined_call_operand.vmem [shape: f32[2,16], index: 0, kind: input, shape index: {}]   ;;  %s107_s1 = inlined_call_operand.hbm [shape: f32[2,4,4], index: 1, kind: output, shape index: {}]  }
   0x1   :  { %v5_v0 = vld [vmem:[%s106_s0] sm:$0x3] }
   0x2   :  { %6 = vst [vmem:[#allocation3] sm:$0x3] %v5_v0 }
   0x3   :  { %2 = vsyncpa [#allocation1], 0  ;;  %s77_s0 = smov 124   ;;  %s78_s8 = smov 116   ;;  %vm8_vm0 = vcmask 31744  }
   0x4   :  { %s79_s9 = smov 120   ;;  %s80_s10 = smov [#allocation0]  }
   0x5   :  { %s43_s11 = sshll.u32 %s80_s10, 4  ;;  %s44_s11 = int_to_ptr.vmem [resolvable:$true] %s43_s11 }
   0x6   :  { %s53_s12 = scalar_lea.vmem %s44_s11, 128  ;;  %p58_p1 = scmp.lt.s32.totalorder %s44_s11, %s44_s11 }
   0x7   :  { %p54_p0 = scmp.ne.s32.totalorder %s44_s11, %s53_s12  ;;  %p59_p2 = scmp.lt.s32.totalorder %s53_s12, %s53_s12 }
   0x9   :  { %v10_v1 = vld [vmem:[#allocation3] sm:$0x3]   ;;  %p60_p3 = por %p59_p2, %p58_p1 }
   0xa   :  { %v22_v2 = vld [vmem:[#allocation3] sm:$0x3]   ;;  %11 = vrot.lane.b32.xlu0 %v10_v1, %s77_s0 }
   0xb   :  { %23 = vrot.lane.b32.xlu1 %v22_v2, %s78_s8  ;;  %v7_v3 = vld [vmem:[#allocation3] sm:$0x3]   ;;  %p61_p4 = pnand %p60_p3, %p54_p0 }
   0xc   :  { %v16_v4 = vld [vmem:[#allocation3] sm:$0x3]   ;;  %9 = vst.msk [vmem:[#allocation2] ss:$8 sm:$0x3] %vm8_vm0, %v7_v3  }
   0xe   :  { %17 = vrot.lane.b32.xlu0 %v16_v4, %s79_s9 }
  0x7c   :  { %v12_v5 = vpop.permute.xlu0 %11  }
  0x7d   :  { %v24_v6 = vpop.permute.xlu1 %23   ;;  %15 = vst.msk [vmem:[#allocation2 + $0x1] ss:$8 sm:$0x3] %vm8_vm0, %v12_v5  }
  0x7e   :  { %27 = vst.msk [vmem:[#allocation2 + $0x3] ss:$8 sm:$0x3] %vm8_vm0, %v24_v6  }
  0x80   :  { %v18_v7 = vpop.permute.xlu0 %17  }
  0x81   :  { %21 = vst.msk [vmem:[#allocation2 + $0x2] ss:$8 sm:$0x3] %vm8_vm0, %v18_v7  }
  0x88   :  { %v31_v8 = vld [vmem:[#allocation2] sm:$0xf]  ;;  %v35_v9 = vld [vmem:[#allocation2 + $0x8] sm:$0xf] }
  0x89   :  { %33 = vst [vmem:[#allocation0] sm:$0xf] %v31_v8  ;;  %38 = vst [vmem:[#allocation0 + $0x4] sm:$0xf] %v35_v9 }
  0x8a   :  { %64 = shalt.err (!%p61_p4)
}
  0x8b   :  { %s65_s15 = scalar_lea.hbm %s107_s1, 128 }
  0x8c   :  { %p66_p5 = scmp.ne.s32.totalorder %s107_s1, %s65_s15  ;;  %p69_p6 = scmp.lt.u32.totalorder %s65_s15, %s107_s1 }
  0x8e   :  { %p71_p7 = pnand %p69_p6, %p66_p5 }
  0x90   :  { %74 = shalt.err (!%p71_p7)
}
  0x91   :  { %46 = dma.vmem_to_hbm [thread:$0]  %s44_s11, 128, %s107_s1, [#allocation1]  }
  0x92   :  { %75 = dma.done.wait [#allocation1], 128  }
  0x93   :  { %76 = vsyncadd [#allocation1], 4294967168 }
  0x94   :  { %48 = vsyncpa [#allocation1], 1 }

// kernel: cropping_model_forward.5
= control target key start
LH: loop header
LB: loop body
LE: loop exit
PB: predicated region body
PF: predicated region fallthrough
CT: control target
= control target key end

     0   :  { %s5330_s0 = inlined_call_operand.vmem [shape: bf16[2,16,32], index: 0, kind: input, shape index: {}]   ;;  %s5331_s1 = inlined_call_operand.vmem [shape: bf16[2,800,16], index: 1, kind: input, shape index: {}]   ;;  %s5332_s2 = inlined_call_operand.vmem [shape: bf16[1600,128], index: 2, kind: input, shape index: {}]   ;;  %s5333_s3 = inlined_call_operand.vmem [shape: f32[1,128], index: 3, kind: input, shape index: {}]   ;;  %s5334_s4 = inlined_call_operand.vmem [shape: f32[128,128], index: 4, kind: input, shape index: {}]   ;;  %s5335_s5 = inlined_call_operand.vmem [shape: f32[1,128], index: 5, kind: input, shape index: {}]   ;;  %s5336_s6 = inlined_call_operand.vmem [shape: f32[128,1], index: 6, kind: input, shape index: {}]   ;;  %s5337_s7 = inlined_call_operand.<no memory space> [shape: f32[1,1], index: 7, kind: input, shape index: {}]   ;;  %s5338_s8 = inlined_call_operand.vmem [shape: f32[2,16,4], index: 8, kind: input, shape index: {}]   ;;  %s5339_s9 = inlined_call_operand.vmem [shape: f32[2,16,1], index: 9, kind: input, shape index: {}]   ;;  %s5340_s10 = inlined_call_operand.hbm [shape: f32[2,1,4], index: 10, kind: output, shape index: {0}]   ;;  %s5341_s11 = inlined_call_operand.vmem [shape: f32[2,16,1], index: 11, kind: output, shape index: {1}]  }
   0x1   :  { %v17_v0 = vstv %s5337_s7 }
   0x2   :  { %18 = vst [vmem:[#allocation2] sm:$0x1] %v17_v0 }
   0x3   :  { %19 = vsyncpa [#allocation4], 0 }
   0x4   :  { %21 = vsyncpa [#allocation4 + $0x1], 0  ;;  %s4503_s19 = smov 0   ;;  %s4505_s20 = smov 0  }
   0x5   :  { %s4507_s21 = smov 0   ;;  %s4509_s22 = smov 0  }
   0x6 LB: > { %s4524_s7 = sadd.s32 4294967295, %s4431_s22   ;;  %s3282_s23 = sadd.s32 4294967294, %s4431_s22   ;;  %s4431_s22 = sphi %s4509_s22, %s5347_s22   ;;  %s4427_s21 = sphi %s4507_s21, %s5346_s21   ;;  %s4423_s20 = sphi %s4505_s20, %s5345_s20   ;;  %s4419_s19 = sphi %s4503_s19, %s5344_s19  }
   0x7   : > { %s4528_s24 = sadd.s32 1, %s4431_s22   ;;  %s264_s25 = sadd.s32 1, %s4427_s21 }
   0x8   : > { %s261_s26 = ssub.s32 %s4431_s22, %s4528_s24  ;;  %p274_p0 = scmp.ne.s32.totalorder %s4427_s21, %s4423_s20 }
   0x9   : > { %p262_p1 = scmp.eq.s32.totalorder %s261_s26, 0  ;;  %p275_p2 = scmp.eq.s32.totalorder %s4524_s7, 1 }
   0xa   : > { %p280_p3 = scmp.ne.s32.totalorder %s4423_s20, %s4419_s19  ;;  %p281_p4 = scmp.eq.s32.totalorder %s3282_s23, 1 }
   0xb   : > { %s4539_s27 = scalar_select %p262_p1, %s4427_s21, %s264_s25  }
   0xc   : > { %p4541_p5 = por %p275_p2, %p274_p0  ;;  %p4545_p6 = por %p281_p4, %p280_p3 }
   0xd   : > { %p3285_p7 = scmp.ge.s32.totalorder %s4431_s22, 1  ;;  %p375_p8 = scmp.lt.s32.totalorder %s4431_s22, 3 }
   0xf   : > { %p376_p9 = pnand %p3285_p7, %p375_p8 }
  0x10   : > { %p434_p10 = scmp.lt.s32.totalorder (!%p376_p9), %s4524_s7, 1  ;;  %vm818_vm0 = vcmask (!%p376_p9), 130048   ;;  %v4433_v52 = vmov (!%p376_p9), 0.0   ;;  %v4264_v53 = vld [vmem:[%s5332_s2 + $0x40] sm:$0xff] (!%p376_p9)   ;;  %v4266_v56 = vld [vmem:[%s5332_s2 + $0x48] sm:$0xff] (!%p376_p9)   ;;  %v4268_v59 = vld [vmem:[%s5332_s2 + $0x50] sm:$0xff] (!%p376_p9)  }
  0x11   : > { %379 = sbr.rel (%p376_p9) target bundleno = 1435 (0x59b), region = 60  ;;  %v4265_v54 = vld [vmem:[%s5332_s2] sm:$0xff] (!%p376_p9)   ;;  %3558 = vmatprep.subr.bf16.mxu1 (!%p376_p9), %v4264_v53  ;;  %v4267_v57 = vld [vmem:[%s5332_s2 + $0x8] sm:$0xff] (!%p376_p9)   ;;  %v4269_v61 = vld [vmem:[%s5332_s2 + $0x10] sm:$0xff] (!%p376_p9)   ;;  %s4435_s18 = smov (!%p376_p9), 64   ;;  %vm1498_vm1 = vcmask (!%p376_p9), 261120  }
  0x12   : > { %v4263_v55 = vld [vmem:[%s5332_s2 + $0x300] sm:$0xff] (!%p376_p9)   ;;  %3559 = vmatpush3.bf16.msra.mxu1 (!%p376_p9), %v4265_v54  ;;  %s4436_s26 = smov (!%p376_p9), 96   ;;  %vm1501_vm2 = vcmask (!%p376_p9), 523264   ;;  %vm1504_vm3 = vcmask (!%p376_p9), 785408   ;;  %vm4437_vm4 = vmmov (!%p376_p9), 0   ;;  %vm3089_vm5 = vcmask (!%p376_p9), 7168  }
  0x13   : > { %3560 = vmatprep.subr.bf16.mxu1 (!%p376_p9), %v4266_v56  ;;  %vm3133_vm6 = vcmask (!%p376_p9), 31744   ;;  %s3500_s14 = sshll.u32 (!%p376_p9), %s4524_s7, 4  ;;  %vm3143_vm7 = vcmask (!%p376_p9), 24576  }
  0x16   : > { %3561 = vmatpush3.bf16.msra.mxu1 (!%p376_p9), %v4267_v57 }
  0x17   : > { %3562 = vmatprep.subr.bf16.mxu1 (!%p376_p9), %v4268_v59 }
  0x18   : > { %s4553_s30 = scalar_select %p434_p10, %s4524_s7, 1 }
  0x19   : > { %s4439_s7 = smov [#allocation3]  }
  0x1a   : > { %s3503_s12 = sshll.u32 %s4553_s30, 3  ;;  %s3979_s13 = smul.u32 400, %s4553_s30  ;;  %3563 = vmatpush3.bf16.msra.mxu1 %v4269_v61 }
  0x1b   : > { %s438_s16 = scalar_lea.vmem %s5330_s0, %s3503_s12 }
  0x1c   : > { %s4563_s23 = scalar_lea.vmem %s5331_s1, %s3979_s13  ;;  %v4212_v1 = vld [vmem:[%s438_s16] sm:$0xff]   ;;  %s4434_s16 = smov 32  }
  0x1d   : > { %v4213_v2 = vld [vmem:[%s4563_s23] sm:$0xff]   ;;  %3731 = vmatprep.subr.bf16.mxu0 %v4212_v1  ;;  %v4214_v3 = vld [vmem:[%s4563_s23 + $0x8] sm:$0xff]   ;;  %v4215_v4 = vld [vmem:[%s4563_s23 + $0x10] sm:$0xff]   ;;  %s425_s13 = sand.u32 1, %s4423_s20  }
  0x1e   : > { %3732 = vmatpush3.bf16.msra.mxu0 %v4212_v1  ;;  %3733 = vmatprep.mubr.msk.bf16.mxu0 %vm818_vm0, %v4213_v2  ;;  %v4216_v5 = vld [vmem:[%s4563_s23 + $0x18] sm:$0xff]   ;;  %v4217_v6 = vld [vmem:[%s4563_s23 + $0x20] sm:$0xff]   ;;  %v4218_v7 = vld [vmem:[%s4563_s23 + $0x28] sm:$0xff]   ;;  %s426_s15 = scalar_lea.vmem [#allocation3], %s425_s13 }
  0x1f   : > { %v4219_v8 = vld [vmem:[%s4563_s23 + $0x30] sm:$0xff]   ;;  %v4220_v9 = vld [vmem:[%s4563_s23 + $0x38] sm:$0xff]   ;;  %v4221_v10 = vld [vmem:[%s4563_s23 + $0x40] sm:$0xff]   ;;  %3833 = vmatprep.subr.bf16.mxu0 %v4433_v52 }
  0x20   : > { %v4222_v11 = vld [vmem:[%s4563_s23 + $0x48] sm:$0xff]   ;;  %v4223_v12 = vld [vmem:[%s4563_s23 + $0x50] sm:$0xff]   ;;  %v4224_v13 = vld [vmem:[%s4563_s23 + $0x58] sm:$0xff]  }
  0x21   : > { %3734 = vmatmul.mubr.msk.bf16.vlgmr.msra.gmra.mrb[0].mxu0 %vm818_vm0, %v4214_v3  ;;  %v4225_v14 = vld [vmem:[%s4563_s23 + $0x60] sm:$0xff]   ;;  %v4226_v15 = vld [vmem:[%s4563_s23 + $0x68] sm:$0xff]   ;;  %v4227_v16 = vld [vmem:[%s4563_s23 + $0x70] sm:$0xff]  }
  0x22   : > { %3737 = vmatprep.mubr.msk.bf16.mxu0 %vm818_vm0, %v4215_v4  ;;  %v4228_v17 = vld [vmem:[%s4563_s23 + $0x78] sm:$0xff]   ;;  %v4229_v18 = vld [vmem:[%s4563_s23 + $0x80] sm:$0xff]   ;;  %v4230_v19 = vld [vmem:[%s4563_s23 + $0x88] sm:$0xff]   ;;  %3834 = vmatpush3.bf16.msra.mxu0 %v4263_v55 }
  0x23   : > { %v4231_v20 = vld [vmem:[%s4563_s23 + $0x90] sm:$0xff]   ;;  %v4232_v21 = vld [vmem:[%s4563_s23 + $0x98] sm:$0xff]   ;;  %v4233_v22 = vld [vmem:[%s4563_s23 + $0xa0] sm:$0xff]   ;;  %3835 = vmatprep.subr.bf16.mxu0 %v4433_v52 }
  0x24   : > { %v4234_v23 = vld [vmem:[%s4563_s23 + $0xa8] sm:$0xff]   ;;  %v4235_v24 = vld [vmem:[%s4563_s23 + $0xb0] sm:$0xff]   ;;  %v4236_v25 = vld [vmem:[%s4563_s23 + $0xb8] sm:$0xff]  }
  0x25   : > { %v4237_v26 = vld [vmem:[%s4563_s23 + $0xc0] sm:$0xff]   ;;  %v4238_v27 = vld [vmem:[%s4563_s23 + $0xc8] sm:$0xff]   ;;  %v4239_v28 = vld [vmem:[%s4563_s23 + $0xd0] sm:$0xff]  }
  0x26   : > { %v4240_v29 = vld [vmem:[%s4563_s23 + $0xd8] sm:$0xff]   ;;  %v4241_v30 = vld [vmem:[%s4563_s23 + $0xe0] sm:$0xff]   ;;  %v4242_v31 = vld [vmem:[%s4563_s23 + $0xe8] sm:$0xff]  }
  0x27   : > { %v4243_v32 = vld [vmem:[%s4563_s23 + $0xf0] sm:$0xff]   ;;  %v4244_v33 = vld [vmem:[%s4563_s23 + $0xf8] sm:$0xff]   ;;  %v4245_v34 = vld [vmem:[%s4563_s23 + $0x100] sm:$0xff]  }
  0x28   : > { %v4246_v35 = vld [vmem:[%s4563_s23 + $0x108] sm:$0xff]   ;;  %v4247_v36 = vld [vmem:[%s4563_s23 + $0x110] sm:$0xff]   ;;  %v4248_v37 = vld [vmem:[%s4563_s23 + $0x118] sm:$0xff]  }
  0x29   : > { %3738 = vmatmul.mubr.msk.bf16.gmra.mrb[4].mxu0 %vm818_vm0, %v4216_v5  ;;  %v4249_v38 = vld [vmem:[%s4563_s23 + $0x120] sm:$0xff]   ;;  %v4250_v39 = vld [vmem:[%s4563_s23 + $0x128] sm:$0xff]   ;;  %v4251_v40 = vld [vmem:[%s4563_s23 + $0x130] sm:$0xff]  }
  0x2a   : > { %3741 = vmatprep.mubr.msk.bf16.mxu0 %vm818_vm0, %v4217_v6  ;;  %v4252_v41 = vld [vmem:[%s4563_s23 + $0x138] sm:$0xff]   ;;  %v4253_v42 = vld [vmem:[%s4563_s23 + $0x140] sm:$0xff]   ;;  %v4254_v43 = vld [vmem:[%s4563_s23 + $0x148] sm:$0xff]  }
  0x2b   : > { %v4255_v44 = vld [vmem:[%s4563_s23 + $0x150] sm:$0xff]   ;;  %v4256_v45 = vld [vmem:[%s4563_s23 + $0x158] sm:$0xff]   ;;  %v4257_v46 = vld [vmem:[%s4563_s23 + $0x160] sm:$0xff]  }
  0x2c   : > { %v4258_v47 = vld [vmem:[%s4563_s23 + $0x168] sm:$0xff]   ;;  %v4259_v48 = vld [vmem:[%s4563_s23 + $0x170] sm:$0xff]   ;;  %v4260_v49 = vld [vmem:[%s4563_s23 + $0x178] sm:$0xff]  }
  0x2d   : > { %v4261_v50 = vld [vmem:[%s4563_s23 + $0x180] sm:$0xff]   ;;  %v4262_v51 = vld [vmem:[%s4563_s23 + $0x188] sm:$0xff]   ;;  %v4270_v1 = vld [vmem:[%s5332_s2 + $0x58] sm:$0xff]   ;;  %s5288_s23 = scalar_lea.hbm %s5340_s10, %s3500_s14 }
  0x2e   : > { %v4271_v2 = vld [vmem:[%s5332_s2 + $0x18] sm:$0xff]   ;;  %3564 = vmatprep.subr.bf16.mxu1 %v4270_v1  ;;  %v4272_v4 = vld [vmem:[%s5332_s2 + $0x60] sm:$0xff]  }
  0x2f   : > { %3565 = vmatpush3.bf16.msra.mxu1 %v4271_v2  ;;  %v4273_v6 = vld [vmem:[%s5332_s2 + $0x20] sm:$0xff]  }
  0x30   : > { %3566 = vmatprep.subr.bf16.mxu1 %v4272_v4 }
  0x31   : > { %3742 = vmatmul.mubr.msk.bf16.gmra.mrb[8].mxu0 %vm818_vm0, %v4218_v7 }
  0x32   : > { %3745 = vmatprep.mubr.msk.bf16.mxu0 %vm818_vm0, %v4219_v8 }
  0x33   : > { %3567 = vmatpush3.bf16.msra.mxu1 %v4273_v6 }
  0x39   : > { %3746 = vmatmul.mubr.msk.bf16.gmra.mrb[12].mxu0 %vm818_vm0, %v4220_v9 }
  0x3a   : > { %3749 = vmatprep.mubr.msk.bf16.mxu0 %vm818_vm0, %v4221_v10 }
  0x41   : > { %3750 = vmatmul.mubr.msk.bf16.gmra.mrb[16].mxu0 %vm818_vm0, %v4222_v11  ;;  %v4274_v11 = vld [vmem:[%s5332_s2 + $0x68] sm:$0xff]  }
  0x42   : > { %3753 = vmatprep.mubr.msk.bf16.mxu0 %vm818_vm0, %v4223_v12  ;;  %v4275_v12 = vld [vmem:[%s5332_s2 + $0x28] sm:$0xff]   ;;  %3568 = vmatprep.subr.bf16.mxu1 %v4274_v11 }
  0x43   : > { %3569 = vmatpush3.bf16.msra.mxu1 %v4275_v12 }
  0x49   : > { %3754 = vmatmul.mubr.msk.bf16.gmra.mrb[20].mxu0 %vm818_vm0, %v4224_v13 }
  0x4a   : > { %3757 = vmatprep.mubr.msk.bf16.mxu0 %vm818_vm0, %v4225_v14  ;;  %v4276_v14 = vld [vmem:[%s5332_s2 + $0x70] sm:$0xff]  }
  0x4b   : > { %3570 = vmatprep.subr.bf16.mxu1 %v4276_v14 }
  0x51   : > { %3758 = vmatmul.mubr.msk.bf16.gmra.mrb[24].mxu0 %vm818_vm0, %v4226_v15 }
  0x52   : > { %3761 = vmatprep.mubr.msk.bf16.mxu0 %vm818_vm0, %v4227_v16  ;;  %v4277_v16 = vld [vmem:[%s5332_s2 + $0x30] sm:$0xff]  }
  0x53   : > { %3571 = vmatpush3.bf16.msra.mxu1 %v4277_v16 }
  0x59   : > { %3762 = vmatmul.mubr.msk.bf16.gmra.mrb[28].mxu0 %vm818_vm0, %v4228_v17 }
  0x5a   : > { %3765 = vmatprep.mubr.msk.bf16.mxu0 %vm818_vm0, %v4229_v18 }
  0x61   : > { %3766 = vmatmul.mubr.msk.bf16.gmra.mrb[32].mxu0 %vm818_vm0, %v4230_v19 }
  0x62   : > { %3769 = vmatprep.mubr.msk.bf16.mxu0 %vm818_vm0, %v4231_v20  ;;  %v4278_v20 = vld [vmem:[%s5332_s2 + $0x78] sm:$0xff]  }
  0x63   : > { %3572 = vmatprep.subr.bf16.mxu1 %v4278_v20 }
  0x69   : > { %3770 = vmatmul.mubr.msk.bf16.gmra.mrb[36].mxu0 %vm818_vm0, %v4232_v21  ;;  %v4279_v21 = vld [vmem:[%s5332_s2 + $0x38] sm:$0xff]  }
  0x6a   : > { %3773 = vmatprep.mubr.msk.bf16.mxu0 %vm818_vm0, %v4233_v22  ;;  %3573 = vmatpush3.bf16.msra.mxu1 %v4279_v21 }
  0x71   : > { %3774 = vmatmul.mubr.msk.bf16.gmra.mrb[40].mxu0 %vm818_vm0, %v4234_v23 }
  0x72   : > { %3777 = vmatprep.mubr.msk.bf16.mxu0 %vm818_vm0, %v4235_v24  ;;  %v4280_v24 = vld [vmem:[%s5332_s2 + $0xc0] sm:$0xff]  }
  0x73   : > { %3580 = vmatprep.subr.bf16.mxu1 %v4280_v24 }
  0x79   : > { %3778 = vmatmul.mubr.msk.bf16.gmra.mrb[44].mxu0 %vm818_vm0, %v4236_v25 }
  0x7a   : > { %3781 = vmatprep.mubr.msk.bf16.mxu0 %vm818_vm0, %v4237_v26 }
  0x81   : > { %3782 = vmatmul.mubr.msk.bf16.gmra.mrb[48].mxu0 %vm818_vm0, %v4238_v27 }
  0x82   : > { %3785 = vmatprep.mubr.msk.bf16.mxu0 %vm818_vm0, %v4239_v28 }
  0x89   : > { %3786 = vmatmul.mubr.msk.bf16.gmra.mrb[52].mxu0 %vm818_vm0, %v4240_v29 }
  0x8a   : > { %3789 = vmatprep.mubr.msk.bf16.mxu0 %vm818_vm0, %v4241_v30 }
  0x91   : > { %3790 = vmatmul.mubr.msk.bf16.gmra.mrb[56].mxu0 %vm818_vm0, %v4242_v31 }
  0x92   : > { %3793 = vmatprep.mubr.msk.bf16.mxu0 %vm818_vm0, %v4243_v32 }
  0x99   : > { %3794 = vmatmul.mubr.msk.bf16.gmra.mrb[60].mxu0 %vm818_vm0, %v4244_v33 }
  0x9a   : > { %3797 = vmatprep.mubr.msk.bf16.mxu0 %vm818_vm0, %v4245_v34 }
  0xa1   : > { %3798 = vmatmul.mubr.msk.bf16.gmra.mrb[64].mxu0 %vm818_vm0, %v4246_v35 }
  0xa2   : > { %3801 = vmatprep.mubr.msk.bf16.mxu0 %vm818_vm0, %v4247_v36 }
  0xa9   : > { %3802 = vmatmul.mubr.msk.bf16.gmra.mrb[68].mxu0 %vm818_vm0, %v4248_v37 }
  0xaa   : > { %3805 = vmatprep.mubr.msk.bf16.mxu0 %vm818_vm0, %v4249_v38 }
  0xb1   : > { %3806 = vmatmul.mubr.msk.bf16.gmra.mrb[72].mxu0 %vm818_vm0, %v4250_v39  ;;  %v4288_v39 = vld [vmem:[%s5332_s2 + $0x308] sm:$0xff]  }
  0xb2   : > { %3809 = vmatprep.mubr.msk.bf16.mxu0 %vm818_vm0, %v4251_v40  ;;  %3836 = vmatpush3.bf16.msra.mxu0 %v4288_v39 }
  0xb3   : > { %3837 = vmatprep.subr.bf16.mxu0 %v4433_v52 }
  0xb9   : > { %3810 = vmatmul.mubr.msk.bf16.gmra.mrb[76].mxu0 %vm818_vm0, %v4252_v41 }
  0xba   : > { %3813 = vmatprep.mubr.msk.bf16.mxu0 %vm818_vm0, %v4253_v42 }
  0xc1   : > { %3814 = vmatmul.mubr.msk.bf16.gmra.mrb[80].mxu0 %vm818_vm0, %v4254_v43 }
  0xc2   : > { %3817 = vmatprep.mubr.msk.bf16.mxu0 %vm818_vm0, %v4255_v44 }
  0xc9   : > { %3818 = vmatmul.mubr.msk.bf16.gmra.mrb[84].mxu0 %vm818_vm0, %v4256_v45 }
  0xca   : > { %3821 = vmatprep.mubr.msk.bf16.mxu0 %vm818_vm0, %v4257_v46 }
  0xd1   : > { %3822 = vmatmul.mubr.msk.bf16.gmra.mrb[88].mxu0 %vm818_vm0, %v4258_v47 }
  0xd2   : > { %3825 = vmatprep.mubr.msk.bf16.mxu0 %vm818_vm0, %v4259_v48 }
  0xd9   : > { %3826 = vmatmul.mubr.msk.bf16.gmra.mrb[92].mxu0 %vm818_vm0, %v4260_v49 }
  0xda   : > { %3829 = vmatprep.mubr.msk.bf16.mxu0 %vm818_vm0, %v4261_v50 }
  0xe1   : > { %3830 = vmatmul.mubr.msk.bf16.gmra.mrb[96].mxu0 %vm818_vm0, %v4262_v51 }
  0xe2   : > { %3841 = vmatprep.mubr.msk.bf16.mxu0 %vm4437_vm4, %v4433_v52 }
  0xf4   : > { %v3735_v58 = vpop.f32.mrb[0].mxu0 }
  0xf5   : > { %v4685_v60 = vpop.f32.mrb[1].mxu0 }
  0xf6   : > { %v3736_v62 = vpop.f32.mrb[2].mxu0 }
  0xf7   : > { %v4025_v63 = vpack.i.bf16 %v3736_v62, %v3735_v58  ;;  %v4690_v0 = vpop.f32.mrb[3].mxu0 }
  0xf9   : > { %4026 = vrot.lane.b32.xlu0 %v4025_v63, %s4434_s16 }
  0xfc   : > { %v3739_v3 = vpop.f32.mrb[4].mxu0 }
  0xfd   : > { %v1019_v5 = vpop.f32.mrb[5].mxu0 }
  0xfe   : > { %v3740_v7 = vpop.f32.mrb[6].mxu0 }
  0xff   : > { %v4050_v8 = vpack.i.bf16 %v3740_v7, %v3739_v3  ;;  %v1022_v9 = vpop.f32.mrb[7].mxu0 }
 0x100   : > { %v4030_v10 = vpack.i.bf16 %v1022_v9, %v1019_v5 }
 0x102   : > { %4031 = vrot.lane.b32.xlu1 %v4030_v10, %s4435_s18 }
 0x104   : > { %v3743_v13 = vpop.f32.mrb[8].mxu0 }
 0x105   : > { %v4715_v15 = vpop.f32.mrb[9].mxu0 }
 0x106   : > { %v3744_v17 = vpop.f32.mrb[10].mxu0 }
 0x107   : > { %v4035_v18 = vpack.i.bf16 %v3744_v17, %v3743_v13  ;;  %v4720_v19 = vpop.f32.mrb[11].mxu0  ;;  %v4315_v13 = vld [vmem:[%s5332_s2 + $0x310] sm:$0xff]  }
 0x108   : > { %3838 = vmatpush3.bf16.msra.mxu0 %v4315_v13 }
 0x109   : > { %4036 = vrot.lane.b32.xlu0 %v4035_v18, %s4434_s16  ;;  %3839 = vmatprep.subr.bf16.mxu0 %v4433_v52 }
 0x10c   : > { %v3747_v22 = vpop.f32.mrb[12].mxu0 }
 0x10d   : > { %v1051_v23 = vpop.f32.mrb[13].mxu0 }
 0x10e   : > { %v3748_v25 = vpop.f32.mrb[14].mxu0 }
 0x10f   : > { %v4040_v26 = vpack.i.bf16 %v3748_v25, %v3747_v22  ;;  %v1054_v27 = vpop.f32.mrb[15].mxu0 }
 0x110   : > { %v4045_v28 = vpack.i.bf16 %v1054_v27, %v1051_v23 }
 0x111   : > { %4041 = vrot.lane.b32.xlu0 %v4040_v26, %s4436_s26 }
 0x112   : > { %4046 = vrot.lane.b32.xlu1 %v4045_v28, %s4435_s18 }
 0x114   : > { %v3751_v29 = vpop.f32.mrb[16].mxu0 }
 0x115   : > { %v4734_v30 = vpop.f32.mrb[17].mxu0 }
 0x116   : > { %4051 = vrot.lane.b32.xlu1 %v4050_v8, %s4436_s26  ;;  %v3752_v31 = vpop.f32.mrb[18].mxu0 }
 0x117   : > { %v4055_v32 = vpack.i.bf16 %v3752_v31, %v3751_v29  ;;  %v4737_v33 = vpop.f32.mrb[19].mxu0 }
 0x11a   : > { %4056 = vrot.lane.b32.xlu1 %v4055_v32, %s4434_s16 }
 0x11c   : > { %v3755_v34 = vpop.f32.mrb[20].mxu0 }
 0x11d   : > { %v1083_v35 = vpop.f32.mrb[21].mxu0 }
 0x11e   : > { %v3756_v36 = vpop.f32.mrb[22].mxu0 }
 0x11f   : > { %v4080_v37 = vpack.i.bf16 %v3756_v36, %v3755_v34  ;;  %v1086_v38 = vpop.f32.mrb[23].mxu0 }
 0x120   : > { %v4060_v40 = vpack.i.bf16 %v1086_v38, %v1083_v35 }
 0x122   : > { %4061 = vrot.lane.b32.xlu1 %v4060_v40, %s4435_s18 }
 0x124   : > { %v3759_v41 = vpop.f32.mrb[24].mxu0 }
 0x125   : > { %v4745_v42 = vpop.f32.mrb[25].mxu0 }
 0x126   : > { %4081 = vrot.lane.b32.xlu1 %v4080_v37, %s4436_s26  ;;  %v3760_v43 = vpop.f32.mrb[26].mxu0 }
 0x127   : > { %v4065_v44 = vpack.i.bf16 %v3760_v43, %v3759_v41  ;;  %v4748_v45 = vpop.f32.mrb[27].mxu0 }
 0x129   : > { %4066 = vrot.lane.b32.xlu0 %v4065_v44, %s4434_s16 }
 0x12c   : > { %v3763_v46 = vpop.f32.mrb[28].mxu0 }
 0x12d   : > { %v1115_v47 = vpop.f32.mrb[29].mxu0 }
 0x12e   : > { %v3764_v48 = vpop.f32.mrb[30].mxu0 }
 0x12f   : > { %v4075_v49 = vpack.i.bf16 %v3764_v48, %v3763_v46  ;;  %v1118_v50 = vpop.f32.mrb[31].mxu0 }
 0x130   : > { %v4070_v51 = vpack.i.bf16 %v1118_v50, %v1115_v47 }
 0x132   : > { %4071 = vrot.lane.b32.xlu0 %v4070_v51, %s4435_s18 }
 0x134   : > { %v3767_v53 = vpop.f32.mrb[32].mxu0 }
 0x135   : > { %v4752_v54 = vpop.f32.mrb[33].mxu0 }
 0x136   : > { %4076 = vrot.lane.b32.xlu0 %v4075_v49, %s4436_s26  ;;  %v3768_v55 = vpop.f32.mrb[34].mxu0 }
 0x137   : > { %v4085_v56 = vpack.i.bf16 %v3768_v55, %v3767_v53  ;;  %v4755_v57 = vpop.f32.mrb[35].mxu0 }
 0x139   : > { %4086 = vrot.lane.b32.xlu1 %v4085_v56, %s4434_s16 }
 0x13c   : > { %v3771_v58 = vpop.f32.mrb[36].mxu0 }
 0x13d   : > { %v1147_v59 = vpop.f32.mrb[37].mxu0 }
 0x13e   : > { %v3772_v61 = vpop.f32.mrb[38].mxu0 }
 0x13f   : > { %v4110_v62 = vpack.i.bf16 %v3772_v61, %v3771_v58  ;;  %v1150_v63 = vpop.f32.mrb[39].mxu0 }
 0x140   : > { %v4090_v1 = vpack.i.bf16 %v1150_v63, %v1147_v59  ;;  %v4340_v59 = vld [vmem:[%s5332_s2 + $0x318] sm:$0xff]  }
 0x141   : > { %3840 = vmatpush3.bf16.msra.mxu0 %v4340_v59  ;;  %v4286_v59 = vld [vmem:[%s5332_s2 + $0xd8] sm:$0xff]  }
 0x142   : > { %4091 = vrot.lane.b32.xlu1 %v4090_v1, %s4435_s18 }
 0x144   : > { %v3775_v2 = vpop.f32.mrb[40].mxu0 }
 0x145   : > { %v4759_v3 = vpop.f32.mrb[41].mxu0 }
 0x146   : > { %4111 = vrot.lane.b32.xlu1 %v4110_v62, %s4436_s26  ;;  %v3776_v4 = vpop.f32.mrb[42].mxu0 }
 0x147   : > { %v4095_v5 = vpack.i.bf16 %v3776_v4, %v3775_v2  ;;  %v4762_v6 = vpop.f32.mrb[43].mxu0 }
 0x149   : > { %4096 = vrot.lane.b32.xlu0 %v4095_v5, %s4434_s16 }
 0x14c   : > { %v3779_v7 = vpop.f32.mrb[44].mxu0 }
 0x14d   : > { %v1179_v8 = vpop.f32.mrb[45].mxu0 }
 0x14e   : > { %v3780_v9 = vpop.f32.mrb[46].mxu0 }
 0x14f   : > { %v4105_v10 = vpack.i.bf16 %v3780_v9, %v3779_v7  ;;  %v1182_v11 = vpop.f32.mrb[47].mxu0 }
 0x150   : > { %v4100_v12 = vpack.i.bf16 %v1182_v11, %v1179_v8 }
 0x152   : > { %4101 = vrot.lane.b32.xlu0 %v4100_v12, %s4435_s18 }
 0x154   : > { %v3783_v14 = vpop.f32.mrb[48].mxu0 }
 0x155   : > { %v4770_v16 = vpop.f32.mrb[49].mxu0 }
 0x156   : > { %4106 = vrot.lane.b32.xlu0 %v4105_v10, %s4436_s26  ;;  %v3784_v17 = vpop.f32.mrb[50].mxu0 }
 0x157   : > { %v4115_v18 = vpack.i.bf16 %v3784_v17, %v3783_v14  ;;  %v4773_v20 = vpop.f32.mrb[51].mxu0 }
 0x159   : > { %4116 = vrot.lane.b32.xlu1 %v4115_v18, %s4434_s16 }
 0x15c   : > { %v3787_v21 = vpop.f32.mrb[52].mxu0 }
 0x15d   : > { %v1211_v22 = vpop.f32.mrb[53].mxu0 }
 0x15e   : > { %v3788_v23 = vpop.f32.mrb[54].mxu0 }
 0x15f   : > { %v4140_v24 = vpack.i.bf16 %v3788_v23, %v3787_v21  ;;  %v1214_v25 = vpop.f32.mrb[55].mxu0 }
 0x160   : > { %v4120_v26 = vpack.i.bf16 %v1214_v25, %v1211_v22 }
 0x162   : > { %4121 = vrot.lane.b32.xlu1 %v4120_v26, %s4435_s18 }
 0x164   : > { %v3791_v27 = vpop.f32.mrb[56].mxu0 }
 0x165   : > { %v4777_v28 = vpop.f32.mrb[57].mxu0 }
 0x166   : > { %4141 = vrot.lane.b32.xlu1 %v4140_v24, %s4436_s26  ;;  %v3792_v29 = vpop.f32.mrb[58].mxu0 }
 0x167   : > { %v4125_v31 = vpack.i.bf16 %v3792_v29, %v3791_v27  ;;  %v4780_v32 = vpop.f32.mrb[59].mxu0 }
 0x169   : > { %4126 = vrot.lane.b32.xlu0 %v4125_v31, %s4434_s16 }
 0x16b   : > { %v4027_v47 = vpop.permute.xlu0 %4026 }
 0x16c   : > { %v3795_v34 = vpop.f32.mrb[60].mxu0  ;;  %v4029_v1 = vunpack.i.h.bf16 %v4027_v47  ;;  %v4028_v2 = vunpack.i.l.bf16 %v4027_v47 }
 0x16d   : > { %v1243_v35 = vpop.f32.mrb[61].mxu0 }
 0x16e   : > { %v3796_v36 = vpop.f32.mrb[62].mxu0  ;;  %v1499_v25 = vsel %vm1498_vm1, %v4685_v60, %v4028_v2 }
 0x16f   : > { %v4135_v37 = vpack.i.bf16 %v3796_v36, %v3795_v34  ;;  %v1246_v38 = vpop.f32.mrb[63].mxu0 }
 0x170   : > { %v4130_v39 = vpack.i.bf16 %v1246_v38, %v1243_v35  ;;  %v4281_v38 = vld [vmem:[%s5332_s2 + $0x80] sm:$0xff]  }
 0x172   : > { %4131 = vrot.lane.b32.xlu0 %v4130_v39, %s4435_s18 }
 0x174   : > { %v3799_v40 = vpop.f32.mrb[64].mxu0  ;;  %v4032_v56 = vpop.permute.xlu1 %4031 }
 0x175   : > { %v4784_v41 = vpop.f32.mrb[65].mxu0  ;;  %v4034_v7 = vunpack.i.h.bf16 %v4032_v56  ;;  %v4033_v8 = vunpack.i.l.bf16 %v4032_v56 }
 0x176   : > { %4136 = vrot.lane.b32.xlu0 %v4135_v37, %s4436_s26  ;;  %v3800_v43 = vpop.f32.mrb[66].mxu0 }
 0x177   : > { %v4145_v44 = vpack.i.bf16 %v3800_v43, %v3799_v40  ;;  %v4787_v46 = vpop.f32.mrb[67].mxu0  ;;  %v1502_v36 = vsel %vm1501_vm2, %v1499_v25, %v4033_v8  ;;  %v4282_v40 = vld [vmem:[%s5332_s2 + $0xc8] sm:$0xff]   ;;  %v4287_v8 = vld [vmem:[%s5332_s2 + $0x98] sm:$0xff]  }
 0x179   : > { %4146 = vrot.lane.b32.xlu1 %v4145_v44, %s4434_s16 }
 0x17b   : > { %v4037_v51 = vpop.permute.xlu0 %4036 }
 0x17c   : > { %v3803_v48 = vpop.f32.mrb[68].mxu0  ;;  %v4039_v61 = vunpack.i.h.bf16 %v4037_v51  ;;  %v4038_v62 = vunpack.i.l.bf16 %v4037_v51 }
 0x17d   : > { %v1275_v49 = vpop.f32.mrb[69].mxu0 }
 0x17e   : > { %v3804_v50 = vpop.f32.mrb[70].mxu0  ;;  %v1507_v17 = vsel %vm1498_vm1, %v4715_v15, %v4038_v62  ;;  %v1508_v18 = vsel %vm1498_vm1, %v4720_v19, %v4039_v61  ;;  %v1500_v15 = vsel %vm1498_vm1, %v4690_v0, %v4029_v1 }
 0x17f   : > { %v4170_v53 = vpack.i.bf16 %v3804_v50, %v3803_v48  ;;  %v1278_v55 = vpop.f32.mrb[71].mxu0  ;;  %v1503_v35 = vsel %vm1501_vm2, %v1500_v15, %v4034_v7 }
 0x180   : > { %v4150_v58 = vpack.i.bf16 %v1278_v55, %v1275_v49  ;;  %v4283_v49 = vld [vmem:[%s5332_s2 + $0x88] sm:$0xff]   ;;  %v4285_v55 = vld [vmem:[%s5332_s2 + $0x90] sm:$0xff]  }
 0x182   : > { %4151 = vrot.lane.b32.xlu1 %v4150_v58, %s4435_s18 }
 0x183   : > { %v4042_v63 = vpop.permute.xlu0 %4041 }
 0x184   : > { %v4047_v4 = vpop.permute.xlu1 %4046  ;;  %v3807_v5 = vpop.f32.mrb[72].mxu0  ;;  %v4044_v12 = vunpack.i.h.bf16 %v4042_v63  ;;  %v4043_v13 = vunpack.i.l.bf16 %v4042_v63 }
 0x185   : > { %v4049_v9 = vunpack.i.h.bf16 %v4047_v4  ;;  %v4048_v10 = vunpack.i.l.bf16 %v4047_v4  ;;  %v4794_v11 = vpop.f32.mrb[73].mxu0 }
 0x186   : > { %4171 = vrot.lane.b32.xlu1 %v4170_v53, %s4436_s26  ;;  %v3808_v14 = vpop.f32.mrb[74].mxu0  ;;  %v4284_v53 = vld [vmem:[%s5332_s2 + $0xd0] sm:$0xff]  }
 0x187   : > { %v4155_v21 = vpack.i.bf16 %v3808_v14, %v3807_v5  ;;  %v4801_v22 = vpop.f32.mrb[75].mxu0  ;;  %v1509_v23 = vsel %vm1501_vm2, %v1507_v17, %v4048_v10  ;;  %v1510_v24 = vsel %vm1501_vm2, %v1508_v18, %v4049_v9  ;;  %v4289_v10 = vld [vmem:[%s5332_s2 + $0xe0] sm:$0xff]  }
 0x188   : > { %v4052_v26 = vpop.permute.xlu1 %4051  ;;  %v1511_v27 = vsel %vm1504_vm3, %v1509_v23, %v4043_v13  ;;  %v1512_v29 = vsel %vm1504_vm3, %v1510_v24, %v4044_v12 }
 0x189   : > { %v4054_v31 = vunpack.i.h.bf16 %v4052_v26  ;;  %v4053_v19 = vunpack.i.l.bf16 %v4052_v26  ;;  %4156 = vrot.lane.b32.xlu0 %v4155_v21, %s4434_s16  ;;  %v1776_v34 = vpack.c.bf16 %v1512_v29, %v1511_v27 }
 0x18b   : > { %2630 = vmatprep.mubr.bf16.mxu1 %v1776_v34  ;;  %v1505_v60 = vsel %vm1504_vm3, %v1502_v36, %v4053_v19  ;;  %v1506_v37 = vsel %vm1504_vm3, %v1503_v35, %v4054_v31  ;;  %v4292_v19 = vld [vmem:[%s5332_s2 + $0xa8] sm:$0xff]   ;;  %v4293_v36 = vld [vmem:[%s5332_s2 + $0xf0] sm:$0xff]  }
 0x18c   : > { %v3811_v39 = vpop.f32.mrb[76].mxu0  ;;  %v1775_v0 = vpack.c.bf16 %v1506_v37, %v1505_v60  ;;  %v4057_v50 = vpop.permute.xlu1 %4056  ;;  %v4294_v60 = vld [vmem:[%s5332_s2 + $0xb0] sm:$0xff]  }
 0x18d   : > { %v1307_v43 = vpop.f32.mrb[77].mxu0  ;;  %v4059_v61 = vunpack.i.h.bf16 %v4057_v50  ;;  %v4058_v62 = vunpack.i.l.bf16 %v4057_v50 }
 0x18e   : > { %v3812_v44 = vpop.f32.mrb[78].mxu0  ;;  %2631 = vmatmul.mubr.bf16.vlgmr.msra.gmra.mrb[0].mxu1 %v1775_v0 }
 0x18f   : > { %v4165_v47 = vpack.i.bf16 %v3812_v44, %v3811_v39  ;;  %v1310_v48 = vpop.f32.mrb[79].mxu0  ;;  %3581 = vmatpush3.bf16.msra.mxu1 %v4281_v38  ;;  %v1513_v12 = vsel %vm1498_vm1, %v4734_v30, %v4058_v62  ;;  %v1514_v13 = vsel %vm1498_vm1, %v4737_v33, %v4059_v61  ;;  %v4290_v30 = vld [vmem:[%s5332_s2 + $0xa0] sm:$0xff]   ;;  %v4291_v33 = vld [vmem:[%s5332_s2 + $0xe8] sm:$0xff]   ;;  %v4295_v39 = vld [vmem:[%s5332_s2 + $0xf8] sm:$0xff]  }
 0x190   : > { %v4160_v51 = vpack.i.bf16 %v1310_v48, %v1307_v43  ;;  %3582 = vmatprep.subr.bf16.mxu1 %v4282_v40 }
 0x192   : > { %4161 = vrot.lane.b32.xlu0 %v4160_v51, %s4435_s18  ;;  %v4296_v51 = vld [vmem:[%s5332_s2 + $0xb8] sm:$0xff]  }
 0x193   : > { %3583 = vmatpush3.bf16.msra.mxu1 %v4283_v49 }
 0x194   : > { %v4062_v56 = vpop.permute.xlu1 %4061  ;;  %v3815_v58 = vpop.f32.mrb[80].mxu0  ;;  %3584 = vmatprep.subr.bf16.mxu1 %v4284_v53 }
 0x195   : > { %v4835_v63 = vpop.f32.mrb[81].mxu0  ;;  %v4064_v1 = vunpack.i.h.bf16 %v4062_v56  ;;  %v4063_v2 = vunpack.i.l.bf16 %v4062_v56 }
 0x196   : > { %4166 = vrot.lane.b32.xlu0 %v4165_v47, %s4436_s26  ;;  %v3816_v4 = vpop.f32.mrb[82].mxu0 }
 0x197   : > { %v4175_v5 = vpack.i.bf16 %v3816_v4, %v3815_v58  ;;  %v4838_v7 = vpop.f32.mrb[83].mxu0  ;;  %3585 = vmatpush3.bf16.msra.mxu1 %v4285_v55  ;;  %v1516_v18 = vsel %vm1501_vm2, %v1514_v13, %v4064_v1  ;;  %v1515_v21 = vsel %vm1501_vm2, %v1513_v12, %v4063_v2  ;;  %v4297_v55 = vld [vmem:[%s5332_s2 + $0x140] sm:$0xff]  }
 0x198   : > { %v4082_v9 = vpop.permute.xlu1 %4081  ;;  %3586 = vmatprep.subr.bf16.mxu1 %v4286_v59 }
 0x199   : > { %v4084_v14 = vunpack.i.h.bf16 %v4082_v9  ;;  %v4083_v17 = vunpack.i.l.bf16 %v4082_v9  ;;  %4176 = vrot.lane.b32.xlu1 %v4175_v5, %s4434_s16  ;;  %v4299_v9 = vld [vmem:[%s5332_s2 + $0x148] sm:$0xff]  }
 0x19b   : > { %v1517_v23 = vsel %vm1504_vm3, %v1515_v21, %v4083_v17  ;;  %v1518_v24 = vsel %vm1504_vm3, %v1516_v18, %v4084_v14  ;;  %3587 = vmatpush3.bf16.msra.mxu1 %v4287_v8  ;;  %v4067_v34 = vpop.permute.xlu0 %4066  ;;  %v4300_v18 = vld [vmem:[%s5332_s2 + $0x108] sm:$0xff]   ;;  %v4301_v21 = vld [vmem:[%s5332_s2 + $0x150] sm:$0xff]  }
 0x19c   : > { %v1777_v25 = vpack.c.bf16 %v1518_v24, %v1517_v23  ;;  %v3819_v26 = vpop.f32.mrb[84].mxu0  ;;  %3588 = vmatprep.subr.bf16.mxu1 %v4289_v10  ;;  %v4069_v0 = vunpack.i.h.bf16 %v4067_v34  ;;  %v4068_v40 = vunpack.i.l.bf16 %v4067_v34 }
 0x19d   : > { %v1339_v27 = vpop.f32.mrb[85].mxu0 }
 0x19e   : > { %v3820_v29 = vpop.f32.mrb[86].mxu0  ;;  %v1519_v56 = vsel %vm1498_vm1, %v4745_v42, %v4068_v40  ;;  %v1520_v58 = vsel %vm1498_vm1, %v4748_v45, %v4069_v0  ;;  %v4298_v42 = vld [vmem:[%s5332_s2 + $0x100] sm:$0xff]  }
 0x19f   : > { %v4200_v15 = vpack.i.bf16 %v3820_v29, %v3819_v26  ;;  %v1342_v31 = vpop.f32.mrb[87].mxu0  ;;  %3589 = vmatpush3.bf16.msra.mxu1 %v4290_v30  ;;  %v4302_v30 = vld [vmem:[%s5332_s2 + $0x110] sm:$0xff]  }
 0x1a0   : > { %v4180_v35 = vpack.i.bf16 %v1342_v31, %v1339_v27  ;;  %3590 = vmatprep.subr.bf16.mxu1 %v4291_v33  ;;  %v4303_v27 = vld [vmem:[%s5332_s2 + $0x158] sm:$0xff]  }
 0x1a2   : > { %4181 = vrot.lane.b32.xlu1 %v4180_v35, %s4435_s18  ;;  %v4304_v35 = vld [vmem:[%s5332_s2 + $0x118] sm:$0xff]  }
 0x1a3   : > { %3591 = vmatpush3.bf16.msra.mxu1 %v4292_v19 }
 0x1a4   : > { %v4072_v37 = vpop.permute.xlu0 %4071  ;;  %v3823_v38 = vpop.f32.mrb[88].mxu0  ;;  %3592 = vmatprep.subr.bf16.mxu1 %v4293_v36 }
 0x1a5   : > { %v4874_v43 = vpop.f32.mrb[89].mxu0  ;;  %v4074_v44 = vunpack.i.h.bf16 %v4072_v37  ;;  %v4073_v47 = vunpack.i.l.bf16 %v4072_v37 }
 0x1a6   : > { %4201 = vrot.lane.b32.xlu1 %v4200_v15, %s4436_s26  ;;  %v3824_v48 = vpop.f32.mrb[90].mxu0 }
 0x1a7   : > { %v4185_v49 = vpack.i.bf16 %v3824_v48, %v3823_v38  ;;  %v4877_v50 = vpop.f32.mrb[91].mxu0  ;;  %3593 = vmatpush3.bf16.msra.mxu1 %v4294_v60  ;;  %v1522_v62 = vsel %vm1501_vm2, %v1520_v58, %v4074_v44  ;;  %v1521_v1 = vsel %vm1501_vm2, %v1519_v56, %v4073_v47  ;;  %v4307_v48 = vld [vmem:[%s5332_s2 + $0x168] sm:$0xff]   ;;  %v4310_v56 = vld [vmem:[%s5332_s2 + $0x130] sm:$0xff]  }
 0x1a8   : > { %v4077_v53 = vpop.permute.xlu0 %4076  ;;  %3594 = vmatprep.subr.bf16.mxu1 %v4295_v39  ;;  %v4305_v39 = vld [vmem:[%s5332_s2 + $0x160] sm:$0xff]  }
 0x1a9   : > { %v4079_v59 = vunpack.i.h.bf16 %v4077_v53  ;;  %v4078_v61 = vunpack.i.l.bf16 %v4077_v53  ;;  %4186 = vrot.lane.b32.xlu0 %v4185_v49, %s4434_s16  ;;  %v4309_v53 = vld [vmem:[%s5332_s2 + $0x170] sm:$0xff]  }
 0x1ab   : > { %3595 = vmatpush3.bf16.msra.mxu1 %v4296_v51  ;;  %v1523_v2 = vsel %vm1504_vm3, %v1521_v1, %v4078_v61  ;;  %v1524_v4 = vsel %vm1504_vm3, %v1522_v62, %v4079_v59  ;;  %v4087_v14 = vpop.permute.xlu1 %4086  ;;  %v4308_v51 = vld [vmem:[%s5332_s2 + $0x128] sm:$0xff]   ;;  %v4311_v61 = vld [vmem:[%s5332_s2 + $0x178] sm:$0xff]  }
 0x1ac   : > { %v3827_v5 = vpop.f32.mrb[92].mxu0  ;;  %v1778_v8 = vpack.c.bf16 %v1524_v4, %v1523_v2  ;;  %3602 = vmatprep.subr.bf16.mxu1 %v4297_v55  ;;  %v4088_v26 = vunpack.i.l.bf16 %v4087_v14  ;;  %v4312_v4 = vld [vmem:[%s5332_s2 + $0x138] sm:$0xff]  }
 0x1ad   : > { %v1371_v45 = vpop.f32.mrb[93].mxu0 }
 0x1ae   : > { %v3828_v10 = vpop.f32.mrb[94].mxu0  ;;  %2671 = vmatprep.mubr.bf16.mxu1 %v1778_v8  ;;  %v1621_v36 = vsel %vm1498_vm1, %v4752_v54, %v4088_v26 }
 0x1af   : > { %v4195_v12 = vpack.i.bf16 %v3828_v10, %v3827_v5  ;;  %v1374_v13 = vpop.f32.mrb[95].mxu0  ;;  %2672 = vmatmul.mubr.bf16.vlgmr.msra.gmra.mrb[4].mxu1 %v1777_v25  ;;  %v4089_v25 = vunpack.i.h.bf16 %v4087_v14 }
 0x1b0   : > { %v4190_v17 = vpack.i.bf16 %v1374_v13, %v1371_v45  ;;  %3603 = vmatpush3.bf16.msra.mxu1 %v4298_v42 }
 0x1b1   : > { %3604 = vmatprep.subr.bf16.mxu1 %v4299_v9  ;;  %v1622_v60 = vsel %vm1498_vm1, %v4755_v57, %v4089_v25  ;;  %v4306_v57 = vld [vmem:[%s5332_s2 + $0x120] sm:$0xff]  }
 0x1b2   : > { %4191 = vrot.lane.b32.xlu0 %v4190_v17, %s4435_s18  ;;  %v4313_v9 = vld [vmem:[%s5332_s2 + $0x1c0] sm:$0xff]   ;;  %v4316_v17 = vld [vmem:[%s5332_s2 + $0x1c8] sm:$0xff]   ;;  %s4373_s18 = sshll.u32 %s4439_s7, 4  ;;  %s4374_s18 = int_to_ptr.vmem [resolvable:$false] %s4373_s18 }
 0x1b4   : > { %3605 = vmatpush3.bf16.msra.mxu1 %v4300_v18  ;;  %v4092_v23 = vpop.permute.xlu1 %4091  ;;  %v3831_v24 = vpop.f32.mrb[96].mxu0 }
 0x1b5   : > { %v4911_v33 = vpop.f32.mrb[97].mxu0  ;;  %3606 = vmatprep.subr.bf16.mxu1 %v4301_v21  ;;  %v4094_v29 = vunpack.i.h.bf16 %v4092_v23  ;;  %v4093_v52 = vunpack.i.l.bf16 %v4092_v23  ;;  %v4317_v21 = vld [vmem:[%s5332_s2 + $0x188] sm:$0xff]   ;;  %v4318_v23 = vld [vmem:[%s5332_s2 + $0x1d0] sm:$0xff]  }
 0x1b6   : > { %4196 = vrot.lane.b32.xlu0 %v4195_v12, %s4436_s26  ;;  %v3832_v15 = vpop.f32.mrb[98].mxu0  ;;  %s5263_s26 = sshll.u32 %s4553_s30, 4 }
 0x1b7   : > { %v4205_v31 = vpack.i.bf16 %v3832_v15, %v3831_v24  ;;  %v4917_v19 = vpop.f32.mrb[99].mxu0  ;;  %v1624_v0 = vsel %vm1501_vm2, %v1622_v60, %v4094_v29  ;;  %v1623_v40 = vsel %vm1501_vm2, %v1621_v36, %v4093_v52  ;;  %s453_s17 = scalar_lea.vmem %s5339_s9, %s5263_s26  ;;  %s458_s25 = scalar_lea.vmem %s5341_s11, %s5263_s26 }
 0x1b8   : > { %3607 = vmatpush3.bf16.msra.mxu1 %v4302_v30  ;;  %v4112_v34 = vpop.permute.xlu1 %4111  ;;  %v4319_v30 = vld [vmem:[%s5332_s2 + $0x190] sm:$0xff]  }
 0x1b9   : > { %v4114_v37 = vunpack.i.h.bf16 %v4112_v34  ;;  %v4113_v38 = vunpack.i.l.bf16 %v4112_v34  ;;  %3608 = vmatprep.subr.bf16.mxu1 %v4303_v27  ;;  %v4320_v27 = vld [vmem:[%s5332_s2 + $0x1d8] sm:$0xff]  }
 0x1ba   : > { %4206 = vrot.lane.b32.xlu0 %v4205_v31, %s4434_s16  ;;  %v4321_v31 = vld [vmem:[%s5332_s2 + $0x198] sm:$0xff]   ;;  %s448_s16 = scalar_lea.vmem %s5338_s8, %s5263_s26  ;;  %s3163_s26 = sshll.u32 %s426_s15, 4  ;;  %s5290_s26 = int_to_ptr.vmem [resolvable:$true] %s3163_s26 }
 0x1bb   : > { %v1625_v44 = vsel %vm1504_vm3, %v1623_v40, %v4113_v38  ;;  %v1626_v54 = vsel %vm1504_vm3, %v1624_v0, %v4114_v37  ;;  %v4097_v49 = vpop.permute.xlu0 %4096  ;;  %v4322_v37 = vld [vmem:[%s5332_s2 + $0x1e0] sm:$0xff]   ;;  %s4369_s12 = scalar_lea.vmem %s5290_s26, 16  ;;  %p4376_p0 = scmp.lt.s32.totalorder %s5290_s26, %s4374_s18 }
 0x1bc   : > { %v1779_v47 = vpack.c.bf16 %v1626_v54, %v1625_v44  ;;  %3609 = vmatpush3.bf16.msra.mxu1 %v4304_v35  ;;  %v4099_v58 = vunpack.i.h.bf16 %v4097_v49  ;;  %v4098_v59 = vunpack.i.l.bf16 %v4097_v49  ;;  %v4327_v49 = vld [vmem:[%s5332_s2 + $0x1b0] sm:$0xff]   ;;  %p4370_p11 = scmp.ne.s32.totalorder %s5290_s26, %s4369_s12 }
 0x1bd   : > { %3610 = vmatprep.subr.bf16.mxu1 %v4305_v39 }
 0x1be   : > { %v1627_v5 = vsel %vm1498_vm1, %v4759_v3, %v4098_v59  ;;  %v1628_v8 = vsel %vm1498_vm1, %v4762_v6, %v4099_v58  ;;  %v4314_v6 = vld [vmem:[%s5332_s2 + $0x180] sm:$0xff]   ;;  %p4371_p12 = pnand %p4370_p11, %p4541_p5 }
 0x1c0   : > { %3611 = vmatpush3.bf16.msra.mxu1 %v4306_v57  ;;  %v4326_v57 = vld [vmem:[%s5332_s2 + $0x1f0] sm:$0xff]   ;;  %p4372_p13 = pneg %p4371_p12 }
 0x1c1   : > { %3612 = vmatprep.subr.bf16.mxu1 %v4307_v48 }
 0x1c4   : > { %3613 = vmatpush3.bf16.msra.mxu1 %v4308_v51  ;;  %v4102_v55 = vpop.permute.xlu0 %4101 }
 0x1c5   : > { %3614 = vmatprep.subr.bf16.mxu1 %v4309_v53  ;;  %v4104_v62 = vunpack.i.h.bf16 %v4102_v55  ;;  %v4103_v1 = vunpack.i.l.bf16 %v4102_v55  ;;  %v4328_v55 = vld [vmem:[%s5332_s2 + $0x1f8] sm:$0xff]  }
 0x1c7   : > { %v1630_v10 = vsel %vm1501_vm2, %v1628_v8, %v4104_v62  ;;  %v1629_v12 = vsel %vm1501_vm2, %v1627_v5, %v4103_v1  ;;  %v4330_v5 = vld [vmem:[%s5332_s2 + $0x240] sm:$0xff]  }
 0x1c8   : > { %3615 = vmatpush3.bf16.msra.mxu1 %v4310_v56  ;;  %v4107_v2 = vpop.permute.xlu0 %4106 }
 0x1c9   : > { %v4109_v42 = vunpack.i.h.bf16 %v4107_v2  ;;  %v4108_v45 = vunpack.i.l.bf16 %v4107_v2  ;;  %3616 = vmatprep.subr.bf16.mxu1 %v4311_v61  ;;  %v4329_v61 = vld [vmem:[%s5332_s2 + $0x1b8] sm:$0xff]  }
 0x1cb   : > { %v1631_v13 = vsel %vm1504_vm3, %v1629_v12, %v4108_v45  ;;  %v1632_v14 = vsel %vm1504_vm3, %v1630_v10, %v4109_v42  ;;  %v4117_v18 = vpop.permute.xlu1 %4116  ;;  %v4332_v10 = vld [vmem:[%s5332_s2 + $0x248] sm:$0xff]  }
 0x1cc   : > { %3617 = vmatpush3.bf16.msra.mxu1 %v4312_v4  ;;  %v1780_v3 = vpack.c.bf16 %v1632_v14, %v1631_v13  ;;  %v4119_v25 = vunpack.i.h.bf16 %v4117_v18  ;;  %v4118_v26 = vunpack.i.l.bf16 %v4117_v18  ;;  %v4333_v13 = vld [vmem:[%s5332_s2 + $0x208] sm:$0xff]   ;;  %v4334_v14 = vld [vmem:[%s5332_s2 + $0x250] sm:$0xff]  }
 0x1cd   : > { %3624 = vmatprep.subr.bf16.mxu1 %v4313_v9 }
 0x1ce   : > { %2712 = vmatprep.mubr.bf16.mxu1 %v1780_v3  ;;  %v1633_v34 = vsel %vm1498_vm1, %v4770_v16, %v4118_v26  ;;  %v1634_v35 = vsel %vm1498_vm1, %v4773_v20, %v4119_v25  ;;  %v4323_v16 = vld [vmem:[%s5332_s2 + $0x1a0] sm:$0xff]   ;;  %v4324_v20 = vld [vmem:[%s5332_s2 + $0x1e8] sm:$0xff]   ;;  %v4337_v25 = vld [vmem:[%s5332_s2 + $0x218] sm:$0xff]  }
 0x1cf   : > { %2713 = vmatmul.mubr.bf16.vlgmr.msra.gmra.mrb[8].mxu1 %v1779_v47  ;;  %v4325_v47 = vld [vmem:[%s5332_s2 + $0x1a8] sm:$0xff]  }
 0x1d0   : > { %3625 = vmatpush3.bf16.msra.mxu1 %v4314_v6  ;;  %v4335_v6 = vld [vmem:[%s5332_s2 + $0x210] sm:$0xff]  }
 0x1d1   : > { %3626 = vmatprep.subr.bf16.mxu1 %v4316_v17 }
 0x1d4   : > { %3627 = vmatpush3.bf16.msra.mxu1 %v4317_v21  ;;  %v4122_v24 = vpop.permute.xlu1 %4121  ;;  %v4336_v21 = vld [vmem:[%s5332_s2 + $0x258] sm:$0xff]  }
 0x1d5   : > { %3628 = vmatprep.subr.bf16.mxu1 %v4318_v23  ;;  %v4124_v29 = vunpack.i.h.bf16 %v4122_v24  ;;  %v4123_v52 = vunpack.i.l.bf16 %v4122_v24 }
 0x1d7   : > { %v1636_v38 = vsel %vm1501_vm2, %v1634_v35, %v4124_v29  ;;  %v1635_v39 = vsel %vm1501_vm2, %v1633_v34, %v4123_v52 }
 0x1d8   : > { %3629 = vmatpush3.bf16.msra.mxu1 %v4319_v30  ;;  %v4142_v15 = vpop.permute.xlu1 %4141 }
 0x1d9   : > { %v4144_v36 = vunpack.i.h.bf16 %v4142_v15  ;;  %v4143_v60 = vunpack.i.l.bf16 %v4142_v15  ;;  %3630 = vmatprep.subr.bf16.mxu1 %v4320_v27  ;;  %v4338_v15 = vld [vmem:[%s5332_s2 + $0x260] sm:$0xff]  }
 0x1db   : > { %v1637_v0 = vsel %vm1504_vm3, %v1635_v39, %v4143_v60  ;;  %v1638_v40 = vsel %vm1504_vm3, %v1636_v38, %v4144_v36  ;;  %v4127_v54 = vpop.permute.xlu0 %4126  ;;  %v4342_v38 = vld [vmem:[%s5332_s2 + $0x228] sm:$0xff]   ;;  %v4343_v39 = vld [vmem:[%s5332_s2 + $0x270] sm:$0xff]  }
 0x1dc   : > { %v1781_v44 = vpack.c.bf16 %v1638_v40, %v1637_v0  ;;  %3631 = vmatpush3.bf16.msra.mxu1 %v4321_v31  ;;  %v4129_v51 = vunpack.i.h.bf16 %v4127_v54  ;;  %v4128_v53 = vunpack.i.l.bf16 %v4127_v54  ;;  %v4344_v40 = vld [vmem:[%s5332_s2 + $0x230] sm:$0xff]  }
 0x1dd   : > { %3632 = vmatprep.subr.bf16.mxu1 %v4322_v37 }
 0x1de   : > { %v1639_v62 = vsel %vm1498_vm1, %v4777_v28, %v4128_v53  ;;  %v1640_v1 = vsel %vm1498_vm1, %v4780_v32, %v4129_v51  ;;  %v4331_v32 = vld [vmem:[%s5332_s2 + $0x200] sm:$0xff]  }
 0x1e0   : > { %3633 = vmatpush3.bf16.msra.mxu1 %v4323_v16 }
 0x1e1   : > { %3634 = vmatprep.subr.bf16.mxu1 %v4324_v20  ;;  %v4345_v20 = vld [vmem:[%s5332_s2 + $0x278] sm:$0xff]  }
 0x1e4   : > { %3635 = vmatpush3.bf16.msra.mxu1 %v4325_v47  ;;  %v4132_v48 = vpop.permute.xlu0 %4131 }
 0x1e5   : > { %3636 = vmatprep.subr.bf16.mxu1 %v4326_v57  ;;  %v4134_v56 = vunpack.i.h.bf16 %v4132_v48  ;;  %v4133_v58 = vunpack.i.l.bf16 %v4132_v48  ;;  %v4346_v48 = vld [vmem:[%s5332_s2 + $0x238] sm:$0xff]  }
 0x1e7   : > { %v1642_v8 = vsel %vm1501_vm2, %v1640_v1, %v4134_v56  ;;  %v1641_v42 = vsel %vm1501_vm2, %v1639_v62, %v4133_v58  ;;  %v4347_v56 = vld [vmem:[%s5332_s2 + $0x2c0] sm:$0xff]   ;;  %v4349_v1 = vld [vmem:[%s5332_s2 + $0x2c8] sm:$0xff]  }
 0x1e8   : > { %3637 = vmatpush3.bf16.msra.mxu1 %v4327_v49  ;;  %v4137_v59 = vpop.permute.xlu0 %4136 }
 0x1e9   : > { %v4139_v2 = vunpack.i.h.bf16 %v4137_v59  ;;  %v4138_v4 = vunpack.i.l.bf16 %v4137_v59  ;;  %3638 = vmatprep.subr.bf16.mxu1 %v4328_v55 }
 0x1eb   : > { %v1643_v45 = vsel %vm1504_vm3, %v1641_v42, %v4138_v4  ;;  %v1644_v9 = vsel %vm1504_vm3, %v1642_v8, %v4139_v2  ;;  %v4147_v12 = vpop.permute.xlu1 %4146  ;;  %v4350_v4 = vld [vmem:[%s5332_s2 + $0x288] sm:$0xff]   ;;  %v4352_v42 = vld [vmem:[%s5332_s2 + $0x290] sm:$0xff]  }
 0x1ec   : > { %3639 = vmatpush3.bf16.msra.mxu1 %v4329_v61  ;;  %v1782_v28 = vpack.c.bf16 %v1644_v9, %v1643_v45  ;;  %v4149_v17 = vunpack.i.h.bf16 %v4147_v12  ;;  %v4148_v18 = vunpack.i.l.bf16 %v4147_v12 }
 0x1ed   : > { %3646 = vmatprep.subr.bf16.mxu1 %v4330_v5  ;;  %v4351_v5 = vld [vmem:[%s5332_s2 + $0x2d0] sm:$0xff]  }
 0x1ee   : > { %2753 = vmatprep.mubr.bf16.mxu1 %v1782_v28  ;;  %v1741_v26 = vsel %vm1498_vm1, %v4784_v41, %v4148_v18  ;;  %v1742_v27 = vsel %vm1498_vm1, %v4787_v46, %v4149_v17  ;;  %v4339_v41 = vld [vmem:[%s5332_s2 + $0x220] sm:$0xff]   ;;  %v4341_v46 = vld [vmem:[%s5332_s2 + $0x268] sm:$0xff]   ;;  %v4353_v28 = vld [vmem:[%s5332_s2 + $0x2d8] sm:$0xff]  }
 0x1ef   : > { %2754 = vmatmul.mubr.bf16.vlgmr.msra.gmra.mrb[12].mxu1 %v1781_v44  ;;  %v4355_v18 = vld [vmem:[%s5332_s2 + $0x2e0] sm:$0xff]  }
 0x1f0   : > { %3647 = vmatpush3.bf16.msra.mxu1 %v4331_v32 }
 0x1f1   : > { %3648 = vmatprep.subr.bf16.mxu1 %v4332_v10 }
 0x1f4   : > { %3649 = vmatpush3.bf16.msra.mxu1 %v4333_v13  ;;  %v4152_v3 = vpop.permute.xlu1 %4151  ;;  %v4354_v13 = vld [vmem:[%s5332_s2 + $0x298] sm:$0xff]  }
 0x1f5   : > { %3650 = vmatprep.subr.bf16.mxu1 %v4334_v14  ;;  %v4154_v23 = vunpack.i.h.bf16 %v4152_v3  ;;  %v4153_v24 = vunpack.i.l.bf16 %v4152_v3 }
 0x1f7   : > { %v1744_v31 = vsel %vm1501_vm2, %v1742_v27, %v4154_v23  ;;  %v1743_v34 = vsel %vm1501_vm2, %v1741_v26, %v4153_v24  ;;  %v4358_v27 = vld [vmem:[%s5332_s2 + $0x2a8] sm:$0xff]  }
 0x1f8   : > { %3651 = vmatpush3.bf16.msra.mxu1 %v4335_v6  ;;  %v4172_v30 = vpop.permute.xlu1 %4171 }
 0x1f9   : > { %v4174_v29 = vunpack.i.h.bf16 %v4172_v30  ;;  %v4173_v52 = vunpack.i.l.bf16 %v4172_v30  ;;  %3652 = vmatprep.subr.bf16.mxu1 %v4336_v21 }
 0x1fb   : > { %v1745_v35 = vsel %vm1504_vm3, %v1743_v34, %v4173_v52  ;;  %v1746_v36 = vsel %vm1504_vm3, %v1744_v31, %v4174_v29  ;;  %v4157_v37 = vpop.permute.xlu0 %4156  ;;  %v4359_v29 = vld [vmem:[%s5332_s2 + $0x2f0] sm:$0xff]  }
 0x1fc   : > { %v1783_v60 = vpack.c.bf16 %v1746_v36, %v1745_v35  ;;  %3653 = vmatpush3.bf16.msra.mxu1 %v4337_v25  ;;  %v4159_v44 = vunpack.i.h.bf16 %v4157_v37  ;;  %v4158_v16 = vunpack.i.l.bf16 %v4157_v37  ;;  %v4361_v35 = vld [vmem:[%s5332_s2 + $0x2f8] sm:$0xff]  }
 0x1fd   : > { %3654 = vmatprep.subr.bf16.mxu1 %v4338_v15  ;;  %v4360_v15 = vld [vmem:[%s5332_s2 + $0x2b0] sm:$0xff]  }
 0x1fe   : > { %v1747_v49 = vsel %vm1498_vm1, %v4794_v11, %v4158_v16  ;;  %v1748_v51 = vsel %vm1498_vm1, %v4801_v22, %v4159_v44  ;;  %v4348_v22 = vld [vmem:[%s5332_s2 + $0x280] sm:$0xff]  }
 0x200   : > { %3655 = vmatpush3.bf16.msra.mxu1 %v4339_v41 }
 0x201   : > { %3656 = vmatprep.subr.bf16.mxu1 %v4341_v46  ;;  %v4362_v46 = vld [vmem:[%s5332_s2 + $0x2b8] sm:$0xff]  }
 0x204   : > { %3657 = vmatpush3.bf16.msra.mxu1 %v4342_v38  ;;  %v4162_v0 = vpop.permute.xlu0 %4161 }
 0x205   : > { %3658 = vmatprep.subr.bf16.mxu1 %v4343_v39  ;;  %v4164_v54 = vunpack.i.h.bf16 %v4162_v0  ;;  %v4163_v47 = vunpack.i.l.bf16 %v4162_v0 }
 0x207   : > { %v1750_v58 = vsel %vm1501_vm2, %v1748_v51, %v4164_v54  ;;  %v1749_v59 = vsel %vm1501_vm2, %v1747_v49, %v4163_v47 }
 0x208   : > { %3659 = vmatpush3.bf16.msra.mxu1 %v4344_v40  ;;  %v4167_v57 = vpop.permute.xlu0 %4166 }
 0x209   : > { %v4169_v53 = vunpack.i.h.bf16 %v4167_v57  ;;  %v4168_v55 = vunpack.i.l.bf16 %v4167_v57  ;;  %3660 = vmatprep.subr.bf16.mxu1 %v4345_v20 }
 0x20b   : > { %v1751_v61 = vsel %vm1504_vm3, %v1749_v59, %v4168_v55  ;;  %v1752_v62 = vsel %vm1504_vm3, %v1750_v58, %v4169_v53  ;;  %v4177_v2 = vpop.permute.xlu1 %4176 }
 0x20c   : > { %3661 = vmatpush3.bf16.msra.mxu1 %v4346_v48  ;;  %v1784_v11 = vpack.c.bf16 %v1752_v62, %v1751_v61  ;;  %v4179_v45 = vunpack.i.h.bf16 %v4177_v2  ;;  %v4178_v9 = vunpack.i.l.bf16 %v4177_v2  ;;  %v2887_v61 = vld [vmem:[%s5334_s4] sm:$0xff]  ;;  %v2892_v2 = vld [vmem:[%s5334_s4 + $0x28] sm:$0xff] }
 0x20d   : > { %3668 = vmatprep.subr.bf16.mxu1 %v4347_v56 }
 0x20e   : > { %2794 = vmatprep.mubr.bf16.mxu1 %v1784_v11  ;;  %v1753_v14 = vsel %vm1498_vm1, %v4835_v63, %v4178_v9  ;;  %v1754_v3 = vsel %vm1498_vm1, %v4838_v7, %v4179_v45  ;;  %v4356_v63 = vld [vmem:[%s5332_s2 + $0x2a0] sm:$0xff]   ;;  %v4357_v7 = vld [vmem:[%s5332_s2 + $0x2e8] sm:$0xff]   ;;  %v2890_v11 = vld [vmem:[%s5334_s4 + $0x18] sm:$0xff] }
 0x20f   : > { %2795 = vmatmul.mubr.bf16.vlgmr.msra.gmra.mrb[16].mxu1 %v1783_v60  ;;  %v2895_v45 = vld [vmem:[%s5334_s4 + $0x40] sm:$0xff]  ;;  %v2896_v9 = vld [vmem:[%s5334_s4 + $0x48] sm:$0xff] }
 0x210   : > { %3669 = vmatpush3.bf16.msra.mxu1 %v4348_v22 }
 0x211   : > { %3670 = vmatprep.subr.bf16.mxu1 %v4349_v1  ;;  %v2891_v1 = vld [vmem:[%s5334_s4 + $0x20] sm:$0xff] }
 0x214   : > { %3671 = vmatpush3.bf16.msra.mxu1 %v4350_v4  ;;  %v4182_v8 = vpop.permute.xlu1 %4181  ;;  %v3923_v4 = vpack.c.bf16 %v2892_v2, %v2891_v1 }
 0x215   : > { %3672 = vmatprep.subr.bf16.mxu1 %v4351_v5  ;;  %v4184_v32 = vunpack.i.h.bf16 %v4182_v8  ;;  %v4183_v10 = vunpack.i.l.bf16 %v4182_v8  ;;  %v2893_v5 = vld [vmem:[%s5334_s4 + $0x30] sm:$0xff]  ;;  %v2894_v8 = vld [vmem:[%s5334_s4 + $0x38] sm:$0xff] }
 0x217   : > { %v1756_v21 = vsel %vm1501_vm2, %v1754_v3, %v4184_v32  ;;  %v1755_v23 = vsel %vm1501_vm2, %v1753_v14, %v4183_v10  ;;  %v2897_v32 = vld [vmem:[%s5334_s4 + $0x50] sm:$0xff]  ;;  %v2898_v10 = vld [vmem:[%s5334_s4 + $0x58] sm:$0xff] }
 0x218   : > { %3673 = vmatpush3.bf16.msra.mxu1 %v4352_v42  ;;  %v4202_v12 = vpop.permute.xlu1 %4201  ;;  %v3927_v42 = vpack.c.bf16 %v2894_v8, %v2893_v5 }
 0x219   : > { %v4204_v6 = vunpack.i.h.bf16 %v4202_v12  ;;  %v4203_v17 = vunpack.i.l.bf16 %v4202_v12  ;;  %3674 = vmatprep.subr.bf16.mxu1 %v4353_v28  ;;  %v3931_v28 = vpack.c.bf16 %v2896_v9, %v2895_v45  ;;  %v3935_v12 = vpack.c.bf16 %v2898_v10, %v2897_v32 }
 0x21b   : > { %v1757_v24 = vsel %vm1504_vm3, %v1755_v23, %v4203_v17  ;;  %v1758_v30 = vsel %vm1504_vm3, %v1756_v21, %v4204_v6  ;;  %v4187_v26 = vpop.permute.xlu0 %4186  ;;  %v2899_v6 = vld [vmem:[%s5334_s4 + $0x60] sm:$0xff]  ;;  %v2900_v17 = vld [vmem:[%s5334_s4 + $0x68] sm:$0xff] }
 0x21c   : > { %v1785_v25 = vpack.c.bf16 %v1758_v30, %v1757_v24  ;;  %3675 = vmatpush3.bf16.msra.mxu1 %v4354_v13  ;;  %v4189_v31 = vunpack.i.h.bf16 %v4187_v26  ;;  %v4188_v34 = vunpack.i.l.bf16 %v4187_v26  ;;  %v3396_v13 = vld [vmem:[%s5333_s3] ss:$0 sm:$0xff]  ;;  %v3939_v24 = vpack.c.bf16 %v2900_v17, %v2899_v6  ;;  %v2901_v26 = vld [vmem:[%s5334_s4 + $0x70] sm:$0xff] }
 0x21d   : > { %3676 = vmatprep.subr.bf16.mxu1 %v4355_v18 }
 0x21e   : > { %v1759_v37 = vsel %vm1498_vm1, %v4874_v43, %v4188_v34  ;;  %v1760_v38 = vsel %vm1498_vm1, %v4877_v50, %v4189_v31  ;;  %v2988_v31 = vld [vmem:[%s5336_s6 + $0x8] sm:$0xff]  ;;  %v2989_v34 = vld [vmem:[%s5336_s6 + $0x10] sm:$0xff] }
 0x220   : > { %3677 = vmatpush3.bf16.msra.mxu1 %v4356_v63 }
 0x221   : > { %3678 = vmatprep.subr.bf16.mxu1 %v4357_v7 }
 0x224   : > { %3679 = vmatpush3.bf16.msra.mxu1 %v4358_v27  ;;  %v4192_v52 = vpop.permute.xlu0 %4191  ;;  %v2902_v27 = vld [vmem:[%s5334_s4 + $0x78] sm:$0xff] }
 0x225   : > { %3680 = vmatprep.subr.bf16.mxu1 %v4359_v29  ;;  %v4194_v36 = vunpack.i.h.bf16 %v4192_v52  ;;  %v4193_v60 = vunpack.i.l.bf16 %v4192_v52  ;;  %v3943_v52 = vpack.c.bf16 %v2902_v27, %v2901_v26  ;;  %v3001_v27 = vld [vmem:[%s5336_s6 + $0x70] sm:$0xff] }
 0x227   : > { %v1762_v40 = vsel %vm1501_vm2, %v1760_v38, %v4194_v36  ;;  %v1761_v44 = vsel %vm1501_vm2, %v1759_v37, %v4193_v60  ;;  %v2990_v36 = vld [vmem:[%s5336_s6 + $0x18] sm:$0xff]  ;;  %v2993_v38 = vld [vmem:[%s5336_s6 + $0x30] sm:$0xff] }
 0x228   : > { %3681 = vmatpush3.bf16.msra.mxu1 %v4360_v15  ;;  %v4197_v41 = vpop.permute.xlu0 %4196  ;;  %v2987_v15 = vld [vmem:[%s5336_s6] sm:$0xff]  ;;  %v3951_v60 = vpack.c.bf16 %v2990_v36, %v2989_v34 }
 0x229   : > { %v4199_v39 = vunpack.i.h.bf16 %v4197_v41  ;;  %v4198_v0 = vunpack.i.l.bf16 %v4197_v41  ;;  %3682 = vmatprep.subr.bf16.mxu1 %v4361_v35  ;;  %v3947_v35 = vpack.c.bf16 %v2988_v31, %v2987_v15  ;;  %v2991_v41 = vld [vmem:[%s5336_s6 + $0x20] sm:$0xff] }
 0x22a   : > { %v3498_v15 = vld [vmem:[%s5335_s5] ss:$0 sm:$0xff] }
 0x22b   : > { %v1763_v16 = vsel %vm1504_vm3, %v1761_v44, %v4198_v0  ;;  %v1764_v20 = vsel %vm1504_vm3, %v1762_v40, %v4199_v39  ;;  %3948 = vmatprep.subr.bf16.mxu0 %v3947_v35  ;;  %v2994_v39 = vld [vmem:[%s5336_s6 + $0x38] sm:$0xff]  ;;  %v2995_v40 = vld [vmem:[%s5336_s6 + $0x40] sm:$0xff]  ;;  %v2996_v44 = vld [vmem:[%s5336_s6 + $0x48] sm:$0xff] }
 0x22c   : > { %3683 = vmatpush3.bf16.msra.mxu1 %v4362_v46  ;;  %v4207_v54 = vpop.permute.xlu0 %4206  ;;  %v1786_v47 = vpack.c.bf16 %v1764_v20, %v1763_v16  ;;  %v2992_v46 = vld [vmem:[%s5336_s6 + $0x28] sm:$0xff]  ;;  %v3959_v0 = vpack.c.bf16 %v2994_v39, %v2993_v38  ;;  %v3963_v16 = vpack.c.bf16 %v2996_v44, %v2995_v40  ;;  %v2997_v20 = vld [vmem:[%s5336_s6 + $0x50] sm:$0xff]  ;;  %v3085_v44 = vld [vmem:[%s453_s17] sm:$0xff] }
 0x22d   : > { %v4209_v57 = vunpack.i.h.bf16 %v4207_v54  ;;  %v4208_v48 = vunpack.i.l.bf16 %v4207_v54  ;;  %v3955_v37 = vpack.c.bf16 %v2992_v46, %v2991_v41  ;;  %v2998_v54 = vld [vmem:[%s5336_s6 + $0x58] sm:$0xff]  ;;  %v4438_v46 = vmov 0   ;;  %v3086_v39 = vld [vmem:[%s453_s17 + $0x8] sm:$0xff] }
 0x22e   : > { %2835 = vmatprep.mubr.bf16.mxu1 %v1786_v47  ;;  %v3967_v47 = vpack.c.bf16 %v2998_v54, %v2997_v20  ;;  %4211 = vset.pattern.permute.xlu0 %v4438_v46 }
 0x22f   : > { %v1773_v43 = vsel %vm1498_vm1, %v4911_v33, %v4208_v48  ;;  %v1774_v50 = vsel %vm1498_vm1, %v4917_v19, %v4209_v57  ;;  %2836 = vmatmul.mubr.bf16.vlgmr.msra.gmra.mrb[20].mxu1 %v1785_v25  ;;  %v2888_v33 = vld [vmem:[%s5334_s4 + $0x8] sm:$0xff]  ;;  %v2889_v19 = vld [vmem:[%s5334_s4 + $0x10] sm:$0xff]  ;;  %v2999_v57 = vld [vmem:[%s5336_s6 + $0x60] sm:$0xff]  ;;  %4210 = vset.pattern.permute.xlu1 %v4438_v46 }
 0x230   : > { %v1787_v49 = vpack.c.bf16 %v1774_v50, %v1773_v43  ;;  %v3915_v62 = vpack.c.bf16 %v2888_v33, %v2887_v61  ;;  %v3919_v22 = vpack.c.bf16 %v2890_v11, %v2889_v19  ;;  %v3000_v48 = vld [vmem:[%s5336_s6 + $0x68] sm:$0xff] }
 0x232   : > { %3842 = vmatmul.mubr.msk.bf16.vlgmr.msra.gmra.mrb[100].mxu0 %vm1501_vm2, %v1787_v49  ;;  %3916 = vmatprep.subr.bf16.mxu1 %v3915_v62  ;;  %v3971_v49 = vpack.c.bf16 %v3000_v48, %v2999_v57 }
 0x233   : > { %3918 = vmatpush3.bf16.msra.mxu1 %v3915_v62  ;;  %3950 = vmatpush3.bf16.msra.mxu0 %v3947_v35 }
 0x234   : > { %3920 = vmatprep.subr.bf16.mxu1 %v3919_v22  ;;  %3952 = vmatprep.subr.bf16.mxu0 %v3951_v60 }
 0x237   : > { %3922 = vmatpush3.bf16.msra.mxu1 %v3919_v22  ;;  %3954 = vmatpush3.bf16.msra.mxu0 %v3951_v60 }
 0x238   : > { %3924 = vmatprep.subr.bf16.mxu1 %v3923_v4  ;;  %3956 = vmatprep.subr.bf16.mxu0 %v3955_v37 }
 0x23b   : > { %3926 = vmatpush3.bf16.msra.mxu1 %v3923_v4  ;;  %3958 = vmatpush3.bf16.msra.mxu0 %v3955_v37  ;;  %v3499_v37 = vld [vmem:[#allocation2] ss:$0 sm:$0xff] }
 0x23c   : > { %3928 = vmatprep.subr.bf16.mxu1 %v3927_v42  ;;  %3960 = vmatprep.subr.bf16.mxu0 %v3959_v0 }
 0x23f   : > { %3930 = vmatpush3.bf16.msra.mxu1 %v3927_v42  ;;  %3962 = vmatpush3.bf16.msra.mxu0 %v3959_v0 }
 0x240   : > { %3932 = vmatprep.subr.bf16.mxu1 %v3931_v28  ;;  %3964 = vmatprep.subr.bf16.mxu0 %v3963_v16 }
 0x243   : > { %3934 = vmatpush3.bf16.msra.mxu1 %v3931_v28  ;;  %3966 = vmatpush3.bf16.msra.mxu0 %v3963_v16 }
 0x244   : > { %3936 = vmatprep.subr.bf16.mxu1 %v3935_v12  ;;  %3968 = vmatprep.subr.bf16.mxu0 %v3967_v47 }
 0x247   : > { %3938 = vmatpush3.bf16.msra.mxu1 %v3935_v12  ;;  %3970 = vmatpush3.bf16.msra.mxu0 %v3967_v47 }
 0x248   : > { %3940 = vmatprep.subr.bf16.mxu1 %v3939_v24  ;;  %3972 = vmatprep.subr.bf16.mxu0 %v3971_v49 }
 0x24b   : > { %3942 = vmatpush3.bf16.msra.mxu1 %v3939_v24  ;;  %3974 = vmatpush3.bf16.msra.mxu0 %v3971_v49 }
 0x24c   : > { %3944 = vmatprep.subr.bf16.mxu1 %v3943_v52 }
 0x24f   : > { %3946 = vmatpush3.bf16.msra.mxu1 %v3943_v52 }
 0x261   : > { %v3574_v51 = vpop.f32.mrb[0].mxu1 }
 0x262   : > { %v3575_v53 = vpop.f32.mrb[1].mxu1 }
 0x263   : > { %v3576_v55 = vadd.f32 %v3575_v53, %v3574_v51  ;;  %v3577_v56 = vpop.f32.mrb[2].mxu1 }
 0x264   : > { %v3578_v58 = vpop.f32.mrb[3].mxu1 }
 0x265   : > { %v3579_v59 = vadd.f32 %v3578_v58, %v3577_v56  ;;  %v2633_v18 = vadd.f32 %v3576_v55, %v3396_v13 }
 0x267   : > { %v2636_v25 = vadd.f32 %v3579_v59, %v3396_v13 }
 0x282   : > { %v3596_v14 = vpop.f32.mrb[4].mxu1 }
 0x283   : > { %v3597_v3 = vpop.f32.mrb[5].mxu1 }
 0x284   : > { %v3598_v21 = vadd.f32 %v3597_v3, %v3596_v14  ;;  %v3599_v23 = vpop.f32.mrb[6].mxu1 }
 0x285   : > { %v3600_v30 = vpop.f32.mrb[7].mxu1 }
 0x286   : > { %v2674_v63 = vadd.f32 %v3598_v21, %v2633_v18  ;;  %v3601_v7 = vadd.f32 %v3600_v30, %v3599_v23 }
 0x288   : > { %v2677_v29 = vadd.f32 %v3601_v7, %v2636_v25 }
 0x2a2   : > { %v3618_v43 = vpop.f32.mrb[8].mxu1 }
 0x2a3   : > { %v3619_v50 = vpop.f32.mrb[9].mxu1 }
 0x2a4   : > { %v3620_v51 = vadd.f32 %v3619_v50, %v3618_v43  ;;  %v3621_v53 = vpop.f32.mrb[10].mxu1 }
 0x2a5   : > { %v3622_v55 = vpop.f32.mrb[11].mxu1 }
 0x2a6   : > { %v2715_v56 = vadd.f32 %v3620_v51, %v2674_v63  ;;  %v3623_v58 = vadd.f32 %v3622_v55, %v3621_v53 }
 0x2a8   : > { %v2718_v59 = vadd.f32 %v3623_v58, %v2677_v29  ;;  %v3002_v29 = vld [vmem:[%s5336_s6 + $0x78] sm:$0xff] }
 0x2a9   : > { %v3975_v52 = vpack.c.bf16 %v3002_v29, %v3001_v27 }
 0x2ab   : > { %3976 = vmatprep.subr.bf16.mxu0 %v3975_v52 }
 0x2ac   : > { %3978 = vmatpush3.bf16.msra.mxu0 %v3975_v52 }
 0x2c2   : > { %v3640_v61 = vpop.f32.mrb[12].mxu1 }
 0x2c3   : > { %v3641_v33 = vpop.f32.mrb[13].mxu1 }
 0x2c4   : > { %v3642_v19 = vadd.f32 %v3641_v33, %v3640_v61  ;;  %v3643_v62 = vpop.f32.mrb[14].mxu1 }
 0x2c5   : > { %v3644_v11 = vpop.f32.mrb[15].mxu1 }
 0x2c6   : > { %v2756_v22 = vadd.f32 %v3642_v19, %v2715_v56  ;;  %v3645_v1 = vadd.f32 %v3644_v11, %v3643_v62 }
 0x2c8   : > { %v2759_v2 = vadd.f32 %v3645_v1, %v2718_v59 }
 0x2e2   : > { %v3662_v4 = vpop.f32.mrb[16].mxu1 }
 0x2e3   : > { %v3663_v5 = vpop.f32.mrb[17].mxu1 }
 0x2e4   : > { %v3664_v8 = vadd.f32 %v3663_v5, %v3662_v4  ;;  %v3665_v42 = vpop.f32.mrb[18].mxu1 }
 0x2e5   : > { %v3666_v45 = vpop.f32.mrb[19].mxu1 }
 0x2e6   : > { %v2797_v9 = vadd.f32 %v3664_v8, %v2756_v22  ;;  %v3667_v28 = vadd.f32 %v3666_v45, %v3665_v42 }
 0x2e8   : > { %v2800_v32 = vadd.f32 %v3667_v28, %v2759_v2 }
 0x302   : > { %v3684_v10 = vpop.f32.mrb[20].mxu1 }
 0x303   : > { %v3685_v12 = vpop.f32.mrb[21].mxu1 }
 0x304   : > { %v3686_v13 = vadd.f32 %v3685_v12, %v3684_v10  ;;  %v3687_v14 = vpop.f32.mrb[22].mxu1  ;;  %v3119_v10 = vld [vmem:[%s448_s16] sm:$0xff] }
 0x305   : > { %v3688_v3 = vpop.f32.mrb[23].mxu1  ;;  %v2878_v6 = vpop.f32.mrb[100].mxu0 }
 0x306   : > { %v3689_v17 = vadd.f32 %v3688_v3, %v3687_v14  ;;  %v2838_v18 = vadd.f32 %v3686_v13, %v2797_v9  ;;  %v3843_v21 = vpop.f32.mrb[101].mxu0 }
 0x307   : > { %v2881_v23 = vpop.f32.mrb[102].mxu0 }
 0x308   : > { %v2879_v24 = vadd.f32 %v2878_v6, %v2838_v18  ;;  %v2841_v30 = vadd.f32 %v3689_v17, %v2800_v32  ;;  %v3844_v25 = vpop.f32.mrb[103].mxu0  ;;  %v3120_v32 = vld [vmem:[%s448_s16 + $0x8] sm:$0xff]  ;;  %s4375_s16 = scalar_lea.vmem %s4374_s18, 32 }
 0x309   : > { %p4377_p1 = scmp.lt.s32.totalorder %s4375_s16, %s4369_s12 }
 0x30a   : > { %v2885_v63 = vmax.f32 %v2879_v24, 0.0  ;;  %v2882_v7 = vadd.f32 %v2881_v23, %v2841_v30 }
 0x30b   : > { %p4378_p2 = por %p4377_p1, %p4376_p0 }
 0x30c   : > { %v2886_v26 = vmax.f32 %v2882_v7, 0.0  ;;  %3877 = vmatprep.mubr.f32.mxu1 %v2885_v63 }
 0x30d   : > { %p4379_p3 = pnand %p4378_p2, %p4372_p13 }
 0x30e   : > { %3878 = vmatmul.mubr.f32.vlgmr.msra.gmra.mrb[24].mxu1 %v2886_v26 }
 0x3e1   : > { %v3879_v31 = vpop.f32.mrb[24].mxu1 }
 0x3e2   : > { %v2982_v34 = vadd.f32 %v3879_v31, %v3498_v15  ;;  %v2976_v35 = vpop.f32.mrb[25].mxu1 }
 0x3e3   : > { %v2977_v36 = vadd.f32 %v3498_v15, %v2976_v35 }
 0x3e4   : > { %v2986_v41 = vmax.f32 %v2982_v34, 0.0 }
 0x3e5   : > { %v2985_v60 = vmax.f32 %v2977_v36, 0.0 }
 0x3e7   : > { %3912 = vmatprep.mubr.f32.mxu0 %v2985_v60 }
 0x3e8   : > { %3913 = vmatmul.mubr.f32.vlgmr.msra.gmra.mrb[104].mxu0 %v2986_v41 }
 0x4bb   : > { %v3914_v38 = vpop.f32.mrb[104].mxu0 }
 0x4bc   : > { %v3082_v0 = vadd.f32 %v3914_v38, %v3499_v37  ;;  %v3076_v40 = vpop.f32.mrb[105].mxu0 }
 0x4bd   : > { %v3077_v16 = vadd.f32 %v3499_v37, %v3076_v40 }
 0x4be   : > { %v3088_v20 = vmul.f32 %v3086_v39, %v3082_v0 }
 0x4bf   : > { %v3087_v54 = vmul.f32 %v3085_v44, %v3077_v16 }
 0x4c0   : > { %v3091_v47 = vsel %vm3089_vm5, %v3088_v20, -inf }
 0x4c1   : > { %v3090_v57 = vsel %vm3089_vm5, %v3087_v54, -inf }
 0x4c2   : > { %v3092_v48 = vmax.f32 %v3090_v57, %v3091_v47 }
 0x4c4   : > { %v3093_v43 = vrot.slane %v3092_v48, 4 }
 0x4c6   : > { %v3094_v50 = vmax.f32 %v3092_v48, %v3093_v43 }
 0x4c8   : > { %v3095_v49 = vrot.slane %v3094_v50, 2 }
 0x4ca   : > { %v3096_v51 = vmax.f32 %v3094_v50, %v3095_v49 }
 0x4cc   : > { %v3097_v53 = vrot.slane %v3096_v51, 1 }
 0x4ce   : > { %v3098_v55 = vmax.f32 %v3096_v51, %v3097_v53 }
 0x4d0   : > { %v3099_v56 = vsub.f32 %v3087_v54, %v3098_v55  ;;  %v3100_v58 = vsub.f32 %v3088_v20, %v3098_v55 }
 0x4d2   : > { %v3101_v59 = vmul.f32 1.442695, %v3099_v56  ;;  %v3103_v61 = vmul.f32 1.442695, %v3100_v58 }
 0x4d4   : > { %4363 = vpow2.f32 %v3101_v59 }
 0x4d5   : > { %4365 = vpow2.f32 %v3103_v61 }
 0x4de   : > { %v4364_v33 = vpop.eup %4363 }
 0x4df   : > { %v4366_v19 = vpop.eup %4365  ;;  %v3105_v62 = vsel %vm3089_vm5, %v4364_v33, 0.0 }
 0x4e0   : > { %v3106_v11 = vsel %vm3089_vm5, %v4366_v19, 0.0 }
 0x4e1   : > { %v3107_v22 = vadd.f32 %v3106_v11, %v3105_v62 }
 0x4e3   : > { %v3108_v1 = vrot.slane %v3107_v22, 4 }
 0x4e5   : > { %v3109_v2 = vadd.f32 %v3108_v1, %v3107_v22 }
 0x4e7   : > { %v3110_v4 = vrot.slane %v3109_v2, 2 }
 0x4e9   : > { %v3111_v5 = vadd.f32 %v3110_v4, %v3109_v2 }
 0x4eb   : > { %v3112_v8 = vrot.slane %v3111_v5, 1 }
 0x4ed   : > { %v3113_v42 = vadd.f32 %v3112_v8, %v3111_v5 }
 0x4ef   : > { %4367 = vrcp.f32 %v3113_v42 }
 0x4f9   : > { %v4368_v45 = vpop.eup %4367 }
 0x4fa   : > { %v3116_v9 = vmul.f32 %v4368_v45, %v4366_v19  ;;  %v3115_v28 = vmul.f32 %v4368_v45, %v4364_v33 }
 0x4fc   : > { %3128 = vperm.xlu0 %4211, %v3116_v9   ;;  %3118 = vst.msk [vmem:[%s458_s25 + $0x8] sm:$0xff] %vm3089_vm5, %v3116_v9  ;;  %3123 = vperm.xlu1 %4210, %v3115_v28   ;;  %3117 = vst.msk [vmem:[%s458_s25] sm:$0xff] %vm3089_vm5, %v3115_v28  ;;  %s3146_s25 = scalar_lea.sflag [#allocation4], %s425_s13 }
 0x57b   : > { %v3129_v12 = vpop.permute.xlu0 %3128  ;;  %v3124_v13 = vpop.permute.xlu1 %3123 }
 0x57c   : > { %v3132_v14 = vmul.f32 %v3129_v12, %v3120_v32  ;;  %v3131_v3 = vmul.f32 %v3124_v13, %v3119_v10 }
 0x57e   : > { %v3135_v6 = vsel %vm3133_vm6, %v3132_v14, 0.0  ;;  %v3134_v17 = vsel %vm3133_vm6, %v3131_v3, 0.0 }
 0x57f   : > { %v3136_v18 = vadd.f32 %v3135_v6, %v3134_v17 }
 0x581   : > { %v3137_v21 = vrot.slane %v3136_v18, 4 }
 0x583   : > { %v3138_v23 = vadd.f32 %v3137_v21, %v3136_v18 }
 0x585   : > { %v3139_v24 = vrot.slane %v3138_v23, 2 }
 0x587   : > { %v3140_v30 = vadd.f32 %v3139_v24, %v3138_v23 }
 0x589   : > { %v3141_v25 = vrot.slane %v3140_v30, 1 }
 0x58b   : > { %v3142_v63 = vadd.f32 %v3141_v25, %v3140_v30 }
 0x58d   : > { %3144 = vst.msk [vmem:[%s426_s15] sm:$0x1] %vm3143_vm7, %v3142_v63 }
 0x58e   : > { %4382 = shalt.err (!%p4379_p3)
}
 0x58f   : > { %s4383_s13 = scalar_lea.hbm %s5288_s23, 16  ;;  %s4387_s17 = scalar_lea.hbm %s5340_s10, 32 }
 0x590   : > { %p4384_p4 = scmp.ne.s32.totalorder %s5288_s23, %s4383_s13  ;;  %p4388_p9 = scmp.lt.u32.totalorder %s5288_s23, %s5340_s10 }
 0x591   : > { %p4389_p10 = scmp.lt.u32.totalorder %s4387_s17, %s4383_s13  ;;  %p4391_p12 = scmp.lt.u32.totalorder %s4383_s13, %s5288_s23 }
 0x592   : > { %p4385_p7 = pnand %p4384_p4, %p4541_p5 }
 0x593   : > { %p4390_p11 = por %p4389_p10, %p4388_p9 }
 0x594   : > { %p4386_p8 = pneg %p4385_p7 }
 0x595   : > { %p4392_p13 = por %p4391_p12, %p4390_p11 }
 0x597   : > { %p4393_p0 = pnand %p4392_p13, %p4386_p8 }
 0x599   : > { %4396 = shalt.err (!%p4393_p0)
}
 0x59a   : > { %3980 = dma.vmem_to_hbm [thread:$0]  (%p4541_p5), %s5290_s26, 16, %s5288_s23, %s3146_s25  }
 0x59b PF: > { %p3986_p1 = scmp.ge.s32.totalorder %s4431_s22, 2  ;;  %s3178_s12 = sand.u32 1, %s4419_s19  }
 0x59c   : > { %s3179_s18 = scalar_lea.sflag [#allocation4], %s3178_s12 }
 0x59d   : > { %p3983_p2 = pnand %p3986_p1, %p4545_p6 }
 0x59f   : > { %4414 = dma.done.wait (!%p3983_p2), %s3179_s18, 16  }
 0x5a0   : > { %4416 = vsyncadd (!%p3983_p2), %s3179_s18, 4294967280  ;;  %p24_p3 = scmp.ge.s32.totalorder %s4528_s24, 4   ;;  %s5344_s19 = smov %s4423_s20 }
 0x5a1   : > { %s5345_s20 = smov %s4427_s21  ;;  %s5346_s21 = smov %s4539_s27 }
 0x5a2   : > { %s5347_s22 = smov %s4528_s24  ;;  %26 = sbr.rel (!%p24_p3) target bundleno = 6 (0x6), region = 116 }
 0x5a9   :  { %3191 = vsyncpa [#allocation4], 1 }
 0x5aa   :  { %3193 = vsyncpa [#allocation4 + $0x1], 1 }

</bundles_post_ra>
